<compile_context>
chip_gen: v7x
topology: tpu7x:2x2x1
jax: 0.10.0
libtpu: 0.0.40
codegen_flags: <defaults>
</compile_context>

<pallas_src>
import functools

import jax
import jax.numpy as jnp
import numpy as np
from jax import lax
from jax.experimental import pallas as pl
from jax.experimental.pallas import tpu as pltpu

_LANE = 128
_SUBLANE = 8


def _round_up(x, m):
    return (x + m - 1) // m * m


def _lstm_kernel(x_ref, w_emb_ref, b_emb_ref, w_cat_ref, b_g_ref, w_out_ref,
                 b_out_ref, o_ref, emb_ref, hs_ref, *, n_layers, h_pad,
                 seq_len, b_pad):
    # ---- Pre-pass: embedding for ALL timesteps in one MXU matmul ----------
    x2d = x_ref[...].reshape(seq_len * b_pad, -1)          # (T*B, in_pad)
    emb = jnp.dot(x2d, w_emb_ref[...],
                  preferred_element_type=jnp.float32) + b_emb_ref[...]
    emb_ref[...] = emb.reshape(seq_len, b_pad, h_pad)

    # ---- Sequential recurrence over time; (h, c) carried in registers -----
    zero = jnp.zeros((b_pad, h_pad), jnp.float32)

    def step(t, carry):
        hs, cs = carry
        h_in = emb_ref[t]                                   # (B, H)
        new_hs, new_cs = [], []
        for l in range(n_layers):                           # unrolled (static)
            hcat = jnp.concatenate([h_in, hs[l]], axis=-1)  # (B, 2H)
            gates = jnp.dot(hcat, w_cat_ref[l],
                            preferred_element_type=jnp.float32) + b_g_ref[l]
            # h_pad is a multiple of 128 -> lane-aligned, relayout-free slices.
            i_g = jax.nn.sigmoid(gates[:, 0 * h_pad:1 * h_pad])
            f_g = jax.nn.sigmoid(gates[:, 1 * h_pad:2 * h_pad])
            g_g = jnp.tanh(gates[:, 2 * h_pad:3 * h_pad])
            o_g = jax.nn.sigmoid(gates[:, 3 * h_pad:4 * h_pad])
            c_new = f_g * cs[l] + i_g * g_g
            h_new = o_g * jnp.tanh(c_new)
            new_hs.append(h_new)
            new_cs.append(c_new)
            h_in = h_new
        hs_ref[t] = h_in                                    # top-layer hidden
        return tuple(new_hs), tuple(new_cs)

    init = (tuple(zero for _ in range(n_layers)),
            tuple(zero for _ in range(n_layers)))
    lax.fori_loop(0, seq_len, step, init, unroll=True)

    # ---- Post-pass: output projection for ALL timesteps in one matmul -----
    hs2d = hs_ref[...].reshape(seq_len * b_pad, h_pad)
    out = jnp.dot(hs2d, w_out_ref[...],
                  preferred_element_type=jnp.float32) + b_out_ref[...]
    o_ref[...] = out.reshape(seq_len, b_pad, -1).astype(o_ref.dtype)


def _pad_params(params, *, n_layers, hidden, in_dim, out_dim):
    """Zero-pad params to lane/sublane-friendly sizes; fuse w_ih/w_hh."""
    h_pad = _round_up(hidden, _LANE)
    in_pad = _round_up(in_dim, _LANE)
    out_pad = _round_up(out_dim, _LANE)

    w_emb = jnp.zeros((in_pad, h_pad), jnp.float32)
    w_emb = w_emb.at[:in_dim, :hidden].set(params["w_emb"])
    b_emb = jnp.zeros((1, h_pad), jnp.float32).at[:, :hidden].set(
        params["b_emb"])

    # Fused gate weight: rows [0:H] multiply h_in, rows [H_pad:H_pad+H]
    # multiply h_prev; gate g occupies columns [g*h_pad : g*h_pad + hidden].
    w_cat = jnp.zeros((n_layers, 2 * h_pad, 4 * h_pad), jnp.float32)
    b_g = jnp.zeros((n_layers, 1, 4 * h_pad), jnp.float32)
    for g in range(4):
        src_cols = slice(g * hidden, (g + 1) * hidden)
        dst_cols = slice(g * h_pad, g * h_pad + hidden)
        w_cat = w_cat.at[:, :hidden, dst_cols].set(
            params["w_ih"][:, :, src_cols])
        w_cat = w_cat.at[:, h_pad:h_pad + hidden, dst_cols].set(
            params["w_hh"][:, :, src_cols])
        b_g = b_g.at[:, :, dst_cols].set(params["b_gates"][:, :, src_cols])

    w_out = jnp.zeros((h_pad, out_pad), jnp.float32)
    w_out = w_out.at[:hidden, :out_dim].set(params["w_out"])
    b_out = jnp.zeros((1, out_pad), jnp.float32).at[:, :out_dim].set(
        params["b_out"])
    return dict(w_emb=w_emb, b_emb=b_emb, w_cat=w_cat, b_g=b_g, w_out=w_out,
                b_out=b_out, h_pad=h_pad, in_pad=in_pad, out_pad=out_pad)


def base_processing_lstm(x, params, *, n_layers, hidden):
    """x: (B, T, in_dim) float32. Returns (B, T, out_dim)."""
    B, T, in_dim = x.shape
    out_dim = params["w_out"].shape[1]

    p = _pad_params(params, n_layers=n_layers, hidden=hidden, in_dim=in_dim,
                    out_dim=out_dim)
    h_pad, in_pad, out_pad = p["h_pad"], p["in_pad"], p["out_pad"]
    b_pad = _round_up(B, _SUBLANE)

    # Time-major, batch padded to sublane multiple, input padded to lane mult.
    x_tm = jnp.transpose(x, (1, 0, 2)).astype(jnp.float32)      # (T, B, in)
    x_p = jnp.zeros((T, b_pad, in_pad), jnp.float32)
    x_p = x_p.at[:, :B, :in_dim].set(x_tm)

    kernel = functools.partial(_lstm_kernel, n_layers=n_layers, h_pad=h_pad,
                               seq_len=T, b_pad=b_pad)

    vmem_spec = pl.BlockSpec(memory_space=pltpu.MemorySpace.VMEM)

    out_p = pl.pallas_call(
        kernel,
        out_shape=jax.ShapeDtypeStruct((T, b_pad, out_pad), jnp.float32),
        in_specs=[vmem_spec] * 7,
        out_specs=vmem_spec,
        scratch_shapes=[
            pltpu.VMEM((T, b_pad, h_pad), jnp.float32),   # embedded inputs
            pltpu.VMEM((T, b_pad, h_pad), jnp.float32),   # top-layer hiddens
        ],
    )(x_p, p["w_emb"], p["b_emb"], p["w_cat"], p["b_g"], p["w_out"],
      p["b_out"])

    # Drop padding, back to (B, T, out_dim).
    return jnp.transpose(out_p[:, :B, :out_dim], (1, 0, 2))


def init_params(key, in_dim, hidden, out_dim, n_layers):
    ks = jax.random.split(key, 8)
    scale = 0.1
    w_emb = scale * jax.random.normal(ks[0], (in_dim, hidden), jnp.float32)
    b_emb = scale * jax.random.normal(ks[1], (1, hidden), jnp.float32)
    w_ih = scale * jax.random.normal(ks[2], (n_layers, hidden, 4 * hidden),
                                     jnp.float32)
    w_hh = scale * jax.random.normal(ks[3], (n_layers, hidden, 4 * hidden),
                                     jnp.float32)
    b_ih = scale * jax.random.normal(ks[4], (n_layers, 4 * hidden), jnp.float32)
    b_hh = scale * jax.random.normal(ks[5], (n_layers, 4 * hidden), jnp.float32)
    # CustomLSTMCell.init_bias: forget-gate segment [H:2H] of each bias <- 1.0
    b_ih = b_ih.at[:, hidden:2 * hidden].set(1.0)
    b_hh = b_hh.at[:, hidden:2 * hidden].set(1.0)
    b_gates = (b_ih + b_hh)[:, None, :]  # (L, 1, 4H)
    w_out = scale * jax.random.normal(ks[6], (hidden, out_dim), jnp.float32)
    b_out = scale * jax.random.normal(ks[7], (1, out_dim), jnp.float32)
    return dict(w_emb=w_emb, b_emb=b_emb, w_ih=w_ih, w_hh=w_hh,
                b_gates=b_gates, w_out=w_out, b_out=b_out)


def reference_forward(x, params, *, n_layers, hidden):
    """Pure-JAX reference mirroring the PyTorch module, for verification."""
    B, T, _ = x.shape
    h = jnp.zeros((n_layers, B, hidden), jnp.float32)
    c = jnp.zeros((n_layers, B, hidden), jnp.float32)
    outs = []
    for t in range(T):
        h_in = x[:, t] @ params["w_emb"] + params["b_emb"]
        for l in range(n_layers):
            gates = (h_in @ params["w_ih"][l] + h[l] @ params["w_hh"][l]
                     + params["b_gates"][l])
            i_g = jax.nn.sigmoid(gates[:, 0 * hidden:1 * hidden])
            f_g = jax.nn.sigmoid(gates[:, 1 * hidden:2 * hidden])
            g_g = jnp.tanh(gates[:, 2 * hidden:3 * hidden])
            o_g = jax.nn.sigmoid(gates[:, 3 * hidden:4 * hidden])
            c_new = f_g * c[l] + i_g * g_g
            h_new = o_g * jnp.tanh(c_new)
            h = h.at[l].set(h_new)
            c = c.at[l].set(c_new)
            h_in = h_new
        outs.append(h_in @ params["w_out"] + params["b_out"])
    return jnp.stack(outs, axis=1)


if __name__ == "__main__":
    B, T = 4, 8
    in_dim, hidden, out_dim, n_layers = 16, 32, 16, 2

    key = jax.random.PRNGKey(0)
    k_x, k_p = jax.random.split(key)
    x = jax.random.normal(k_x, (B, T, in_dim), jnp.float32)
    params = init_params(k_p, in_dim, hidden, out_dim, n_layers)

    out = base_processing_lstm(x, params, n_layers=n_layers, hidden=hidden)
    out = jax.block_until_ready(out)

    ref = reference_forward(x, params, n_layers=n_layers, hidden=hidden)
    np.testing.assert_allclose(np.asarray(out), np.asarray(ref),
                               rtol=1e-4, atol=1e-4)
    print("KERNEL_OK")
</pallas_src>

<mosaic_0001>
module attributes {stable_mosaic.version = 11 : i64} {
  func.func @_lstm_kernel(%arg0: memref<8x8x128xf32, #tpu.memory_space<vmem>>, %arg1: memref<128x128xf32, #tpu.memory_space<vmem>>, %arg2: memref<1x128xf32, #tpu.memory_space<vmem>>, %arg3: memref<2x256x512xf32, #tpu.memory_space<vmem>>, %arg4: memref<2x1x512xf32, #tpu.memory_space<vmem>>, %arg5: memref<128x128xf32, #tpu.memory_space<vmem>>, %arg6: memref<1x128xf32, #tpu.memory_space<vmem>>, %arg7: memref<8x8x128xf32, #tpu.memory_space<vmem>>, %arg8: memref<8x8x128xf32, #tpu.memory_space<vmem>>, %arg9: memref<8x8x128xf32, #tpu.memory_space<vmem>>) attributes {dimension_semantics = [], scalar_prefetch = 0 : i64, scratch_operands = 2 : i64, tpu.core_type = #tpu.core_type<tc>} {
    %c0 = arith.constant 0 : index
    %c0_0 = arith.constant 0 : index
    %c0_1 = arith.constant 0 : index
    %0 = vector.load %arg0[%c0, %c0_0, %c0_1] : memref<8x8x128xf32, #tpu.memory_space<vmem>>, vector<8x8x128xf32>
    %1 = vector.shape_cast %0 : vector<8x8x128xf32> to vector<64x128xf32>
    %c0_2 = arith.constant 0 : index
    %c0_3 = arith.constant 0 : index
    %2 = vector.load %arg1[%c0_2, %c0_3] : memref<128x128xf32, #tpu.memory_space<vmem>>, vector<128x128xf32>
    %cst = arith.constant dense<0.000000e+00> : vector<64x128xf32>
    %3 = tpu.matmul %1, %2, %cst {dimension_numbers = #tpu.dot_dimension_numbers<[1], [0], [0], [1], [0, 0, 1, 1], [], []>} : vector<64x128xf32>, vector<128x128xf32>, vector<64x128xf32> -> vector<64x128xf32>
    %c0_4 = arith.constant 0 : index
    %c0_5 = arith.constant 0 : index
    %4 = vector.load %arg2[%c0_4, %c0_5] : memref<1x128xf32, #tpu.memory_space<vmem>>, vector<1x128xf32>
    %5 = vector.broadcast %4 : vector<1x128xf32> to vector<64x128xf32>
    %6 = arith.addf %3, %5 : vector<64x128xf32>
    %7 = vector.shape_cast %6 : vector<64x128xf32> to vector<8x8x128xf32>
    %c0_6 = arith.constant 0 : index
    %c0_7 = arith.constant 0 : index
    %c0_8 = arith.constant 0 : index
    %8 = vector.load %arg8[%c0_6, %c0_7, %c0_8] : memref<8x8x128xf32, #tpu.memory_space<vmem>>, vector<8x8x128xf32>
    tpu.vector_store %arg8[%c0_6, %c0_7, %c0_8], %7 {strides = array<i32>} : memref<8x8x128xf32, #tpu.memory_space<vmem>>, vector<8x8x128xf32>,
    %cst_9 = arith.constant 0.000000e+00 : f32
    %9 = vector.broadcast %cst_9 : f32 to vector<8x128xf32>
    %c0_i32 = arith.constant 0 : i32
    %10 = arith.index_cast %c0_i32 : i32 to index
    %c0_10 = arith.constant 0 : index
    %c0_11 = arith.constant 0 : index
    %11 = vector.load %arg8[%10, %c0_10, %c0_11] : memref<8x8x128xf32, #tpu.memory_space<vmem>>, vector<1x8x128xf32>
    %12 = vector.shape_cast %11 : vector<1x8x128xf32> to vector<8x128xf32>
    %13 = tpu.concatenate %12, %9 in 1 : vector<8x128xf32>, vector<8x128xf32> -> vector<8x256xf32>
    %c0_12 = arith.constant 0 : index
    %c0_13 = arith.constant 0 : index
    %c0_14 = arith.constant 0 : index
    %14 = vector.load %arg3[%c0_12, %c0_13, %c0_14] : memref<2x256x512xf32, #tpu.memory_space<vmem>>, vector<1x256x512xf32>
    %15 = vector.shape_cast %14 : vector<1x256x512xf32> to vector<256x512xf32>
    %cst_15 = arith.constant dense<0.000000e+00> : vector<8x512xf32>
    %16 = tpu.matmul %13, %15, %cst_15 {dimension_numbers = #tpu.dot_dimension_numbers<[1], [0], [0], [1], [0, 0, 1, 1], [], []>} : vector<8x256xf32>, vector<256x512xf32>, vector<8x512xf32> -> vector<8x512xf32>
    %c0_16 = arith.constant 0 : index
    %c0_17 = arith.constant 0 : index
    %c0_18 = arith.constant 0 : index
    %17 = vector.load %arg4[%c0_16, %c0_17, %c0_18] : memref<2x1x512xf32, #tpu.memory_space<vmem>>, vector<1x1x512xf32>
    %18 = vector.shape_cast %17 : vector<1x1x512xf32> to vector<1x512xf32>
    %19 = vector.broadcast %18 : vector<1x512xf32> to vector<8x512xf32>
    %20 = arith.addf %16, %19 : vector<8x512xf32>
    %21 = vector.extract_strided_slice %20 {offsets = [0, 0], sizes = [8, 128], strides = [1, 1]} : vector<8x512xf32> to vector<8x128xf32>
    %22 = arith.negf %21 : vector<8x128xf32>
    %23 = math.exp %22 : vector<8x128xf32>
    %cst_19 = arith.constant 1.000000e+00 : f32
    %24 = vector.broadcast %cst_19 : f32 to vector<8x128xf32>
    %25 = arith.addf %24, %23 : vector<8x128xf32>
    %26 = arith.divf %24, %25 : vector<8x128xf32>
    %27 = vector.extract_strided_slice %20 {offsets = [0, 128], sizes = [8, 128], strides = [1, 1]} : vector<8x512xf32> to vector<8x128xf32>
    %28 = arith.negf %27 : vector<8x128xf32>
    %29 = math.exp %28 : vector<8x128xf32>
    %cst_20 = arith.constant 1.000000e+00 : f32
    %30 = vector.broadcast %cst_20 : f32 to vector<8x128xf32>
    %31 = arith.addf %30, %29 : vector<8x128xf32>
    %32 = arith.divf %30, %31 : vector<8x128xf32>
    %33 = vector.extract_strided_slice %20 {offsets = [0, 256], sizes = [8, 128], strides = [1, 1]} : vector<8x512xf32> to vector<8x128xf32>
    %34 = math.tanh %33 : vector<8x128xf32>
    %35 = vector.extract_strided_slice %20 {offsets = [0, 384], sizes = [8, 128], strides = [1, 1]} : vector<8x512xf32> to vector<8x128xf32>
    %36 = arith.negf %35 : vector<8x128xf32>
    %37 = math.exp %36 : vector<8x128xf32>
    %cst_21 = arith.constant 1.000000e+00 : f32
    %38 = vector.broadcast %cst_21 : f32 to vector<8x128xf32>
    %39 = arith.addf %38, %37 : vector<8x128xf32>
    %40 = arith.divf %38, %39 : vector<8x128xf32>
    %41 = arith.mulf %32, %9 : vector<8x128xf32>
    %42 = arith.mulf %26, %34 : vector<8x128xf32>
    %43 = arith.addf %41, %42 : vector<8x128xf32>
    %44 = math.tanh %43 : vector<8x128xf32>
    %45 = arith.mulf %40, %44 : vector<8x128xf32>
    %46 = tpu.concatenate %45, %9 in 1 : vector<8x128xf32>, vector<8x128xf32> -> vector<8x256xf32>
    %c1 = arith.constant 1 : index
    %c0_22 = arith.constant 0 : index
    %c0_23 = arith.constant 0 : index
    %47 = vector.load %arg3[%c1, %c0_22, %c0_23] : memref<2x256x512xf32, #tpu.memory_space<vmem>>, vector<1x256x512xf32>
    %48 = vector.shape_cast %47 : vector<1x256x512xf32> to vector<256x512xf32>
    %cst_24 = arith.constant dense<0.000000e+00> : vector<8x512xf32>
    %49 = tpu.matmul %46, %48, %cst_24 {dimension_numbers = #tpu.dot_dimension_numbers<[1], [0], [0], [1], [0, 0, 1, 1], [], []>} : vector<8x256xf32>, vector<256x512xf32>, vector<8x512xf32> -> vector<8x512xf32>
    %c1_25 = arith.constant 1 : index
    %c0_26 = arith.constant 0 : index
    %c0_27 = arith.constant 0 : index
    %50 = vector.load %arg4[%c1_25, %c0_26, %c0_27] : memref<2x1x512xf32, #tpu.memory_space<vmem>>, vector<1x1x512xf32>
    %51 = vector.shape_cast %50 : vector<1x1x512xf32> to vector<1x512xf32>
    %52 = vector.broadcast %51 : vector<1x512xf32> to vector<8x512xf32>
    %53 = arith.addf %49, %52 : vector<8x512xf32>
    %54 = vector.extract_strided_slice %53 {offsets = [0, 0], sizes = [8, 128], strides = [1, 1]} : vector<8x512xf32> to vector<8x128xf32>
    %55 = arith.negf %54 : vector<8x128xf32>
    %56 = math.exp %55 : vector<8x128xf32>
    %cst_28 = arith.constant 1.000000e+00 : f32
    %57 = vector.broadcast %cst_28 : f32 to vector<8x128xf32>
    %58 = arith.addf %57, %56 : vector<8x128xf32>
    %59 = arith.divf %57, %58 : vector<8x128xf32>
    %60 = vector.extract_strided_slice %53 {offsets = [0, 128], sizes = [8, 128], strides = [1, 1]} : vector<8x512xf32> to vector<8x128xf32>
    %61 = arith.negf %60 : vector<8x128xf32>
    %62 = math.exp %61 : vector<8x128xf32>
    %cst_29 = arith.constant 1.000000e+00 : f32
    %63 = vector.broadcast %cst_29 : f32 to vector<8x128xf32>
    %64 = arith.addf %63, %62 : vector<8x128xf32>
    %65 = arith.divf %63, %64 : vector<8x128xf32>
    %66 = vector.extract_strided_slice %53 {offsets = [0, 256], sizes = [8, 128], strides = [1, 1]} : vector<8x512xf32> to vector<8x128xf32>
    %67 = math.tanh %66 : vector<8x128xf32>
    %68 = vector.extract_strided_slice %53 {offsets = [0, 384], sizes = [8, 128], strides = [1, 1]} : vector<8x512xf32> to vector<8x128xf32>
    %69 = arith.negf %68 : vector<8x128xf32>
    %70 = math.exp %69 : vector<8x128xf32>
    %cst_30 = arith.constant 1.000000e+00 : f32
    %71 = vector.broadcast %cst_30 : f32 to vector<8x128xf32>
    %72 = arith.addf %71, %70 : vector<8x128xf32>
    %73 = arith.divf %71, %72 : vector<8x128xf32>
    %74 = arith.mulf %65, %9 : vector<8x128xf32>
    %75 = arith.mulf %59, %67 : vector<8x128xf32>
    %76 = arith.addf %74, %75 : vector<8x128xf32>
    %77 = math.tanh %76 : vector<8x128xf32>
    %78 = arith.mulf %73, %77 : vector<8x128xf32>
    %79 = arith.index_cast %c0_i32 : i32 to index
    %c0_31 = arith.constant 0 : index
    %c0_32 = arith.constant 0 : index
    %80 = vector.load %arg9[%79, %c0_31, %c0_32] : memref<8x8x128xf32, #tpu.memory_space<vmem>>, vector<1x8x128xf32>
    %81 = vector.shape_cast %80 : vector<1x8x128xf32> to vector<8x128xf32>
    %82 = vector.shape_cast %78 : vector<8x128xf32> to vector<1x8x128xf32>
    tpu.vector_store %arg9[%79, %c0_31, %c0_32], %82 {strides = array<i32>} : memref<8x8x128xf32, #tpu.memory_space<vmem>>, vector<1x8x128xf32>,
    %c1_i32 = arith.constant 1 : i32
    %83 = arith.index_cast %c1_i32 : i32 to index
    %c0_33 = arith.constant 0 : index
    %c0_34 = arith.constant 0 : index
    %84 = vector.load %arg8[%83, %c0_33, %c0_34] : memref<8x8x128xf32, #tpu.memory_space<vmem>>, vector<1x8x128xf32>
    %85 = vector.shape_cast %84 : vector<1x8x128xf32> to vector<8x128xf32>
    %86 = tpu.concatenate %85, %45 in 1 : vector<8x128xf32>, vector<8x128xf32> -> vector<8x256xf32>
    %c0_35 = arith.constant 0 : index
    %c0_36 = arith.constant 0 : index
    %c0_37 = arith.constant 0 : index
    %87 = vector.load %arg3[%c0_35, %c0_36, %c0_37] : memref<2x256x512xf32, #tpu.memory_space<vmem>>, vector<1x256x512xf32>
    %88 = vector.shape_cast %87 : vector<1x256x512xf32> to vector<256x512xf32>
    %cst_38 = arith.constant dense<0.000000e+00> : vector<8x512xf32>
    %89 = tpu.matmul %86, %88, %cst_38 {dimension_numbers = #tpu.dot_dimension_numbers<[1], [0], [0], [1], [0, 0, 1, 1], [], []>} : vector<8x256xf32>, vector<256x512xf32>, vector<8x512xf32> -> vector<8x512xf32>
    %c0_39 = arith.constant 0 : index
    %c0_40 = arith.constant 0 : index
    %c0_41 = arith.constant 0 : index
    %90 = vector.load %arg4[%c0_39, %c0_40, %c0_41] : memref<2x1x512xf32, #tpu.memory_space<vmem>>, vector<1x1x512xf32>
    %91 = vector.shape_cast %90 : vector<1x1x512xf32> to vector<1x512xf32>
    %92 = vector.broadcast %91 : vector<1x512xf32> to vector<8x512xf32>
    %93 = arith.addf %89, %92 : vector<8x512xf32>
    %94 = vector.extract_strided_slice %93 {offsets = [0, 0], sizes = [8, 128], strides = [1, 1]} : vector<8x512xf32> to vector<8x128xf32>
    %95 = arith.negf %94 : vector<8x128xf32>
    %96 = math.exp %95 : vector<8x128xf32>
    %cst_42 = arith.constant 1.000000e+00 : f32
    %97 = vector.broadcast %cst_42 : f32 to vector<8x128xf32>
    %98 = arith.addf %97, %96 : vector<8x128xf32>
    %99 = arith.divf %97, %98 : vector<8x128xf32>
    %100 = vector.extract_strided_slice %93 {offsets = [0, 128], sizes = [8, 128], strides = [1, 1]} : vector<8x512xf32> to vector<8x128xf32>
    %101 = arith.negf %100 : vector<8x128xf32>
    %102 = math.exp %101 : vector<8x128xf32>
    %cst_43 = arith.constant 1.000000e+00 : f32
    %103 = vector.broadcast %cst_43 : f32 to vector<8x128xf32>
    %104 = arith.addf %103, %102 : vector<8x128xf32>
    %105 = arith.divf %103, %104 : vector<8x128xf32>
    %106 = vector.extract_strided_slice %93 {offsets = [0, 256], sizes = [8, 128], strides = [1, 1]} : vector<8x512xf32> to vector<8x128xf32>
    %107 = math.tanh %106 : vector<8x128xf32>
    %108 = vector.extract_strided_slice %93 {offsets = [0, 384], sizes = [8, 128], strides = [1, 1]} : vector<8x512xf32> to vector<8x128xf32>
    %109 = arith.negf %108 : vector<8x128xf32>
    %110 = math.exp %109 : vector<8x128xf32>
    %cst_44 = arith.constant 1.000000e+00 : f32
    %111 = vector.broadcast %cst_44 : f32 to vector<8x128xf32>
    %112 = arith.addf %111, %110 : vector<8x128xf32>
    %113 = arith.divf %111, %112 : vector<8x128xf32>
    %114 = arith.mulf %105, %43 : vector<8x128xf32>
    %115 = arith.mulf %99, %107 : vector<8x128xf32>
    %116 = arith.addf %114, %115 : vector<8x128xf32>
    %117 = math.tanh %116 : vector<8x128xf32>
    %118 = arith.mulf %113, %117 : vector<8x128xf32>
    %119 = tpu.concatenate %118, %78 in 1 : vector<8x128xf32>, vector<8x128xf32> -> vector<8x256xf32>
    %c1_45 = arith.constant 1 : index
    %c0_46 = arith.constant 0 : index
    %c0_47 = arith.constant 0 : index
    %120 = vector.load %arg3[%c1_45, %c0_46, %c0_47] : memref<2x256x512xf32, #tpu.memory_space<vmem>>, vector<1x256x512xf32>
    %121 = vector.shape_cast %120 : vector<1x256x512xf32> to vector<256x512xf32>
    %cst_48 = arith.constant dense<0.000000e+00> : vector<8x512xf32>
    %122 = tpu.matmul %119, %121, %cst_48 {dimension_numbers = #tpu.dot_dimension_numbers<[1], [0], [0], [1], [0, 0, 1, 1], [], []>} : vector<8x256xf32>, vector<256x512xf32>, vector<8x512xf32> -> vector<8x512xf32>
    %c1_49 = arith.constant 1 : index
    %c0_50 = arith.constant 0 : index
    %c0_51 = arith.constant 0 : index
    %123 = vector.load %arg4[%c1_49, %c0_50, %c0_51] : memref<2x1x512xf32, #tpu.memory_space<vmem>>, vector<1x1x512xf32>
    %124 = vector.shape_cast %123 : vector<1x1x512xf32> to vector<1x512xf32>
    %125 = vector.broadcast %124 : vector<1x512xf32> to vector<8x512xf32>
    %126 = arith.addf %122, %125 : vector<8x512xf32>
    %127 = vector.extract_strided_slice %126 {offsets = [0, 0], sizes = [8, 128], strides = [1, 1]} : vector<8x512xf32> to vector<8x128xf32>
    %128 = arith.negf %127 : vector<8x128xf32>
    %129 = math.exp %128 : vector<8x128xf32>
    %cst_52 = arith.constant 1.000000e+00 : f32
    %130 = vector.broadcast %cst_52 : f32 to vector<8x128xf32>
    %131 = arith.addf %130, %129 : vector<8x128xf32>
    %132 = arith.divf %130, %131 : vector<8x128xf32>
    %133 = vector.extract_strided_slice %126 {offsets = [0, 128], sizes = [8, 128], strides = [1, 1]} : vector<8x512xf32> to vector<8x128xf32>
    %134 = arith.negf %133 : vector<8x128xf32>
    %135 = math.exp %134 : vector<8x128xf32>
    %cst_53 = arith.constant 1.000000e+00 : f32
    %136 = vector.broadcast %cst_53 : f32 to vector<8x128xf32>
    %137 = arith.addf %136, %135 : vector<8x128xf32>
    %138 = arith.divf %136, %137 : vector<8x128xf32>
    %139 = vector.extract_strided_slice %126 {offsets = [0, 256], sizes = [8, 128], strides = [1, 1]} : vector<8x512xf32> to vector<8x128xf32>
    %140 = math.tanh %139 : vector<8x128xf32>
    %141 = vector.extract_strided_slice %126 {offsets = [0, 384], sizes = [8, 128], strides = [1, 1]} : vector<8x512xf32> to vector<8x128xf32>
    %142 = arith.negf %141 : vector<8x128xf32>
    %143 = math.exp %142 : vector<8x128xf32>
    %cst_54 = arith.constant 1.000000e+00 : f32
    %144 = vector.broadcast %cst_54 : f32 to vector<8x128xf32>
    %145 = arith.addf %144, %143 : vector<8x128xf32>
    %146 = arith.divf %144, %145 : vector<8x128xf32>
    %147 = arith.mulf %138, %76 : vector<8x128xf32>
    %148 = arith.mulf %132, %140 : vector<8x128xf32>
    %149 = arith.addf %147, %148 : vector<8x128xf32>
    %150 = math.tanh %149 : vector<8x128xf32>
    %151 = arith.mulf %146, %150 : vector<8x128xf32>
    %152 = arith.index_cast %c1_i32 : i32 to index
    %c0_55 = arith.constant 0 : index
    %c0_56 = arith.constant 0 : index
    %153 = vector.load %arg9[%152, %c0_55, %c0_56] : memref<8x8x128xf32, #tpu.memory_space<vmem>>, vector<1x8x128xf32>
    %154 = vector.shape_cast %153 : vector<1x8x128xf32> to vector<8x128xf32>
    %155 = vector.shape_cast %151 : vector<8x128xf32> to vector<1x8x128xf32>
    tpu.vector_store %arg9[%152, %c0_55, %c0_56], %155 {strides = array<i32>} : memref<8x8x128xf32, #tpu.memory_space<vmem>>, vector<1x8x128xf32>,
    %c2_i32 = arith.constant 2 : i32
    %156 = arith.index_cast %c2_i32 : i32 to index
    %c0_57 = arith.constant 0 : index
    %c0_58 = arith.constant 0 : index
    %157 = vector.load %arg8[%156, %c0_57, %c0_58] : memref<8x8x128xf32, #tpu.memory_space<vmem>>, vector<1x8x128xf32>
    %158 = vector.shape_cast %157 : vector<1x8x128xf32> to vector<8x128xf32>
    %159 = tpu.concatenate %158, %118 in 1 : vector<8x128xf32>, vector<8x128xf32> -> vector<8x256xf32>
    %c0_59 = arith.constant 0 : index
    %c0_60 = arith.constant 0 : index
    %c0_61 = arith.constant 0 : index
    %160 = vector.load %arg3[%c0_59, %c0_60, %c0_61] : memref<2x256x512xf32, #tpu.memory_space<vmem>>, vector<1x256x512xf32>
    %161 = vector.shape_cast %160 : vector<1x256x512xf32> to vector<256x512xf32>
    %cst_62 = arith.constant dense<0.000000e+00> : vector<8x512xf32>
    %162 = tpu.matmul %159, %161, %cst_62 {dimension_numbers = #tpu.dot_dimension_numbers<[1], [0], [0], [1], [0, 0, 1, 1], [], []>} : vector<8x256xf32>, vector<256x512xf32>, vector<8x512xf32> -> vector<8x512xf32>
    %c0_63 = arith.constant 0 : index
    %c0_64 = arith.constant 0 : index
    %c0_65 = arith.constant 0 : index
    %163 = vector.load %arg4[%c0_63, %c0_64, %c0_65] : memref<2x1x512xf32, #tpu.memory_space<vmem>>, vector<1x1x512xf32>
    %164 = vector.shape_cast %163 : vector<1x1x512xf32> to vector<1x512xf32>
    %165 = vector.broadcast %164 : vector<1x512xf32> to vector<8x512xf32>
    %166 = arith.addf %162, %165 : vector<8x512xf32>
    %167 = vector.extract_strided_slice %166 {offsets = [0, 0], sizes = [8, 128], strides = [1, 1]} : vector<8x512xf32> to vector<8x128xf32>
    %168 = arith.negf %167 : vector<8x128xf32>
    %169 = math.exp %168 : vector<8x128xf32>
    %cst_66 = arith.constant 1.000000e+00 : f32
    %170 = vector.broadcast %cst_66 : f32 to vector<8x128xf32>
    %171 = arith.addf %170, %169 : vector<8x128xf32>
    %172 = arith.divf %170, %171 : vector<8x128xf32>
    %173 = vector.extract_strided_slice %166 {offsets = [0, 128], sizes = [8, 128], strides = [1, 1]} : vector<8x512xf32> to vector<8x128xf32>
    %174 = arith.negf %173 : vector<8x128xf32>
    %175 = math.exp %174 : vector<8x128xf32>
    %cst_67 = arith.constant 1.000000e+00 : f32
    %176 = vector.broadcast %cst_67 : f32 to vector<8x128xf32>
    %177 = arith.addf %176, %175 : vector<8x128xf32>
    %178 = arith.divf %176, %177 : vector<8x128xf32>
    %179 = vector.extract_strided_slice %166 {offsets = [0, 256], sizes = [8, 128], strides = [1, 1]} : vector<8x512xf32> to vector<8x128xf32>
    %180 = math.tanh %179 : vector<8x128xf32>
    %181 = vector.extract_strided_slice %166 {offsets = [0, 384], sizes = [8, 128], strides = [1, 1]} : vector<8x512xf32> to vector<8x128xf32>
    %182 = arith.negf %181 : vector<8x128xf32>
    %183 = math.exp %182 : vector<8x128xf32>
    %cst_68 = arith.constant 1.000000e+00 : f32
    %184 = vector.broadcast %cst_68 : f32 to vector<8x128xf32>
    %185 = arith.addf %184, %183 : vector<8x128xf32>
    %186 = arith.divf %184, %185 : vector<8x128xf32>
    %187 = arith.mulf %178, %116 : vector<8x128xf32>
    %188 = arith.mulf %172, %180 : vector<8x128xf32>
    %189 = arith.addf %187, %188 : vector<8x128xf32>
    %190 = math.tanh %189 : vector<8x128xf32>
    %191 = arith.mulf %186, %190 : vector<8x128xf32>
    %192 = tpu.concatenate %191, %151 in 1 : vector<8x128xf32>, vector<8x128xf32> -> vector<8x256xf32>
    %c1_69 = arith.constant 1 : index
    %c0_70 = arith.constant 0 : index
    %c0_71 = arith.constant 0 : index
    %193 = vector.load %arg3[%c1_69, %c0_70, %c0_71] : memref<2x256x512xf32, #tpu.memory_space<vmem>>, vector<1x256x512xf32>
    %194 = vector.shape_cast %193 : vector<1x256x512xf32> to vector<256x512xf32>
    %cst_72 = arith.constant dense<0.000000e+00> : vector<8x512xf32>
    %195 = tpu.matmul %192, %194, %cst_72 {dimension_numbers = #tpu.dot_dimension_numbers<[1], [0], [0], [1], [0, 0, 1, 1], [], []>} : vector<8x256xf32>, vector<256x512xf32>, vector<8x512xf32> -> vector<8x512xf32>
    %c1_73 = arith.constant 1 : index
    %c0_74 = arith.constant 0 : index
    %c0_75 = arith.constant 0 : index
    %196 = vector.load %arg4[%c1_73, %c0_74, %c0_75] : memref<2x1x512xf32, #tpu.memory_space<vmem>>, vector<1x1x512xf32>
    %197 = vector.shape_cast %196 : vector<1x1x512xf32> to vector<1x512xf32>
    %198 = vector.broadcast %197 : vector<1x512xf32> to vector<8x512xf32>
    %199 = arith.addf %195, %198 : vector<8x512xf32>
    %200 = vector.extract_strided_slice %199 {offsets = [0, 0], sizes = [8, 128], strides = [1, 1]} : vector<8x512xf32> to vector<8x128xf32>
    %201 = arith.negf %200 : vector<8x128xf32>
    %202 = math.exp %201 : vector<8x128xf32>
    %cst_76 = arith.constant 1.000000e+00 : f32
    %203 = vector.broadcast %cst_76 : f32 to vector<8x128xf32>
    %204 = arith.addf %203, %202 : vector<8x128xf32>
    %205 = arith.divf %203, %204 : vector<8x128xf32>
    %206 = vector.extract_strided_slice %199 {offsets = [0, 128], sizes = [8, 128], strides = [1, 1]} : vector<8x512xf32> to vector<8x128xf32>
    %207 = arith.negf %206 : vector<8x128xf32>
    %208 = math.exp %207 : vector<8x128xf32>
    %cst_77 = arith.constant 1.000000e+00 : f32
    %209 = vector.broadcast %cst_77 : f32 to vector<8x128xf32>
    %210 = arith.addf %209, %208 : vector<8x128xf32>
    %211 = arith.divf %209, %210 : vector<8x128xf32>
    %212 = vector.extract_strided_slice %199 {offsets = [0, 256], sizes = [8, 128], strides = [1, 1]} : vector<8x512xf32> to vector<8x128xf32>
    %213 = math.tanh %212 : vector<8x128xf32>
    %214 = vector.extract_strided_slice %199 {offsets = [0, 384], sizes = [8, 128], strides = [1, 1]} : vector<8x512xf32> to vector<8x128xf32>
    %215 = arith.negf %214 : vector<8x128xf32>
    %216 = math.exp %215 : vector<8x128xf32>
    %cst_78 = arith.constant 1.000000e+00 : f32
    %217 = vector.broadcast %cst_78 : f32 to vector<8x128xf32>
    %218 = arith.addf %217, %216 : vector<8x128xf32>
    %219 = arith.divf %217, %218 : vector<8x128xf32>
    %220 = arith.mulf %211, %149 : vector<8x128xf32>
    %221 = arith.mulf %205, %213 : vector<8x128xf32>
    %222 = arith.addf %220, %221 : vector<8x128xf32>
    %223 = math.tanh %222 : vector<8x128xf32>
    %224 = arith.mulf %219, %223 : vector<8x128xf32>
    %225 = arith.index_cast %c2_i32 : i32 to index
    %c0_79 = arith.constant 0 : index
    %c0_80 = arith.constant 0 : index
    %226 = vector.load %arg9[%225, %c0_79, %c0_80] : memref<8x8x128xf32, #tpu.memory_space<vmem>>, vector<1x8x128xf32>
    %227 = vector.shape_cast %226 : vector<1x8x128xf32> to vector<8x128xf32>
    %228 = vector.shape_cast %224 : vector<8x128xf32> to vector<1x8x128xf32>
    tpu.vector_store %arg9[%225, %c0_79, %c0_80], %228 {strides = array<i32>} : memref<8x8x128xf32, #tpu.memory_space<vmem>>, vector<1x8x128xf32>,
    %c3_i32 = arith.constant 3 : i32
    %229 = arith.index_cast %c3_i32 : i32 to index
    %c0_81 = arith.constant 0 : index
    %c0_82 = arith.constant 0 : index
    %230 = vector.load %arg8[%229, %c0_81, %c0_82] : memref<8x8x128xf32, #tpu.memory_space<vmem>>, vector<1x8x128xf32>
    %231 = vector.shape_cast %230 : vector<1x8x128xf32> to vector<8x128xf32>
    %232 = tpu.concatenate %231, %191 in 1 : vector<8x128xf32>, vector<8x128xf32> -> vector<8x256xf32>
    %c0_83 = arith.constant 0 : index
    %c0_84 = arith.constant 0 : index
    %c0_85 = arith.constant 0 : index
    %233 = vector.load %arg3[%c0_83, %c0_84, %c0_85] : memref<2x256x512xf32, #tpu.memory_space<vmem>>, vector<1x256x512xf32>
    %234 = vector.shape_cast %233 : vector<1x256x512xf32> to vector<256x512xf32>
    %cst_86 = arith.constant dense<0.000000e+00> : vector<8x512xf32>
    %235 = tpu.matmul %232, %234, %cst_86 {dimension_numbers = #tpu.dot_dimension_numbers<[1], [0], [0], [1], [0, 0, 1, 1], [], []>} : vector<8x256xf32>, vector<256x512xf32>, vector<8x512xf32> -> vector<8x512xf32>
    %c0_87 = arith.constant 0 : index
    %c0_88 = arith.constant 0 : index
    %c0_89 = arith.constant 0 : index
    %236 = vector.load %arg4[%c0_87, %c0_88, %c0_89] : memref<2x1x512xf32, #tpu.memory_space<vmem>>, vector<1x1x512xf32>
    %237 = vector.shape_cast %236 : vector<1x1x512xf32> to vector<1x512xf32>
    %238 = vector.broadcast %237 : vector<1x512xf32> to vector<8x512xf32>
    %239 = arith.addf %235, %238 : vector<8x512xf32>
    %240 = vector.extract_strided_slice %239 {offsets = [0, 0], sizes = [8, 128], strides = [1, 1]} : vector<8x512xf32> to vector<8x128xf32>
    %241 = arith.negf %240 : vector<8x128xf32>
    %242 = math.exp %241 : vector<8x128xf32>
    %cst_90 = arith.constant 1.000000e+00 : f32
    %243 = vector.broadcast %cst_90 : f32 to vector<8x128xf32>
    %244 = arith.addf %243, %242 : vector<8x128xf32>
    %245 = arith.divf %243, %244 : vector<8x128xf32>
    %246 = vector.extract_strided_slice %239 {offsets = [0, 128], sizes = [8, 128], strides = [1, 1]} : vector<8x512xf32> to vector<8x128xf32>
    %247 = arith.negf %246 : vector<8x128xf32>
    %248 = math.exp %247 : vector<8x128xf32>
    %cst_91 = arith.constant 1.000000e+00 : f32
    %249 = vector.broadcast %cst_91 : f32 to vector<8x128xf32>
    %250 = arith.addf %249, %248 : vector<8x128xf32>
    %251 = arith.divf %249, %250 : vector<8x128xf32>
    %252 = vector.extract_strided_slice %239 {offsets = [0, 256], sizes = [8, 128], strides = [1, 1]} : vector<8x512xf32> to vector<8x128xf32>
    %253 = math.tanh %252 : vector<8x128xf32>
    %254 = vector.extract_strided_slice %239 {offsets = [0, 384], sizes = [8, 128], strides = [1, 1]} : vector<8x512xf32> to vector<8x128xf32>
    %255 = arith.negf %254 : vector<8x128xf32>
    %256 = math.exp %255 : vector<8x128xf32>
    %cst_92 = arith.constant 1.000000e+00 : f32
    %257 = vector.broadcast %cst_92 : f32 to vector<8x128xf32>
    %258 = arith.addf %257, %256 : vector<8x128xf32>
    %259 = arith.divf %257, %258 : vector<8x128xf32>
    %260 = arith.mulf %251, %189 : vector<8x128xf32>
    %261 = arith.mulf %245, %253 : vector<8x128xf32>
    %262 = arith.addf %260, %261 : vector<8x128xf32>
    %263 = math.tanh %262 : vector<8x128xf32>
    %264 = arith.mulf %259, %263 : vector<8x128xf32>
    %265 = tpu.concatenate %264, %224 in 1 : vector<8x128xf32>, vector<8x128xf32> -> vector<8x256xf32>
    %c1_93 = arith.constant 1 : index
    %c0_94 = arith.constant 0 : index
    %c0_95 = arith.constant 0 : index
    %266 = vector.load %arg3[%c1_93, %c0_94, %c0_95] : memref<2x256x512xf32, #tpu.memory_space<vmem>>, vector<1x256x512xf32>
    %267 = vector.shape_cast %266 : vector<1x256x512xf32> to vector<256x512xf32>
    %cst_96 = arith.constant dense<0.000000e+00> : vector<8x512xf32>
    %268 = tpu.matmul %265, %267, %cst_96 {dimension_numbers = #tpu.dot_dimension_numbers<[1], [0], [0], [1], [0, 0, 1, 1], [], []>} : vector<8x256xf32>, vector<256x512xf32>, vector<8x512xf32> -> vector<8x512xf32>
    %c1_97 = arith.constant 1 : index
    %c0_98 = arith.constant 0 : index
    %c0_99 = arith.constant 0 : index
    %269 = vector.load %arg4[%c1_97, %c0_98, %c0_99] : memref<2x1x512xf32, #tpu.memory_space<vmem>>, vector<1x1x512xf32>
    %270 = vector.shape_cast %269 : vector<1x1x512xf32> to vector<1x512xf32>
    %271 = vector.broadcast %270 : vector<1x512xf32> to vector<8x512xf32>
    %272 = arith.addf %268, %271 : vector<8x512xf32>
    %273 = vector.extract_strided_slice %272 {offsets = [0, 0], sizes = [8, 128], strides = [1, 1]} : vector<8x512xf32> to vector<8x128xf32>
    %274 = arith.negf %273 : vector<8x128xf32>
    %275 = math.exp %274 : vector<8x128xf32>
    %cst_100 = arith.constant 1.000000e+00 : f32
    %276 = vector.broadcast %cst_100 : f32 to vector<8x128xf32>
    %277 = arith.addf %276, %275 : vector<8x128xf32>
    %278 = arith.divf %276, %277 : vector<8x128xf32>
    %279 = vector.extract_strided_slice %272 {offsets = [0, 128], sizes = [8, 128], strides = [1, 1]} : vector<8x512xf32> to vector<8x128xf32>
    %280 = arith.negf %279 : vector<8x128xf32>
    %281 = math.exp %280 : vector<8x128xf32>
    %cst_101 = arith.constant 1.000000e+00 : f32
    %282 = vector.broadcast %cst_101 : f32 to vector<8x128xf32>
    %283 = arith.addf %282, %281 : vector<8x128xf32>
    %284 = arith.divf %282, %283 : vector<8x128xf32>
    %285 = vector.extract_strided_slice %272 {offsets = [0, 256], sizes = [8, 128], strides = [1, 1]} : vector<8x512xf32> to vector<8x128xf32>
    %286 = math.tanh %285 : vector<8x128xf32>
    %287 = vector.extract_strided_slice %272 {offsets = [0, 384], sizes = [8, 128], strides = [1, 1]} : vector<8x512xf32> to vector<8x128xf32>
    %288 = arith.negf %287 : vector<8x128xf32>
    %289 = math.exp %288 : vector<8x128xf32>
    %cst_102 = arith.constant 1.000000e+00 : f32
    %290 = vector.broadcast %cst_102 : f32 to vector<8x128xf32>
    %291 = arith.addf %290, %289 : vector<8x128xf32>
    %292 = arith.divf %290, %291 : vector<8x128xf32>
    %293 = arith.mulf %284, %222 : vector<8x128xf32>
    %294 = arith.mulf %278, %286 : vector<8x128xf32>
    %295 = arith.addf %293, %294 : vector<8x128xf32>
    %296 = math.tanh %295 : vector<8x128xf32>
    %297 = arith.mulf %292, %296 : vector<8x128xf32>
    %298 = arith.index_cast %c3_i32 : i32 to index
    %c0_103 = arith.constant 0 : index
    %c0_104 = arith.constant 0 : index
    %299 = vector.load %arg9[%298, %c0_103, %c0_104] : memref<8x8x128xf32, #tpu.memory_space<vmem>>, vector<1x8x128xf32>
    %300 = vector.shape_cast %299 : vector<1x8x128xf32> to vector<8x128xf32>
    %301 = vector.shape_cast %297 : vector<8x128xf32> to vector<1x8x128xf32>
    tpu.vector_store %arg9[%298, %c0_103, %c0_104], %301 {strides = array<i32>} : memref<8x8x128xf32, #tpu.memory_space<vmem>>, vector<1x8x128xf32>,
    %c4_i32 = arith.constant 4 : i32
    %302 = arith.index_cast %c4_i32 : i32 to index
    %c0_105 = arith.constant 0 : index
    %c0_106 = arith.constant 0 : index
    %303 = vector.load %arg8[%302, %c0_105, %c0_106] : memref<8x8x128xf32, #tpu.memory_space<vmem>>, vector<1x8x128xf32>
    %304 = vector.shape_cast %303 : vector<1x8x128xf32> to vector<8x128xf32>
    %305 = tpu.concatenate %304, %264 in 1 : vector<8x128xf32>, vector<8x128xf32> -> vector<8x256xf32>
    %c0_107 = arith.constant 0 : index
    %c0_108 = arith.constant 0 : index
    %c0_109 = arith.constant 0 : index
    %306 = vector.load %arg3[%c0_107, %c0_108, %c0_109] : memref<2x256x512xf32, #tpu.memory_space<vmem>>, vector<1x256x512xf32>
    %307 = vector.shape_cast %306 : vector<1x256x512xf32> to vector<256x512xf32>
    %cst_110 = arith.constant dense<0.000000e+00> : vector<8x512xf32>
    %308 = tpu.matmul %305, %307, %cst_110 {dimension_numbers = #tpu.dot_dimension_numbers<[1], [0], [0], [1], [0, 0, 1, 1], [], []>} : vector<8x256xf32>, vector<256x512xf32>, vector<8x512xf32> -> vector<8x512xf32>
    %c0_111 = arith.constant 0 : index
    %c0_112 = arith.constant 0 : index
    %c0_113 = arith.constant 0 : index
    %309 = vector.load %arg4[%c0_111, %c0_112, %c0_113] : memref<2x1x512xf32, #tpu.memory_space<vmem>>, vector<1x1x512xf32>
    %310 = vector.shape_cast %309 : vector<1x1x512xf32> to vector<1x512xf32>
    %311 = vector.broadcast %310 : vector<1x512xf32> to vector<8x512xf32>
    %312 = arith.addf %308, %311 : vector<8x512xf32>
    %313 = vector.extract_strided_slice %312 {offsets = [0, 0], sizes = [8, 128], strides = [1, 1]} : vector<8x512xf32> to vector<8x128xf32>
    %314 = arith.negf %313 : vector<8x128xf32>
    %315 = math.exp %314 : vector<8x128xf32>
    %cst_114 = arith.constant 1.000000e+00 : f32
    %316 = vector.broadcast %cst_114 : f32 to vector<8x128xf32>
    %317 = arith.addf %316, %315 : vector<8x128xf32>
    %318 = arith.divf %316, %317 : vector<8x128xf32>
    %319 = vector.extract_strided_slice %312 {offsets = [0, 128], sizes = [8, 128], strides = [1, 1]} : vector<8x512xf32> to vector<8x128xf32>
    %320 = arith.negf %319 : vector<8x128xf32>
    %321 = math.exp %320 : vector<8x128xf32>
    %cst_115 = arith.constant 1.000000e+00 : f32
    %322 = vector.broadcast %cst_115 : f32 to vector<8x128xf32>
    %323 = arith.addf %322, %321 : vector<8x128xf32>
    %324 = arith.divf %322, %323 : vector<8x128xf32>
    %325 = vector.extract_strided_slice %312 {offsets = [0, 256], sizes = [8, 128], strides = [1, 1]} : vector<8x512xf32> to vector<8x128xf32>
    %326 = math.tanh %325 : vector<8x128xf32>
    %327 = vector.extract_strided_slice %312 {offsets = [0, 384], sizes = [8, 128], strides = [1, 1]} : vector<8x512xf32> to vector<8x128xf32>
    %328 = arith.negf %327 : vector<8x128xf32>
    %329 = math.exp %328 : vector<8x128xf32>
    %cst_116 = arith.constant 1.000000e+00 : f32
    %330 = vector.broadcast %cst_116 : f32 to vector<8x128xf32>
    %331 = arith.addf %330, %329 : vector<8x128xf32>
    %332 = arith.divf %330, %331 : vector<8x128xf32>
    %333 = arith.mulf %324, %262 : vector<8x128xf32>
    %334 = arith.mulf %318, %326 : vector<8x128xf32>
    %335 = arith.addf %333, %334 : vector<8x128xf32>
    %336 = math.tanh %335 : vector<8x128xf32>
    %337 = arith.mulf %332, %336 : vector<8x128xf32>
    %338 = tpu.concatenate %337, %297 in 1 : vector<8x128xf32>, vector<8x128xf32> -> vector<8x256xf32>
    %c1_117 = arith.constant 1 : index
    %c0_118 = arith.constant 0 : index
    %c0_119 = arith.constant 0 : index
    %339 = vector.load %arg3[%c1_117, %c0_118, %c0_119] : memref<2x256x512xf32, #tpu.memory_space<vmem>>, vector<1x256x512xf32>
    %340 = vector.shape_cast %339 : vector<1x256x512xf32> to vector<256x512xf32>
    %cst_120 = arith.constant dense<0.000000e+00> : vector<8x512xf32>
    %341 = tpu.matmul %338, %340, %cst_120 {dimension_numbers = #tpu.dot_dimension_numbers<[1], [0], [0], [1], [0, 0, 1, 1], [], []>} : vector<8x256xf32>, vector<256x512xf32>, vector<8x512xf32> -> vector<8x512xf32>
    %c1_121 = arith.constant 1 : index
    %c0_122 = arith.constant 0 : index
    %c0_123 = arith.constant 0 : index
    %342 = vector.load %arg4[%c1_121, %c0_122, %c0_123] : memref<2x1x512xf32, #tpu.memory_space<vmem>>, vector<1x1x512xf32>
    %343 = vector.shape_cast %342 : vector<1x1x512xf32> to vector<1x512xf32>
    %344 = vector.broadcast %343 : vector<1x512xf32> to vector<8x512xf32>
    %345 = arith.addf %341, %344 : vector<8x512xf32>
    %346 = vector.extract_strided_slice %345 {offsets = [0, 0], sizes = [8, 128], strides = [1, 1]} : vector<8x512xf32> to vector<8x128xf32>
    %347 = arith.negf %346 : vector<8x128xf32>
    %348 = math.exp %347 : vector<8x128xf32>
    %cst_124 = arith.constant 1.000000e+00 : f32
    %349 = vector.broadcast %cst_124 : f32 to vector<8x128xf32>
    %350 = arith.addf %349, %348 : vector<8x128xf32>
    %351 = arith.divf %349, %350 : vector<8x128xf32>
    %352 = vector.extract_strided_slice %345 {offsets = [0, 128], sizes = [8, 128], strides = [1, 1]} : vector<8x512xf32> to vector<8x128xf32>
    %353 = arith.negf %352 : vector<8x128xf32>
    %354 = math.exp %353 : vector<8x128xf32>
    %cst_125 = arith.constant 1.000000e+00 : f32
    %355 = vector.broadcast %cst_125 : f32 to vector<8x128xf32>
    %356 = arith.addf %355, %354 : vector<8x128xf32>
    %357 = arith.divf %355, %356 : vector<8x128xf32>
    %358 = vector.extract_strided_slice %345 {offsets = [0, 256], sizes = [8, 128], strides = [1, 1]} : vector<8x512xf32> to vector<8x128xf32>
    %359 = math.tanh %358 : vector<8x128xf32>
    %360 = vector.extract_strided_slice %345 {offsets = [0, 384], sizes = [8, 128], strides = [1, 1]} : vector<8x512xf32> to vector<8x128xf32>
    %361 = arith.negf %360 : vector<8x128xf32>
    %362 = math.exp %361 : vector<8x128xf32>
    %cst_126 = arith.constant 1.000000e+00 : f32
    %363 = vector.broadcast %cst_126 : f32 to vector<8x128xf32>
    %364 = arith.addf %363, %362 : vector<8x128xf32>
    %365 = arith.divf %363, %364 : vector<8x128xf32>
    %366 = arith.mulf %357, %295 : vector<8x128xf32>
    %367 = arith.mulf %351, %359 : vector<8x128xf32>
    %368 = arith.addf %366, %367 : vector<8x128xf32>
    %369 = math.tanh %368 : vector<8x128xf32>
    %370 = arith.mulf %365, %369 : vector<8x128xf32>
    %371 = arith.index_cast %c4_i32 : i32 to index
    %c0_127 = arith.constant 0 : index
    %c0_128 = arith.constant 0 : index
    %372 = vector.load %arg9[%371, %c0_127, %c0_128] : memref<8x8x128xf32, #tpu.memory_space<vmem>>, vector<1x8x128xf32>
    %373 = vector.shape_cast %372 : vector<1x8x128xf32> to vector<8x128xf32>
    %374 = vector.shape_cast %370 : vector<8x128xf32> to vector<1x8x128xf32>
    tpu.vector_store %arg9[%371, %c0_127, %c0_128], %374 {strides = array<i32>} : memref<8x8x128xf32, #tpu.memory_space<vmem>>, vector<1x8x128xf32>,
    %c5_i32 = arith.constant 5 : i32
    %375 = arith.index_cast %c5_i32 : i32 to index
    %c0_129 = arith.constant 0 : index
    %c0_130 = arith.constant 0 : index
    %376 = vector.load %arg8[%375, %c0_129, %c0_130] : memref<8x8x128xf32, #tpu.memory_space<vmem>>, vector<1x8x128xf32>
    %377 = vector.shape_cast %376 : vector<1x8x128xf32> to vector<8x128xf32>
    %378 = tpu.concatenate %377, %337 in 1 : vector<8x128xf32>, vector<8x128xf32> -> vector<8x256xf32>
    %c0_131 = arith.constant 0 : index
    %c0_132 = arith.constant 0 : index
    %c0_133 = arith.constant 0 : index
    %379 = vector.load %arg3[%c0_131, %c0_132, %c0_133] : memref<2x256x512xf32, #tpu.memory_space<vmem>>, vector<1x256x512xf32>
    %380 = vector.shape_cast %379 : vector<1x256x512xf32> to vector<256x512xf32>
    %cst_134 = arith.constant dense<0.000000e+00> : vector<8x512xf32>
    %381 = tpu.matmul %378, %380, %cst_134 {dimension_numbers = #tpu.dot_dimension_numbers<[1], [0], [0], [1], [0, 0, 1, 1], [], []>} : vector<8x256xf32>, vector<256x512xf32>, vector<8x512xf32> -> vector<8x512xf32>
    %c0_135 = arith.constant 0 : index
    %c0_136 = arith.constant 0 : index
    %c0_137 = arith.constant 0 : index
    %382 = vector.load %arg4[%c0_135, %c0_136, %c0_137] : memref<2x1x512xf32, #tpu.memory_space<vmem>>, vector<1x1x512xf32>
    %383 = vector.shape_cast %382 : vector<1x1x512xf32> to vector<1x512xf32>
    %384 = vector.broadcast %383 : vector<1x512xf32> to vector<8x512xf32>
    %385 = arith.addf %381, %384 : vector<8x512xf32>
    %386 = vector.extract_strided_slice %385 {offsets = [0, 0], sizes = [8, 128], strides = [1, 1]} : vector<8x512xf32> to vector<8x128xf32>
    %387 = arith.negf %386 : vector<8x128xf32>
    %388 = math.exp %387 : vector<8x128xf32>
    %cst_138 = arith.constant 1.000000e+00 : f32
    %389 = vector.broadcast %cst_138 : f32 to vector<8x128xf32>
    %390 = arith.addf %389, %388 : vector<8x128xf32>
    %391 = arith.divf %389, %390 : vector<8x128xf32>
    %392 = vector.extract_strided_slice %385 {offsets = [0, 128], sizes = [8, 128], strides = [1, 1]} : vector<8x512xf32> to vector<8x128xf32>
    %393 = arith.negf %392 : vector<8x128xf32>
    %394 = math.exp %393 : vector<8x128xf32>
    %cst_139 = arith.constant 1.000000e+00 : f32
    %395 = vector.broadcast %cst_139 : f32 to vector<8x128xf32>
    %396 = arith.addf %395, %394 : vector<8x128xf32>
    %397 = arith.divf %395, %396 : vector<8x128xf32>
    %398 = vector.extract_strided_slice %385 {offsets = [0, 256], sizes = [8, 128], strides = [1, 1]} : vector<8x512xf32> to vector<8x128xf32>
    %399 = math.tanh %398 : vector<8x128xf32>
    %400 = vector.extract_strided_slice %385 {offsets = [0, 384], sizes = [8, 128], strides = [1, 1]} : vector<8x512xf32> to vector<8x128xf32>
    %401 = arith.negf %400 : vector<8x128xf32>
    %402 = math.exp %401 : vector<8x128xf32>
    %cst_140 = arith.constant 1.000000e+00 : f32
    %403 = vector.broadcast %cst_140 : f32 to vector<8x128xf32>
    %404 = arith.addf %403, %402 : vector<8x128xf32>
    %405 = arith.divf %403, %404 : vector<8x128xf32>
    %406 = arith.mulf %397, %335 : vector<8x128xf32>
    %407 = arith.mulf %391, %399 : vector<8x128xf32>
    %408 = arith.addf %406, %407 : vector<8x128xf32>
    %409 = math.tanh %408 : vector<8x128xf32>
    %410 = arith.mulf %405, %409 : vector<8x128xf32>
    %411 = tpu.concatenate %410, %370 in 1 : vector<8x128xf32>, vector<8x128xf32> -> vector<8x256xf32>
    %c1_141 = arith.constant 1 : index
    %c0_142 = arith.constant 0 : index
    %c0_143 = arith.constant 0 : index
    %412 = vector.load %arg3[%c1_141, %c0_142, %c0_143] : memref<2x256x512xf32, #tpu.memory_space<vmem>>, vector<1x256x512xf32>
    %413 = vector.shape_cast %412 : vector<1x256x512xf32> to vector<256x512xf32>
    %cst_144 = arith.constant dense<0.000000e+00> : vector<8x512xf32>
    %414 = tpu.matmul %411, %413, %cst_144 {dimension_numbers = #tpu.dot_dimension_numbers<[1], [0], [0], [1], [0, 0, 1, 1], [], []>} : vector<8x256xf32>, vector<256x512xf32>, vector<8x512xf32> -> vector<8x512xf32>
    %c1_145 = arith.constant 1 : index
    %c0_146 = arith.constant 0 : index
    %c0_147 = arith.constant 0 : index
    %415 = vector.load %arg4[%c1_145, %c0_146, %c0_147] : memref<2x1x512xf32, #tpu.memory_space<vmem>>, vector<1x1x512xf32>
    %416 = vector.shape_cast %415 : vector<1x1x512xf32> to vector<1x512xf32>
    %417 = vector.broadcast %416 : vector<1x512xf32> to vector<8x512xf32>
    %418 = arith.addf %414, %417 : vector<8x512xf32>
    %419 = vector.extract_strided_slice %418 {offsets = [0, 0], sizes = [8, 128], strides = [1, 1]} : vector<8x512xf32> to vector<8x128xf32>
    %420 = arith.negf %419 : vector<8x128xf32>
    %421 = math.exp %420 : vector<8x128xf32>
    %cst_148 = arith.constant 1.000000e+00 : f32
    %422 = vector.broadcast %cst_148 : f32 to vector<8x128xf32>
    %423 = arith.addf %422, %421 : vector<8x128xf32>
    %424 = arith.divf %422, %423 : vector<8x128xf32>
    %425 = vector.extract_strided_slice %418 {offsets = [0, 128], sizes = [8, 128], strides = [1, 1]} : vector<8x512xf32> to vector<8x128xf32>
    %426 = arith.negf %425 : vector<8x128xf32>
    %427 = math.exp %426 : vector<8x128xf32>
    %cst_149 = arith.constant 1.000000e+00 : f32
    %428 = vector.broadcast %cst_149 : f32 to vector<8x128xf32>
    %429 = arith.addf %428, %427 : vector<8x128xf32>
    %430 = arith.divf %428, %429 : vector<8x128xf32>
    %431 = vector.extract_strided_slice %418 {offsets = [0, 256], sizes = [8, 128], strides = [1, 1]} : vector<8x512xf32> to vector<8x128xf32>
    %432 = math.tanh %431 : vector<8x128xf32>
    %433 = vector.extract_strided_slice %418 {offsets = [0, 384], sizes = [8, 128], strides = [1, 1]} : vector<8x512xf32> to vector<8x128xf32>
    %434 = arith.negf %433 : vector<8x128xf32>
    %435 = math.exp %434 : vector<8x128xf32>
    %cst_150 = arith.constant 1.000000e+00 : f32
    %436 = vector.broadcast %cst_150 : f32 to vector<8x128xf32>
    %437 = arith.addf %436, %435 : vector<8x128xf32>
    %438 = arith.divf %436, %437 : vector<8x128xf32>
    %439 = arith.mulf %430, %368 : vector<8x128xf32>
    %440 = arith.mulf %424, %432 : vector<8x128xf32>
    %441 = arith.addf %439, %440 : vector<8x128xf32>
    %442 = math.tanh %441 : vector<8x128xf32>
    %443 = arith.mulf %438, %442 : vector<8x128xf32>
    %444 = arith.index_cast %c5_i32 : i32 to index
    %c0_151 = arith.constant 0 : index
    %c0_152 = arith.constant 0 : index
    %445 = vector.load %arg9[%444, %c0_151, %c0_152] : memref<8x8x128xf32, #tpu.memory_space<vmem>>, vector<1x8x128xf32>
    %446 = vector.shape_cast %445 : vector<1x8x128xf32> to vector<8x128xf32>
    %447 = vector.shape_cast %443 : vector<8x128xf32> to vector<1x8x128xf32>
    tpu.vector_store %arg9[%444, %c0_151, %c0_152], %447 {strides = array<i32>} : memref<8x8x128xf32, #tpu.memory_space<vmem>>, vector<1x8x128xf32>,
    %c6_i32 = arith.constant 6 : i32
    %448 = arith.index_cast %c6_i32 : i32 to index
    %c0_153 = arith.constant 0 : index
    %c0_154 = arith.constant 0 : index
    %449 = vector.load %arg8[%448, %c0_153, %c0_154] : memref<8x8x128xf32, #tpu.memory_space<vmem>>, vector<1x8x128xf32>
    %450 = vector.shape_cast %449 : vector<1x8x128xf32> to vector<8x128xf32>
    %451 = tpu.concatenate %450, %410 in 1 : vector<8x128xf32>, vector<8x128xf32> -> vector<8x256xf32>
    %c0_155 = arith.constant 0 : index
    %c0_156 = arith.constant 0 : index
    %c0_157 = arith.constant 0 : index
    %452 = vector.load %arg3[%c0_155, %c0_156, %c0_157] : memref<2x256x512xf32, #tpu.memory_space<vmem>>, vector<1x256x512xf32>
    %453 = vector.shape_cast %452 : vector<1x256x512xf32> to vector<256x512xf32>
    %cst_158 = arith.constant dense<0.000000e+00> : vector<8x512xf32>
    %454 = tpu.matmul %451, %453, %cst_158 {dimension_numbers = #tpu.dot_dimension_numbers<[1], [0], [0], [1], [0, 0, 1, 1], [], []>} : vector<8x256xf32>, vector<256x512xf32>, vector<8x512xf32> -> vector<8x512xf32>
    %c0_159 = arith.constant 0 : index
    %c0_160 = arith.constant 0 : index
    %c0_161 = arith.constant 0 : index
    %455 = vector.load %arg4[%c0_159, %c0_160, %c0_161] : memref<2x1x512xf32, #tpu.memory_space<vmem>>, vector<1x1x512xf32>
    %456 = vector.shape_cast %455 : vector<1x1x512xf32> to vector<1x512xf32>
    %457 = vector.broadcast %456 : vector<1x512xf32> to vector<8x512xf32>
    %458 = arith.addf %454, %457 : vector<8x512xf32>
    %459 = vector.extract_strided_slice %458 {offsets = [0, 0], sizes = [8, 128], strides = [1, 1]} : vector<8x512xf32> to vector<8x128xf32>
    %460 = arith.negf %459 : vector<8x128xf32>
    %461 = math.exp %460 : vector<8x128xf32>
    %cst_162 = arith.constant 1.000000e+00 : f32
    %462 = vector.broadcast %cst_162 : f32 to vector<8x128xf32>
    %463 = arith.addf %462, %461 : vector<8x128xf32>
    %464 = arith.divf %462, %463 : vector<8x128xf32>
    %465 = vector.extract_strided_slice %458 {offsets = [0, 128], sizes = [8, 128], strides = [1, 1]} : vector<8x512xf32> to vector<8x128xf32>
    %466 = arith.negf %465 : vector<8x128xf32>
    %467 = math.exp %466 : vector<8x128xf32>
    %cst_163 = arith.constant 1.000000e+00 : f32
    %468 = vector.broadcast %cst_163 : f32 to vector<8x128xf32>
    %469 = arith.addf %468, %467 : vector<8x128xf32>
    %470 = arith.divf %468, %469 : vector<8x128xf32>
    %471 = vector.extract_strided_slice %458 {offsets = [0, 256], sizes = [8, 128], strides = [1, 1]} : vector<8x512xf32> to vector<8x128xf32>
    %472 = math.tanh %471 : vector<8x128xf32>
    %473 = vector.extract_strided_slice %458 {offsets = [0, 384], sizes = [8, 128], strides = [1, 1]} : vector<8x512xf32> to vector<8x128xf32>
    %474 = arith.negf %473 : vector<8x128xf32>
    %475 = math.exp %474 : vector<8x128xf32>
    %cst_164 = arith.constant 1.000000e+00 : f32
    %476 = vector.broadcast %cst_164 : f32 to vector<8x128xf32>
    %477 = arith.addf %476, %475 : vector<8x128xf32>
    %478 = arith.divf %476, %477 : vector<8x128xf32>
    %479 = arith.mulf %470, %408 : vector<8x128xf32>
    %480 = arith.mulf %464, %472 : vector<8x128xf32>
    %481 = arith.addf %479, %480 : vector<8x128xf32>
    %482 = math.tanh %481 : vector<8x128xf32>
    %483 = arith.mulf %478, %482 : vector<8x128xf32>
    %484 = tpu.concatenate %483, %443 in 1 : vector<8x128xf32>, vector<8x128xf32> -> vector<8x256xf32>
    %c1_165 = arith.constant 1 : index
    %c0_166 = arith.constant 0 : index
    %c0_167 = arith.constant 0 : index
    %485 = vector.load %arg3[%c1_165, %c0_166, %c0_167] : memref<2x256x512xf32, #tpu.memory_space<vmem>>, vector<1x256x512xf32>
    %486 = vector.shape_cast %485 : vector<1x256x512xf32> to vector<256x512xf32>
    %cst_168 = arith.constant dense<0.000000e+00> : vector<8x512xf32>
    %487 = tpu.matmul %484, %486, %cst_168 {dimension_numbers = #tpu.dot_dimension_numbers<[1], [0], [0], [1], [0, 0, 1, 1], [], []>} : vector<8x256xf32>, vector<256x512xf32>, vector<8x512xf32> -> vector<8x512xf32>
    %c1_169 = arith.constant 1 : index
    %c0_170 = arith.constant 0 : index
    %c0_171 = arith.constant 0 : index
    %488 = vector.load %arg4[%c1_169, %c0_170, %c0_171] : memref<2x1x512xf32, #tpu.memory_space<vmem>>, vector<1x1x512xf32>
    %489 = vector.shape_cast %488 : vector<1x1x512xf32> to vector<1x512xf32>
    %490 = vector.broadcast %489 : vector<1x512xf32> to vector<8x512xf32>
    %491 = arith.addf %487, %490 : vector<8x512xf32>
    %492 = vector.extract_strided_slice %491 {offsets = [0, 0], sizes = [8, 128], strides = [1, 1]} : vector<8x512xf32> to vector<8x128xf32>
    %493 = arith.negf %492 : vector<8x128xf32>
    %494 = math.exp %493 : vector<8x128xf32>
    %cst_172 = arith.constant 1.000000e+00 : f32
    %495 = vector.broadcast %cst_172 : f32 to vector<8x128xf32>
    %496 = arith.addf %495, %494 : vector<8x128xf32>
    %497 = arith.divf %495, %496 : vector<8x128xf32>
    %498 = vector.extract_strided_slice %491 {offsets = [0, 128], sizes = [8, 128], strides = [1, 1]} : vector<8x512xf32> to vector<8x128xf32>
    %499 = arith.negf %498 : vector<8x128xf32>
    %500 = math.exp %499 : vector<8x128xf32>
    %cst_173 = arith.constant 1.000000e+00 : f32
    %501 = vector.broadcast %cst_173 : f32 to vector<8x128xf32>
    %502 = arith.addf %501, %500 : vector<8x128xf32>
    %503 = arith.divf %501, %502 : vector<8x128xf32>
    %504 = vector.extract_strided_slice %491 {offsets = [0, 256], sizes = [8, 128], strides = [1, 1]} : vector<8x512xf32> to vector<8x128xf32>
    %505 = math.tanh %504 : vector<8x128xf32>
    %506 = vector.extract_strided_slice %491 {offsets = [0, 384], sizes = [8, 128], strides = [1, 1]} : vector<8x512xf32> to vector<8x128xf32>
    %507 = arith.negf %506 : vector<8x128xf32>
    %508 = math.exp %507 : vector<8x128xf32>
    %cst_174 = arith.constant 1.000000e+00 : f32
    %509 = vector.broadcast %cst_174 : f32 to vector<8x128xf32>
    %510 = arith.addf %509, %508 : vector<8x128xf32>
    %511 = arith.divf %509, %510 : vector<8x128xf32>
    %512 = arith.mulf %503, %441 : vector<8x128xf32>
    %513 = arith.mulf %497, %505 : vector<8x128xf32>
    %514 = arith.addf %512, %513 : vector<8x128xf32>
    %515 = math.tanh %514 : vector<8x128xf32>
    %516 = arith.mulf %511, %515 : vector<8x128xf32>
    %517 = arith.index_cast %c6_i32 : i32 to index
    %c0_175 = arith.constant 0 : index
    %c0_176 = arith.constant 0 : index
    %518 = vector.load %arg9[%517, %c0_175, %c0_176] : memref<8x8x128xf32, #tpu.memory_space<vmem>>, vector<1x8x128xf32>
    %519 = vector.shape_cast %518 : vector<1x8x128xf32> to vector<8x128xf32>
    %520 = vector.shape_cast %516 : vector<8x128xf32> to vector<1x8x128xf32>
    tpu.vector_store %arg9[%517, %c0_175, %c0_176], %520 {strides = array<i32>} : memref<8x8x128xf32, #tpu.memory_space<vmem>>, vector<1x8x128xf32>,
    %c7_i32 = arith.constant 7 : i32
    %521 = arith.index_cast %c7_i32 : i32 to index
    %c0_177 = arith.constant 0 : index
    %c0_178 = arith.constant 0 : index
    %522 = vector.load %arg8[%521, %c0_177, %c0_178] : memref<8x8x128xf32, #tpu.memory_space<vmem>>, vector<1x8x128xf32>
    %523 = vector.shape_cast %522 : vector<1x8x128xf32> to vector<8x128xf32>
    %524 = tpu.concatenate %523, %483 in 1 : vector<8x128xf32>, vector<8x128xf32> -> vector<8x256xf32>
    %c0_179 = arith.constant 0 : index
    %c0_180 = arith.constant 0 : index
    %c0_181 = arith.constant 0 : index
    %525 = vector.load %arg3[%c0_179, %c0_180, %c0_181] : memref<2x256x512xf32, #tpu.memory_space<vmem>>, vector<1x256x512xf32>
    %526 = vector.shape_cast %525 : vector<1x256x512xf32> to vector<256x512xf32>
    %cst_182 = arith.constant dense<0.000000e+00> : vector<8x512xf32>
    %527 = tpu.matmul %524, %526, %cst_182 {dimension_numbers = #tpu.dot_dimension_numbers<[1], [0], [0], [1], [0, 0, 1, 1], [], []>} : vector<8x256xf32>, vector<256x512xf32>, vector<8x512xf32> -> vector<8x512xf32>
    %c0_183 = arith.constant 0 : index
    %c0_184 = arith.constant 0 : index
    %c0_185 = arith.constant 0 : index
    %528 = vector.load %arg4[%c0_183, %c0_184, %c0_185] : memref<2x1x512xf32, #tpu.memory_space<vmem>>, vector<1x1x512xf32>
    %529 = vector.shape_cast %528 : vector<1x1x512xf32> to vector<1x512xf32>
    %530 = vector.broadcast %529 : vector<1x512xf32> to vector<8x512xf32>
    %531 = arith.addf %527, %530 : vector<8x512xf32>
    %532 = vector.extract_strided_slice %531 {offsets = [0, 0], sizes = [8, 128], strides = [1, 1]} : vector<8x512xf32> to vector<8x128xf32>
    %533 = arith.negf %532 : vector<8x128xf32>
    %534 = math.exp %533 : vector<8x128xf32>
    %cst_186 = arith.constant 1.000000e+00 : f32
    %535 = vector.broadcast %cst_186 : f32 to vector<8x128xf32>
    %536 = arith.addf %535, %534 : vector<8x128xf32>
    %537 = arith.divf %535, %536 : vector<8x128xf32>
    %538 = vector.extract_strided_slice %531 {offsets = [0, 128], sizes = [8, 128], strides = [1, 1]} : vector<8x512xf32> to vector<8x128xf32>
    %539 = arith.negf %538 : vector<8x128xf32>
    %540 = math.exp %539 : vector<8x128xf32>
    %cst_187 = arith.constant 1.000000e+00 : f32
    %541 = vector.broadcast %cst_187 : f32 to vector<8x128xf32>
    %542 = arith.addf %541, %540 : vector<8x128xf32>
    %543 = arith.divf %541, %542 : vector<8x128xf32>
    %544 = vector.extract_strided_slice %531 {offsets = [0, 256], sizes = [8, 128], strides = [1, 1]} : vector<8x512xf32> to vector<8x128xf32>
    %545 = math.tanh %544 : vector<8x128xf32>
    %546 = vector.extract_strided_slice %531 {offsets = [0, 384], sizes = [8, 128], strides = [1, 1]} : vector<8x512xf32> to vector<8x128xf32>
    %547 = arith.negf %546 : vector<8x128xf32>
    %548 = math.exp %547 : vector<8x128xf32>
    %cst_188 = arith.constant 1.000000e+00 : f32
    %549 = vector.broadcast %cst_188 : f32 to vector<8x128xf32>
    %550 = arith.addf %549, %548 : vector<8x128xf32>
    %551 = arith.divf %549, %550 : vector<8x128xf32>
    %552 = arith.mulf %543, %481 : vector<8x128xf32>
    %553 = arith.mulf %537, %545 : vector<8x128xf32>
    %554 = arith.addf %552, %553 : vector<8x128xf32>
    %555 = math.tanh %554 : vector<8x128xf32>
    %556 = arith.mulf %551, %555 : vector<8x128xf32>
    %557 = tpu.concatenate %556, %516 in 1 : vector<8x128xf32>, vector<8x128xf32> -> vector<8x256xf32>
    %c1_189 = arith.constant 1 : index
    %c0_190 = arith.constant 0 : index
    %c0_191 = arith.constant 0 : index
    %558 = vector.load %arg3[%c1_189, %c0_190, %c0_191] : memref<2x256x512xf32, #tpu.memory_space<vmem>>, vector<1x256x512xf32>
    %559 = vector.shape_cast %558 : vector<1x256x512xf32> to vector<256x512xf32>
    %cst_192 = arith.constant dense<0.000000e+00> : vector<8x512xf32>
    %560 = tpu.matmul %557, %559, %cst_192 {dimension_numbers = #tpu.dot_dimension_numbers<[1], [0], [0], [1], [0, 0, 1, 1], [], []>} : vector<8x256xf32>, vector<256x512xf32>, vector<8x512xf32> -> vector<8x512xf32>
    %c1_193 = arith.constant 1 : index
    %c0_194 = arith.constant 0 : index
    %c0_195 = arith.constant 0 : index
    %561 = vector.load %arg4[%c1_193, %c0_194, %c0_195] : memref<2x1x512xf32, #tpu.memory_space<vmem>>, vector<1x1x512xf32>
    %562 = vector.shape_cast %561 : vector<1x1x512xf32> to vector<1x512xf32>
    %563 = vector.broadcast %562 : vector<1x512xf32> to vector<8x512xf32>
    %564 = arith.addf %560, %563 : vector<8x512xf32>
    %565 = vector.extract_strided_slice %564 {offsets = [0, 0], sizes = [8, 128], strides = [1, 1]} : vector<8x512xf32> to vector<8x128xf32>
    %566 = arith.negf %565 : vector<8x128xf32>
    %567 = math.exp %566 : vector<8x128xf32>
    %cst_196 = arith.constant 1.000000e+00 : f32
    %568 = vector.broadcast %cst_196 : f32 to vector<8x128xf32>
    %569 = arith.addf %568, %567 : vector<8x128xf32>
    %570 = arith.divf %568, %569 : vector<8x128xf32>
    %571 = vector.extract_strided_slice %564 {offsets = [0, 128], sizes = [8, 128], strides = [1, 1]} : vector<8x512xf32> to vector<8x128xf32>
    %572 = arith.negf %571 : vector<8x128xf32>
    %573 = math.exp %572 : vector<8x128xf32>
    %cst_197 = arith.constant 1.000000e+00 : f32
    %574 = vector.broadcast %cst_197 : f32 to vector<8x128xf32>
    %575 = arith.addf %574, %573 : vector<8x128xf32>
    %576 = arith.divf %574, %575 : vector<8x128xf32>
    %577 = vector.extract_strided_slice %564 {offsets = [0, 256], sizes = [8, 128], strides = [1, 1]} : vector<8x512xf32> to vector<8x128xf32>
    %578 = math.tanh %577 : vector<8x128xf32>
    %579 = vector.extract_strided_slice %564 {offsets = [0, 384], sizes = [8, 128], strides = [1, 1]} : vector<8x512xf32> to vector<8x128xf32>
    %580 = arith.negf %579 : vector<8x128xf32>
    %581 = math.exp %580 : vector<8x128xf32>
    %cst_198 = arith.constant 1.000000e+00 : f32
    %582 = vector.broadcast %cst_198 : f32 to vector<8x128xf32>
    %583 = arith.addf %582, %581 : vector<8x128xf32>
    %584 = arith.divf %582, %583 : vector<8x128xf32>
    %585 = arith.mulf %576, %514 : vector<8x128xf32>
    %586 = arith.mulf %570, %578 : vector<8x128xf32>
    %587 = arith.addf %585, %586 : vector<8x128xf32>
    %588 = math.tanh %587 : vector<8x128xf32>
    %589 = arith.mulf %584, %588 : vector<8x128xf32>
    %590 = arith.index_cast %c7_i32 : i32 to index
    %c0_199 = arith.constant 0 : index
    %c0_200 = arith.constant 0 : index
    %591 = vector.load %arg9[%590, %c0_199, %c0_200] : memref<8x8x128xf32, #tpu.memory_space<vmem>>, vector<1x8x128xf32>
    %592 = vector.shape_cast %591 : vector<1x8x128xf32> to vector<8x128xf32>
    %593 = vector.shape_cast %589 : vector<8x128xf32> to vector<1x8x128xf32>
    tpu.vector_store %arg9[%590, %c0_199, %c0_200], %593 {strides = array<i32>} : memref<8x8x128xf32, #tpu.memory_space<vmem>>, vector<1x8x128xf32>,
    %c8_i32 = arith.constant 8 : i32
    %c0_201 = arith.constant 0 : index
    %c0_202 = arith.constant 0 : index
    %c0_203 = arith.constant 0 : index
    %594 = vector.load %arg9[%c0_201, %c0_202, %c0_203] : memref<8x8x128xf32, #tpu.memory_space<vmem>>, vector<8x8x128xf32>
    %595 = vector.shape_cast %594 : vector<8x8x128xf32> to vector<64x128xf32>
    %c0_204 = arith.constant 0 : index
    %c0_205 = arith.constant 0 : index
    %596 = vector.load %arg5[%c0_204, %c0_205] : memref<128x128xf32, #tpu.memory_space<vmem>>, vector<128x128xf32>
    %cst_206 = arith.constant dense<0.000000e+00> : vector<64x128xf32>
    %597 = tpu.matmul %595, %596, %cst_206 {dimension_numbers = #tpu.dot_dimension_numbers<[1], [0], [0], [1], [0, 0, 1, 1], [], []>} : vector<64x128xf32>, vector<128x128xf32>, vector<64x128xf32> -> vector<64x128xf32>
    %c0_207 = arith.constant 0 : index
    %c0_208 = arith.constant 0 : index
    %598 = vector.load %arg6[%c0_207, %c0_208] : memref<1x128xf32, #tpu.memory_space<vmem>>, vector<1x128xf32>
    %599 = vector.broadcast %598 : vector<1x128xf32> to vector<64x128xf32>
    %600 = arith.addf %597, %599 : vector<64x128xf32>
    %601 = vector.shape_cast %600 : vector<64x128xf32> to vector<8x8x128xf32>
    %c0_209 = arith.constant 0 : index
    %c0_210 = arith.constant 0 : index
    %c0_211 = arith.constant 0 : index
    %602 = vector.load %arg7[%c0_209, %c0_210, %c0_211] : memref<8x8x128xf32, #tpu.memory_space<vmem>>, vector<8x8x128xf32>
    tpu.vector_store %arg7[%c0_209, %c0_210, %c0_211], %601 {strides = array<i32>} : memref<8x8x128xf32, #tpu.memory_space<vmem>>, vector<8x8x128xf32>,
    return
  }
}

</mosaic_0001>

<bundles_post_ra>
// kernel: tpu_custom_call.1
= control target key start
LH: loop header
LB: loop body
LE: loop exit
PB: predicated region body
PF: predicated region fallthrough
CT: control target
= control target key end

     0   :  { %12 = vsyncpa [#allocation5], 0  ;;  %s8566_s0 = inlined_call_operand.hbm [shape: f32[8,8,128], index: 0, kind: input, shape index: {}]   ;;  %s8567_s1 = inlined_call_operand.hbm [shape: f32[128,128], index: 1, kind: input, shape index: {}]   ;;  %s8568_s2 = inlined_call_operand.vmem [shape: f32[1,128], index: 2, kind: input, shape index: {}]   ;;  %s8569_s3 = inlined_call_operand.hbm [shape: f32[2,256,512], index: 3, kind: input, shape index: {}]   ;;  %s8570_s4 = inlined_call_operand.vmem [shape: f32[2,1,512], index: 4, kind: input, shape index: {}]   ;;  %s8571_s5 = inlined_call_operand.hbm [shape: f32[128,128], index: 5, kind: input, shape index: {}]   ;;  %s8572_s6 = inlined_call_operand.vmem [shape: f32[1,128], index: 6, kind: input, shape index: {}]   ;;  %s8573_s7 = inlined_call_operand.hbm [shape: f32[8,8,128], index: 7, kind: output, shape index: {}]  }
   0x1   :  { %13 = vsyncpa [#allocation8], 0 }
   0x2   :  { %14 = vsyncpa [#allocation11], 0 }
   0x3   :  { %15 = vsyncpa [#allocation6], 0  ;;  %s8174_s24 = smov [#allocation7]   ;;  %s8175_s26 = smov [#allocation4]  }
   0x4   :  { %s33_s25 = sshll.u32 %s8174_s24, 4  ;;  %s21_s27 = sshll.u32 %s8175_s26, 4  ;;  %s34_s25 = int_to_ptr.vmem [resolvable:$true] %s33_s25  ;;  %s8224_s27 = int_to_ptr.vmem [resolvable:$true] %s21_s27 }
   0x5   :  { %s8056_s30 = scalar_lea.hbm %s8567_s1, 2048 }
   0x6   :  { %p8057_p0 = scmp.ne.s32.totalorder %s8567_s1, %s8056_s30  ;;  %p8060_p1 = scmp.lt.u32.totalorder %s8056_s30, %s8567_s1 }
   0x8   :  { %p8062_p2 = pnand %p8060_p1, %p8057_p0 }
   0xa   :  { %8065 = shalt.err (!%p8062_p2)
}
   0xb   :  { %s8066_s12 = scalar_lea.vmem %s34_s25, 2048  ;;  %p8071_p4 = scmp.lt.s32.totalorder %s34_s25, %s34_s25 }
   0xc   :  { %p8067_p3 = scmp.ne.s32.totalorder %s34_s25, %s8066_s12  ;;  %p8072_p5 = scmp.lt.s32.totalorder %s8066_s12, %s8066_s12 }
   0xe   :  { %p8073_p6 = por %p8072_p5, %p8071_p4 }
  0x10   :  { %p8074_p7 = pnand %p8073_p6, %p8067_p3 }
  0x12   :  { %8077 = shalt.err (!%p8074_p7)
}
  0x13   :  { %s8176_s13 = smov 128   ;;  %s8177_s14 = smov 8  }
  0x14   :  { %39 = dma.hbm_to_vmem [thread:$0]  %s8567_s1, 2048, %s34_s25, [#allocation8], %s8176_s13, %s8176_s13, %s8177_s14  }
  0x15   :  { %s8078_s19 = scalar_lea.hbm %s8566_s0, 1024 }
  0x16   :  { %p8079_p8 = scmp.ne.s32.totalorder %s8566_s0, %s8078_s19  ;;  %p8082_p9 = scmp.lt.u32.totalorder %s8078_s19, %s8566_s0 }
  0x18   :  { %p8084_p10 = pnand %p8082_p9, %p8079_p8 }
  0x1a   :  { %8087 = shalt.err (!%p8084_p10)
}
  0x1b   :  { %s8088_s24 = scalar_lea.vmem %s8224_s27, 1024  ;;  %p8093_p12 = scmp.lt.s32.totalorder %s8224_s27, %s8224_s27 }
  0x1c   :  { %p8089_p11 = scmp.ne.s32.totalorder %s8224_s27, %s8088_s24  ;;  %p8094_p13 = scmp.lt.s32.totalorder %s8088_s24, %s8088_s24 }
  0x1e   :  { %p8095_p0 = por %p8094_p13, %p8093_p12 }
  0x20   :  { %p8096_p1 = pnand %p8095_p0, %p8089_p11 }
  0x22   :  { %8099 = shalt.err (!%p8096_p1)
}
  0x23   :  { %27 = dma.hbm_to_vmem [thread:$0]  %s8566_s0, 1024, %s8224_s27, [#allocation5], %s8176_s13, %s8176_s13, %s8177_s14  }
  0x24   :  { %s8178_s26 = smov [#allocation9]   ;;  %s8100_s8 = scalar_lea.hbm %s8569_s3, 32768 }
  0x25   :  { %s47_s28 = sshll.u32 %s8178_s26, 4  ;;  %p8101_p2 = scmp.ne.s32.totalorder %s8569_s3, %s8100_s8  ;;  %s48_s28 = int_to_ptr.vmem [resolvable:$true] %s47_s28 }
  0x26   :  { %p8104_p3 = scmp.lt.u32.totalorder %s8100_s8, %s8569_s3 }
  0x28   :  { %p8106_p4 = pnand %p8104_p3, %p8101_p2 }
  0x2a   :  { %8109 = shalt.err (!%p8106_p4)
}
  0x2b   :  { %s8110_s15 = scalar_lea.vmem %s48_s28, 32768  ;;  %p8115_p6 = scmp.lt.s32.totalorder %s48_s28, %s48_s28 }
  0x2c   :  { %p8111_p5 = scmp.ne.s32.totalorder %s48_s28, %s8110_s15  ;;  %p8116_p7 = scmp.lt.s32.totalorder %s8110_s15, %s8110_s15 }
  0x2e   :  { %p8117_p8 = por %p8116_p7, %p8115_p6 }
  0x30   :  { %p8118_p9 = pnand %p8117_p8, %p8111_p5 }
  0x32   :  { %8121 = shalt.err (!%p8118_p9)
}
  0x33   :  { %s8179_s0 = smov 512   ;;  %s8180_s27 = smov 32  }
  0x34   :  { %53 = dma.hbm_to_vmem [thread:$0]  %s8569_s3, 32768, %s48_s28, [#allocation8], %s8179_s0, %s8179_s0, %s8180_s27  }
  0x35   :  { %s8181_s18 = smov [#allocation10]   ;;  %s8122_s22 = scalar_lea.hbm %s8571_s5, 2048 }
  0x36   :  { %s61_s19 = sshll.u32 %s8181_s18, 4  ;;  %p8123_p10 = scmp.ne.s32.totalorder %s8571_s5, %s8122_s22  ;;  %s62_s19 = int_to_ptr.vmem [resolvable:$true] %s61_s19 }
  0x37   :  { %p8126_p11 = scmp.lt.u32.totalorder %s8122_s22, %s8571_s5 }
  0x39   :  { %p8128_p12 = pnand %p8126_p11, %p8123_p10 }
  0x3b   :  { %8131 = shalt.err (!%p8128_p12)
}
  0x3c   :  { %s8132_s26 = scalar_lea.vmem %s62_s19, 2048  ;;  %p8137_p0 = scmp.lt.s32.totalorder %s62_s19, %s62_s19 }
  0x3d   :  { %p8133_p13 = scmp.ne.s32.totalorder %s62_s19, %s8132_s26  ;;  %p8138_p1 = scmp.lt.s32.totalorder %s8132_s26, %s8132_s26 }
  0x3f   :  { %p8139_p2 = por %p8138_p1, %p8137_p0 }
  0x41   :  { %p8140_p3 = pnand %p8139_p2, %p8133_p13 }
  0x43   :  { %8143 = shalt.err (!%p8140_p3)
}
  0x44   :  { %67 = dma.hbm_to_vmem [thread:$0]  %s8571_s5, 2048, %s62_s19, [#allocation11], %s8176_s13, %s8176_s13, %s8177_s14  }
  0x45   :  { %8166 = dma.done.wait [#allocation5], 1024  }
  0x46   :  { %8167 = vsyncadd [#allocation5], 4294966272 }
  0x47   :  { %8168 = dma.done.wait [#allocation8], 34816  }
  0x48   :  { %8169 = vsyncadd [#allocation8], 4294932480 }
  0x49   :  { %8170 = dma.done.wait [#allocation11], 2048  }
  0x4a   :  { %8171 = vsyncadd [#allocation11], 4294965248  ;;  %v90_v0 = vld [vmem:[#allocation7] sm:$0xff]  ;;  %v91_v1 = vld [vmem:[#allocation7 + $0x8] sm:$0xff] }
  0x4b   :  { %v92_v2 = vld [vmem:[#allocation7 + $0x10] sm:$0xff]  ;;  %v5671_v3 = vpack.c.bf16 %v91_v1, %v90_v0  ;;  %v93_v4 = vld [vmem:[#allocation7 + $0x18] sm:$0xff]  ;;  %v94_v6 = vld [vmem:[#allocation7 + $0x20] sm:$0xff] }
  0x4c   :  { %v5675_v5 = vpack.c.bf16 %v93_v4, %v92_v2  ;;  %v95_v7 = vld [vmem:[#allocation7 + $0x28] sm:$0xff]  ;;  %v96_v9 = vld [vmem:[#allocation7 + $0x30] sm:$0xff]  ;;  %v82_v10 = vld [vmem:[#allocation4] sm:$0xff] }
  0x4d   :  { %5672 = vmatprep.subr.bf16.mxu0 %v5671_v3  ;;  %v5679_v8 = vpack.c.bf16 %v95_v7, %v94_v6  ;;  %v97_v11 = vld [vmem:[#allocation7 + $0x38] sm:$0xff]  ;;  %5615 = vmatprep.mubr.f32.mxu0 %v82_v10  ;;  %v228_v12 = vld [vmem:[#allocation9 + $0x8] sm:$0xff]  ;;  %v227_v15 = vld [vmem:[#allocation9] sm:$0xff] }
  0x4e   :  { %5674 = vmatpush3.bf16.msra.mxu0 %v5671_v3  ;;  %v232_v13 = vld [vmem:[#allocation9 + $0x28] sm:$0xff]  ;;  %v231_v16 = vld [vmem:[#allocation9 + $0x20] sm:$0xff]  ;;  %v5683_v19 = vpack.c.bf16 %v97_v11, %v96_v9  ;;  %v100_v32 = vld [vmem:[#allocation7 + $0x50] sm:$0xff] }
  0x4f   :  { %5676 = vmatprep.subr.bf16.mxu0 %v5675_v5  ;;  %v5703_v14 = vpack.c.bf16 %v232_v13, %v228_v12  ;;  %v5705_v17 = vpack.c.bf16 %v231_v16, %v227_v15  ;;  %v236_v18 = vld [vmem:[#allocation9 + $0x48] sm:$0xff]  ;;  %v98_v20 = vld [vmem:[#allocation7 + $0x40] sm:$0xff]  ;;  %v101_v34 = vld [vmem:[#allocation7 + $0x58] sm:$0xff] }
  0x50   :  { %v240_v21 = vld [vmem:[#allocation9 + $0x68] sm:$0xff]  ;;  %v235_v24 = vld [vmem:[#allocation9 + $0x40] sm:$0xff]  ;;  %v5691_v42 = vpack.c.bf16 %v101_v34, %v100_v32  ;;  %v104_v53 = vld [vmem:[#allocation7 + $0x70] sm:$0xff] }
  0x51   :  { %5704 = vmatprep.subr.bf16.mxu1 %v5703_v14  ;;  %v99_v22 = vld [vmem:[#allocation7 + $0x48] sm:$0xff]  ;;  %v5707_v23 = vpack.c.bf16 %v240_v21, %v236_v18  ;;  %v239_v25 = vld [vmem:[#allocation9 + $0x60] sm:$0xff]  ;;  %v105_v54 = vld [vmem:[#allocation7 + $0x78] sm:$0xff] }
  0x52   :  { %5678 = vmatpush3.bf16.msra.mxu0 %v5675_v5  ;;  %5706 = vmatpush1.bf16.msra.mxu1 %v5705_v17  ;;  %v5709_v26 = vpack.c.bf16 %v239_v25, %v235_v24  ;;  %v244_v27 = vld [vmem:[#allocation9 + $0x88] sm:$0xff]  ;;  %v243_v30 = vld [vmem:[#allocation9 + $0x80] sm:$0xff]  ;;  %v5687_v31 = vpack.c.bf16 %v99_v22, %v98_v20  ;;  %v5699_v61 = vpack.c.bf16 %v105_v54, %v104_v53  ;;  %v230_v62 = vld [vmem:[#allocation9 + $0x18] sm:$0xff] }
  0x53   :  { %5680 = vmatprep.subr.bf16.mxu0 %v5679_v8  ;;  %v248_v28 = vld [vmem:[#allocation9 + $0xa8] sm:$0xff]  ;;  %5708 = vmatprep.subr.bf16.mxu1 %v5707_v23  ;;  %v247_v33 = vld [vmem:[#allocation9 + $0xa0] sm:$0xff]  ;;  %v234_v63 = vld [vmem:[#allocation9 + $0x38] sm:$0xff] }
  0x54   :  { %v5711_v29 = vpack.c.bf16 %v248_v28, %v244_v27  ;;  %v5713_v35 = vpack.c.bf16 %v247_v33, %v243_v30  ;;  %v252_v36 = vld [vmem:[#allocation9 + $0xc8] sm:$0xff]  ;;  %v251_v39 = vld [vmem:[#allocation9 + $0xc0] sm:$0xff]  ;;  %v5767_v6 = vpack.c.bf16 %v234_v63, %v230_v62  ;;  %v229_v7 = vld [vmem:[#allocation9 + $0x10] sm:$0xff] }
  0x55   :  { %v256_v37 = vld [vmem:[#allocation9 + $0xe8] sm:$0xff]  ;;  %v255_v40 = vld [vmem:[#allocation9 + $0xe0] sm:$0xff]  ;;  %v238_v9 = vld [vmem:[#allocation9 + $0x58] sm:$0xff] }
  0x56   :  { %5682 = vmatpush3.bf16.msra.mxu0 %v5679_v8  ;;  %5710 = vmatpush1.bf16.msra.mxu1 %v5709_v26  ;;  %v5715_v38 = vpack.c.bf16 %v256_v37, %v252_v36  ;;  %v260_v41 = vld [vmem:[#allocation9 + $0x108] sm:$0xff]  ;;  %v102_v44 = vld [vmem:[#allocation7 + $0x60] sm:$0xff]  ;;  %v5717_v46 = vpack.c.bf16 %v255_v40, %v251_v39  ;;  %v233_v8 = vld [vmem:[#allocation9 + $0x30] sm:$0xff] }
  0x57   :  { %5684 = vmatprep.subr.bf16.mxu0 %v5683_v19  ;;  %5712 = vmatprep.subr.bf16.mxu1 %v5711_v29  ;;  %v264_v43 = vld [vmem:[#allocation9 + $0x128] sm:$0xff]  ;;  %v259_v48 = vld [vmem:[#allocation9 + $0x100] sm:$0xff]  ;;  %v242_v10 = vld [vmem:[#allocation9 + $0x78] sm:$0xff]  ;;  %v5769_v16 = vpack.c.bf16 %v233_v8, %v229_v7 }
  0x58   :  { %v103_v45 = vld [vmem:[#allocation7 + $0x68] sm:$0xff]  ;;  %v5719_v47 = vpack.c.bf16 %v264_v43, %v260_v41  ;;  %v263_v49 = vld [vmem:[#allocation9 + $0x120] sm:$0xff]  ;;  %v237_v20 = vld [vmem:[#allocation9 + $0x50] sm:$0xff] }
  0x59   :  { %v268_v50 = vld [vmem:[#allocation9 + $0x148] sm:$0xff]  ;;  %v5695_v52 = vpack.c.bf16 %v103_v45, %v102_v44  ;;  %v5721_v55 = vpack.c.bf16 %v263_v49, %v259_v48  ;;  %v267_v57 = vld [vmem:[#allocation9 + $0x140] sm:$0xff]  ;;  %v241_v21 = vld [vmem:[#allocation9 + $0x70] sm:$0xff] }
  0x5a   :  { %5686 = vmatpush3.bf16.msra.mxu0 %v5683_v19  ;;  %5714 = vmatpush1.bf16.msra.mxu1 %v5713_v35  ;;  %v272_v51 = vld [vmem:[#allocation9 + $0x168] sm:$0xff]  ;;  %v271_v58 = vld [vmem:[#allocation9 + $0x160] sm:$0xff]  ;;  %v5771_v19 = vpack.c.bf16 %v242_v10, %v238_v9  ;;  %v246_v22 = vld [vmem:[#allocation9 + $0x98] sm:$0xff]  ;;  %v5773_v28 = vpack.c.bf16 %v241_v21, %v237_v20 }
  0x5b   :  { %5688 = vmatprep.subr.bf16.mxu0 %v5687_v31  ;;  %5716 = vmatprep.subr.bf16.mxu1 %v5715_v38  ;;  %v5723_v56 = vpack.c.bf16 %v272_v51, %v268_v50  ;;  %v276_v59 = vld [vmem:[#allocation9 + $0x188] sm:$0xff]  ;;  %v5725_v0 = vpack.c.bf16 %v271_v58, %v267_v57  ;;  %v275_v2 = vld [vmem:[#allocation9 + $0x180] sm:$0xff]  ;;  %v250_v23 = vld [vmem:[#allocation9 + $0xb8] sm:$0xff] }
  0x5c   :  { %v280_v60 = vld [vmem:[#allocation9 + $0x1a8] sm:$0xff]  ;;  %v279_v3 = vld [vmem:[#allocation9 + $0x1a0] sm:$0xff]  ;;  %v245_v32 = vld [vmem:[#allocation9 + $0x90] sm:$0xff] }
  0x5d   :  { %v5727_v1 = vpack.c.bf16 %v280_v60, %v276_v59  ;;  %v284_v4 = vld [vmem:[#allocation9 + $0x1c8] sm:$0xff]  ;;  %v5729_v11 = vpack.c.bf16 %v279_v3, %v275_v2  ;;  %v283_v13 = vld [vmem:[#allocation9 + $0x1c0] sm:$0xff]  ;;  %v249_v33 = vld [vmem:[#allocation9 + $0xb0] sm:$0xff] }
  0x5e   :  { %5690 = vmatpush3.bf16.msra.mxu0 %v5687_v31  ;;  %5718 = vmatpush1.bf16.msra.mxu1 %v5717_v46  ;;  %v288_v5 = vld [vmem:[#allocation9 + $0x1e8] sm:$0xff]  ;;  %v287_v14 = vld [vmem:[#allocation9 + $0x1e0] sm:$0xff]  ;;  %v5775_v31 = vpack.c.bf16 %v250_v23, %v246_v22  ;;  %v254_v34 = vld [vmem:[#allocation9 + $0xd8] sm:$0xff]  ;;  %v5777_v40 = vpack.c.bf16 %v249_v33, %v245_v32 }
  0x5f   :  { %5692 = vmatprep.subr.bf16.mxu0 %v5691_v42  ;;  %5720 = vmatprep.subr.bf16.mxu1 %v5719_v47  ;;  %v5731_v12 = vpack.c.bf16 %v288_v5, %v284_v4  ;;  %v83_v15 = vld [vmem:[#allocation4 + $0x8] sm:$0xff]  ;;  %v5733_v24 = vpack.c.bf16 %v287_v14, %v283_v13  ;;  %v291_v26 = vld [vmem:[#allocation9 + $0x200] sm:$0xff]  ;;  %v258_v35 = vld [vmem:[#allocation9 + $0xf8] sm:$0xff] }
  0x60   :  { %v292_v17 = vld [vmem:[#allocation9 + $0x208] sm:$0xff]  ;;  %v295_v27 = vld [vmem:[#allocation9 + $0x220] sm:$0xff]  ;;  %v84_v43 = vld [vmem:[#allocation4 + $0x10] sm:$0xff]  ;;  %v5779_v44 = vpack.c.bf16 %v258_v35, %v254_v34 }
  0x61   :  { %v296_v18 = vld [vmem:[#allocation9 + $0x228] sm:$0xff]  ;;  %v5737_v36 = vpack.c.bf16 %v295_v27, %v291_v26  ;;  %v299_v38 = vld [vmem:[#allocation9 + $0x240] sm:$0xff]  ;;  %v253_v45 = vld [vmem:[#allocation9 + $0xd0] sm:$0xff] }
  0x62   :  { %5694 = vmatpush3.bf16.msra.mxu0 %v5691_v42  ;;  %5722 = vmatpush1.bf16.msra.mxu1 %v5721_v55  ;;  %v5735_v25 = vpack.c.bf16 %v296_v18, %v292_v17  ;;  %v300_v29 = vld [vmem:[#allocation9 + $0x248] sm:$0xff]  ;;  %v303_v39 = vld [vmem:[#allocation9 + $0x260] sm:$0xff]  ;;  %v257_v46 = vld [vmem:[#allocation9 + $0xf0] sm:$0xff] }
  0x63   :  { %5696 = vmatprep.subr.bf16.mxu0 %v5695_v52  ;;  %5724 = vmatprep.subr.bf16.mxu1 %v5723_v56  ;;  %v304_v30 = vld [vmem:[#allocation9 + $0x268] sm:$0xff]  ;;  %v85_v47 = vld [vmem:[#allocation4 + $0x18] sm:$0xff]  ;;  %v5741_v50 = vpack.c.bf16 %v303_v39, %v299_v38  ;;  %v311_v53 = vld [vmem:[#allocation9 + $0x2a0] sm:$0xff]  ;;  %v5781_v55 = vpack.c.bf16 %v257_v46, %v253_v45 }
  0x64   :  { %v5739_v37 = vpack.c.bf16 %v304_v30, %v300_v29  ;;  %v308_v41 = vld [vmem:[#allocation9 + $0x288] sm:$0xff]  ;;  %v262_v48 = vld [vmem:[#allocation9 + $0x118] sm:$0xff]  ;;  %v86_v57 = vld [vmem:[#allocation4 + $0x20] sm:$0xff] }
  0x65   :  { %v312_v42 = vld [vmem:[#allocation9 + $0x2a8] sm:$0xff]  ;;  %v266_v49 = vld [vmem:[#allocation9 + $0x138] sm:$0xff]  ;;  %v261_v60 = vld [vmem:[#allocation9 + $0x110] sm:$0xff] }
  0x66   :  { %5698 = vmatpush3.bf16.msra.mxu0 %v5695_v52  ;;  %5726 = vmatpush1.bf16.msra.mxu1 %v5725_v0  ;;  %v5743_v51 = vpack.c.bf16 %v312_v42, %v308_v41  ;;  %v307_v52 = vld [vmem:[#allocation9 + $0x280] sm:$0xff]  ;;  %v316_v54 = vld [vmem:[#allocation9 + $0x2c8] sm:$0xff]  ;;  %v5783_v59 = vpack.c.bf16 %v266_v49, %v262_v48  ;;  %v270_v62 = vld [vmem:[#allocation9 + $0x158] sm:$0xff] }
  0x67   :  { %5700 = vmatprep.subr.bf16.mxu0 %v5699_v61  ;;  %5728 = vmatprep.subr.bf16.mxu1 %v5727_v1  ;;  %v320_v56 = vld [vmem:[#allocation9 + $0x2e8] sm:$0xff]  ;;  %v274_v63 = vld [vmem:[#allocation9 + $0x178] sm:$0xff]  ;;  %v5745_v0 = vpack.c.bf16 %v311_v53, %v307_v52  ;;  %v315_v2 = vld [vmem:[#allocation9 + $0x2c0] sm:$0xff] }
  0x68   :  { %v87_v58 = vld [vmem:[#allocation4 + $0x28] sm:$0xff]  ;;  %v5747_v1 = vpack.c.bf16 %v320_v56, %v316_v54  ;;  %v319_v3 = vld [vmem:[#allocation9 + $0x2e0] sm:$0xff]  ;;  %v88_v4 = vld [vmem:[#allocation4 + $0x30] sm:$0xff]  ;;  %v5787_v8 = vpack.c.bf16 %v274_v63, %v270_v62 }
  0x69   :  { %v328_v7 = vld [vmem:[#allocation9 + $0x328] sm:$0xff]  ;;  %v269_v9 = vld [vmem:[#allocation9 + $0x150] sm:$0xff]  ;;  %v5749_v13 = vpack.c.bf16 %v319_v3, %v315_v2  ;;  %v286_v23 = vld [vmem:[#allocation9 + $0x1d8] sm:$0xff] }
  0x6a   :  { %5702 = vmatpush3.bf16.msra.mxu0 %v5699_v61  ;;  %5730 = vmatpush1.bf16.msra.mxu1 %v5729_v11  ;;  %v265_v61 = vld [vmem:[#allocation9 + $0x130] sm:$0xff]  ;;  %v278_v11 = vld [vmem:[#allocation9 + $0x198] sm:$0xff]  ;;  %v332_v18 = vld [vmem:[#allocation9 + $0x348] sm:$0xff] }
  0x6b   :  { %5768 = vmatprep.subr.bf16.mxu0 %v5767_v6  ;;  %5732 = vmatprep.subr.bf16.mxu1 %v5731_v12  ;;  %v5785_v5 = vpack.c.bf16 %v265_v61, %v261_v60  ;;  %v324_v6 = vld [vmem:[#allocation9 + $0x308] sm:$0xff]  ;;  %v273_v10 = vld [vmem:[#allocation9 + $0x170] sm:$0xff]  ;;  %v282_v12 = vld [vmem:[#allocation9 + $0x1b8] sm:$0xff] }
  0x6c   :  { %v5751_v14 = vpack.c.bf16 %v328_v7, %v324_v6  ;;  %v5789_v17 = vpack.c.bf16 %v273_v10, %v269_v9  ;;  %v5791_v20 = vpack.c.bf16 %v282_v12, %v278_v11  ;;  %v277_v21 = vld [vmem:[#allocation9 + $0x190] sm:$0xff]  ;;  %v331_v27 = vld [vmem:[#allocation9 + $0x340] sm:$0xff]  ;;  %v340_v30 = vld [vmem:[#allocation9 + $0x388] sm:$0xff] }
  0x6d   :  { %5616 = vmatmul.mubr.f32.vlgmr.msra.gmra.mrb[0].mxu0 %v83_v15  ;;  %v323_v15 = vld [vmem:[#allocation9 + $0x300] sm:$0xff]  ;;  %v281_v22 = vld [vmem:[#allocation9 + $0x1b0] sm:$0xff]  ;;  %v294_v35 = vld [vmem:[#allocation9 + $0x218] sm:$0xff] }
  0x6e   :  { %5770 = vmatpush1.bf16.msra.mxu0 %v5769_v16  ;;  %5734 = vmatpush1.bf16.msra.mxu1 %v5733_v24  ;;  %v327_v16 = vld [vmem:[#allocation9 + $0x320] sm:$0xff]  ;;  %v290_v24 = vld [vmem:[#allocation9 + $0x1f8] sm:$0xff]  ;;  %v5793_v29 = vpack.c.bf16 %v281_v22, %v277_v21  ;;  %v285_v33 = vld [vmem:[#allocation9 + $0x1d0] sm:$0xff] }
  0x6f   :  { %5772 = vmatprep.subr.bf16.mxu0 %v5771_v19  ;;  %5736 = vmatprep.subr.bf16.mxu1 %v5735_v25  ;;  %v336_v19 = vld [vmem:[#allocation9 + $0x368] sm:$0xff]  ;;  %v5753_v25 = vpack.c.bf16 %v327_v16, %v323_v15  ;;  %v5795_v32 = vpack.c.bf16 %v290_v24, %v286_v23  ;;  %v289_v34 = vld [vmem:[#allocation9 + $0x1f0] sm:$0xff]  ;;  %v339_v39 = vld [vmem:[#allocation9 + $0x380] sm:$0xff] }
  0x70   :  { %5618 = vmatprep.mubr.f32.mxu0 %v84_v43  ;;  %v5755_v26 = vpack.c.bf16 %v336_v19, %v332_v18  ;;  %v5797_v41 = vpack.c.bf16 %v289_v34, %v285_v33  ;;  %v293_v43 = vld [vmem:[#allocation9 + $0x210] sm:$0xff]  ;;  %v302_v45 = vld [vmem:[#allocation9 + $0x258] sm:$0xff]  ;;  %v348_v19 = vld [vmem:[#allocation9 + $0x3c8] sm:$0xff] }
  0x71   :  { %5619 = vmatmul.mubr.f32.gmra.mrb[2].mxu0 %v85_v47  ;;  %v306_v46 = vld [vmem:[#allocation9 + $0x278] sm:$0xff]  ;;  %v309_v56 = vld [vmem:[#allocation9 + $0x290] sm:$0xff]  ;;  %v347_v24 = vld [vmem:[#allocation9 + $0x3c0] sm:$0xff] }
  0x72   :  { %5774 = vmatpush1.bf16.msra.mxu0 %v5773_v28  ;;  %5738 = vmatpush1.bf16.msra.mxu1 %v5737_v36  ;;  %v335_v28 = vld [vmem:[#allocation9 + $0x360] sm:$0xff]  ;;  %v298_v36 = vld [vmem:[#allocation9 + $0x238] sm:$0xff]  ;;  %v5803_v49 = vpack.c.bf16 %v306_v46, %v302_v45  ;;  %v317_v62 = vld [vmem:[#allocation9 + $0x2d0] sm:$0xff] }
  0x73   :  { %5776 = vmatprep.subr.bf16.mxu0 %v5775_v31  ;;  %5740 = vmatprep.subr.bf16.mxu1 %v5739_v37  ;;  %v344_v31 = vld [vmem:[#allocation9 + $0x3a8] sm:$0xff]  ;;  %v5757_v37 = vpack.c.bf16 %v335_v28, %v331_v27  ;;  %v5799_v42 = vpack.c.bf16 %v298_v36, %v294_v35  ;;  %v310_v52 = vld [vmem:[#allocation9 + $0x298] sm:$0xff]  ;;  %v321_v63 = vld [vmem:[#allocation9 + $0x2f0] sm:$0xff] }
  0x74   :  { %5621 = vmatprep.mubr.f32.mxu0 %v86_v57  ;;  %v5759_v38 = vpack.c.bf16 %v344_v31, %v340_v30  ;;  %v314_v53 = vld [vmem:[#allocation9 + $0x2b8] sm:$0xff]  ;;  %v313_v57 = vld [vmem:[#allocation9 + $0x2b0] sm:$0xff]  ;;  %v5813_v2 = vpack.c.bf16 %v321_v63, %v317_v62  ;;  %v545_v33 = vld [vmem:[#allocation9 + $0x408] sm:$0xff] }
  0x75   :  { %5622 = vmatmul.mubr.f32.gmra.mrb[4].mxu0 %v87_v58  ;;  %v318_v58 = vld [vmem:[#allocation9 + $0x2d8] sm:$0xff]  ;;  %v5809_v60 = vpack.c.bf16 %v313_v57, %v309_v56  ;;  %v333_v10 = vld [vmem:[#allocation9 + $0x350] sm:$0xff]  ;;  %v549_v34 = vld [vmem:[#allocation9 + $0x428] sm:$0xff] }
  0x76   :  { %5778 = vmatpush1.bf16.msra.mxu0 %v5777_v40  ;;  %5742 = vmatpush1.bf16.msra.mxu1 %v5741_v50  ;;  %v343_v40 = vld [vmem:[#allocation9 + $0x3a0] sm:$0xff]  ;;  %v301_v50 = vld [vmem:[#allocation9 + $0x250] sm:$0xff]  ;;  %v334_v6 = vld [vmem:[#allocation9 + $0x358] sm:$0xff]  ;;  %v5831_v36 = vpack.c.bf16 %v549_v34, %v545_v33 }
  0x77   :  { %5780 = vmatprep.subr.bf16.mxu0 %v5779_v44  ;;  %5744 = vmatprep.subr.bf16.mxu1 %v5743_v51  ;;  %v297_v44 = vld [vmem:[#allocation9 + $0x230] sm:$0xff]  ;;  %v5761_v47 = vpack.c.bf16 %v343_v40, %v339_v39  ;;  %v338_v7 = vld [vmem:[#allocation9 + $0x378] sm:$0xff]  ;;  %v5477_v39 = vld [vmem:[%s8568_s2] ss:$0 sm:$0xff] }
  0x78   :  { %5624 = vmatprep.mubr.f32.mxu0 %v88_v4  ;;  %v5801_v48 = vpack.c.bf16 %v297_v44, %v293_v43  ;;  %v305_v51 = vld [vmem:[#allocation9 + $0x270] sm:$0xff]  ;;  %v5819_v9 = vpack.c.bf16 %v338_v7, %v334_v6  ;;  %v342_v12 = vld [vmem:[#allocation9 + $0x398] sm:$0xff]  ;;  %v544_v40 = vld [vmem:[#allocation9 + $0x400] sm:$0xff] }
  0x79   :  { %v5805_v54 = vpack.c.bf16 %v305_v51, %v301_v50  ;;  %v325_v4 = vld [vmem:[#allocation9 + $0x310] sm:$0xff]  ;;  %v350_v21 = vld [vmem:[#allocation9 + $0x3d8] sm:$0xff]  ;;  %v553_v44 = vld [vmem:[#allocation9 + $0x448] sm:$0xff] }
  0x7a   :  { %5782 = vmatpush1.bf16.msra.mxu0 %v5781_v55  ;;  %5746 = vmatpush1.bf16.msra.mxu1 %v5745_v0  ;;  %v5807_v55 = vpack.c.bf16 %v314_v53, %v310_v52  ;;  %v326_v0 = vld [vmem:[#allocation9 + $0x318] sm:$0xff]  ;;  %v337_v11 = vld [vmem:[#allocation9 + $0x370] sm:$0xff]  ;;  %v557_v45 = vld [vmem:[#allocation9 + $0x468] sm:$0xff] }
  0x7b   :  { %5784 = vmatprep.subr.bf16.mxu0 %v5783_v59  ;;  %5748 = vmatprep.subr.bf16.mxu1 %v5747_v1  ;;  %v322_v59 = vld [vmem:[#allocation9 + $0x2f8] sm:$0xff]  ;;  %v341_v16 = vld [vmem:[#allocation9 + $0x390] sm:$0xff]  ;;  %v552_v52 = vld [vmem:[#allocation9 + $0x440] sm:$0xff] }
  0x7c   :  { %v5811_v61 = vpack.c.bf16 %v322_v59, %v318_v58  ;;  %v330_v1 = vld [vmem:[#allocation9 + $0x338] sm:$0xff]  ;;  %v353_v30 = vld [vmem:[#allocation9 + $0x3f0] sm:$0xff]  ;;  %v556_v53 = vld [vmem:[#allocation9 + $0x460] sm:$0xff] }
  0x7d   :  { %v5815_v3 = vpack.c.bf16 %v330_v1, %v326_v0  ;;  %v354_v23 = vld [vmem:[#allocation9 + $0x3f8] sm:$0xff]  ;;  %v550_v43 = vld [vmem:[#allocation9 + $0x430] sm:$0xff]  ;;  %v561_v59 = vld [vmem:[#allocation9 + $0x488] sm:$0xff]  ;;  %v5837_v63 = vpack.c.bf16 %v556_v53, %v552_v52 }
  0x7e   :  { %5786 = vmatpush1.bf16.msra.mxu0 %v5785_v5  ;;  %5750 = vmatpush1.bf16.msra.mxu1 %v5749_v13  ;;  %v329_v5 = vld [vmem:[#allocation9 + $0x330] sm:$0xff]  ;;  %v346_v13 = vld [vmem:[#allocation9 + $0x3b8] sm:$0xff]  ;;  %v5827_v27 = vpack.c.bf16 %v354_v23, %v350_v21  ;;  %v560_v1 = vld [vmem:[#allocation9 + $0x480] sm:$0xff] }
  0x7f   :  { %5788 = vmatprep.subr.bf16.mxu0 %v5787_v8  ;;  %5752 = vmatprep.subr.bf16.mxu1 %v5751_v14  ;;  %v5817_v8 = vpack.c.bf16 %v329_v5, %v325_v4  ;;  %v5821_v14 = vpack.c.bf16 %v337_v11, %v333_v10  ;;  %v5823_v15 = vpack.c.bf16 %v346_v13, %v342_v12  ;;  %v547_v35 = vld [vmem:[#allocation9 + $0x418] sm:$0xff]  ;;  %v554_v57 = vld [vmem:[#allocation9 + $0x450] sm:$0xff]  ;;  %v569_v7 = vld [vmem:[#allocation9 + $0x4c8] sm:$0xff] }
  0x80   :  { %v555_v46 = vld [vmem:[#allocation9 + $0x458] sm:$0xff]  ;;  %v558_v58 = vld [vmem:[#allocation9 + $0x470] sm:$0xff]  ;;  %v577_v21 = vld [vmem:[#allocation9 + $0x508] sm:$0xff] }
  0x81   :  { %v567_v62 = vld [vmem:[#allocation9 + $0x4b8] sm:$0xff]  ;;  %v5901_v0 = vpack.c.bf16 %v558_v58, %v554_v57  ;;  %v562_v5 = vld [vmem:[#allocation9 + $0x490] sm:$0xff]  ;;  %v581_v23 = vld [vmem:[#allocation9 + $0x528] sm:$0xff] }
  0x82   :  { %5790 = vmatpush1.bf16.msra.mxu0 %v5789_v17  ;;  %5754 = vmatpush1.bf16.msra.mxu1 %v5753_v25  ;;  %v345_v17 = vld [vmem:[#allocation9 + $0x3b0] sm:$0xff]  ;;  %v351_v25 = vld [vmem:[#allocation9 + $0x3e0] sm:$0xff]  ;;  %v571_v10 = vld [vmem:[#allocation9 + $0x4d8] sm:$0xff] }
  0x83   :  { %5792 = vmatprep.subr.bf16.mxu0 %v5791_v20  ;;  %5756 = vmatprep.subr.bf16.mxu1 %v5755_v26  ;;  %v5825_v18 = vpack.c.bf16 %v345_v17, %v341_v16  ;;  %v352_v20 = vld [vmem:[#allocation9 + $0x3e8] sm:$0xff]  ;;  %v89_v26 = vld [vmem:[#allocation4 + $0x38] sm:$0xff]  ;;  %v5765_v28 = vpack.c.bf16 %v351_v25, %v347_v24  ;;  %v566_v6 = vld [vmem:[#allocation9 + $0x4b0] sm:$0xff] }
  0x84   :  { %v5763_v22 = vpack.c.bf16 %v352_v20, %v348_v19  ;;  %5625 = vmatmul.mubr.f32.gmra.mrb[6].mxu0 %v89_v26  ;;  %v575_v11 = vld [vmem:[#allocation9 + $0x4f8] sm:$0xff]  ;;  %v572_v16 = vld [vmem:[#allocation9 + $0x4e0] sm:$0xff]  ;;  %v570_v19 = vld [vmem:[#allocation9 + $0x4d0] sm:$0xff] }
  0x85   :  { %v574_v20 = vld [vmem:[#allocation9 + $0x4f0] sm:$0xff]  ;;  %v579_v24 = vld [vmem:[#allocation9 + $0x518] sm:$0xff]  ;;  %v593_v52 = vld [vmem:[#allocation9 + $0x588] sm:$0xff] }
  0x86   :  { %5794 = vmatpush1.bf16.msra.mxu0 %v5793_v29  ;;  %5758 = vmatpush1.bf16.msra.mxu1 %v5757_v37  ;;  %v349_v29 = vld [vmem:[#allocation9 + $0x3d0] sm:$0xff]  ;;  %v551_v37 = vld [vmem:[#allocation9 + $0x438] sm:$0xff]  ;;  %v597_v53 = vld [vmem:[#allocation9 + $0x5a8] sm:$0xff] }
  0x87   :  { %5796 = vmatprep.subr.bf16.mxu0 %v5795_v32  ;;  %5760 = vmatprep.subr.bf16.mxu1 %v5759_v38  ;;  %v5829_v31 = vpack.c.bf16 %v353_v30, %v349_v29  ;;  %v8182_v32 = vmov 0.0   ;;  %v5895_v38 = vpack.c.bf16 %v551_v37, %v547_v35  ;;  %v583_v25 = vld [vmem:[#allocation9 + $0x538] sm:$0xff]  ;;  %v576_v29 = vld [vmem:[#allocation9 + $0x500] sm:$0xff]  ;;  %v5847_v30 = vpack.c.bf16 %v581_v23, %v577_v21  ;;  %v578_v33 = vld [vmem:[#allocation9 + $0x510] sm:$0xff] }
  0x88   :  { %441 = vmatprep.mubr.f32.mxu1 %v8182_v32  ;;  %512 = vmatprep.mubr.f32.mxu0 %v8182_v32  ;;  %v582_v34 = vld [vmem:[#allocation9 + $0x530] sm:$0xff]  ;;  %v592_v57 = vld [vmem:[#allocation9 + $0x580] sm:$0xff] }
  0x89   :  { %v596_v58 = vld [vmem:[#allocation9 + $0x5a0] sm:$0xff] }
  0x8a   :  { %5798 = vmatpush1.bf16.msra.mxu0 %v5797_v41  ;;  %5762 = vmatpush1.bf16.msra.mxu1 %v5761_v47  ;;  %v548_v41 = vld [vmem:[#allocation9 + $0x420] sm:$0xff]  ;;  %v559_v47 = vld [vmem:[#allocation9 + $0x478] sm:$0xff] }
  0x8b   :  { %5800 = vmatprep.subr.bf16.mxu0 %v5799_v42  ;;  %5764 = vmatprep.subr.bf16.mxu1 %v5763_v22  ;;  %v546_v42 = vld [vmem:[#allocation9 + $0x410] sm:$0xff]  ;;  %v5833_v50 = vpack.c.bf16 %v548_v41, %v544_v40  ;;  %v5899_v56 = vpack.c.bf16 %v559_v47, %v555_v46  ;;  %v589_v40 = vld [vmem:[#allocation9 + $0x568] sm:$0xff]  ;;  %v587_v41 = vld [vmem:[#allocation9 + $0x558] sm:$0xff] }
  0x8c   :  { %v5897_v51 = vpack.c.bf16 %v550_v43, %v546_v42  ;;  %v591_v43 = vld [vmem:[#allocation9 + $0x578] sm:$0xff] }
  0x8d   :  { %v5915_v46 = vpack.c.bf16 %v591_v43, %v587_v41  ;;  %v629_v43 = vld [vmem:[#allocation9 + $0x6a8] sm:$0xff] }
  0x8e   :  { %5802 = vmatpush1.bf16.msra.mxu0 %v5801_v48  ;;  %5766 = vmatpush1.bf16.msra.mxu1 %v5765_v28  ;;  %v5909_v28 = vpack.c.bf16 %v574_v20, %v570_v19  ;;  %v608_v19 = vld [vmem:[#allocation9 + $0x600] sm:$0xff] }
  0x8f   :  { %5804 = vmatprep.subr.bf16.mxu0 %v5803_v49  ;;  %5832 = vmatprep.subr.bf16.mxu1 %v5831_v36  ;;  %v5913_v36 = vpack.c.bf16 %v582_v34, %v578_v33  ;;  %v612_v20 = vld [vmem:[#allocation9 + $0x620] sm:$0xff] }
  0x90   :  { %v5865_v23 = vpack.c.bf16 %v612_v20, %v608_v19  ;;  %v616_v33 = vld [vmem:[#allocation9 + $0x640] sm:$0xff]  ;;  %v651_v19 = vld [vmem:[#allocation9 + $0x758] sm:$0xff] }
  0x91   :  { %v620_v34 = vld [vmem:[#allocation9 + $0x660] sm:$0xff] }
  0x92   :  { %5806 = vmatpush1.bf16.msra.mxu0 %v5805_v54 }
  0x93   :  { %5808 = vmatprep.subr.bf16.mxu0 %v5807_v55  ;;  %v5835_v55 = vpack.c.bf16 %v557_v45, %v553_v44  ;;  %v584_v44 = vld [vmem:[#allocation9 + $0x540] sm:$0xff] }
  0x94   :  { %v588_v45 = vld [vmem:[#allocation9 + $0x560] sm:$0xff] }
  0x95   :  { %v5853_v47 = vpack.c.bf16 %v588_v45, %v584_v44  ;;  %v627_v44 = vld [vmem:[#allocation9 + $0x698] sm:$0xff] }
  0x96   :  { %5810 = vmatpush1.bf16.msra.mxu0 %v5809_v60  ;;  %v565_v60 = vld [vmem:[#allocation9 + $0x4a8] sm:$0xff] }
  0x97   :  { %5812 = vmatprep.subr.bf16.mxu0 %v5811_v61  ;;  %v563_v61 = vld [vmem:[#allocation9 + $0x498] sm:$0xff] }
  0x98   :  { %v5903_v4 = vpack.c.bf16 %v567_v62, %v563_v61  ;;  %v594_v61 = vld [vmem:[#allocation9 + $0x590] sm:$0xff] }
  0x99   :  { %v598_v62 = vld [vmem:[#allocation9 + $0x5b0] sm:$0xff] }
  0x9a   :  { %5814 = vmatpush1.bf16.msra.mxu0 %v5813_v2  ;;  %v564_v2 = vld [vmem:[#allocation9 + $0x4a0] sm:$0xff] }
  0x9b   :  { %5816 = vmatprep.subr.bf16.mxu0 %v5815_v3  ;;  %v5839_v3 = vpack.c.bf16 %v565_v60, %v561_v59  ;;  %v5841_v13 = vpack.c.bf16 %v564_v2, %v560_v1  ;;  %v5857_v60 = vpack.c.bf16 %v596_v58, %v592_v57  ;;  %v605_v1 = vld [vmem:[#allocation9 + $0x5e8] sm:$0xff]  ;;  %v603_v2 = vld [vmem:[#allocation9 + $0x5d8] sm:$0xff] }
  0x9c   :  { %v635_v57 = vld [vmem:[#allocation9 + $0x6d8] sm:$0xff] }
  0x9e   :  { %5818 = vmatpush1.bf16.msra.mxu0 %v5817_v8 }
  0x9f   :  { %5820 = vmatprep.subr.bf16.mxu0 %v5819_v9  ;;  %v573_v9 = vld [vmem:[#allocation9 + $0x4e8] sm:$0xff] }
  0xa0   :  { %v5843_v17 = vpack.c.bf16 %v573_v9, %v569_v7 }
  0xa2   :  { %5822 = vmatpush1.bf16.msra.mxu0 %v5821_v14  ;;  %v5905_v14 = vpack.c.bf16 %v566_v6, %v562_v5  ;;  %v600_v5 = vld [vmem:[#allocation9 + $0x5c0] sm:$0xff] }
  0xa3   :  { %5824 = vmatprep.subr.bf16.mxu0 %v5823_v15  ;;  %v568_v15 = vld [vmem:[#allocation9 + $0x4c0] sm:$0xff] }
  0xa4   :  { %v604_v6 = vld [vmem:[#allocation9 + $0x5e0] sm:$0xff] }
  0xa5   :  { %v5861_v9 = vpack.c.bf16 %v604_v6, %v600_v5  ;;  %v643_v5 = vld [vmem:[#allocation9 + $0x718] sm:$0xff] }
  0xa6   :  { %5826 = vmatpush1.bf16.msra.mxu0 %v5825_v18  ;;  %v5907_v18 = vpack.c.bf16 %v575_v11, %v571_v10  ;;  %v602_v10 = vld [vmem:[#allocation9 + $0x5d0] sm:$0xff] }
  0xa7   :  { %5828 = vmatprep.subr.bf16.mxu0 %v5827_v27  ;;  %v5845_v27 = vpack.c.bf16 %v572_v16, %v568_v15  ;;  %v606_v11 = vld [vmem:[#allocation9 + $0x5f0] sm:$0xff]  ;;  %v613_v15 = vld [vmem:[#allocation9 + $0x628] sm:$0xff]  ;;  %v611_v16 = vld [vmem:[#allocation9 + $0x618] sm:$0xff] }
  0xaa   :  { %5830 = vmatpush1.bf16.msra.mxu0 %v5829_v31  ;;  %v5911_v31 = vpack.c.bf16 %v583_v25, %v579_v24  ;;  %v610_v24 = vld [vmem:[#allocation9 + $0x610] sm:$0xff] }
  0xab   :  { %5896 = vmatprep.subr.bf16.mxu0 %v5895_v38  ;;  %v614_v25 = vld [vmem:[#allocation9 + $0x630] sm:$0xff] }
 0x140   :  { %v8291_v48 = vpop.f32.mrb[0].mxu0 }
 0x141   :  { %v179_v49 = vpop.f32.mrb[1].mxu0 }
 0x142   :  { %v180_v54 = vadd.f32 %v5477_v39, %v179_v49  ;;  %v585_v39 = vld [vmem:[#allocation9 + $0x548] sm:$0xff]  ;;  %v586_v49 = vld [vmem:[#allocation9 + $0x550] sm:$0xff] }
 0x143   :  { %v5851_v42 = vpack.c.bf16 %v589_v40, %v585_v39  ;;  %v618_v39 = vld [vmem:[#allocation9 + $0x650] sm:$0xff] }
 0x144   :  { %442 = vmatmul.mubr.f32.vlgmr.msra.gmra.mrb[0].mxu1 %v180_v54  ;;  %513 = vmatmul.mubr.f32.vlgmr.msra.gmra.mrb[8].mxu0 %v180_v54  ;;  %v8293_v8 = vpop.f32.mrb[2].mxu0  ;;  %v595_v54 = vld [vmem:[#allocation9 + $0x598] sm:$0xff]  ;;  %v622_v40 = vld [vmem:[#allocation9 + $0x670] sm:$0xff] }
 0x145   :  { %5834 = vmatpush1.bf16.msra.mxu1 %v5833_v50  ;;  %5898 = vmatpush1.bf16.msra.mxu0 %v5897_v51  ;;  %v8295_v12 = vpop.f32.mrb[3].mxu0  ;;  %v590_v50 = vld [vmem:[#allocation9 + $0x570] sm:$0xff]  ;;  %v5933_v41 = vpack.c.bf16 %v622_v40, %v618_v39  ;;  %v656_v39 = vld [vmem:[#allocation9 + $0x780] sm:$0xff] }
 0x146   :  { %5836 = vmatprep.subr.bf16.mxu1 %v5835_v55  ;;  %5900 = vmatprep.subr.bf16.mxu0 %v5899_v56  ;;  %v5917_v51 = vpack.c.bf16 %v590_v50, %v586_v49  ;;  %v5855_v55 = vpack.c.bf16 %v597_v53, %v593_v52  ;;  %v599_v56 = vld [vmem:[#allocation9 + $0x5b8] sm:$0xff]  ;;  %v628_v49 = vld [vmem:[#allocation9 + $0x6a0] sm:$0xff]  ;;  %v626_v52 = vld [vmem:[#allocation9 + $0x690] sm:$0xff] }
 0x147   :  { %759 = vmatprep.mubr.f32.mxu1 %v8182_v32  ;;  %830 = vmatprep.mubr.f32.mxu0 %v8182_v32  ;;  %v580_v32 = vld [vmem:[#allocation9 + $0x520] sm:$0xff]  ;;  %v5919_v59 = vpack.c.bf16 %v599_v56, %v595_v54  ;;  %v630_v53 = vld [vmem:[#allocation9 + $0x6b0] sm:$0xff]  ;;  %v637_v56 = vld [vmem:[#allocation9 + $0x6e8] sm:$0xff] }
 0x148   :  { %v8297_v22 = vpop.f32.mrb[4].mxu0  ;;  %v5849_v35 = vpack.c.bf16 %v580_v32, %v576_v29  ;;  %v621_v29 = vld [vmem:[#allocation9 + $0x668] sm:$0xff]  ;;  %v623_v32 = vld [vmem:[#allocation9 + $0x678] sm:$0xff]  ;;  %v5937_v54 = vpack.c.bf16 %v630_v53, %v626_v52  ;;  %v660_v40 = vld [vmem:[#allocation9 + $0x7a0] sm:$0xff] }
 0x149   :  { %5838 = vmatpush1.bf16.msra.mxu1 %v5837_v63  ;;  %5902 = vmatpush1.bf16.msra.mxu0 %v5901_v0  ;;  %v8299_v26 = vpop.f32.mrb[5].mxu0  ;;  %v5921_v63 = vpack.c.bf16 %v598_v62, %v594_v61  ;;  %v601_v0 = vld [vmem:[#allocation9 + $0x5c8] sm:$0xff]  ;;  %v636_v61 = vld [vmem:[#allocation9 + $0x6e0] sm:$0xff] }
 0x14a   :  { %5840 = vmatprep.subr.bf16.mxu1 %v5839_v3  ;;  %5904 = vmatprep.subr.bf16.mxu0 %v5903_v4  ;;  %v5859_v3 = vpack.c.bf16 %v605_v1, %v601_v0  ;;  %v607_v4 = vld [vmem:[#allocation9 + $0x5f8] sm:$0xff]  ;;  %v634_v0 = vld [vmem:[#allocation9 + $0x6d0] sm:$0xff]  ;;  %v668_v53 = vld [vmem:[#allocation9 + $0x7e0] sm:$0xff] }
 0x14b   :  { %v5923_v7 = vpack.c.bf16 %v607_v4, %v603_v2  ;;  %v638_v1 = vld [vmem:[#allocation9 + $0x6f0] sm:$0xff]  ;;  %v645_v4 = vld [vmem:[#allocation9 + $0x728] sm:$0xff] }
 0x14c   :  { %v5941_v2 = vpack.c.bf16 %v638_v1, %v634_v0  ;;  %v357_v0 = vlaneseq }
 0x14d   :  { %5842 = vmatpush1.bf16.msra.mxu1 %v5841_v13  ;;  %5906 = vmatpush1.bf16.msra.mxu0 %v5905_v14  ;;  %v5925_v13 = vpack.c.bf16 %v606_v11, %v602_v10  ;;  %v609_v14 = vld [vmem:[#allocation9 + $0x608] sm:$0xff]  ;;  %v644_v10 = vld [vmem:[#allocation9 + $0x720] sm:$0xff] }
 0x14e   :  { %5844 = vmatprep.subr.bf16.mxu1 %v5843_v17  ;;  %5908 = vmatprep.subr.bf16.mxu0 %v5907_v18  ;;  %v5863_v17 = vpack.c.bf16 %v613_v15, %v609_v14  ;;  %v615_v18 = vld [vmem:[#allocation9 + $0x638] sm:$0xff]  ;;  %v642_v14 = vld [vmem:[#allocation9 + $0x710] sm:$0xff]  ;;  %v358_v1 = vshrl.u32 %v357_v0, 7 }
 0x14f   :  { %v5927_v21 = vpack.c.bf16 %v615_v18, %v611_v16  ;;  %v646_v15 = vld [vmem:[#allocation9 + $0x730] sm:$0xff]  ;;  %v653_v18 = vld [vmem:[#allocation9 + $0x768] sm:$0xff] }
 0x150   :  { %v5945_v16 = vpack.c.bf16 %v646_v15, %v642_v14 }
 0x151   :  { %5846 = vmatpush1.bf16.msra.mxu1 %v5845_v27  ;;  %5910 = vmatpush1.bf16.msra.mxu0 %v5909_v28  ;;  %v5929_v27 = vpack.c.bf16 %v614_v25, %v610_v24  ;;  %v617_v28 = vld [vmem:[#allocation9 + $0x648] sm:$0xff]  ;;  %v652_v24 = vld [vmem:[#allocation9 + $0x760] sm:$0xff] }
 0x152   :  { %5848 = vmatprep.subr.bf16.mxu1 %v5847_v30  ;;  %5912 = vmatprep.subr.bf16.mxu0 %v5911_v31  ;;  %v619_v30 = vld [vmem:[#allocation9 + $0x658] sm:$0xff]  ;;  %v5867_v31 = vpack.c.bf16 %v621_v29, %v617_v28  ;;  %v650_v28 = vld [vmem:[#allocation9 + $0x750] sm:$0xff] }
 0x153   :  { %v654_v29 = vld [vmem:[#allocation9 + $0x770] sm:$0xff] }
 0x155   :  { %5850 = vmatpush1.bf16.msra.mxu1 %v5849_v35  ;;  %5914 = vmatpush1.bf16.msra.mxu0 %v5913_v36  ;;  %v5931_v35 = vpack.c.bf16 %v623_v32, %v619_v30  ;;  %v5869_v36 = vpack.c.bf16 %v620_v34, %v616_v33  ;;  %v657_v30 = vld [vmem:[#allocation9 + $0x788] sm:$0xff]  ;;  %v659_v33 = vld [vmem:[#allocation9 + $0x798] sm:$0xff] }
 0x156   :  { %5852 = vmatprep.subr.bf16.mxu1 %v5851_v42  ;;  %5916 = vmatprep.subr.bf16.mxu0 %v5915_v46  ;;  %v625_v42 = vld [vmem:[#allocation9 + $0x688] sm:$0xff]  ;;  %v631_v46 = vld [vmem:[#allocation9 + $0x6b8] sm:$0xff] }
 0x157   :  { %v8301_v37 = vpop.f32.mrb[6].mxu0  ;;  %v5871_v45 = vpack.c.bf16 %v629_v43, %v625_v42  ;;  %v5935_v50 = vpack.c.bf16 %v631_v46, %v627_v44  ;;  %v661_v32 = vld [vmem:[#allocation9 + $0x7a8] sm:$0xff]  ;;  %v663_v34 = vld [vmem:[#allocation9 + $0x7b8] sm:$0xff]  ;;  %v5889_v42 = vpack.c.bf16 %v660_v40, %v656_v39  ;;  %v662_v43 = vld [vmem:[#allocation9 + $0x7b0] sm:$0xff] }
 0x158   :  { %v8303_v38 = vpop.f32.mrb[7].mxu0  ;;  %v665_v44 = vld [vmem:[#allocation9 + $0x7c8] sm:$0xff]  ;;  %v864_v40 = vld [vmem:[#allocation9] sm:$0xff] }
 0x159   :  { %5854 = vmatpush1.bf16.msra.mxu1 %v5853_v47  ;;  %5918 = vmatpush1.bf16.msra.mxu0 %v5917_v51  ;;  %v624_v47 = vld [vmem:[#allocation9 + $0x680] sm:$0xff] }
 0x15a   :  { %5856 = vmatprep.subr.bf16.mxu1 %v5855_v55  ;;  %5920 = vmatprep.subr.bf16.mxu0 %v5919_v59  ;;  %v5873_v51 = vpack.c.bf16 %v628_v49, %v624_v47  ;;  %v633_v55 = vld [vmem:[#allocation9 + $0x6c8] sm:$0xff]  ;;  %v639_v59 = vld [vmem:[#allocation9 + $0x6f8] sm:$0xff] }
 0x15b   :  { %v5875_v58 = vpack.c.bf16 %v637_v56, %v633_v55  ;;  %v5939_v62 = vpack.c.bf16 %v639_v59, %v635_v57  ;;  %v667_v49 = vld [vmem:[#allocation9 + $0x7d8] sm:$0xff]  ;;  %v670_v55 = vld [vmem:[#allocation9 + $0x7f0] sm:$0xff]  ;;  %v865_v57 = vld [vmem:[#allocation9 + $0x8] sm:$0xff] }
 0x15c   :  { %v867_v59 = vld [vmem:[#allocation9 + $0x18] sm:$0xff] }
 0x15d   :  { %5858 = vmatpush1.bf16.msra.mxu1 %v5857_v60  ;;  %5922 = vmatpush1.bf16.msra.mxu0 %v5921_v63  ;;  %v632_v60 = vld [vmem:[#allocation9 + $0x6c0] sm:$0xff] }
 0x15e   :  { %5860 = vmatprep.subr.bf16.mxu1 %v5859_v3  ;;  %5924 = vmatprep.subr.bf16.mxu0 %v5923_v7  ;;  %v5877_v63 = vpack.c.bf16 %v636_v61, %v632_v60  ;;  %v641_v3 = vld [vmem:[#allocation9 + $0x708] sm:$0xff]  ;;  %v647_v7 = vld [vmem:[#allocation9 + $0x738] sm:$0xff] }
 0x15f   :  { %v5879_v6 = vpack.c.bf16 %v645_v4, %v641_v3  ;;  %v5943_v11 = vpack.c.bf16 %v647_v7, %v643_v5  ;;  %v355_v3 = vld [vmem:[%s8570_s4] sm:$0xf]  ;;  %v8310_v4 = vsub.s32 1, %v358_v1 }
 0x161   :  { %5862 = vmatpush1.bf16.msra.mxu1 %v5861_v9  ;;  %5926 = vmatpush1.bf16.msra.mxu0 %v5925_v13  ;;  %v640_v9 = vld [vmem:[#allocation9 + $0x700] sm:$0xff] }
 0x162   :  { %5864 = vmatprep.subr.bf16.mxu1 %v5863_v17  ;;  %5928 = vmatprep.subr.bf16.mxu0 %v5927_v21  ;;  %v5881_v13 = vpack.c.bf16 %v644_v10, %v640_v9  ;;  %v649_v17 = vld [vmem:[#allocation9 + $0x748] sm:$0xff]  ;;  %v655_v21 = vld [vmem:[#allocation9 + $0x778] sm:$0xff]  ;;  %v8314_v10 = vsub.s32 3, %v358_v1 }
 0x163   :  { %v5883_v20 = vpack.c.bf16 %v653_v18, %v649_v17  ;;  %v5947_v25 = vpack.c.bf16 %v655_v21, %v651_v19  ;;  %v8317_v19 = vsub.s32 2, %v358_v1 }
 0x164   :  { %v372_v18 = vrot.slane %v355_v3, %v8314_v10 }
 0x165   :  { %5866 = vmatpush1.bf16.msra.mxu1 %v5865_v23  ;;  %5930 = vmatpush1.bf16.msra.mxu0 %v5929_v27  ;;  %v648_v23 = vld [vmem:[#allocation9 + $0x740] sm:$0xff]  ;;  %v368_v21 = vrot.slane %v355_v3, %v8317_v19 }
 0x166   :  { %5868 = vmatprep.subr.bf16.mxu1 %v5867_v31  ;;  %5932 = vmatprep.subr.bf16.mxu0 %v5931_v35  ;;  %v5885_v27 = vpack.c.bf16 %v652_v24, %v648_v23  ;;  %v5949_v31 = vpack.c.bf16 %v654_v29, %v650_v28  ;;  %v5887_v35 = vpack.c.bf16 %v661_v32, %v657_v30 }
 0x169   :  { %5870 = vmatpush1.bf16.msra.mxu1 %v5869_v36  ;;  %5934 = vmatpush1.bf16.msra.mxu0 %v5933_v41  ;;  %v5951_v36 = vpack.c.bf16 %v663_v34, %v659_v33  ;;  %v658_v41 = vld [vmem:[#allocation9 + $0x790] sm:$0xff] }
 0x16a   :  { %5872 = vmatprep.subr.bf16.mxu1 %v5871_v45  ;;  %5936 = vmatprep.subr.bf16.mxu0 %v5935_v50  ;;  %v669_v45 = vld [vmem:[#allocation9 + $0x7e8] sm:$0xff]  ;;  %v5953_v46 = vpack.c.bf16 %v662_v43, %v658_v41  ;;  %v671_v50 = vld [vmem:[#allocation9 + $0x7f8] sm:$0xff]  ;;  %v868_v41 = vld [vmem:[#allocation9 + $0x20] sm:$0xff] }
 0x16b   :  { %v5891_v47 = vpack.c.bf16 %v669_v45, %v665_v44  ;;  %v5955_v52 = vpack.c.bf16 %v671_v50, %v667_v49  ;;  %v870_v43 = vld [vmem:[#allocation9 + $0x30] sm:$0xff]  ;;  %v873_v44 = vld [vmem:[#allocation9 + $0x48] sm:$0xff]  ;;  %v879_v49 = vld [vmem:[#allocation9 + $0x78] sm:$0xff] }
 0x16d   :  { %5874 = vmatpush1.bf16.msra.mxu1 %v5873_v51  ;;  %5938 = vmatpush1.bf16.msra.mxu0 %v5937_v54  ;;  %v664_v51 = vld [vmem:[#allocation9 + $0x7c0] sm:$0xff]  ;;  %v666_v54 = vld [vmem:[#allocation9 + $0x7d0] sm:$0xff] }
 0x16e   :  { %5876 = vmatprep.subr.bf16.mxu1 %v5875_v58  ;;  %5940 = vmatprep.subr.bf16.mxu0 %v5939_v62  ;;  %v5893_v56 = vpack.c.bf16 %v668_v53, %v664_v51  ;;  %v869_v58 = vld [vmem:[#allocation9 + $0x28] sm:$0xff]  ;;  %v5957_v60 = vpack.c.bf16 %v670_v55, %v666_v54  ;;  %v871_v62 = vld [vmem:[#allocation9 + $0x38] sm:$0xff]  ;;  %v5961_v51 = vpack.c.bf16 %v868_v41, %v864_v40  ;;  %v872_v53 = vld [vmem:[#allocation9 + $0x40] sm:$0xff] }
 0x16f   :  { %v5959_v61 = vpack.c.bf16 %v869_v58, %v865_v57  ;;  %v876_v54 = vld [vmem:[#allocation9 + $0x60] sm:$0xff]  ;;  %v878_v57 = vld [vmem:[#allocation9 + $0x70] sm:$0xff]  ;;  %v881_v58 = vld [vmem:[#allocation9 + $0x88] sm:$0xff] }
 0x170   :  { %v5965_v0 = vpack.c.bf16 %v876_v54, %v872_v53  ;;  %v898_v41 = vld [vmem:[#allocation9 + $0x110] sm:$0xff] }
 0x171   :  { %5878 = vmatpush1.bf16.msra.mxu1 %v5877_v63  ;;  %5942 = vmatpush1.bf16.msra.mxu0 %v5941_v2  ;;  %v6023_v63 = vpack.c.bf16 %v871_v62, %v867_v59  ;;  %v8305_v2 = vsub.s32 0, %v358_v1  ;;  %v883_v62 = vld [vmem:[#allocation9 + $0x98] sm:$0xff]  ;;  %v906_v54 = vld [vmem:[#allocation9 + $0x150] sm:$0xff] }
 0x172   :  { %5880 = vmatprep.subr.bf16.mxu1 %v5879_v6  ;;  %5944 = vmatprep.subr.bf16.mxu0 %v5943_v11  ;;  %v364_v6 = vrot.slane %v355_v3, %v8310_v4 }
 0x173   :  { %v360_v5 = vrot.slane %v355_v3, %v8305_v2  ;;  %v880_v3 = vld [vmem:[#allocation9 + $0x80] sm:$0xff] }
 0x175   :  { %5882 = vmatpush1.bf16.msra.mxu1 %v5881_v13  ;;  %5946 = vmatpush1.bf16.msra.mxu0 %v5945_v16 }
 0x176   :  { %5884 = vmatprep.subr.bf16.mxu1 %v5883_v20  ;;  %5948 = vmatprep.subr.bf16.mxu0 %v5947_v25 }
 0x179   :  { %5886 = vmatpush1.bf16.msra.mxu1 %v5885_v27  ;;  %5950 = vmatpush1.bf16.msra.mxu0 %v5949_v31 }
 0x17a   :  { %5888 = vmatprep.subr.bf16.mxu1 %v5887_v35  ;;  %5952 = vmatprep.subr.bf16.mxu0 %v5951_v36 }
 0x17d   :  { %5890 = vmatpush1.bf16.msra.mxu1 %v5889_v42  ;;  %5954 = vmatpush1.bf16.msra.mxu0 %v5953_v46  ;;  %v866_v42 = vld [vmem:[#allocation9 + $0x10] sm:$0xff]  ;;  %v877_v46 = vld [vmem:[#allocation9 + $0x68] sm:$0xff] }
 0x17e   :  { %5892 = vmatprep.subr.bf16.mxu1 %v5891_v47  ;;  %5956 = vmatprep.subr.bf16.mxu0 %v5955_v52  ;;  %v875_v47 = vld [vmem:[#allocation9 + $0x58] sm:$0xff]  ;;  %v6025_v52 = vpack.c.bf16 %v870_v43, %v866_v42  ;;  %v5963_v59 = vpack.c.bf16 %v877_v46, %v873_v44  ;;  %v902_v42 = vld [vmem:[#allocation9 + $0x130] sm:$0xff]  ;;  %v905_v43 = vld [vmem:[#allocation9 + $0x148] sm:$0xff] }
 0x17f   :  { %v909_v44 = vld [vmem:[#allocation9 + $0x168] sm:$0xff]  ;;  %v911_v46 = vld [vmem:[#allocation9 + $0x178] sm:$0xff] }
 0x181   :  { %5894 = vmatpush1.bf16.msra.mxu1 %v5893_v56  ;;  %5958 = vmatpush1.bf16.msra.mxu0 %v5957_v60  ;;  %v874_v56 = vld [vmem:[#allocation9 + $0x50] sm:$0xff]  ;;  %v6027_v60 = vpack.c.bf16 %v879_v49, %v875_v47  ;;  %v6041_v49 = vpack.c.bf16 %v902_v42, %v898_v41  ;;  %v939_v41 = vld [vmem:[#allocation9 + $0x258] sm:$0xff] }
 0x182   :  { %5960 = vmatprep.subr.bf16.mxu1 %v5959_v61  ;;  %6024 = vmatprep.subr.bf16.mxu0 %v6023_v63  ;;  %v885_v61 = vld [vmem:[#allocation9 + $0xa8] sm:$0xff]  ;;  %v887_v63 = vld [vmem:[#allocation9 + $0xb8] sm:$0xff]  ;;  %v6029_v1 = vpack.c.bf16 %v878_v57, %v874_v56 }
 0x183   :  { %v913_v56 = vld [vmem:[#allocation9 + $0x188] sm:$0xff]  ;;  %v943_v42 = vld [vmem:[#allocation9 + $0x278] sm:$0xff] }
 0x184   :  { %v917_v57 = vld [vmem:[#allocation9 + $0x1a8] sm:$0xff] }
 0x217   :  { %v443_v7 = vpop.f32.mrb[0].mxu1  ;;  %v514_v9 = vpop.f32.mrb[8].mxu0 }
 0x218   :  { %v444_v11 = vadd.f32 %v443_v7, %v360_v5  ;;  %v445_v13 = vpop.f32.mrb[1].mxu1  ;;  %v516_v14 = vpop.f32.mrb[9].mxu0  ;;  %v515_v24 = vadd.f32 %v514_v9, %v368_v21  ;;  %v884_v5 = vld [vmem:[#allocation9 + $0xa0] sm:$0xff]  ;;  %v6031_v7 = vpack.c.bf16 %v887_v63, %v883_v62  ;;  %v882_v9 = vld [vmem:[#allocation9 + $0x90] sm:$0xff] }
 0x219   :  { %v446_v15 = vadd.f32 %v445_v13, %v364_v6  ;;  %v517_v20 = vadd.f32 %v516_v14, %v372_v18  ;;  %v5967_v6 = vpack.c.bf16 %v885_v61, %v881_v58  ;;  %v889_v13 = vld [vmem:[#allocation9 + $0xc8] sm:$0xff]  ;;  %v892_v21 = vld [vmem:[#allocation9 + $0xe0] sm:$0xff]  ;;  %v915_v58 = vld [vmem:[#allocation9 + $0x198] sm:$0xff] }
 0x21a   :  { %v5478_v16 = vmul.f32 -1.442695, %v444_v11  ;;  %v886_v11 = vld [vmem:[#allocation9 + $0xb0] sm:$0xff]  ;;  %v893_v14 = vld [vmem:[#allocation9 + $0xe8] sm:$0xff]  ;;  %v912_v62 = vld [vmem:[#allocation9 + $0x180] sm:$0xff] }
 0x21b   :  { %v5479_v17 = vmul.f32 -1.442695, %v446_v15  ;;  %v5480_v23 = vmul.f32 -1.442695, %v517_v20  ;;  %v891_v15 = vld [vmem:[#allocation9 + $0xd8] sm:$0xff]  ;;  %v6033_v18 = vpack.c.bf16 %v886_v11, %v882_v9  ;;  %v888_v20 = vld [vmem:[#allocation9 + $0xc0] sm:$0xff] }
 0x21c   :  { %7793 = vpow2.f32 %v5478_v16  ;;  %v895_v16 = vld [vmem:[#allocation9 + $0xf8] sm:$0xff]  ;;  %v916_v63 = vld [vmem:[#allocation9 + $0x1a0] sm:$0xff] }
 0x21d   :  { %7795 = vpow2.f32 %v5479_v17  ;;  %v5969_v17 = vpack.c.bf16 %v884_v5, %v880_v3  ;;  %v914_v3 = vld [vmem:[#allocation9 + $0x190] sm:$0xff]  ;;  %v923_v9 = vld [vmem:[#allocation9 + $0x1d8] sm:$0xff] }
 0x21e   :  { %7797 = vpow2.f32 %v5480_v23  ;;  %v5971_v23 = vpack.c.bf16 %v893_v14, %v889_v13  ;;  %v918_v5 = vld [vmem:[#allocation9 + $0x1b0] sm:$0xff]  ;;  %v927_v11 = vld [vmem:[#allocation9 + $0x1f8] sm:$0xff]  ;;  %v5985_v13 = vpack.c.bf16 %v916_v63, %v912_v62 }
 0x21f   :  { %7799 = vtanh.f32 %v515_v24  ;;  %v6035_v24 = vpack.c.bf16 %v895_v16, %v891_v15  ;;  %v6049_v14 = vpack.c.bf16 %v918_v5, %v914_v3  ;;  %v920_v15 = vld [vmem:[#allocation9 + $0x1c0] sm:$0xff]  ;;  %v946_v62 = vld [vmem:[#allocation9 + $0x290] sm:$0xff]  ;;  %v955_v3 = vld [vmem:[#allocation9 + $0x2d8] sm:$0xff] }
 0x220   :  { %v924_v16 = vld [vmem:[#allocation9 + $0x1e0] sm:$0xff]  ;;  %v950_v63 = vld [vmem:[#allocation9 + $0x2b0] sm:$0xff]  ;;  %v959_v5 = vld [vmem:[#allocation9 + $0x2f8] sm:$0xff] }
 0x226   :  { %v7794_v25 = vpop.eup %7793 }
 0x227   :  { %v7796_v27 = vpop.eup %7795  ;;  %v522_v28 = vadd.f32 1.0, %v7794_v25  ;;  %v890_v25 = vld [vmem:[#allocation9 + $0xd0] sm:$0xff] }
 0x228   :  { %v528_v29 = vadd.f32 1.0, %v7796_v27  ;;  %v7798_v30 = vpop.eup %7797  ;;  %v894_v27 = vld [vmem:[#allocation9 + $0xf0] sm:$0xff] }
 0x229   :  { %7801 = vrcp.f32 %v522_v28  ;;  %v7800_v31 = vpop.eup %7799  ;;  %v535_v35 = vadd.f32 1.0, %v7798_v30  ;;  %v897_v28 = vld [vmem:[#allocation9 + $0x108] sm:$0xff]  ;;  %v899_v30 = vld [vmem:[#allocation9 + $0x118] sm:$0xff] }
 0x22a   :  { %7803 = vrcp.f32 %v528_v29  ;;  %v901_v29 = vld [vmem:[#allocation9 + $0x128] sm:$0xff] }
 0x22b   :  { %7805 = vrcp.f32 %v535_v35  ;;  %v900_v35 = vld [vmem:[#allocation9 + $0x120] sm:$0xff] }
 0x233   :  { %v7802_v32 = vpop.eup %7801 }
 0x234   :  { %v7804_v33 = vpop.eup %7803  ;;  %v539_v34 = vmul.f32 %v7802_v32, %v7800_v31  ;;  %v903_v31 = vld [vmem:[#allocation9 + $0x138] sm:$0xff]  ;;  %v5973_v32 = vpack.c.bf16 %v892_v21, %v888_v20  ;;  %v922_v20 = vld [vmem:[#allocation9 + $0x1d0] sm:$0xff] }
 0x235   :  { %v538_v36 = vmul.f32 0.0, %v7804_v33  ;;  %v7806_v45 = vpop.eup %7805  ;;  %v6037_v33 = vpack.c.bf16 %v894_v27, %v890_v25  ;;  %v6039_v40 = vpack.c.bf16 %v903_v31, %v899_v30  ;;  %v926_v21 = vld [vmem:[#allocation9 + $0x1f0] sm:$0xff]  ;;  %v931_v25 = vld [vmem:[#allocation9 + $0x218] sm:$0xff]  ;;  %v928_v30 = vld [vmem:[#allocation9 + $0x200] sm:$0xff] }
 0x236   :  { %v935_v27 = vld [vmem:[#allocation9 + $0x238] sm:$0xff]  ;;  %v932_v31 = vld [vmem:[#allocation9 + $0x220] sm:$0xff] }
 0x237   :  { %v8320_v39 = vadd.f32 %v539_v34, %v538_v36  ;;  %v896_v34 = vld [vmem:[#allocation9 + $0x100] sm:$0xff]  ;;  %v5975_v36 = vpack.c.bf16 %v901_v29, %v897_v28  ;;  %v5989_v28 = vpack.c.bf16 %v924_v16, %v920_v15  ;;  %v6053_v29 = vpack.c.bf16 %v926_v21, %v922_v20  ;;  %v954_v15 = vld [vmem:[#allocation9 + $0x2d0] sm:$0xff]  ;;  %v963_v20 = vld [vmem:[#allocation9 + $0x318] sm:$0xff] }
 0x238   :  { %v5977_v47 = vpack.c.bf16 %v900_v35, %v896_v34  ;;  %v930_v34 = vld [vmem:[#allocation9 + $0x210] sm:$0xff]  ;;  %v967_v21 = vld [vmem:[#allocation9 + $0x338] sm:$0xff] }
 0x239   :  { %7807 = vtanh.f32 %v8320_v39  ;;  %v934_v35 = vld [vmem:[#allocation9 + $0x230] sm:$0xff] }
 0x23a   :  { %v958_v16 = vld [vmem:[#allocation9 + $0x2f0] sm:$0xff] }
 0x243   :  { %v7808_v50 = vpop.eup %7807 }
 0x244   :  { %v542_v55 = vmul.f32 %v7808_v50, %v7806_v45  ;;  %v907_v45 = vld [vmem:[#allocation9 + $0x158] sm:$0xff]  ;;  %v904_v50 = vld [vmem:[#allocation9 + $0x140] sm:$0xff] }
 0x245   :  { %v6043_v53 = vpack.c.bf16 %v911_v46, %v907_v45  ;;  %v936_v45 = vld [vmem:[#allocation9 + $0x240] sm:$0xff] }
 0x246   :  { %760 = vmatmul.mubr.f32.vlgmr.msra.gmra.mrb[2].mxu1 %v542_v55  ;;  %831 = vmatmul.mubr.f32.vlgmr.msra.gmra.mrb[10].mxu0 %v542_v55  ;;  %v940_v46 = vld [vmem:[#allocation9 + $0x260] sm:$0xff] }
 0x247   :  { %5962 = vmatpush1.bf16.msra.mxu1 %v5961_v51  ;;  %6026 = vmatpush1.bf16.msra.mxu0 %v6025_v52  ;;  %v908_v51 = vld [vmem:[#allocation9 + $0x160] sm:$0xff]  ;;  %v5979_v52 = vpack.c.bf16 %v909_v44, %v905_v43  ;;  %v5993_v43 = vpack.c.bf16 %v932_v31, %v928_v30  ;;  %v6057_v44 = vpack.c.bf16 %v934_v35, %v930_v34  ;;  %v962_v30 = vld [vmem:[#allocation9 + $0x310] sm:$0xff]  ;;  %v971_v34 = vld [vmem:[#allocation9 + $0x358] sm:$0xff] }
 0x248   :  { %1078 = vmatprep.mubr.f32.mxu1 %v542_v55  ;;  %1149 = vmatprep.mubr.f32.mxu0 %v542_v55  ;;  %v910_v55 = vld [vmem:[#allocation9 + $0x170] sm:$0xff]  ;;  %v975_v35 = vld [vmem:[#allocation9 + $0x378] sm:$0xff] }
 0x249   :  { %5964 = vmatprep.subr.bf16.mxu1 %v5963_v59  ;;  %6028 = vmatprep.subr.bf16.mxu0 %v6027_v60  ;;  %v919_v59 = vld [vmem:[#allocation9 + $0x1b8] sm:$0xff]  ;;  %v5981_v60 = vpack.c.bf16 %v908_v51, %v904_v50  ;;  %v6045_v61 = vpack.c.bf16 %v910_v55, %v906_v54  ;;  %v938_v50 = vld [vmem:[#allocation9 + $0x250] sm:$0xff] }
 0x24a   :  { %v942_v51 = vld [vmem:[#allocation9 + $0x270] sm:$0xff]  ;;  %v947_v54 = vld [vmem:[#allocation9 + $0x298] sm:$0xff] }
 0x24b   :  { %5966 = vmatpush1.bf16.msra.mxu1 %v5965_v0  ;;  %6030 = vmatpush1.bf16.msra.mxu0 %v6029_v1  ;;  %v5983_v0 = vpack.c.bf16 %v917_v57, %v913_v56  ;;  %v6047_v1 = vpack.c.bf16 %v919_v59, %v915_v58  ;;  %v951_v55 = vld [vmem:[#allocation9 + $0x2b8] sm:$0xff]  ;;  %v5997_v56 = vpack.c.bf16 %v940_v46, %v936_v45  ;;  %v944_v58 = vld [vmem:[#allocation9 + $0x280] sm:$0xff]  ;;  %v966_v31 = vld [vmem:[#allocation9 + $0x330] sm:$0xff] }
 0x24c   :  { %5968 = vmatprep.subr.bf16.mxu1 %v5967_v6  ;;  %6032 = vmatprep.subr.bf16.mxu0 %v6031_v7  ;;  %v921_v6 = vld [vmem:[#allocation9 + $0x1c8] sm:$0xff]  ;;  %v6061_v57 = vpack.c.bf16 %v942_v51, %v938_v50  ;;  %v948_v59 = vld [vmem:[#allocation9 + $0x2a0] sm:$0xff]  ;;  %v970_v45 = vld [vmem:[#allocation9 + $0x350] sm:$0xff] }
 0x24d   :  { %v925_v7 = vld [vmem:[#allocation9 + $0x1e8] sm:$0xff]  ;;  %v974_v46 = vld [vmem:[#allocation9 + $0x370] sm:$0xff]  ;;  %v979_v50 = vld [vmem:[#allocation9 + $0x398] sm:$0xff] }
 0x24e   :  { %v983_v51 = vld [vmem:[#allocation9 + $0x3b8] sm:$0xff] }
 0x24f   :  { %5970 = vmatpush1.bf16.msra.mxu1 %v5969_v17  ;;  %6034 = vmatpush1.bf16.msra.mxu0 %v6033_v18  ;;  %v5987_v17 = vpack.c.bf16 %v925_v7, %v921_v6  ;;  %v6051_v18 = vpack.c.bf16 %v927_v11, %v923_v9  ;;  %v6001_v6 = vpack.c.bf16 %v948_v59, %v944_v58  ;;  %v952_v9 = vld [vmem:[#allocation9 + $0x2c0] sm:$0xff]  ;;  %v978_v58 = vld [vmem:[#allocation9 + $0x390] sm:$0xff] }
 0x250   :  { %5972 = vmatprep.subr.bf16.mxu1 %v5971_v23  ;;  %6036 = vmatprep.subr.bf16.mxu0 %v6035_v24  ;;  %v929_v23 = vld [vmem:[#allocation9 + $0x208] sm:$0xff]  ;;  %v6065_v7 = vpack.c.bf16 %v950_v63, %v946_v62  ;;  %v956_v11 = vld [vmem:[#allocation9 + $0x2e0] sm:$0xff]  ;;  %v982_v59 = vld [vmem:[#allocation9 + $0x3b0] sm:$0xff] }
 0x251   :  { %v933_v24 = vld [vmem:[#allocation9 + $0x228] sm:$0xff]  ;;  %v987_v62 = vld [vmem:[#allocation9 + $0x3d8] sm:$0xff] }
 0x252   :  { %v991_v63 = vld [vmem:[#allocation9 + $0x3f8] sm:$0xff] }
 0x253   :  { %5974 = vmatpush1.bf16.msra.mxu1 %v5973_v32  ;;  %6038 = vmatpush1.bf16.msra.mxu0 %v6037_v33  ;;  %v5991_v32 = vpack.c.bf16 %v933_v24, %v929_v23  ;;  %v6055_v33 = vpack.c.bf16 %v935_v27, %v931_v25  ;;  %v6005_v23 = vpack.c.bf16 %v956_v11, %v952_v9  ;;  %v960_v25 = vld [vmem:[#allocation9 + $0x300] sm:$0xff]  ;;  %v986_v9 = vld [vmem:[#allocation9 + $0x3d0] sm:$0xff] }
 0x254   :  { %5976 = vmatprep.subr.bf16.mxu1 %v5975_v36  ;;  %6040 = vmatprep.subr.bf16.mxu0 %v6039_v40  ;;  %v937_v36 = vld [vmem:[#allocation9 + $0x248] sm:$0xff]  ;;  %v6069_v24 = vpack.c.bf16 %v958_v16, %v954_v15  ;;  %v964_v27 = vld [vmem:[#allocation9 + $0x320] sm:$0xff]  ;;  %v990_v11 = vld [vmem:[#allocation9 + $0x3f0] sm:$0xff] }
 0x255   :  { %v941_v40 = vld [vmem:[#allocation9 + $0x268] sm:$0xff]  ;;  %v8049_v15 = vld [vmem:[%s8568_s2] ss:$0 sm:$0xff] }
 0x256   :  { %v185_v16 = vadd.f32 %v8049_v15, %v8291_v48  ;;  %v1193_v48 = vld [vmem:[#allocation9 + $0x468] sm:$0xff] }
 0x257   :  { %5978 = vmatpush1.bf16.msra.mxu1 %v5977_v47  ;;  %6042 = vmatpush1.bf16.msra.mxu0 %v6041_v49  ;;  %v5995_v47 = vpack.c.bf16 %v941_v40, %v937_v36  ;;  %v6059_v49 = vpack.c.bf16 %v943_v42, %v939_v41  ;;  %v6009_v36 = vpack.c.bf16 %v964_v27, %v960_v25  ;;  %v968_v41 = vld [vmem:[#allocation9 + $0x340] sm:$0xff] }
 0x258   :  { %5980 = vmatprep.subr.bf16.mxu1 %v5979_v52  ;;  %6044 = vmatprep.subr.bf16.mxu0 %v6043_v53  ;;  %v945_v52 = vld [vmem:[#allocation9 + $0x288] sm:$0xff]  ;;  %v6073_v40 = vpack.c.bf16 %v966_v31, %v962_v30  ;;  %v972_v42 = vld [vmem:[#allocation9 + $0x360] sm:$0xff]  ;;  %v1186_v30 = vld [vmem:[#allocation9 + $0x430] sm:$0xff] }
 0x259   :  { %v949_v53 = vld [vmem:[#allocation9 + $0x2a8] sm:$0xff]  ;;  %v1184_v25 = vld [vmem:[#allocation9 + $0x420] sm:$0xff] }
 0x25b   :  { %5982 = vmatpush1.bf16.msra.mxu1 %v5981_v60  ;;  %6046 = vmatpush1.bf16.msra.mxu0 %v6045_v61  ;;  %v5999_v60 = vpack.c.bf16 %v949_v53, %v945_v52  ;;  %v6063_v61 = vpack.c.bf16 %v951_v55, %v947_v54  ;;  %v6013_v52 = vpack.c.bf16 %v972_v42, %v968_v41  ;;  %v976_v54 = vld [vmem:[#allocation9 + $0x380] sm:$0xff] }
 0x25c   :  { %5984 = vmatprep.subr.bf16.mxu1 %v5983_v0  ;;  %6048 = vmatprep.subr.bf16.mxu0 %v6047_v1  ;;  %v953_v0 = vld [vmem:[#allocation9 + $0x2c8] sm:$0xff]  ;;  %v6077_v53 = vpack.c.bf16 %v974_v46, %v970_v45  ;;  %v980_v55 = vld [vmem:[#allocation9 + $0x3a0] sm:$0xff] }
 0x25d   :  { %v957_v1 = vld [vmem:[#allocation9 + $0x2e8] sm:$0xff] }
 0x25e   :  { %v1197_v45 = vld [vmem:[#allocation9 + $0x488] sm:$0xff] }
 0x25f   :  { %5986 = vmatpush1.bf16.msra.mxu1 %v5985_v13  ;;  %6050 = vmatpush1.bf16.msra.mxu0 %v6049_v14  ;;  %v6003_v13 = vpack.c.bf16 %v957_v1, %v953_v0  ;;  %v6067_v14 = vpack.c.bf16 %v959_v5, %v955_v3  ;;  %v6017_v0 = vpack.c.bf16 %v980_v55, %v976_v54  ;;  %v984_v3 = vld [vmem:[#allocation9 + $0x3c0] sm:$0xff]  ;;  %v1198_v55 = vld [vmem:[#allocation9 + $0x490] sm:$0xff] }
 0x260   :  { %5988 = vmatprep.subr.bf16.mxu1 %v5987_v17  ;;  %6052 = vmatprep.subr.bf16.mxu0 %v6051_v18  ;;  %v961_v17 = vld [vmem:[#allocation9 + $0x308] sm:$0xff]  ;;  %v6081_v1 = vpack.c.bf16 %v982_v59, %v978_v58  ;;  %v1200_v54 = vld [vmem:[#allocation9 + $0x4a0] sm:$0xff] }
 0x261   :  { %v965_v18 = vld [vmem:[#allocation9 + $0x328] sm:$0xff] }
 0x262   :  { %v1205_v58 = vld [vmem:[#allocation9 + $0x4c8] sm:$0xff] }
 0x263   :  { %5990 = vmatpush1.bf16.msra.mxu1 %v5989_v28  ;;  %6054 = vmatpush1.bf16.msra.mxu0 %v6053_v29  ;;  %v6007_v28 = vpack.c.bf16 %v965_v18, %v961_v17  ;;  %v6071_v29 = vpack.c.bf16 %v967_v21, %v963_v20  ;;  %v1181_v17 = vld [vmem:[#allocation9 + $0x408] sm:$0xff]  ;;  %v1183_v20 = vld [vmem:[#allocation9 + $0x418] sm:$0xff] }
 0x264   :  { %5992 = vmatprep.subr.bf16.mxu1 %v5991_v32  ;;  %6056 = vmatprep.subr.bf16.mxu0 %v6055_v33  ;;  %v969_v32 = vld [vmem:[#allocation9 + $0x348] sm:$0xff] }
 0x265   :  { %v973_v33 = vld [vmem:[#allocation9 + $0x368] sm:$0xff] }
 0x266   :  { %v1185_v18 = vld [vmem:[#allocation9 + $0x428] sm:$0xff] }
 0x267   :  { %5994 = vmatpush1.bf16.msra.mxu1 %v5993_v43  ;;  %6058 = vmatpush1.bf16.msra.mxu0 %v6057_v44  ;;  %v6011_v43 = vpack.c.bf16 %v973_v33, %v969_v32  ;;  %v6075_v44 = vpack.c.bf16 %v975_v35, %v971_v34  ;;  %v6087_v21 = vpack.c.bf16 %v1185_v18, %v1181_v17  ;;  %v1189_v32 = vld [vmem:[#allocation9 + $0x448] sm:$0xff]  ;;  %v1191_v33 = vld [vmem:[#allocation9 + $0x458] sm:$0xff]  ;;  %v1212_v17 = vld [vmem:[#allocation9 + $0x500] sm:$0xff] }
 0x268   :  { %5996 = vmatprep.subr.bf16.mxu1 %v5995_v47  ;;  %6060 = vmatprep.subr.bf16.mxu0 %v6059_v49  ;;  %v977_v47 = vld [vmem:[#allocation9 + $0x388] sm:$0xff]  ;;  %v6091_v34 = vpack.c.bf16 %v1193_v48, %v1189_v32  ;;  %v1195_v35 = vld [vmem:[#allocation9 + $0x478] sm:$0xff]  ;;  %v1216_v18 = vld [vmem:[#allocation9 + $0x520] sm:$0xff] }
 0x269   :  { %v981_v49 = vld [vmem:[#allocation9 + $0x3a8] sm:$0xff]  ;;  %v6155_v41 = vpack.c.bf16 %v1195_v35, %v1191_v33  ;;  %v1220_v32 = vld [vmem:[#allocation9 + $0x540] sm:$0xff]  ;;  %v1222_v35 = vld [vmem:[#allocation9 + $0x550] sm:$0xff] }
 0x26a   :  { %v1209_v59 = vld [vmem:[#allocation9 + $0x4e8] sm:$0xff]  ;;  %v1224_v48 = vld [vmem:[#allocation9 + $0x560] sm:$0xff] }
 0x26b   :  { %5998 = vmatpush1.bf16.msra.mxu1 %v5997_v56  ;;  %6062 = vmatpush1.bf16.msra.mxu0 %v6061_v57  ;;  %v6015_v56 = vpack.c.bf16 %v981_v49, %v977_v47  ;;  %v6079_v57 = vpack.c.bf16 %v983_v51, %v979_v50  ;;  %v1201_v47 = vld [vmem:[#allocation9 + $0x4a8] sm:$0xff]  ;;  %v1199_v49 = vld [vmem:[#allocation9 + $0x498] sm:$0xff] }
 0x26c   :  { %6000 = vmatprep.subr.bf16.mxu1 %v5999_v60  ;;  %6064 = vmatprep.subr.bf16.mxu0 %v6063_v61  ;;  %v985_v60 = vld [vmem:[#allocation9 + $0x3c8] sm:$0xff]  ;;  %v1203_v50 = vld [vmem:[#allocation9 + $0x4b8] sm:$0xff]  ;;  %v6095_v51 = vpack.c.bf16 %v1201_v47, %v1197_v45  ;;  %v1232_v47 = vld [vmem:[#allocation9 + $0x5a0] sm:$0xff] }
 0x26d   :  { %v989_v61 = vld [vmem:[#allocation9 + $0x3e8] sm:$0xff]  ;;  %v1235_v45 = vld [vmem:[#allocation9 + $0x5b8] sm:$0xff] }
 0x26e   :  { %v6019_v5 = vpack.c.bf16 %v989_v61, %v985_v60  ;;  %v6099_v61 = vpack.c.bf16 %v1209_v59, %v1205_v58  ;;  %v1243_v58 = vld [vmem:[#allocation9 + $0x5f8] sm:$0xff]  ;;  %v1236_v59 = vld [vmem:[#allocation9 + $0x5c0] sm:$0xff] }
 0x26f   :  { %6002 = vmatpush1.bf16.msra.mxu1 %v6001_v6  ;;  %6066 = vmatpush1.bf16.msra.mxu0 %v6065_v7  ;;  %v6083_v6 = vpack.c.bf16 %v991_v63, %v987_v62  ;;  %v988_v7 = vld [vmem:[#allocation9 + $0x3e0] sm:$0xff]  ;;  %v1207_v62 = vld [vmem:[#allocation9 + $0x4d8] sm:$0xff] }
 0x270   :  { %6004 = vmatprep.subr.bf16.mxu1 %v6003_v13  ;;  %6068 = vmatprep.subr.bf16.mxu0 %v6067_v14  ;;  %v6021_v13 = vpack.c.bf16 %v988_v7, %v984_v3  ;;  %v6085_v14 = vpack.c.bf16 %v990_v11, %v986_v9  ;;  %v1211_v63 = vld [vmem:[#allocation9 + $0x4f8] sm:$0xff]  ;;  %v1208_v3 = vld [vmem:[#allocation9 + $0x4e0] sm:$0xff]  ;;  %v1213_v9 = vld [vmem:[#allocation9 + $0x508] sm:$0xff] }
 0x271   :  { %v1217_v11 = vld [vmem:[#allocation9 + $0x528] sm:$0xff] }
 0x272   :  { %v6103_v15 = vpack.c.bf16 %v1217_v11, %v1213_v9  ;;  %v1251_v9 = vld [vmem:[#allocation9 + $0x638] sm:$0xff]  ;;  %v1244_v11 = vld [vmem:[#allocation9 + $0x600] sm:$0xff] }
 0x273   :  { %6006 = vmatpush1.bf16.msra.mxu1 %v6005_v23  ;;  %6070 = vmatpush1.bf16.msra.mxu0 %v6069_v24  ;;  %v1187_v23 = vld [vmem:[#allocation9 + $0x438] sm:$0xff]  ;;  %v1180_v24 = vld [vmem:[#allocation9 + $0x400] sm:$0xff] }
 0x274   :  { %6008 = vmatprep.subr.bf16.mxu1 %v6007_v28  ;;  %6072 = vmatprep.subr.bf16.mxu0 %v6071_v29  ;;  %v6151_v27 = vpack.c.bf16 %v1187_v23, %v1183_v20  ;;  %v6089_v28 = vpack.c.bf16 %v1184_v25, %v1180_v24  ;;  %v1182_v29 = vld [vmem:[#allocation9 + $0x410] sm:$0xff]  ;;  %v6105_v24 = vpack.c.bf16 %v1216_v18, %v1212_v17 }
 0x275   :  { %v6153_v31 = vpack.c.bf16 %v1186_v30, %v1182_v29  ;;  %v1218_v23 = vld [vmem:[#allocation9 + $0x530] sm:$0xff]  ;;  %v1223_v29 = vld [vmem:[#allocation9 + $0x558] sm:$0xff] }
 0x276   :  { %v1250_v17 = vld [vmem:[#allocation9 + $0x630] sm:$0xff] }
 0x277   :  { %6010 = vmatpush1.bf16.msra.mxu1 %v6009_v36  ;;  %6074 = vmatpush1.bf16.msra.mxu0 %v6073_v40  ;;  %v1188_v36 = vld [vmem:[#allocation9 + $0x440] sm:$0xff] }
 0x278   :  { %6012 = vmatprep.subr.bf16.mxu1 %v6011_v43  ;;  %6076 = vmatprep.subr.bf16.mxu0 %v6075_v44  ;;  %v1192_v40 = vld [vmem:[#allocation9 + $0x460] sm:$0xff]  ;;  %v1190_v43 = vld [vmem:[#allocation9 + $0x450] sm:$0xff] }
 0x279   :  { %v6093_v42 = vpack.c.bf16 %v1192_v40, %v1188_v36  ;;  %v1194_v44 = vld [vmem:[#allocation9 + $0x470] sm:$0xff] }
 0x27a   :  { %v6157_v46 = vpack.c.bf16 %v1194_v44, %v1190_v43  ;;  %v1226_v36 = vld [vmem:[#allocation9 + $0x570] sm:$0xff]  ;;  %v1231_v43 = vld [vmem:[#allocation9 + $0x598] sm:$0xff] }
 0x27b   :  { %6014 = vmatpush1.bf16.msra.mxu1 %v6013_v52  ;;  %6078 = vmatpush1.bf16.msra.mxu0 %v6077_v53  ;;  %v6159_v52 = vpack.c.bf16 %v1203_v50, %v1199_v49  ;;  %v1196_v53 = vld [vmem:[#allocation9 + $0x480] sm:$0xff]  ;;  %v6173_v40 = vpack.c.bf16 %v1226_v36, %v1222_v35  ;;  %v6175_v49 = vpack.c.bf16 %v1235_v45, %v1231_v43  ;;  %v1263_v35 = vld [vmem:[#allocation9 + $0x698] sm:$0xff]  ;;  %v1262_v45 = vld [vmem:[#allocation9 + $0x690] sm:$0xff] }
 0x27c   :  { %6016 = vmatprep.subr.bf16.mxu1 %v6015_v56  ;;  %6080 = vmatprep.subr.bf16.mxu0 %v6079_v57  ;;  %v6097_v56 = vpack.c.bf16 %v1200_v54, %v1196_v53  ;;  %v1202_v57 = vld [vmem:[#allocation9 + $0x4b0] sm:$0xff]  ;;  %v1237_v54 = vld [vmem:[#allocation9 + $0x5c8] sm:$0xff] }
 0x27d   :  { %v6161_v60 = vpack.c.bf16 %v1202_v57, %v1198_v55  ;;  %v1241_v55 = vld [vmem:[#allocation9 + $0x5e8] sm:$0xff] }
 0x27e   :  { %v6115_v57 = vpack.c.bf16 %v1241_v55, %v1237_v54  ;;  %v1268_v54 = vld [vmem:[#allocation9 + $0x6c0] sm:$0xff] }
 0x27f   :  { %6018 = vmatpush1.bf16.msra.mxu1 %v6017_v0  ;;  %6082 = vmatpush1.bf16.msra.mxu0 %v6081_v1  ;;  %v1204_v0 = vld [vmem:[#allocation9 + $0x4c0] sm:$0xff]  ;;  %v6163_v1 = vpack.c.bf16 %v1211_v63, %v1207_v62  ;;  %v1238_v63 = vld [vmem:[#allocation9 + $0x5d0] sm:$0xff] }
 0x280   :  { %6020 = vmatprep.subr.bf16.mxu1 %v6019_v5  ;;  %6084 = vmatprep.subr.bf16.mxu0 %v6083_v6  ;;  %v1206_v5 = vld [vmem:[#allocation9 + $0x4d0] sm:$0xff]  ;;  %v6101_v7 = vpack.c.bf16 %v1208_v3, %v1204_v0  ;;  %v1245_v3 = vld [vmem:[#allocation9 + $0x608] sm:$0xff]  ;;  %v1272_v55 = vld [vmem:[#allocation9 + $0x6e0] sm:$0xff] }
 0x281   :  { %v1210_v6 = vld [vmem:[#allocation9 + $0x4f0] sm:$0xff] }
 0x282   :  { %v1242_v0 = vld [vmem:[#allocation9 + $0x5f0] sm:$0xff] }
 0x283   :  { %6022 = vmatpush1.bf16.msra.mxu1 %v6021_v13  ;;  %6086 = vmatpush1.bf16.msra.mxu0 %v6085_v14  ;;  %v1215_v13 = vld [vmem:[#allocation9 + $0x518] sm:$0xff]  ;;  %v6165_v14 = vpack.c.bf16 %v1210_v6, %v1206_v5  ;;  %v1249_v5 = vld [vmem:[#allocation9 + $0x628] sm:$0xff] }
 0x284   :  { %6088 = vmatprep.subr.bf16.mxu1 %v6087_v21  ;;  %6152 = vmatprep.subr.bf16.mxu0 %v6151_v27  ;;  %v1214_v21 = vld [vmem:[#allocation9 + $0x510] sm:$0xff]  ;;  %v1221_v27 = vld [vmem:[#allocation9 + $0x548] sm:$0xff]  ;;  %v1247_v6 = vld [vmem:[#allocation9 + $0x618] sm:$0xff] }
 0x285   :  { %v6169_v25 = vpack.c.bf16 %v1218_v23, %v1214_v21  ;;  %v1257_v21 = vld [vmem:[#allocation9 + $0x668] sm:$0xff]  ;;  %v1255_v23 = vld [vmem:[#allocation9 + $0x658] sm:$0xff] }
 0x286   :  { %1079 = vmatmul.mubr.f32.vlgmr.msra.gmra.mrb[4].mxu1 %v185_v16  ;;  %1150 = vmatmul.mubr.f32.vlgmr.msra.gmra.mrb[12].mxu0 %v185_v16  ;;  %v1219_v16 = vld [vmem:[#allocation9 + $0x538] sm:$0xff] }
 0x287   :  { %6090 = vmatpush1.bf16.msra.mxu1 %v6089_v28  ;;  %6154 = vmatpush1.bf16.msra.mxu0 %v6153_v31  ;;  %v6167_v20 = vpack.c.bf16 %v1219_v16, %v1215_v13  ;;  %v1225_v28 = vld [vmem:[#allocation9 + $0x568] sm:$0xff]  ;;  %v1227_v31 = vld [vmem:[#allocation9 + $0x578] sm:$0xff]  ;;  %v1248_v13 = vld [vmem:[#allocation9 + $0x620] sm:$0xff] }
 0x288   :  { %6092 = vmatprep.subr.bf16.mxu1 %v6091_v34  ;;  %6156 = vmatprep.subr.bf16.mxu0 %v6155_v41  ;;  %v6107_v30 = vpack.c.bf16 %v1225_v28, %v1221_v27  ;;  %v6171_v33 = vpack.c.bf16 %v1227_v31, %v1223_v29  ;;  %v6109_v34 = vpack.c.bf16 %v1224_v48, %v1220_v32  ;;  %v1229_v41 = vld [vmem:[#allocation9 + $0x588] sm:$0xff]  ;;  %v1246_v16 = vld [vmem:[#allocation9 + $0x610] sm:$0xff]  ;;  %v1252_v27 = vld [vmem:[#allocation9 + $0x640] sm:$0xff] }
 0x289   :  { %v6185_v18 = vpack.c.bf16 %v1250_v17, %v1246_v16  ;;  %v1256_v28 = vld [vmem:[#allocation9 + $0x660] sm:$0xff]  ;;  %v1254_v31 = vld [vmem:[#allocation9 + $0x650] sm:$0xff]  ;;  %v1287_v16 = vld [vmem:[#allocation9 + $0x758] sm:$0xff] }
 0x28a   :  { %v1258_v32 = vld [vmem:[#allocation9 + $0x670] sm:$0xff] }
 0x28b   :  { %6094 = vmatpush1.bf16.msra.mxu1 %v6093_v42  ;;  %6158 = vmatpush1.bf16.msra.mxu0 %v6157_v46  ;;  %v1233_v42 = vld [vmem:[#allocation9 + $0x5a8] sm:$0xff]  ;;  %v1228_v46 = vld [vmem:[#allocation9 + $0x580] sm:$0xff]  ;;  %v6189_v48 = vpack.c.bf16 %v1258_v32, %v1254_v31  ;;  %v1295_v31 = vld [vmem:[#allocation9 + $0x798] sm:$0xff] }
 0x28c   :  { %6096 = vmatprep.subr.bf16.mxu1 %v6095_v51  ;;  %6160 = vmatprep.subr.bf16.mxu0 %v6159_v52  ;;  %v6111_v44 = vpack.c.bf16 %v1233_v42, %v1229_v41  ;;  %v6113_v50 = vpack.c.bf16 %v1232_v47, %v1228_v46  ;;  %v1230_v51 = vld [vmem:[#allocation9 + $0x590] sm:$0xff]  ;;  %v1260_v41 = vld [vmem:[#allocation9 + $0x680] sm:$0xff]  ;;  %v1299_v32 = vld [vmem:[#allocation9 + $0x7b8] sm:$0xff] }
 0x28d   :  { %v1234_v52 = vld [vmem:[#allocation9 + $0x5b0] sm:$0xff]  ;;  %v1264_v42 = vld [vmem:[#allocation9 + $0x6a0] sm:$0xff] }
 0x28e   :  { %v6177_v53 = vpack.c.bf16 %v1234_v52, %v1230_v51  ;;  %v1266_v46 = vld [vmem:[#allocation9 + $0x6b0] sm:$0xff]  ;;  %v1271_v51 = vld [vmem:[#allocation9 + $0x6d8] sm:$0xff] }
 0x28f   :  { %6098 = vmatpush1.bf16.msra.mxu1 %v6097_v56  ;;  %6162 = vmatpush1.bf16.msra.mxu0 %v6161_v60  ;;  %v1239_v56 = vld [vmem:[#allocation9 + $0x5d8] sm:$0xff]  ;;  %v1240_v60 = vld [vmem:[#allocation9 + $0x5e0] sm:$0xff]  ;;  %v6193_v47 = vpack.c.bf16 %v1266_v46, %v1262_v45 }
 0x290   :  { %6100 = vmatprep.subr.bf16.mxu1 %v6099_v61  ;;  %6164 = vmatprep.subr.bf16.mxu0 %v6163_v1  ;;  %v6179_v61 = vpack.c.bf16 %v1243_v58, %v1239_v56  ;;  %v6117_v62 = vpack.c.bf16 %v1240_v60, %v1236_v59  ;;  %v6181_v1 = vpack.c.bf16 %v1242_v0, %v1238_v63  ;;  %v1270_v58 = vld [vmem:[#allocation9 + $0x6d0] sm:$0xff]  ;;  %v1279_v63 = vld [vmem:[#allocation9 + $0x718] sm:$0xff] }
 0x291   :  { %v1274_v59 = vld [vmem:[#allocation9 + $0x6f0] sm:$0xff]  ;;  %v1303_v46 = vld [vmem:[#allocation9 + $0x7d8] sm:$0xff] }
 0x292   :  { %v6197_v60 = vpack.c.bf16 %v1274_v59, %v1270_v58 }
 0x293   :  { %6102 = vmatpush1.bf16.msra.mxu1 %v6101_v7  ;;  %6166 = vmatpush1.bf16.msra.mxu0 %v6165_v14  ;;  %v6119_v7 = vpack.c.bf16 %v1249_v5, %v1245_v3  ;;  %v6183_v14 = vpack.c.bf16 %v1251_v9, %v1247_v6  ;;  %v1276_v3 = vld [vmem:[#allocation9 + $0x700] sm:$0xff]  ;;  %v1278_v9 = vld [vmem:[#allocation9 + $0x710] sm:$0xff] }
 0x294   :  { %6104 = vmatprep.subr.bf16.mxu1 %v6103_v15  ;;  %6168 = vmatprep.subr.bf16.mxu0 %v6167_v20  ;;  %v6121_v15 = vpack.c.bf16 %v1248_v13, %v1244_v11  ;;  %v1253_v20 = vld [vmem:[#allocation9 + $0x648] sm:$0xff]  ;;  %v1280_v5 = vld [vmem:[#allocation9 + $0x720] sm:$0xff]  ;;  %v1282_v11 = vld [vmem:[#allocation9 + $0x730] sm:$0xff] }
 0x295   :  { %v6201_v13 = vpack.c.bf16 %v1282_v11, %v1278_v9 }
 0x297   :  { %6106 = vmatpush1.bf16.msra.mxu1 %v6105_v24  ;;  %6170 = vmatpush1.bf16.msra.mxu0 %v6169_v25  ;;  %v6123_v24 = vpack.c.bf16 %v1257_v21, %v1253_v20  ;;  %v1259_v25 = vld [vmem:[#allocation9 + $0x678] sm:$0xff]  ;;  %v1284_v20 = vld [vmem:[#allocation9 + $0x740] sm:$0xff] }
 0x298   :  { %6108 = vmatprep.subr.bf16.mxu1 %v6107_v30  ;;  %6172 = vmatprep.subr.bf16.mxu0 %v6171_v33  ;;  %v6187_v29 = vpack.c.bf16 %v1259_v25, %v1255_v23  ;;  %v6125_v30 = vpack.c.bf16 %v1256_v28, %v1252_v27  ;;  %v1261_v33 = vld [vmem:[#allocation9 + $0x688] sm:$0xff]  ;;  %v1288_v21 = vld [vmem:[#allocation9 + $0x760] sm:$0xff]  ;;  %v1286_v25 = vld [vmem:[#allocation9 + $0x750] sm:$0xff] }
 0x299   :  { %v1290_v27 = vld [vmem:[#allocation9 + $0x770] sm:$0xff]  ;;  %v1293_v28 = vld [vmem:[#allocation9 + $0x788] sm:$0xff] }
 0x29b   :  { %6110 = vmatpush1.bf16.msra.mxu1 %v6109_v34  ;;  %6174 = vmatpush1.bf16.msra.mxu0 %v6173_v40  ;;  %v1265_v34 = vld [vmem:[#allocation9 + $0x6a8] sm:$0xff]  ;;  %v1267_v40 = vld [vmem:[#allocation9 + $0x6b8] sm:$0xff] }
 0x29c   :  { %6112 = vmatprep.subr.bf16.mxu1 %v6111_v44  ;;  %6176 = vmatprep.subr.bf16.mxu0 %v6175_v49  ;;  %v6127_v36 = vpack.c.bf16 %v1265_v34, %v1261_v33  ;;  %v6191_v43 = vpack.c.bf16 %v1267_v40, %v1263_v35  ;;  %v6129_v44 = vpack.c.bf16 %v1264_v42, %v1260_v41  ;;  %v1269_v49 = vld [vmem:[#allocation9 + $0x6c8] sm:$0xff]  ;;  %v1292_v34 = vld [vmem:[#allocation9 + $0x780] sm:$0xff]  ;;  %v1298_v41 = vld [vmem:[#allocation9 + $0x7b0] sm:$0xff] }
 0x29d   :  { %v6207_v33 = vpack.c.bf16 %v1299_v32, %v1295_v31  ;;  %v1296_v35 = vld [vmem:[#allocation9 + $0x7a0] sm:$0xff]  ;;  %v1301_v42 = vld [vmem:[#allocation9 + $0x7c8] sm:$0xff] }
 0x29e   :  { %v6145_v40 = vpack.c.bf16 %v1296_v35, %v1292_v34 }
 0x29f   :  { %6114 = vmatpush1.bf16.msra.mxu1 %v6113_v50  ;;  %6178 = vmatpush1.bf16.msra.mxu0 %v6177_v53  ;;  %v1273_v50 = vld [vmem:[#allocation9 + $0x6e8] sm:$0xff]  ;;  %v1275_v53 = vld [vmem:[#allocation9 + $0x6f8] sm:$0xff] }
 0x2a0   :  { %6116 = vmatprep.subr.bf16.mxu1 %v6115_v57  ;;  %6180 = vmatprep.subr.bf16.mxu0 %v6179_v61  ;;  %v6131_v52 = vpack.c.bf16 %v1273_v50, %v1269_v49  ;;  %v6195_v56 = vpack.c.bf16 %v1275_v53, %v1271_v51  ;;  %v6133_v57 = vpack.c.bf16 %v1272_v55, %v1268_v54  ;;  %v1277_v61 = vld [vmem:[#allocation9 + $0x708] sm:$0xff]  ;;  %v1300_v49 = vld [vmem:[#allocation9 + $0x7c0] sm:$0xff]  ;;  %v1306_v53 = vld [vmem:[#allocation9 + $0x7f0] sm:$0xff] }
 0x2a1   :  { %v1304_v51 = vld [vmem:[#allocation9 + $0x7e0] sm:$0xff]  ;;  %v1501_v55 = vld [vmem:[#allocation9 + $0x8] sm:$0xff] }
 0x2a2   :  { %v6149_v54 = vpack.c.bf16 %v1304_v51, %v1300_v49 }
 0x2a3   :  { %6118 = vmatpush1.bf16.msra.mxu1 %v6117_v62  ;;  %6182 = vmatpush1.bf16.msra.mxu0 %v6181_v1  ;;  %v1281_v62 = vld [vmem:[#allocation9 + $0x728] sm:$0xff]  ;;  %v1283_v1 = vld [vmem:[#allocation9 + $0x738] sm:$0xff] }
 0x2a4   :  { %6120 = vmatprep.subr.bf16.mxu1 %v6119_v7  ;;  %6184 = vmatprep.subr.bf16.mxu0 %v6183_v14  ;;  %v6135_v0 = vpack.c.bf16 %v1281_v62, %v1277_v61  ;;  %v6199_v6 = vpack.c.bf16 %v1283_v1, %v1279_v63  ;;  %v6137_v7 = vpack.c.bf16 %v1280_v5, %v1276_v3  ;;  %v1285_v14 = vld [vmem:[#allocation9 + $0x748] sm:$0xff]  ;;  %v5481_v62 = vld [vmem:[%s8570_s4 + $0x4] sm:$0xf] }
 0x2a5   :  { %v678_v63 = vrot.slane %v5481_v62, %v8305_v2 }
 0x2a7   :  { %6122 = vmatpush1.bf16.msra.mxu1 %v6121_v15  ;;  %6186 = vmatpush1.bf16.msra.mxu0 %v6185_v18  ;;  %v1289_v15 = vld [vmem:[#allocation9 + $0x768] sm:$0xff]  ;;  %v1291_v18 = vld [vmem:[#allocation9 + $0x778] sm:$0xff] }
 0x2a8   :  { %6124 = vmatprep.subr.bf16.mxu1 %v6123_v24  ;;  %6188 = vmatprep.subr.bf16.mxu0 %v6187_v29  ;;  %v6139_v17 = vpack.c.bf16 %v1289_v15, %v1285_v14  ;;  %v6203_v23 = vpack.c.bf16 %v1291_v18, %v1287_v16  ;;  %v6141_v24 = vpack.c.bf16 %v1288_v21, %v1284_v20 }
 0x2a9   :  { %v6205_v29 = vpack.c.bf16 %v1290_v27, %v1286_v25  ;;  %v690_v14 = vrot.slane %v5481_v62, %v8314_v10  ;;  %v686_v16 = vrot.slane %v5481_v62, %v8317_v19 }
 0x2ab   :  { %6126 = vmatpush1.bf16.msra.mxu1 %v6125_v30  ;;  %6190 = vmatpush1.bf16.msra.mxu0 %v6189_v48  ;;  %v1297_v30 = vld [vmem:[#allocation9 + $0x7a8] sm:$0xff] }
 0x2ac   :  { %6128 = vmatprep.subr.bf16.mxu1 %v6127_v36  ;;  %6192 = vmatprep.subr.bf16.mxu0 %v6191_v43  ;;  %v6143_v48 = vpack.c.bf16 %v1297_v30, %v1293_v28  ;;  %v1294_v36 = vld [vmem:[#allocation9 + $0x790] sm:$0xff]  ;;  %v1305_v43 = vld [vmem:[#allocation9 + $0x7e8] sm:$0xff] }
 0x2ad   :  { %v6147_v45 = vpack.c.bf16 %v1305_v43, %v1301_v42 }
 0x2af   :  { %6130 = vmatpush1.bf16.msra.mxu1 %v6129_v44  ;;  %6194 = vmatpush1.bf16.msra.mxu0 %v6193_v47  ;;  %v6209_v44 = vpack.c.bf16 %v1298_v41, %v1294_v36  ;;  %v1307_v47 = vld [vmem:[#allocation9 + $0x7f8] sm:$0xff]  ;;  %v992_v36 = vld [vmem:[%s8570_s4] sm:$0xf] }
 0x2b0   :  { %6132 = vmatprep.subr.bf16.mxu1 %v6131_v52  ;;  %6196 = vmatprep.subr.bf16.mxu0 %v6195_v56  ;;  %v6211_v50 = vpack.c.bf16 %v1307_v47, %v1303_v46  ;;  %v1302_v52 = vld [vmem:[#allocation9 + $0x7d0] sm:$0xff]  ;;  %v1505_v56 = vld [vmem:[#allocation9 + $0x28] sm:$0xff]  ;;  %v1001_v41 = vrot.slane %v992_v36, %v8310_v4  ;;  %v1009_v51 = vrot.slane %v992_v36, %v8314_v10 }
 0x2b1   :  { %v6213_v58 = vpack.c.bf16 %v1306_v53, %v1302_v52  ;;  %v6215_v59 = vpack.c.bf16 %v1505_v56, %v1501_v55  ;;  %v1005_v53 = vrot.slane %v992_v36, %v8317_v19 }
 0x2b3   :  { %6134 = vmatpush1.bf16.msra.mxu1 %v6133_v57  ;;  %6198 = vmatpush1.bf16.msra.mxu0 %v6197_v60  ;;  %v1503_v57 = vld [vmem:[#allocation9 + $0x18] sm:$0xff] }
 0x2b4   :  { %6136 = vmatprep.subr.bf16.mxu1 %v6135_v0  ;;  %6200 = vmatprep.subr.bf16.mxu0 %v6199_v6  ;;  %v1507_v60 = vld [vmem:[#allocation9 + $0x38] sm:$0xff]  ;;  %v682_v0 = vrot.slane %v5481_v62, %v8310_v4 }
 0x2b5   :  { %v6279_v61 = vpack.c.bf16 %v1507_v60, %v1503_v57 }
 0x2b7   :  { %6138 = vmatpush1.bf16.msra.mxu1 %v6137_v7  ;;  %6202 = vmatpush1.bf16.msra.mxu0 %v6201_v13 }
 0x2b8   :  { %6140 = vmatprep.subr.bf16.mxu1 %v6139_v17  ;;  %6204 = vmatprep.subr.bf16.mxu0 %v6203_v23 }
 0x2bb   :  { %6142 = vmatpush1.bf16.msra.mxu1 %v6141_v24  ;;  %6206 = vmatpush1.bf16.msra.mxu0 %v6205_v29 }
 0x2bc   :  { %6144 = vmatprep.subr.bf16.mxu1 %v6143_v48  ;;  %6208 = vmatprep.subr.bf16.mxu0 %v6207_v33 }
 0x2bf   :  { %6146 = vmatpush1.bf16.msra.mxu1 %v6145_v40  ;;  %6210 = vmatpush1.bf16.msra.mxu0 %v6209_v44  ;;  %v997_v40 = vrot.slane %v992_v36, %v8305_v2 }
 0x2c0   :  { %6148 = vmatprep.subr.bf16.mxu1 %v6147_v45  ;;  %6212 = vmatprep.subr.bf16.mxu0 %v6211_v50 }
 0x2c3   :  { %6150 = vmatpush1.bf16.msra.mxu1 %v6149_v54  ;;  %6214 = vmatpush1.bf16.msra.mxu0 %v6213_v58 }
 0x2c4   :  { %6216 = vmatprep.subr.bf16.mxu1 %v6215_v59  ;;  %6280 = vmatprep.subr.bf16.mxu0 %v6279_v61 }
 0x319   :  { %v761_v1 = vpop.f32.mrb[2].mxu1  ;;  %v832_v3 = vpop.f32.mrb[10].mxu0 }
 0x31a   :  { %v762_v5 = vadd.f32 %v761_v1, %v678_v63  ;;  %v763_v6 = vpop.f32.mrb[3].mxu1  ;;  %v834_v7 = vpop.f32.mrb[11].mxu0  ;;  %v833_v18 = vadd.f32 %v832_v3, %v686_v16  ;;  %v1511_v16 = vld [vmem:[#allocation9 + $0x58] sm:$0xff] }
 0x31b   :  { %v764_v9 = vadd.f32 %v763_v6, %v682_v0  ;;  %v835_v15 = vadd.f32 %v834_v7, %v690_v14  ;;  %v1500_v6 = vld [vmem:[#allocation9] sm:$0xff] }
 0x31c   :  { %v5482_v11 = vmul.f32 -1.442695, %v762_v5  ;;  %v1504_v7 = vld [vmem:[#allocation9 + $0x20] sm:$0xff] }
 0x31d   :  { %v5483_v13 = vmul.f32 -1.442695, %v764_v9  ;;  %v5484_v17 = vmul.f32 -1.442695, %v835_v15  ;;  %v1502_v9 = vld [vmem:[#allocation9 + $0x10] sm:$0xff]  ;;  %v1513_v15 = vld [vmem:[#allocation9 + $0x68] sm:$0xff] }
 0x31e   :  { %7809 = vpow2.f32 %v5482_v11  ;;  %v1506_v11 = vld [vmem:[#allocation9 + $0x30] sm:$0xff] }
 0x31f   :  { %7811 = vpow2.f32 %v5483_v13  ;;  %v1509_v13 = vld [vmem:[#allocation9 + $0x48] sm:$0xff] }
 0x320   :  { %7813 = vpow2.f32 %v5484_v17  ;;  %v1515_v17 = vld [vmem:[#allocation9 + $0x78] sm:$0xff] }
 0x321   :  { %7815 = vtanh.f32 %v833_v18 }
 0x328   :  { %v7810_v20 = vpop.eup %7809 }
 0x329   :  { %v7812_v21 = vpop.eup %7811  ;;  %v840_v23 = vadd.f32 1.0, %v7810_v20  ;;  %v6217_v20 = vpack.c.bf16 %v1504_v7, %v1500_v6 }
 0x32a   :  { %v846_v24 = vadd.f32 1.0, %v7812_v21  ;;  %v7814_v25 = vpop.eup %7813  ;;  %v6281_v21 = vpack.c.bf16 %v1506_v11, %v1502_v9  ;;  %v1534_v9 = vld [vmem:[#allocation9 + $0x110] sm:$0xff] }
 0x32b   :  { %7817 = vrcp.f32 %v840_v23  ;;  %v7816_v27 = vpop.eup %7815  ;;  %v853_v31 = vadd.f32 1.0, %v7814_v25  ;;  %v1508_v23 = vld [vmem:[#allocation9 + $0x40] sm:$0xff]  ;;  %v1510_v25 = vld [vmem:[#allocation9 + $0x50] sm:$0xff] }
 0x32c   :  { %7819 = vrcp.f32 %v846_v24  ;;  %v1512_v24 = vld [vmem:[#allocation9 + $0x60] sm:$0xff]  ;;  %v1538_v11 = vld [vmem:[#allocation9 + $0x130] sm:$0xff] }
 0x32d   :  { %7821 = vrcp.f32 %v853_v31  ;;  %v1521_v31 = vld [vmem:[#allocation9 + $0xa8] sm:$0xff] }
 0x335   :  { %v7818_v28 = vpop.eup %7817 }
 0x336   :  { %v7820_v29 = vpop.eup %7819  ;;  %v857_v30 = vmul.f32 %v7818_v28, %v7816_v27  ;;  %v1514_v27 = vld [vmem:[#allocation9 + $0x70] sm:$0xff]  ;;  %v1517_v28 = vld [vmem:[#allocation9 + $0x88] sm:$0xff] }
 0x337   :  { %v856_v32 = vmul.f32 0.0, %v7820_v29  ;;  %v7822_v33 = vpop.eup %7821  ;;  %v6219_v29 = vpack.c.bf16 %v1513_v15, %v1509_v13  ;;  %v6285_v36 = vpack.c.bf16 %v1514_v27, %v1510_v25  ;;  %v1541_v13 = vld [vmem:[#allocation9 + $0x148] sm:$0xff]  ;;  %v1543_v15 = vld [vmem:[#allocation9 + $0x158] sm:$0xff]  ;;  %v1546_v25 = vld [vmem:[#allocation9 + $0x170] sm:$0xff] }
 0x338   :  { %v1549_v27 = vld [vmem:[#allocation9 + $0x188] sm:$0xff] }
 0x339   :  { %v8334_v48 = vadd.f32 %v857_v30, %v856_v32  ;;  %v6283_v30 = vpack.c.bf16 %v1515_v17, %v1511_v16  ;;  %v1519_v32 = vld [vmem:[#allocation9 + $0x98] sm:$0xff] }
 0x33a   :  { %v1547_v16 = vld [vmem:[#allocation9 + $0x178] sm:$0xff] }
 0x33b   :  { %7823 = vtanh.f32 %v8334_v48 }
 0x345   :  { %v7824_v34 = vpop.eup %7823 }
 0x346   :  { %v8337_v35 = vmul.f32 %v7824_v34, %v7822_v33  ;;  %v1523_v33 = vld [vmem:[#allocation9 + $0xb8] sm:$0xff]  ;;  %v6221_v34 = vpack.c.bf16 %v1512_v24, %v1508_v23  ;;  %v6299_v24 = vpack.c.bf16 %v1547_v16, %v1543_v15  ;;  %v1572_v16 = vld [vmem:[#allocation9 + $0x240] sm:$0xff] }
 0x348   :  { %1394 = vmatprep.mubr.f32.mxu1 %v8337_v35  ;;  %1465 = vmatprep.mubr.f32.mxu0 %v8337_v35 }
 0x359   :  { %v1080_v42 = vpop.f32.mrb[4].mxu1  ;;  %v1151_v43 = vpop.f32.mrb[12].mxu0 }
 0x35a   :  { %v1081_v44 = vadd.f32 %v1080_v42, %v997_v40  ;;  %v1082_v45 = vpop.f32.mrb[5].mxu1  ;;  %v1153_v46 = vpop.f32.mrb[13].mxu0  ;;  %v1152_v55 = vadd.f32 %v1151_v43, %v1005_v53  ;;  %v1516_v40 = vld [vmem:[#allocation9 + $0x80] sm:$0xff]  ;;  %v6223_v42 = vpack.c.bf16 %v1521_v31, %v1517_v28  ;;  %v6287_v43 = vpack.c.bf16 %v1523_v33, %v1519_v32  ;;  %v1553_v28 = vld [vmem:[#allocation9 + $0x1a8] sm:$0xff] }
 0x35b   :  { %v1083_v47 = vadd.f32 %v1082_v45, %v1001_v41  ;;  %v1154_v52 = vadd.f32 %v1153_v46, %v1009_v51  ;;  %v1520_v41 = vld [vmem:[#allocation9 + $0xa0] sm:$0xff]  ;;  %v1522_v45 = vld [vmem:[#allocation9 + $0xb0] sm:$0xff]  ;;  %v1525_v46 = vld [vmem:[#allocation9 + $0xc8] sm:$0xff] }
 0x35c   :  { %v5485_v49 = vmul.f32 -1.442695, %v1081_v44  ;;  %v1518_v44 = vld [vmem:[#allocation9 + $0x90] sm:$0xff]  ;;  %v6225_v51 = vpack.c.bf16 %v1520_v41, %v1516_v40  ;;  %v1524_v53 = vld [vmem:[#allocation9 + $0xc0] sm:$0xff] }
 0x35d   :  { %v5486_v50 = vmul.f32 -1.442695, %v1083_v47  ;;  %v5487_v54 = vmul.f32 -1.442695, %v1154_v52  ;;  %v1529_v47 = vld [vmem:[#allocation9 + $0xe8] sm:$0xff]  ;;  %v6289_v52 = vpack.c.bf16 %v1522_v45, %v1518_v44  ;;  %v1548_v33 = vld [vmem:[#allocation9 + $0x180] sm:$0xff] }
 0x35e   :  { %7825 = vpow2.f32 %v5485_v49  ;;  %v1527_v49 = vld [vmem:[#allocation9 + $0xd8] sm:$0xff]  ;;  %v1550_v41 = vld [vmem:[#allocation9 + $0x190] sm:$0xff]  ;;  %v1561_v44 = vld [vmem:[#allocation9 + $0x1e8] sm:$0xff] }
 0x35f   :  { %7827 = vpow2.f32 %v5486_v50  ;;  %v1531_v50 = vld [vmem:[#allocation9 + $0xf8] sm:$0xff] }
 0x360   :  { %7829 = vpow2.f32 %v5487_v54  ;;  %v1528_v54 = vld [vmem:[#allocation9 + $0xe0] sm:$0xff]  ;;  %v1559_v45 = vld [vmem:[#allocation9 + $0x1d8] sm:$0xff] }
 0x361   :  { %7831 = vtanh.f32 %v1152_v55  ;;  %v6227_v55 = vpack.c.bf16 %v1529_v47, %v1525_v46  ;;  %v1563_v46 = vld [vmem:[#allocation9 + $0x1f8] sm:$0xff] }
 0x368   :  { %v7826_v56 = vpop.eup %7825 }
 0x369   :  { %v7828_v57 = vpop.eup %7827  ;;  %v1159_v58 = vadd.f32 1.0, %v7826_v56  ;;  %v6291_v56 = vpack.c.bf16 %v1531_v50, %v1527_v49  ;;  %v1556_v50 = vld [vmem:[#allocation9 + $0x1c0] sm:$0xff] }
 0x36a   :  { %v1165_v59 = vadd.f32 1.0, %v7828_v57  ;;  %v7830_v60 = vpop.eup %7829  ;;  %v1526_v57 = vld [vmem:[#allocation9 + $0xd0] sm:$0xff] }
 0x36b   :  { %7833 = vrcp.f32 %v1159_v58  ;;  %v7832_v61 = vpop.eup %7831  ;;  %v1172_v1 = vadd.f32 1.0, %v7830_v60  ;;  %v1530_v58 = vld [vmem:[#allocation9 + $0xf0] sm:$0xff]  ;;  %v1537_v60 = vld [vmem:[#allocation9 + $0x128] sm:$0xff] }
 0x36c   :  { %7835 = vrcp.f32 %v1165_v59  ;;  %v1533_v59 = vld [vmem:[#allocation9 + $0x108] sm:$0xff] }
 0x36d   :  { %7837 = vrcp.f32 %v1172_v1  ;;  %v1532_v1 = vld [vmem:[#allocation9 + $0x100] sm:$0xff]  ;;  %v6231_v6 = vpack.c.bf16 %v1537_v60, %v1533_v59  ;;  %v1571_v59 = vld [vmem:[#allocation9 + $0x238] sm:$0xff] }
 0x375   :  { %v7834_v62 = vpop.eup %7833 }
 0x376   :  { %v7836_v63 = vpop.eup %7835  ;;  %v1176_v0 = vmul.f32 %v7834_v62, %v7832_v61  ;;  %v1535_v61 = vld [vmem:[#allocation9 + $0x118] sm:$0xff] }
 0x377   :  { %v1175_v3 = vmul.f32 %v7836_v63, %v8320_v39  ;;  %v7838_v14 = vpop.eup %7837  ;;  %v1539_v62 = vld [vmem:[#allocation9 + $0x138] sm:$0xff]  ;;  %v6229_v63 = vpack.c.bf16 %v1528_v54, %v1524_v53  ;;  %v6307_v53 = vpack.c.bf16 %v1563_v46, %v1559_v45  ;;  %v1558_v54 = vld [vmem:[#allocation9 + $0x1d0] sm:$0xff]  ;;  %v1588_v46 = vld [vmem:[#allocation9 + $0x2c0] sm:$0xff] }
 0x378   :  { %v6295_v7 = vpack.c.bf16 %v1539_v62, %v1535_v61  ;;  %v1564_v62 = vld [vmem:[#allocation9 + $0x200] sm:$0xff] }
 0x379   :  { %v8349_v5 = vadd.f32 %v1176_v0, %v1175_v3  ;;  %v6293_v0 = vpack.c.bf16 %v1530_v58, %v1526_v57  ;;  %v1536_v3 = vld [vmem:[#allocation9 + $0x120] sm:$0xff]  ;;  %v1569_v57 = vld [vmem:[#allocation9 + $0x228] sm:$0xff]  ;;  %v1567_v58 = vld [vmem:[#allocation9 + $0x218] sm:$0xff] }
 0x37a   :  { %v6233_v17 = vpack.c.bf16 %v1536_v3, %v1532_v1  ;;  %v6311_v1 = vpack.c.bf16 %v1571_v59, %v1567_v58  ;;  %v1566_v3 = vld [vmem:[#allocation9 + $0x210] sm:$0xff]  ;;  %v1596_v59 = vld [vmem:[#allocation9 + $0x300] sm:$0xff] }
 0x37b   :  { %7839 = vtanh.f32 %v8349_v5 }
 0x385   :  { %v7840_v18 = vpop.eup %7839 }
 0x386   :  { %v1179_v39 = vmul.f32 %v7840_v18, %v7838_v14  ;;  %v1545_v14 = vld [vmem:[#allocation9 + $0x168] sm:$0xff]  ;;  %v6297_v18 = vpack.c.bf16 %v1538_v11, %v1534_v9  ;;  %v1575_v11 = vld [vmem:[#allocation9 + $0x258] sm:$0xff] }
 0x387   :  { %v6235_v23 = vpack.c.bf16 %v1545_v14, %v1541_v13  ;;  %v1577_v9 = vld [vmem:[#allocation9 + $0x268] sm:$0xff]  ;;  %v1579_v13 = vld [vmem:[#allocation9 + $0x278] sm:$0xff] }
 0x388   :  { %1395 = vmatmul.mubr.f32.vlgmr.msra.gmra.mrb[6].mxu1 %v1179_v39  ;;  %1466 = vmatmul.mubr.f32.vlgmr.msra.gmra.mrb[14].mxu0 %v1179_v39 }
 0x389   :  { %6218 = vmatpush1.bf16.msra.mxu1 %v6217_v20  ;;  %6282 = vmatpush1.bf16.msra.mxu0 %v6281_v21  ;;  %v1540_v20 = vld [vmem:[#allocation9 + $0x140] sm:$0xff] }
 0x38a   :  { %1714 = vmatprep.mubr.f32.mxu1 %v1179_v39  ;;  %1785 = vmatprep.mubr.f32.mxu0 %v1179_v39  ;;  %v1544_v21 = vld [vmem:[#allocation9 + $0x160] sm:$0xff]  ;;  %v1542_v39 = vld [vmem:[#allocation9 + $0x150] sm:$0xff] }
 0x38b   :  { %6220 = vmatprep.subr.bf16.mxu1 %v6219_v29  ;;  %6284 = vmatprep.subr.bf16.mxu0 %v6283_v30  ;;  %v1551_v29 = vld [vmem:[#allocation9 + $0x198] sm:$0xff]  ;;  %v6237_v31 = vpack.c.bf16 %v1544_v21, %v1540_v20  ;;  %v6301_v32 = vpack.c.bf16 %v1546_v25, %v1542_v39  ;;  %v6315_v20 = vpack.c.bf16 %v1579_v13, %v1575_v11  ;;  %v1574_v21 = vld [vmem:[#allocation9 + $0x250] sm:$0xff]  ;;  %v1585_v39 = vld [vmem:[#allocation9 + $0x2a8] sm:$0xff] }
 0x38c   :  { %v1555_v30 = vld [vmem:[#allocation9 + $0x1b8] sm:$0xff]  ;;  %v1604_v13 = vld [vmem:[#allocation9 + $0x340] sm:$0xff] }
 0x38d   :  { %6222 = vmatpush1.bf16.msra.mxu1 %v6221_v34  ;;  %6286 = vmatpush1.bf16.msra.mxu0 %v6285_v36  ;;  %v1552_v34 = vld [vmem:[#allocation9 + $0x1a0] sm:$0xff]  ;;  %v6239_v36 = vpack.c.bf16 %v1553_v28, %v1549_v27  ;;  %v6303_v40 = vpack.c.bf16 %v1555_v30, %v1551_v29  ;;  %v1583_v25 = vld [vmem:[#allocation9 + $0x298] sm:$0xff] }
 0x38e   :  { %6224 = vmatprep.subr.bf16.mxu1 %v6223_v42  ;;  %6288 = vmatprep.subr.bf16.mxu0 %v6287_v43  ;;  %v1554_v42 = vld [vmem:[#allocation9 + $0x1b0] sm:$0xff]  ;;  %v1557_v43 = vld [vmem:[#allocation9 + $0x1c8] sm:$0xff]  ;;  %v6241_v47 = vpack.c.bf16 %v1552_v34, %v1548_v33  ;;  %v1587_v27 = vld [vmem:[#allocation9 + $0x2b8] sm:$0xff] }
 0x38f   :  { %v6305_v49 = vpack.c.bf16 %v1554_v42, %v1550_v41  ;;  %v1580_v30 = vld [vmem:[#allocation9 + $0x280] sm:$0xff]  ;;  %v6319_v33 = vpack.c.bf16 %v1587_v27, %v1583_v25  ;;  %v1582_v34 = vld [vmem:[#allocation9 + $0x290] sm:$0xff]  ;;  %v1593_v41 = vld [vmem:[#allocation9 + $0x2e8] sm:$0xff] }
 0x390   :  { %v1591_v42 = vld [vmem:[#allocation9 + $0x2d8] sm:$0xff]  ;;  %v1612_v27 = vld [vmem:[#allocation9 + $0x380] sm:$0xff] }
 0x391   :  { %6226 = vmatpush1.bf16.msra.mxu1 %v6225_v51  ;;  %6290 = vmatpush1.bf16.msra.mxu0 %v6289_v52  ;;  %v1560_v51 = vld [vmem:[#allocation9 + $0x1e0] sm:$0xff]  ;;  %v6243_v52 = vpack.c.bf16 %v1561_v44, %v1557_v43  ;;  %v1595_v43 = vld [vmem:[#allocation9 + $0x2f8] sm:$0xff] }
 0x392   :  { %6228 = vmatprep.subr.bf16.mxu1 %v6227_v55  ;;  %6292 = vmatprep.subr.bf16.mxu0 %v6291_v56  ;;  %v1562_v55 = vld [vmem:[#allocation9 + $0x1f0] sm:$0xff]  ;;  %v1565_v56 = vld [vmem:[#allocation9 + $0x208] sm:$0xff]  ;;  %v6245_v60 = vpack.c.bf16 %v1560_v51, %v1556_v50  ;;  %v6323_v50 = vpack.c.bf16 %v1595_v43, %v1591_v42  ;;  %v1620_v43 = vld [vmem:[#allocation9 + $0x3c0] sm:$0xff] }
 0x393   :  { %v6309_v61 = vpack.c.bf16 %v1562_v55, %v1558_v54  ;;  %v1590_v51 = vld [vmem:[#allocation9 + $0x2d0] sm:$0xff]  ;;  %v1601_v54 = vld [vmem:[#allocation9 + $0x328] sm:$0xff]  ;;  %v1599_v55 = vld [vmem:[#allocation9 + $0x318] sm:$0xff] }
 0x395   :  { %6230 = vmatpush1.bf16.msra.mxu1 %v6229_v63  ;;  %6294 = vmatpush1.bf16.msra.mxu0 %v6293_v0  ;;  %v1568_v63 = vld [vmem:[#allocation9 + $0x220] sm:$0xff]  ;;  %v6247_v0 = vpack.c.bf16 %v1569_v57, %v1565_v56  ;;  %v1603_v56 = vld [vmem:[#allocation9 + $0x338] sm:$0xff] }
 0x396   :  { %6232 = vmatprep.subr.bf16.mxu1 %v6231_v6  ;;  %6296 = vmatprep.subr.bf16.mxu0 %v6295_v7  ;;  %v1570_v6 = vld [vmem:[#allocation9 + $0x230] sm:$0xff]  ;;  %v1573_v7 = vld [vmem:[#allocation9 + $0x248] sm:$0xff]  ;;  %v6249_v14 = vpack.c.bf16 %v1568_v63, %v1564_v62  ;;  %v6327_v62 = vpack.c.bf16 %v1603_v56, %v1599_v55  ;;  %v1819_v56 = vld [vmem:[#allocation9 + $0x418] sm:$0xff] }
 0x397   :  { %v6313_v15 = vpack.c.bf16 %v1570_v6, %v1566_v3  ;;  %v1598_v63 = vld [vmem:[#allocation9 + $0x310] sm:$0xff]  ;;  %v1609_v3 = vld [vmem:[#allocation9 + $0x368] sm:$0xff]  ;;  %v1607_v6 = vld [vmem:[#allocation9 + $0x358] sm:$0xff] }
 0x398   :  { %v1821_v55 = vld [vmem:[#allocation9 + $0x428] sm:$0xff] }
 0x399   :  { %6234 = vmatpush1.bf16.msra.mxu1 %v6233_v17  ;;  %6298 = vmatpush1.bf16.msra.mxu0 %v6297_v18  ;;  %v1576_v17 = vld [vmem:[#allocation9 + $0x260] sm:$0xff]  ;;  %v6251_v18 = vpack.c.bf16 %v1577_v9, %v1573_v7  ;;  %v1611_v7 = vld [vmem:[#allocation9 + $0x378] sm:$0xff] }
 0x39a   :  { %6236 = vmatprep.subr.bf16.mxu1 %v6235_v23  ;;  %6300 = vmatprep.subr.bf16.mxu0 %v6299_v24  ;;  %v1578_v23 = vld [vmem:[#allocation9 + $0x270] sm:$0xff]  ;;  %v1581_v24 = vld [vmem:[#allocation9 + $0x288] sm:$0xff]  ;;  %v6253_v28 = vpack.c.bf16 %v1576_v17, %v1572_v16  ;;  %v6331_v16 = vpack.c.bf16 %v1611_v7, %v1607_v6  ;;  %v1827_v6 = vld [vmem:[#allocation9 + $0x458] sm:$0xff] }
 0x39b   :  { %v6317_v29 = vpack.c.bf16 %v1578_v23, %v1574_v21  ;;  %v1606_v17 = vld [vmem:[#allocation9 + $0x350] sm:$0xff]  ;;  %v1617_v21 = vld [vmem:[#allocation9 + $0x3a8] sm:$0xff]  ;;  %v1615_v23 = vld [vmem:[#allocation9 + $0x398] sm:$0xff] }
 0x39d   :  { %6238 = vmatpush1.bf16.msra.mxu1 %v6237_v31  ;;  %6302 = vmatpush1.bf16.msra.mxu0 %v6301_v32  ;;  %v1584_v31 = vld [vmem:[#allocation9 + $0x2a0] sm:$0xff]  ;;  %v6255_v32 = vpack.c.bf16 %v1585_v39, %v1581_v24  ;;  %v1619_v24 = vld [vmem:[#allocation9 + $0x3b8] sm:$0xff] }
 0x39e   :  { %6240 = vmatprep.subr.bf16.mxu1 %v6239_v36  ;;  %6304 = vmatprep.subr.bf16.mxu0 %v6303_v40  ;;  %v1586_v36 = vld [vmem:[#allocation9 + $0x2b0] sm:$0xff]  ;;  %v1589_v40 = vld [vmem:[#allocation9 + $0x2c8] sm:$0xff]  ;;  %v6257_v44 = vpack.c.bf16 %v1584_v31, %v1580_v30  ;;  %v6335_v30 = vpack.c.bf16 %v1619_v24, %v1615_v23  ;;  %v1835_v23 = vld [vmem:[#allocation9 + $0x498] sm:$0xff] }
 0x39f   :  { %v6321_v45 = vpack.c.bf16 %v1586_v36, %v1582_v34  ;;  %v1614_v31 = vld [vmem:[#allocation9 + $0x390] sm:$0xff]  ;;  %v1625_v34 = vld [vmem:[#allocation9 + $0x3e8] sm:$0xff]  ;;  %v1623_v36 = vld [vmem:[#allocation9 + $0x3d8] sm:$0xff] }
 0x3a0   :  { %v1839_v24 = vld [vmem:[#allocation9 + $0x4b8] sm:$0xff] }
 0x3a1   :  { %6242 = vmatpush1.bf16.msra.mxu1 %v6241_v47  ;;  %6306 = vmatpush1.bf16.msra.mxu0 %v6305_v49  ;;  %v1592_v47 = vld [vmem:[#allocation9 + $0x2e0] sm:$0xff]  ;;  %v6259_v49 = vpack.c.bf16 %v1593_v41, %v1589_v40  ;;  %v1627_v40 = vld [vmem:[#allocation9 + $0x3f8] sm:$0xff] }
 0x3a2   :  { %6244 = vmatprep.subr.bf16.mxu1 %v6243_v52  ;;  %6308 = vmatprep.subr.bf16.mxu0 %v6307_v53  ;;  %v1594_v52 = vld [vmem:[#allocation9 + $0x2f0] sm:$0xff]  ;;  %v1597_v53 = vld [vmem:[#allocation9 + $0x308] sm:$0xff]  ;;  %v6261_v57 = vpack.c.bf16 %v1592_v47, %v1588_v46  ;;  %v1624_v46 = vld [vmem:[#allocation9 + $0x3e0] sm:$0xff] }
 0x3a3   :  { %v6325_v58 = vpack.c.bf16 %v1594_v52, %v1590_v51  ;;  %v1622_v47 = vld [vmem:[#allocation9 + $0x3d0] sm:$0xff]  ;;  %v8050_v52 = vld [vmem:[%s8568_s2] ss:$0 sm:$0xff] }
 0x3a5   :  { %6246 = vmatpush1.bf16.msra.mxu1 %v6245_v60  ;;  %6310 = vmatpush1.bf16.msra.mxu0 %v6309_v61  ;;  %v1600_v60 = vld [vmem:[#allocation9 + $0x320] sm:$0xff]  ;;  %v6263_v61 = vpack.c.bf16 %v1601_v54, %v1597_v53  ;;  %v190_v53 = vadd.f32 %v8050_v52, %v8295_v12  ;;  %v1817_v54 = vld [vmem:[#allocation9 + $0x408] sm:$0xff] }
 0x3a6   :  { %6248 = vmatprep.subr.bf16.mxu1 %v6247_v0  ;;  %6312 = vmatprep.subr.bf16.mxu0 %v6311_v1  ;;  %v1602_v0 = vld [vmem:[#allocation9 + $0x330] sm:$0xff]  ;;  %v1605_v1 = vld [vmem:[#allocation9 + $0x348] sm:$0xff]  ;;  %v6265_v9 = vpack.c.bf16 %v1600_v60, %v1596_v59  ;;  %v1816_v59 = vld [vmem:[#allocation9 + $0x400] sm:$0xff] }
 0x3a7   :  { %v6329_v11 = vpack.c.bf16 %v1602_v0, %v1598_v63  ;;  %v1820_v60 = vld [vmem:[#allocation9 + $0x420] sm:$0xff]  ;;  %v1818_v63 = vld [vmem:[#allocation9 + $0x410] sm:$0xff]  ;;  %v1829_v12 = vld [vmem:[#allocation9 + $0x468] sm:$0xff] }
 0x3a8   :  { %v1822_v0 = vld [vmem:[#allocation9 + $0x430] sm:$0xff] }
 0x3a9   :  { %6250 = vmatpush1.bf16.msra.mxu1 %v6249_v14  ;;  %6314 = vmatpush1.bf16.msra.mxu0 %v6313_v15  ;;  %v1608_v14 = vld [vmem:[#allocation9 + $0x360] sm:$0xff]  ;;  %v6267_v15 = vpack.c.bf16 %v1609_v3, %v1605_v1  ;;  %v6409_v1 = vpack.c.bf16 %v1822_v0, %v1818_v63  ;;  %v1825_v3 = vld [vmem:[#allocation9 + $0x448] sm:$0xff]  ;;  %v1859_v0 = vld [vmem:[#allocation9 + $0x558] sm:$0xff] }
 0x3aa   :  { %6252 = vmatprep.subr.bf16.mxu1 %v6251_v18  ;;  %6316 = vmatprep.subr.bf16.mxu0 %v6315_v20  ;;  %v1610_v18 = vld [vmem:[#allocation9 + $0x370] sm:$0xff]  ;;  %v1613_v20 = vld [vmem:[#allocation9 + $0x388] sm:$0xff]  ;;  %v6269_v39 = vpack.c.bf16 %v1608_v14, %v1604_v13  ;;  %v6347_v7 = vpack.c.bf16 %v1829_v12, %v1825_v3  ;;  %v1828_v13 = vld [vmem:[#allocation9 + $0x460] sm:$0xff] }
 0x3ab   :  { %v6333_v25 = vpack.c.bf16 %v1610_v18, %v1606_v17  ;;  %v1830_v17 = vld [vmem:[#allocation9 + $0x470] sm:$0xff]  ;;  %v1833_v18 = vld [vmem:[#allocation9 + $0x488] sm:$0xff]  ;;  %v1863_v3 = vld [vmem:[#allocation9 + $0x578] sm:$0xff] }
 0x3ac   :  { %v1861_v63 = vld [vmem:[#allocation9 + $0x568] sm:$0xff]  ;;  %v1856_v12 = vld [vmem:[#allocation9 + $0x540] sm:$0xff] }
 0x3ad   :  { %6254 = vmatpush1.bf16.msra.mxu1 %v6253_v28  ;;  %6318 = vmatpush1.bf16.msra.mxu0 %v6317_v29  ;;  %v1616_v28 = vld [vmem:[#allocation9 + $0x3a0] sm:$0xff]  ;;  %v6271_v29 = vpack.c.bf16 %v1617_v21, %v1613_v20  ;;  %v1837_v21 = vld [vmem:[#allocation9 + $0x4a8] sm:$0xff] }
 0x3ae   :  { %6256 = vmatprep.subr.bf16.mxu1 %v6255_v32  ;;  %6320 = vmatprep.subr.bf16.mxu0 %v6319_v33  ;;  %v1618_v32 = vld [vmem:[#allocation9 + $0x3b0] sm:$0xff]  ;;  %v1621_v33 = vld [vmem:[#allocation9 + $0x3c8] sm:$0xff]  ;;  %v6273_v41 = vpack.c.bf16 %v1616_v28, %v1612_v27  ;;  %v1832_v27 = vld [vmem:[#allocation9 + $0x480] sm:$0xff] }
 0x3af   :  { %v6337_v42 = vpack.c.bf16 %v1618_v32, %v1614_v31  ;;  %v1836_v28 = vld [vmem:[#allocation9 + $0x4a0] sm:$0xff]  ;;  %v1838_v31 = vld [vmem:[#allocation9 + $0x4b0] sm:$0xff]  ;;  %v1841_v32 = vld [vmem:[#allocation9 + $0x4c8] sm:$0xff] }
 0x3b1   :  { %6258 = vmatpush1.bf16.msra.mxu1 %v6257_v44  ;;  %6322 = vmatpush1.bf16.msra.mxu0 %v6321_v45  ;;  %v6275_v44 = vpack.c.bf16 %v1625_v34, %v1621_v33  ;;  %v6339_v45 = vpack.c.bf16 %v1627_v40, %v1623_v36  ;;  %v1845_v33 = vld [vmem:[#allocation9 + $0x4e8] sm:$0xff]  ;;  %v1843_v40 = vld [vmem:[#allocation9 + $0x4d8] sm:$0xff] }
 0x3b2   :  { %6260 = vmatprep.subr.bf16.mxu1 %v6259_v49  ;;  %6324 = vmatprep.subr.bf16.mxu0 %v6323_v50  ;;  %v1626_v49 = vld [vmem:[#allocation9 + $0x3f0] sm:$0xff]  ;;  %v6277_v50 = vpack.c.bf16 %v1624_v46, %v1620_v43  ;;  %v6355_v36 = vpack.c.bf16 %v1845_v33, %v1841_v32  ;;  %v1879_v33 = vld [vmem:[#allocation9 + $0x5f8] sm:$0xff] }
 0x3b3   :  { %v6341_v51 = vpack.c.bf16 %v1626_v49, %v1622_v47  ;;  %v1846_v46 = vld [vmem:[#allocation9 + $0x4f0] sm:$0xff]  ;;  %v1849_v49 = vld [vmem:[#allocation9 + $0x508] sm:$0xff] }
 0x3b5   :  { %6262 = vmatpush1.bf16.msra.mxu1 %v6261_v57  ;;  %6326 = vmatpush1.bf16.msra.mxu0 %v6325_v58  ;;  %v6343_v57 = vpack.c.bf16 %v1821_v55, %v1817_v54  ;;  %v1823_v58 = vld [vmem:[#allocation9 + $0x438] sm:$0xff]  ;;  %v1848_v55 = vld [vmem:[#allocation9 + $0x500] sm:$0xff] }
 0x3b6   :  { %6264 = vmatprep.subr.bf16.mxu1 %v6263_v61  ;;  %6328 = vmatprep.subr.bf16.mxu0 %v6327_v62  ;;  %v6407_v61 = vpack.c.bf16 %v1823_v58, %v1819_v56  ;;  %v6345_v62 = vpack.c.bf16 %v1820_v60, %v1816_v59  ;;  %v1855_v54 = vld [vmem:[#allocation9 + $0x538] sm:$0xff]  ;;  %v1852_v56 = vld [vmem:[#allocation9 + $0x520] sm:$0xff]  ;;  %v1850_v58 = vld [vmem:[#allocation9 + $0x510] sm:$0xff] }
 0x3b7   :  { %v1854_v59 = vld [vmem:[#allocation9 + $0x530] sm:$0xff]  ;;  %v6361_v60 = vpack.c.bf16 %v1852_v56, %v1848_v55 }
 0x3b8   :  { %v1882_v55 = vld [vmem:[#allocation9 + $0x610] sm:$0xff] }
 0x3b9   :  { %6266 = vmatpush1.bf16.msra.mxu1 %v6265_v9  ;;  %6330 = vmatpush1.bf16.msra.mxu0 %v6329_v11  ;;  %v1831_v9 = vld [vmem:[#allocation9 + $0x478] sm:$0xff]  ;;  %v1824_v11 = vld [vmem:[#allocation9 + $0x440] sm:$0xff]  ;;  %v1886_v56 = vld [vmem:[#allocation9 + $0x630] sm:$0xff] }
 0x3ba   :  { %6268 = vmatprep.subr.bf16.mxu1 %v6267_v15  ;;  %6332 = vmatprep.subr.bf16.mxu0 %v6331_v16  ;;  %v6411_v14 = vpack.c.bf16 %v1831_v9, %v1827_v6  ;;  %v6349_v15 = vpack.c.bf16 %v1828_v13, %v1824_v11  ;;  %v1826_v16 = vld [vmem:[#allocation9 + $0x450] sm:$0xff]  ;;  %v1860_v6 = vld [vmem:[#allocation9 + $0x560] sm:$0xff] }
 0x3bb   :  { %v6413_v20 = vpack.c.bf16 %v1830_v17, %v1826_v16  ;;  %v6365_v9 = vpack.c.bf16 %v1860_v6, %v1856_v12  ;;  %v1858_v11 = vld [vmem:[#allocation9 + $0x550] sm:$0xff]  ;;  %v1869_v16 = vld [vmem:[#allocation9 + $0x5a8] sm:$0xff]  ;;  %v1867_v17 = vld [vmem:[#allocation9 + $0x598] sm:$0xff] }
 0x3bc   :  { %v1862_v13 = vld [vmem:[#allocation9 + $0x570] sm:$0xff] }
 0x3bd   :  { %6270 = vmatpush1.bf16.msra.mxu1 %v6269_v39  ;;  %6334 = vmatpush1.bf16.msra.mxu0 %v6333_v25  ;;  %v6351_v39 = vpack.c.bf16 %v1837_v21, %v1833_v18  ;;  %v6415_v25 = vpack.c.bf16 %v1839_v24, %v1835_v23  ;;  %v1864_v21 = vld [vmem:[#allocation9 + $0x580] sm:$0xff]  ;;  %v1890_v12 = vld [vmem:[#allocation9 + $0x650] sm:$0xff] }
 0x3be   :  { %6272 = vmatprep.subr.bf16.mxu1 %v6271_v29  ;;  %6336 = vmatprep.subr.bf16.mxu0 %v6335_v30  ;;  %v1834_v29 = vld [vmem:[#allocation9 + $0x490] sm:$0xff]  ;;  %v6353_v30 = vpack.c.bf16 %v1836_v28, %v1832_v27  ;;  %v1868_v23 = vld [vmem:[#allocation9 + $0x5a0] sm:$0xff] }
 0x3bf   :  { %v6417_v34 = vpack.c.bf16 %v1838_v31, %v1834_v29  ;;  %v1870_v27 = vld [vmem:[#allocation9 + $0x5b0] sm:$0xff]  ;;  %v1873_v29 = vld [vmem:[#allocation9 + $0x5c8] sm:$0xff]  ;;  %v1875_v31 = vld [vmem:[#allocation9 + $0x5d8] sm:$0xff] }
 0x3c0   :  { %v1894_v6 = vld [vmem:[#allocation9 + $0x670] sm:$0xff] }
 0x3c1   :  { %6274 = vmatpush1.bf16.msra.mxu1 %v6273_v41  ;;  %6338 = vmatpush1.bf16.msra.mxu0 %v6337_v42  ;;  %v1847_v41 = vld [vmem:[#allocation9 + $0x4f8] sm:$0xff]  ;;  %v1840_v42 = vld [vmem:[#allocation9 + $0x4c0] sm:$0xff] }
 0x3c2   :  { %6276 = vmatprep.subr.bf16.mxu1 %v6275_v44  ;;  %6340 = vmatprep.subr.bf16.mxu0 %v6339_v45  ;;  %v6419_v43 = vpack.c.bf16 %v1847_v41, %v1843_v40  ;;  %v1844_v44 = vld [vmem:[#allocation9 + $0x4e0] sm:$0xff]  ;;  %v1842_v45 = vld [vmem:[#allocation9 + $0x4d0] sm:$0xff]  ;;  %v6435_v40 = vpack.c.bf16 %v1879_v33, %v1875_v31 }
 0x3c3   :  { %v6357_v47 = vpack.c.bf16 %v1844_v44, %v1840_v42  ;;  %v6421_v52 = vpack.c.bf16 %v1846_v46, %v1842_v45  ;;  %v1874_v42 = vld [vmem:[#allocation9 + $0x5d0] sm:$0xff]  ;;  %v1881_v45 = vld [vmem:[#allocation9 + $0x608] sm:$0xff]  ;;  %v1908_v31 = vld [vmem:[#allocation9 + $0x6e0] sm:$0xff] }
 0x3c4   :  { %v1885_v46 = vld [vmem:[#allocation9 + $0x628] sm:$0xff] }
 0x3c5   :  { %6278 = vmatpush1.bf16.msra.mxu1 %v6277_v50  ;;  %6342 = vmatpush1.bf16.msra.mxu0 %v6341_v51  ;;  %v1853_v50 = vld [vmem:[#allocation9 + $0x528] sm:$0xff]  ;;  %v1851_v51 = vld [vmem:[#allocation9 + $0x518] sm:$0xff] }
 0x3c6   :  { %6344 = vmatprep.subr.bf16.mxu1 %v6343_v57  ;;  %6408 = vmatprep.subr.bf16.mxu0 %v6407_v61  ;;  %v6423_v57 = vpack.c.bf16 %v1855_v54, %v1851_v51  ;;  %v6425_v61 = vpack.c.bf16 %v1854_v59, %v1850_v58  ;;  %v1880_v51 = vld [vmem:[#allocation9 + $0x600] sm:$0xff]  ;;  %v1889_v58 = vld [vmem:[#allocation9 + $0x648] sm:$0xff] }
 0x3c7   :  { %v1893_v59 = vld [vmem:[#allocation9 + $0x668] sm:$0xff] }
 0x3c8   :  { %1715 = vmatmul.mubr.f32.vlgmr.msra.gmra.mrb[8].mxu1 %v190_v53  ;;  %1786 = vmatmul.mubr.f32.vlgmr.msra.gmra.mrb[16].mxu0 %v190_v53  ;;  %v6359_v53 = vpack.c.bf16 %v1853_v50, %v1849_v49  ;;  %v6375_v49 = vpack.c.bf16 %v1885_v46, %v1881_v45  ;;  %v1887_v50 = vld [vmem:[#allocation9 + $0x638] sm:$0xff]  ;;  %v1912_v46 = vld [vmem:[#allocation9 + $0x700] sm:$0xff] }
 0x3c9   :  { %6346 = vmatpush1.bf16.msra.mxu1 %v6345_v62  ;;  %6410 = vmatpush1.bf16.msra.mxu0 %v6409_v1  ;;  %v1857_v62 = vld [vmem:[#allocation9 + $0x548] sm:$0xff]  ;;  %v1919_v45 = vld [vmem:[#allocation9 + $0x738] sm:$0xff] }
 0x3ca   :  { %6348 = vmatprep.subr.bf16.mxu1 %v6347_v7  ;;  %6412 = vmatprep.subr.bf16.mxu0 %v6411_v14  ;;  %v6363_v1 = vpack.c.bf16 %v1861_v63, %v1857_v62  ;;  %v6427_v7 = vpack.c.bf16 %v1863_v3, %v1859_v0  ;;  %v6429_v14 = vpack.c.bf16 %v1862_v13, %v1858_v11  ;;  %v1895_v62 = vld [vmem:[#allocation9 + $0x678] sm:$0xff]  ;;  %v1888_v63 = vld [vmem:[#allocation9 + $0x640] sm:$0xff]  ;;  %v1901_v11 = vld [vmem:[#allocation9 + $0x6a8] sm:$0xff] }
 0x3cb   :  { %v1892_v0 = vld [vmem:[#allocation9 + $0x660] sm:$0xff]  ;;  %v1899_v13 = vld [vmem:[#allocation9 + $0x698] sm:$0xff] }
 0x3cc   :  { %v6381_v3 = vpack.c.bf16 %v1892_v0, %v1888_v63  ;;  %v1922_v63 = vld [vmem:[#allocation9 + $0x750] sm:$0xff] }
 0x3cd   :  { %6350 = vmatpush1.bf16.msra.mxu1 %v6349_v15  ;;  %6414 = vmatpush1.bf16.msra.mxu0 %v6413_v20  ;;  %v1865_v15 = vld [vmem:[#allocation9 + $0x588] sm:$0xff]  ;;  %v1871_v20 = vld [vmem:[#allocation9 + $0x5b8] sm:$0xff]  ;;  %v1926_v0 = vld [vmem:[#allocation9 + $0x770] sm:$0xff] }
 0x3ce   :  { %6352 = vmatprep.subr.bf16.mxu1 %v6351_v39  ;;  %6416 = vmatprep.subr.bf16.mxu0 %v6415_v25  ;;  %v6367_v18 = vpack.c.bf16 %v1869_v16, %v1865_v15  ;;  %v6431_v24 = vpack.c.bf16 %v1871_v20, %v1867_v17  ;;  %v6369_v39 = vpack.c.bf16 %v1868_v23, %v1864_v21  ;;  %v1866_v25 = vld [vmem:[#allocation9 + $0x590] sm:$0xff]  ;;  %v1903_v15 = vld [vmem:[#allocation9 + $0x6b8] sm:$0xff]  ;;  %v1896_v16 = vld [vmem:[#allocation9 + $0x680] sm:$0xff] }
 0x3cf   :  { %v6433_v28 = vpack.c.bf16 %v1870_v27, %v1866_v25  ;;  %v1900_v17 = vld [vmem:[#allocation9 + $0x6a0] sm:$0xff]  ;;  %v1898_v21 = vld [vmem:[#allocation9 + $0x690] sm:$0xff]  ;;  %v1909_v25 = vld [vmem:[#allocation9 + $0x6e8] sm:$0xff] }
 0x3d0   :  { %v6385_v20 = vpack.c.bf16 %v1900_v17, %v1896_v16  ;;  %v1902_v23 = vld [vmem:[#allocation9 + $0x6b0] sm:$0xff]  ;;  %v1907_v27 = vld [vmem:[#allocation9 + $0x6d8] sm:$0xff] }
 0x3d1   :  { %6354 = vmatpush1.bf16.msra.mxu1 %v6353_v30  ;;  %6418 = vmatpush1.bf16.msra.mxu0 %v6417_v34  ;;  %v1877_v30 = vld [vmem:[#allocation9 + $0x5e8] sm:$0xff]  ;;  %v1872_v34 = vld [vmem:[#allocation9 + $0x5c0] sm:$0xff]  ;;  %v1934_v17 = vld [vmem:[#allocation9 + $0x7b0] sm:$0xff] }
 0x3d2   :  { %6356 = vmatprep.subr.bf16.mxu1 %v6355_v36  ;;  %6420 = vmatprep.subr.bf16.mxu0 %v6419_v43  ;;  %v6371_v32 = vpack.c.bf16 %v1877_v30, %v1873_v29  ;;  %v1876_v36 = vld [vmem:[#allocation9 + $0x5e0] sm:$0xff]  ;;  %v1878_v43 = vld [vmem:[#allocation9 + $0x5f0] sm:$0xff]  ;;  %v1911_v29 = vld [vmem:[#allocation9 + $0x6f8] sm:$0xff] }
 0x3d3   :  { %v6373_v41 = vpack.c.bf16 %v1876_v36, %v1872_v34  ;;  %v6437_v44 = vpack.c.bf16 %v1878_v43, %v1874_v42  ;;  %v1904_v30 = vld [vmem:[#allocation9 + $0x6c0] sm:$0xff]  ;;  %v1906_v34 = vld [vmem:[#allocation9 + $0x6d0] sm:$0xff]  ;;  %v1917_v42 = vld [vmem:[#allocation9 + $0x728] sm:$0xff] }
 0x3d4   :  { %v6389_v33 = vpack.c.bf16 %v1908_v31, %v1904_v30  ;;  %v1910_v36 = vld [vmem:[#allocation9 + $0x6f0] sm:$0xff]  ;;  %v1915_v43 = vld [vmem:[#allocation9 + $0x718] sm:$0xff] }
 0x3d5   :  { %6358 = vmatpush1.bf16.msra.mxu1 %v6357_v47  ;;  %6422 = vmatpush1.bf16.msra.mxu0 %v6421_v52  ;;  %v1883_v47 = vld [vmem:[#allocation9 + $0x618] sm:$0xff]  ;;  %v1884_v52 = vld [vmem:[#allocation9 + $0x620] sm:$0xff]  ;;  %v1942_v30 = vld [vmem:[#allocation9 + $0x7f0] sm:$0xff] }
 0x3d6   :  { %6360 = vmatprep.subr.bf16.mxu1 %v6359_v53  ;;  %6424 = vmatprep.subr.bf16.mxu0 %v6423_v57  ;;  %v6439_v53 = vpack.c.bf16 %v1887_v50, %v1883_v47  ;;  %v6377_v54 = vpack.c.bf16 %v1884_v52, %v1880_v51  ;;  %v6441_v57 = vpack.c.bf16 %v1886_v56, %v1882_v55  ;;  %v1916_v47 = vld [vmem:[#allocation9 + $0x720] sm:$0xff]  ;;  %v1914_v51 = vld [vmem:[#allocation9 + $0x710] sm:$0xff]  ;;  %v1925_v55 = vld [vmem:[#allocation9 + $0x768] sm:$0xff] }
 0x3d7   :  { %v6393_v50 = vpack.c.bf16 %v1916_v47, %v1912_v46  ;;  %v1918_v52 = vld [vmem:[#allocation9 + $0x730] sm:$0xff]  ;;  %v1923_v56 = vld [vmem:[#allocation9 + $0x758] sm:$0xff] }
 0x3d9   :  { %6362 = vmatpush1.bf16.msra.mxu1 %v6361_v60  ;;  %6426 = vmatpush1.bf16.msra.mxu0 %v6425_v61  ;;  %v1891_v60 = vld [vmem:[#allocation9 + $0x658] sm:$0xff]  ;;  %v6379_v61 = vpack.c.bf16 %v1893_v59, %v1889_v58  ;;  %v1920_v59 = vld [vmem:[#allocation9 + $0x740] sm:$0xff] }
 0x3da   :  { %6364 = vmatprep.subr.bf16.mxu1 %v6363_v1  ;;  %6428 = vmatprep.subr.bf16.mxu0 %v6427_v7  ;;  %v6443_v1 = vpack.c.bf16 %v1895_v62, %v1891_v60  ;;  %v6445_v7 = vpack.c.bf16 %v1894_v6, %v1890_v12  ;;  %v1927_v58 = vld [vmem:[#allocation9 + $0x778] sm:$0xff]  ;;  %v1924_v60 = vld [vmem:[#allocation9 + $0x760] sm:$0xff]  ;;  %v1933_v12 = vld [vmem:[#allocation9 + $0x7a8] sm:$0xff] }
 0x3db   :  { %v6397_v62 = vpack.c.bf16 %v1924_v60, %v1920_v59  ;;  %v1931_v6 = vld [vmem:[#allocation9 + $0x798] sm:$0xff] }
 0x3dd   :  { %6366 = vmatpush1.bf16.msra.mxu1 %v6365_v9  ;;  %6430 = vmatpush1.bf16.msra.mxu0 %v6429_v14  ;;  %v1897_v9 = vld [vmem:[#allocation9 + $0x688] sm:$0xff] }
 0x3de   :  { %6368 = vmatprep.subr.bf16.mxu1 %v6367_v18  ;;  %6432 = vmatprep.subr.bf16.mxu0 %v6431_v24  ;;  %v6383_v14 = vpack.c.bf16 %v1901_v11, %v1897_v9  ;;  %v6447_v18 = vpack.c.bf16 %v1903_v15, %v1899_v13  ;;  %v6449_v24 = vpack.c.bf16 %v1902_v23, %v1898_v21  ;;  %v1928_v13 = vld [vmem:[#allocation9 + $0x780] sm:$0xff]  ;;  %v1930_v15 = vld [vmem:[#allocation9 + $0x790] sm:$0xff] }
 0x3df   :  { %v6465_v21 = vpack.c.bf16 %v1934_v17, %v1930_v15 }
 0x3e1   :  { %6370 = vmatpush1.bf16.msra.mxu1 %v6369_v39  ;;  %6434 = vmatpush1.bf16.msra.mxu0 %v6433_v28  ;;  %v1905_v39 = vld [vmem:[#allocation9 + $0x6c8] sm:$0xff] }
 0x3e2   :  { %6372 = vmatprep.subr.bf16.mxu1 %v6371_v32  ;;  %6436 = vmatprep.subr.bf16.mxu0 %v6435_v40  ;;  %v6387_v28 = vpack.c.bf16 %v1909_v25, %v1905_v39  ;;  %v6451_v32 = vpack.c.bf16 %v1911_v29, %v1907_v27  ;;  %v6453_v40 = vpack.c.bf16 %v1910_v36, %v1906_v34  ;;  %v1943_v39 = vld [vmem:[#allocation9 + $0x7f8] sm:$0xff]  ;;  %v1936_v25 = vld [vmem:[#allocation9 + $0x7c0] sm:$0xff]  ;;  %v1938_v29 = vld [vmem:[#allocation9 + $0x7d0] sm:$0xff] }
 0x3e3   :  { %v2139_v34 = vld [vmem:[#allocation9 + $0x18] sm:$0xff]  ;;  %v6469_v36 = vpack.c.bf16 %v1942_v30, %v1938_v29 }
 0x3e5   :  { %6374 = vmatpush1.bf16.msra.mxu1 %v6373_v41  ;;  %6438 = vmatpush1.bf16.msra.mxu0 %v6437_v44  ;;  %v1913_v41 = vld [vmem:[#allocation9 + $0x708] sm:$0xff] }
 0x3e6   :  { %6376 = vmatprep.subr.bf16.mxu1 %v6375_v49  ;;  %6440 = vmatprep.subr.bf16.mxu0 %v6439_v53  ;;  %v6391_v44 = vpack.c.bf16 %v1917_v42, %v1913_v41  ;;  %v6455_v49 = vpack.c.bf16 %v1919_v45, %v1915_v43  ;;  %v6457_v53 = vpack.c.bf16 %v1918_v52, %v1914_v51  ;;  %v2143_v41 = vld [vmem:[#allocation9 + $0x38] sm:$0xff]  ;;  %v5488_v43 = vld [vmem:[%s8570_s4 + $0x4] sm:$0xf] }
 0x3e7   :  { %v6535_v42 = vpack.c.bf16 %v2143_v41, %v2139_v34  ;;  %v1317_v45 = vrot.slane %v5488_v43, %v8310_v4 }
 0x3e9   :  { %6378 = vmatpush1.bf16.msra.mxu1 %v6377_v54  ;;  %6442 = vmatpush1.bf16.msra.mxu0 %v6441_v57  ;;  %v1921_v54 = vld [vmem:[#allocation9 + $0x748] sm:$0xff] }
 0x3ea   :  { %6380 = vmatprep.subr.bf16.mxu1 %v6379_v61  ;;  %6444 = vmatprep.subr.bf16.mxu0 %v6443_v1  ;;  %v6395_v57 = vpack.c.bf16 %v1925_v55, %v1921_v54  ;;  %v6459_v61 = vpack.c.bf16 %v1927_v58, %v1923_v56  ;;  %v1929_v1 = vld [vmem:[#allocation9 + $0x788] sm:$0xff]  ;;  %v1325_v55 = vrot.slane %v5488_v43, %v8314_v10 }
 0x3eb   :  { %v6399_v9 = vpack.c.bf16 %v1933_v12, %v1929_v1 }
 0x3ed   :  { %6382 = vmatpush1.bf16.msra.mxu1 %v6381_v3  ;;  %6446 = vmatpush1.bf16.msra.mxu0 %v6445_v7  ;;  %v6461_v3 = vpack.c.bf16 %v1926_v0, %v1922_v63  ;;  %v1935_v7 = vld [vmem:[#allocation9 + $0x7b8] sm:$0xff] }
 0x3ee   :  { %6384 = vmatprep.subr.bf16.mxu1 %v6383_v14  ;;  %6448 = vmatprep.subr.bf16.mxu0 %v6447_v18  ;;  %v6463_v11 = vpack.c.bf16 %v1935_v7, %v1931_v6  ;;  %v1932_v14 = vld [vmem:[#allocation9 + $0x7a0] sm:$0xff]  ;;  %v1937_v18 = vld [vmem:[#allocation9 + $0x7c8] sm:$0xff] }
 0x3ef   :  { %v6401_v16 = vpack.c.bf16 %v1932_v14, %v1928_v13 }
 0x3f1   :  { %6386 = vmatpush1.bf16.msra.mxu1 %v6385_v20  ;;  %6450 = vmatpush1.bf16.msra.mxu0 %v6449_v24  ;;  %v1941_v20 = vld [vmem:[#allocation9 + $0x7e8] sm:$0xff]  ;;  %v1939_v24 = vld [vmem:[#allocation9 + $0x7d8] sm:$0xff] }
 0x3f2   :  { %6388 = vmatprep.subr.bf16.mxu1 %v6387_v28  ;;  %6452 = vmatprep.subr.bf16.mxu0 %v6451_v32  ;;  %v6403_v23 = vpack.c.bf16 %v1941_v20, %v1937_v18  ;;  %v6467_v27 = vpack.c.bf16 %v1943_v39, %v1939_v24  ;;  %v1940_v28 = vld [vmem:[#allocation9 + $0x7e0] sm:$0xff]  ;;  %v2137_v32 = vld [vmem:[#allocation9 + $0x8] sm:$0xff] }
 0x3f3   :  { %v6405_v31 = vpack.c.bf16 %v1940_v28, %v1936_v25 }
 0x3f5   :  { %6390 = vmatpush1.bf16.msra.mxu1 %v6389_v33  ;;  %6454 = vmatpush1.bf16.msra.mxu0 %v6453_v40  ;;  %v2141_v33 = vld [vmem:[#allocation9 + $0x28] sm:$0xff] }
 0x3f6   :  { %6392 = vmatprep.subr.bf16.mxu1 %v6391_v44  ;;  %6456 = vmatprep.subr.bf16.mxu0 %v6455_v49  ;;  %v6471_v40 = vpack.c.bf16 %v2141_v33, %v2137_v32  ;;  %v1313_v44 = vrot.slane %v5488_v43, %v8305_v2 }
 0x3f9   :  { %6394 = vmatpush1.bf16.msra.mxu1 %v6393_v50  ;;  %6458 = vmatpush1.bf16.msra.mxu0 %v6457_v53 }
 0x3fa   :  { %6396 = vmatprep.subr.bf16.mxu1 %v6395_v57  ;;  %6460 = vmatprep.subr.bf16.mxu0 %v6459_v61  ;;  %v1321_v57 = vrot.slane %v5488_v43, %v8317_v19 }
 0x3fd   :  { %6398 = vmatpush1.bf16.msra.mxu1 %v6397_v62  ;;  %6462 = vmatpush1.bf16.msra.mxu0 %v6461_v3 }
 0x3fe   :  { %6400 = vmatprep.subr.bf16.mxu1 %v6399_v9  ;;  %6464 = vmatprep.subr.bf16.mxu0 %v6463_v11 }
 0x401   :  { %6402 = vmatpush1.bf16.msra.mxu1 %v6401_v16  ;;  %6466 = vmatpush1.bf16.msra.mxu0 %v6465_v21  ;;  %v1628_v16 = vld [vmem:[%s8570_s4] sm:$0xf] }
 0x402   :  { %6404 = vmatprep.subr.bf16.mxu1 %v6403_v23  ;;  %6468 = vmatprep.subr.bf16.mxu0 %v6467_v27  ;;  %v1633_v17 = vrot.slane %v1628_v16, %v8305_v2  ;;  %v1645_v28 = vrot.slane %v1628_v16, %v8314_v10  ;;  %v1641_v30 = vrot.slane %v1628_v16, %v8317_v19 }
 0x405   :  { %6406 = vmatpush1.bf16.msra.mxu1 %v6405_v31  ;;  %6470 = vmatpush1.bf16.msra.mxu0 %v6469_v36 }
 0x406   :  { %6472 = vmatprep.subr.bf16.mxu1 %v6471_v40  ;;  %6536 = vmatprep.subr.bf16.mxu0 %v6535_v42 }
 0x45b   :  { %v1396_v46 = vpop.f32.mrb[6].mxu1  ;;  %v1467_v47 = vpop.f32.mrb[14].mxu0 }
 0x45c   :  { %v1397_v49 = vadd.f32 %v1396_v46, %v1313_v44  ;;  %v1398_v50 = vpop.f32.mrb[7].mxu1  ;;  %v1469_v51 = vpop.f32.mrb[15].mxu0  ;;  %v1468_v59 = vadd.f32 %v1467_v47, %v1321_v57  ;;  %v2147_v57 = vld [vmem:[#allocation9 + $0x58] sm:$0xff] }
 0x45d   :  { %v1399_v52 = vadd.f32 %v1398_v50, %v1317_v45  ;;  %v1470_v56 = vadd.f32 %v1469_v51, %v1325_v55  ;;  %v2136_v50 = vld [vmem:[#allocation9] sm:$0xff] }
 0x45e   :  { %v5489_v53 = vmul.f32 -1.442695, %v1397_v49  ;;  %v2140_v51 = vld [vmem:[#allocation9 + $0x20] sm:$0xff] }
 0x45f   :  { %v5490_v54 = vmul.f32 -1.442695, %v1399_v52  ;;  %v5491_v58 = vmul.f32 -1.442695, %v1470_v56  ;;  %v2138_v52 = vld [vmem:[#allocation9 + $0x10] sm:$0xff]  ;;  %v2149_v56 = vld [vmem:[#allocation9 + $0x68] sm:$0xff] }
 0x460   :  { %7841 = vpow2.f32 %v5489_v53  ;;  %v2142_v53 = vld [vmem:[#allocation9 + $0x30] sm:$0xff] }
 0x461   :  { %7843 = vpow2.f32 %v5490_v54  ;;  %v2145_v54 = vld [vmem:[#allocation9 + $0x48] sm:$0xff] }
 0x462   :  { %7845 = vpow2.f32 %v5491_v58  ;;  %v2151_v58 = vld [vmem:[#allocation9 + $0x78] sm:$0xff] }
 0x463   :  { %7847 = vtanh.f32 %v1468_v59 }
 0x46a   :  { %v7842_v60 = vpop.eup %7841 }
 0x46b   :  { %v7844_v61 = vpop.eup %7843  ;;  %v1475_v62 = vadd.f32 1.0, %v7842_v60  ;;  %v6473_v60 = vpack.c.bf16 %v2140_v51, %v2136_v50 }
 0x46c   :  { %v1481_v63 = vadd.f32 1.0, %v7844_v61  ;;  %v7846_v0 = vpop.eup %7845  ;;  %v6537_v61 = vpack.c.bf16 %v2142_v53, %v2138_v52  ;;  %v2170_v52 = vld [vmem:[#allocation9 + $0x110] sm:$0xff] }
 0x46d   :  { %7849 = vrcp.f32 %v1475_v62  ;;  %v7848_v1 = vpop.eup %7847  ;;  %v1488_v7 = vadd.f32 1.0, %v7846_v0  ;;  %v2144_v62 = vld [vmem:[#allocation9 + $0x40] sm:$0xff]  ;;  %v2146_v0 = vld [vmem:[#allocation9 + $0x50] sm:$0xff] }
 0x46e   :  { %7851 = vrcp.f32 %v1481_v63  ;;  %v2148_v63 = vld [vmem:[#allocation9 + $0x60] sm:$0xff]  ;;  %v2174_v53 = vld [vmem:[#allocation9 + $0x130] sm:$0xff] }
 0x46f   :  { %7853 = vrcp.f32 %v1488_v7  ;;  %v2157_v7 = vld [vmem:[#allocation9 + $0xa8] sm:$0xff] }
 0x477   :  { %v7850_v3 = vpop.eup %7849 }
 0x478   :  { %v7852_v12 = vpop.eup %7851  ;;  %v1492_v6 = vmul.f32 %v7850_v3, %v7848_v1  ;;  %v2150_v1 = vld [vmem:[#allocation9 + $0x70] sm:$0xff]  ;;  %v2153_v3 = vld [vmem:[#allocation9 + $0x88] sm:$0xff] }
 0x479   :  { %v1491_v9 = vmul.f32 %v7852_v12, %v8334_v48  ;;  %v7854_v13 = vpop.eup %7853  ;;  %v1637_v48 = vrot.slane %v1628_v16, %v8310_v4  ;;  %v6475_v12 = vpack.c.bf16 %v2149_v56, %v2145_v54  ;;  %v6541_v16 = vpack.c.bf16 %v2150_v1, %v2146_v0  ;;  %v2177_v54 = vld [vmem:[#allocation9 + $0x148] sm:$0xff]  ;;  %v2179_v56 = vld [vmem:[#allocation9 + $0x158] sm:$0xff]  ;;  %v2182_v0 = vld [vmem:[#allocation9 + $0x170] sm:$0xff] }
 0x47a   :  { %v2185_v1 = vld [vmem:[#allocation9 + $0x188] sm:$0xff] }
 0x47b   :  { %v8364_v11 = vadd.f32 %v1492_v6, %v1491_v9  ;;  %v6539_v6 = vpack.c.bf16 %v2151_v58, %v2147_v57  ;;  %v2155_v9 = vld [vmem:[#allocation9 + $0x98] sm:$0xff] }
 0x47c   :  { %v2183_v57 = vld [vmem:[#allocation9 + $0x178] sm:$0xff] }
 0x47d   :  { %7855 = vtanh.f32 %v8364_v11 }
 0x487   :  { %v7856_v14 = vpop.eup %7855 }
 0x488   :  { %v8367_v15 = vmul.f32 %v7856_v14, %v7854_v13  ;;  %v2159_v13 = vld [vmem:[#allocation9 + $0xb8] sm:$0xff]  ;;  %v6477_v14 = vpack.c.bf16 %v2148_v63, %v2144_v62  ;;  %v6555_v63 = vpack.c.bf16 %v2183_v57, %v2179_v56  ;;  %v2208_v57 = vld [vmem:[#allocation9 + $0x240] sm:$0xff] }
 0x48a   :  { %2030 = vmatprep.mubr.f32.mxu1 %v8367_v15  ;;  %2101 = vmatprep.mubr.f32.mxu0 %v8367_v15 }
 0x49b   :  { %v1716_v18 = vpop.f32.mrb[8].mxu1  ;;  %v1787_v20 = vpop.f32.mrb[16].mxu0 }
 0x49c   :  { %v1717_v21 = vadd.f32 %v1716_v18, %v1633_v17  ;;  %v1718_v23 = vpop.f32.mrb[9].mxu1  ;;  %v1789_v24 = vpop.f32.mrb[17].mxu0  ;;  %v1788_v32 = vadd.f32 %v1787_v20, %v1641_v30  ;;  %v2152_v17 = vld [vmem:[#allocation9 + $0x80] sm:$0xff]  ;;  %v6479_v18 = vpack.c.bf16 %v2157_v7, %v2153_v3  ;;  %v6543_v20 = vpack.c.bf16 %v2159_v13, %v2155_v9  ;;  %v2189_v3 = vld [vmem:[#allocation9 + $0x1a8] sm:$0xff] }
 0x49d   :  { %v1719_v39 = vadd.f32 %v1718_v23, %v1637_v48  ;;  %v1790_v29 = vadd.f32 %v1789_v24, %v1645_v28  ;;  %v2156_v48 = vld [vmem:[#allocation9 + $0xa0] sm:$0xff]  ;;  %v2158_v23 = vld [vmem:[#allocation9 + $0xb0] sm:$0xff]  ;;  %v2161_v24 = vld [vmem:[#allocation9 + $0xc8] sm:$0xff] }
 0x49e   :  { %v5492_v25 = vmul.f32 -1.442695, %v1717_v21  ;;  %v2154_v21 = vld [vmem:[#allocation9 + $0x90] sm:$0xff]  ;;  %v6481_v28 = vpack.c.bf16 %v2156_v48, %v2152_v17  ;;  %v2160_v30 = vld [vmem:[#allocation9 + $0xc0] sm:$0xff] }
 0x49f   :  { %v5493_v27 = vmul.f32 -1.442695, %v1719_v39  ;;  %v5494_v31 = vmul.f32 -1.442695, %v1790_v29  ;;  %v2165_v39 = vld [vmem:[#allocation9 + $0xe8] sm:$0xff]  ;;  %v6545_v29 = vpack.c.bf16 %v2158_v23, %v2154_v21  ;;  %v2184_v13 = vld [vmem:[#allocation9 + $0x180] sm:$0xff] }
 0x4a0   :  { %7857 = vpow2.f32 %v5492_v25  ;;  %v2163_v25 = vld [vmem:[#allocation9 + $0xd8] sm:$0xff]  ;;  %v2186_v48 = vld [vmem:[#allocation9 + $0x190] sm:$0xff]  ;;  %v2197_v21 = vld [vmem:[#allocation9 + $0x1e8] sm:$0xff] }
 0x4a1   :  { %7859 = vpow2.f32 %v5493_v27  ;;  %v2167_v27 = vld [vmem:[#allocation9 + $0xf8] sm:$0xff] }
 0x4a2   :  { %7861 = vpow2.f32 %v5494_v31  ;;  %v2164_v31 = vld [vmem:[#allocation9 + $0xe0] sm:$0xff]  ;;  %v2195_v23 = vld [vmem:[#allocation9 + $0x1d8] sm:$0xff] }
 0x4a3   :  { %7863 = vtanh.f32 %v1788_v32  ;;  %v6483_v32 = vpack.c.bf16 %v2165_v39, %v2161_v24  ;;  %v2199_v24 = vld [vmem:[#allocation9 + $0x1f8] sm:$0xff] }
 0x4aa   :  { %v7858_v33 = vpop.eup %7857 }
 0x4ab   :  { %v7860_v34 = vpop.eup %7859  ;;  %v1795_v36 = vadd.f32 1.0, %v7858_v33  ;;  %v6547_v33 = vpack.c.bf16 %v2167_v27, %v2163_v25  ;;  %v2192_v27 = vld [vmem:[#allocation9 + $0x1c0] sm:$0xff] }
 0x4ac   :  { %v1801_v40 = vadd.f32 1.0, %v7860_v34  ;;  %v7862_v41 = vpop.eup %7861  ;;  %v2162_v34 = vld [vmem:[#allocation9 + $0xd0] sm:$0xff] }
 0x4ad   :  { %7865 = vrcp.f32 %v1795_v36  ;;  %v7864_v42 = vpop.eup %7863  ;;  %v1808_v46 = vadd.f32 1.0, %v7862_v41  ;;  %v2166_v36 = vld [vmem:[#allocation9 + $0xf0] sm:$0xff]  ;;  %v2173_v41 = vld [vmem:[#allocation9 + $0x128] sm:$0xff] }
 0x4ae   :  { %7867 = vrcp.f32 %v1801_v40  ;;  %v2169_v40 = vld [vmem:[#allocation9 + $0x108] sm:$0xff] }
 0x4af   :  { %7869 = vrcp.f32 %v1808_v46  ;;  %v2168_v46 = vld [vmem:[#allocation9 + $0x100] sm:$0xff]  ;;  %v6487_v50 = vpack.c.bf16 %v2173_v41, %v2169_v40  ;;  %v2207_v40 = vld [vmem:[#allocation9 + $0x238] sm:$0xff] }
 0x4b7   :  { %v7866_v43 = vpop.eup %7865 }
 0x4b8   :  { %v7868_v44 = vpop.eup %7867  ;;  %v1812_v45 = vmul.f32 %v7866_v43, %v7864_v42  ;;  %v2171_v42 = vld [vmem:[#allocation9 + $0x118] sm:$0xff] }
 0x4b9   :  { %v1811_v47 = vmul.f32 %v7868_v44, %v8349_v5  ;;  %v7870_v55 = vpop.eup %7869  ;;  %v2175_v43 = vld [vmem:[#allocation9 + $0x138] sm:$0xff]  ;;  %v6485_v44 = vpack.c.bf16 %v2164_v31, %v2160_v30  ;;  %v6563_v30 = vpack.c.bf16 %v2199_v24, %v2195_v23  ;;  %v2194_v31 = vld [vmem:[#allocation9 + $0x1d0] sm:$0xff]  ;;  %v2224_v24 = vld [vmem:[#allocation9 + $0x2c0] sm:$0xff] }
 0x4ba   :  { %v6551_v51 = vpack.c.bf16 %v2175_v43, %v2171_v42  ;;  %v2200_v43 = vld [vmem:[#allocation9 + $0x200] sm:$0xff] }
 0x4bb   :  { %v8379_v49 = vadd.f32 %v1812_v45, %v1811_v47  ;;  %v6549_v45 = vpack.c.bf16 %v2166_v36, %v2162_v34  ;;  %v2172_v47 = vld [vmem:[#allocation9 + $0x120] sm:$0xff]  ;;  %v2205_v34 = vld [vmem:[#allocation9 + $0x228] sm:$0xff]  ;;  %v2203_v36 = vld [vmem:[#allocation9 + $0x218] sm:$0xff] }
 0x4bc   :  { %v6489_v58 = vpack.c.bf16 %v2172_v47, %v2168_v46  ;;  %v6567_v46 = vpack.c.bf16 %v2207_v40, %v2203_v36  ;;  %v2202_v47 = vld [vmem:[#allocation9 + $0x210] sm:$0xff]  ;;  %v2232_v40 = vld [vmem:[#allocation9 + $0x300] sm:$0xff] }
 0x4bd   :  { %7871 = vtanh.f32 %v8379_v49 }
 0x4c7   :  { %v7872_v59 = vpop.eup %7871 }
 0x4c8   :  { %v1815_v5 = vmul.f32 %v7872_v59, %v7870_v55  ;;  %v2181_v55 = vld [vmem:[#allocation9 + $0x168] sm:$0xff]  ;;  %v6553_v59 = vpack.c.bf16 %v2174_v53, %v2170_v52  ;;  %v2211_v53 = vld [vmem:[#allocation9 + $0x258] sm:$0xff] }
 0x4c9   :  { %v6491_v62 = vpack.c.bf16 %v2181_v55, %v2177_v54  ;;  %v2213_v52 = vld [vmem:[#allocation9 + $0x268] sm:$0xff]  ;;  %v2215_v54 = vld [vmem:[#allocation9 + $0x278] sm:$0xff] }
 0x4ca   :  { %2031 = vmatmul.mubr.f32.vlgmr.msra.gmra.mrb[10].mxu1 %v1815_v5  ;;  %2102 = vmatmul.mubr.f32.vlgmr.msra.gmra.mrb[18].mxu0 %v1815_v5 }
 0x4cb   :  { %6474 = vmatpush1.bf16.msra.mxu1 %v6473_v60  ;;  %6538 = vmatpush1.bf16.msra.mxu0 %v6537_v61  ;;  %v2176_v60 = vld [vmem:[#allocation9 + $0x140] sm:$0xff] }
 0x4cc   :  { %2350 = vmatprep.mubr.f32.mxu1 %v1815_v5  ;;  %2421 = vmatprep.mubr.f32.mxu0 %v1815_v5  ;;  %v2180_v61 = vld [vmem:[#allocation9 + $0x160] sm:$0xff]  ;;  %v2178_v5 = vld [vmem:[#allocation9 + $0x150] sm:$0xff] }
 0x4cd   :  { %6476 = vmatprep.subr.bf16.mxu1 %v6475_v12  ;;  %6540 = vmatprep.subr.bf16.mxu0 %v6539_v6  ;;  %v2187_v12 = vld [vmem:[#allocation9 + $0x198] sm:$0xff]  ;;  %v6493_v7 = vpack.c.bf16 %v2180_v61, %v2176_v60  ;;  %v6557_v9 = vpack.c.bf16 %v2182_v0, %v2178_v5  ;;  %v6571_v60 = vpack.c.bf16 %v2215_v54, %v2211_v53  ;;  %v2210_v61 = vld [vmem:[#allocation9 + $0x250] sm:$0xff]  ;;  %v2221_v5 = vld [vmem:[#allocation9 + $0x2a8] sm:$0xff] }
 0x4ce   :  { %v2191_v6 = vld [vmem:[#allocation9 + $0x1b8] sm:$0xff]  ;;  %v2240_v54 = vld [vmem:[#allocation9 + $0x340] sm:$0xff] }
 0x4cf   :  { %6478 = vmatpush1.bf16.msra.mxu1 %v6477_v14  ;;  %6542 = vmatpush1.bf16.msra.mxu0 %v6541_v16  ;;  %v2188_v14 = vld [vmem:[#allocation9 + $0x1a0] sm:$0xff]  ;;  %v6495_v16 = vpack.c.bf16 %v2189_v3, %v2185_v1  ;;  %v6559_v17 = vpack.c.bf16 %v2191_v6, %v2187_v12  ;;  %v2219_v0 = vld [vmem:[#allocation9 + $0x298] sm:$0xff] }
 0x4d0   :  { %6480 = vmatprep.subr.bf16.mxu1 %v6479_v18  ;;  %6544 = vmatprep.subr.bf16.mxu0 %v6543_v20  ;;  %v2190_v18 = vld [vmem:[#allocation9 + $0x1b0] sm:$0xff]  ;;  %v2193_v20 = vld [vmem:[#allocation9 + $0x1c8] sm:$0xff]  ;;  %v6497_v39 = vpack.c.bf16 %v2188_v14, %v2184_v13  ;;  %v2223_v1 = vld [vmem:[#allocation9 + $0x2b8] sm:$0xff] }
 0x4d1   :  { %v6561_v25 = vpack.c.bf16 %v2190_v18, %v2186_v48  ;;  %v2216_v6 = vld [vmem:[#allocation9 + $0x280] sm:$0xff]  ;;  %v6575_v13 = vpack.c.bf16 %v2223_v1, %v2219_v0  ;;  %v2218_v14 = vld [vmem:[#allocation9 + $0x290] sm:$0xff]  ;;  %v2229_v48 = vld [vmem:[#allocation9 + $0x2e8] sm:$0xff] }
 0x4d2   :  { %v2227_v18 = vld [vmem:[#allocation9 + $0x2d8] sm:$0xff]  ;;  %v2248_v1 = vld [vmem:[#allocation9 + $0x380] sm:$0xff] }
 0x4d3   :  { %6482 = vmatpush1.bf16.msra.mxu1 %v6481_v28  ;;  %6546 = vmatpush1.bf16.msra.mxu0 %v6545_v29  ;;  %v2196_v28 = vld [vmem:[#allocation9 + $0x1e0] sm:$0xff]  ;;  %v6499_v29 = vpack.c.bf16 %v2197_v21, %v2193_v20  ;;  %v2231_v20 = vld [vmem:[#allocation9 + $0x2f8] sm:$0xff] }
 0x4d4   :  { %6484 = vmatprep.subr.bf16.mxu1 %v6483_v32  ;;  %6548 = vmatprep.subr.bf16.mxu0 %v6547_v33  ;;  %v2198_v32 = vld [vmem:[#allocation9 + $0x1f0] sm:$0xff]  ;;  %v2201_v33 = vld [vmem:[#allocation9 + $0x208] sm:$0xff]  ;;  %v6501_v41 = vpack.c.bf16 %v2196_v28, %v2192_v27  ;;  %v6579_v27 = vpack.c.bf16 %v2231_v20, %v2227_v18  ;;  %v2256_v20 = vld [vmem:[#allocation9 + $0x3c0] sm:$0xff] }
 0x4d5   :  { %v6565_v42 = vpack.c.bf16 %v2198_v32, %v2194_v31  ;;  %v2226_v28 = vld [vmem:[#allocation9 + $0x2d0] sm:$0xff]  ;;  %v2237_v31 = vld [vmem:[#allocation9 + $0x328] sm:$0xff]  ;;  %v2235_v32 = vld [vmem:[#allocation9 + $0x318] sm:$0xff] }
 0x4d7   :  { %6486 = vmatpush1.bf16.msra.mxu1 %v6485_v44  ;;  %6550 = vmatpush1.bf16.msra.mxu0 %v6549_v45  ;;  %v2204_v44 = vld [vmem:[#allocation9 + $0x220] sm:$0xff]  ;;  %v6503_v45 = vpack.c.bf16 %v2205_v34, %v2201_v33  ;;  %v2239_v33 = vld [vmem:[#allocation9 + $0x338] sm:$0xff] }
 0x4d8   :  { %6488 = vmatprep.subr.bf16.mxu1 %v6487_v50  ;;  %6552 = vmatprep.subr.bf16.mxu0 %v6551_v51  ;;  %v2206_v50 = vld [vmem:[#allocation9 + $0x230] sm:$0xff]  ;;  %v2209_v51 = vld [vmem:[#allocation9 + $0x248] sm:$0xff]  ;;  %v6505_v55 = vpack.c.bf16 %v2204_v44, %v2200_v43  ;;  %v6583_v43 = vpack.c.bf16 %v2239_v33, %v2235_v32  ;;  %v2455_v33 = vld [vmem:[#allocation9 + $0x418] sm:$0xff] }
 0x4d9   :  { %v6569_v56 = vpack.c.bf16 %v2206_v50, %v2202_v47  ;;  %v2234_v44 = vld [vmem:[#allocation9 + $0x310] sm:$0xff]  ;;  %v2245_v47 = vld [vmem:[#allocation9 + $0x368] sm:$0xff]  ;;  %v2243_v50 = vld [vmem:[#allocation9 + $0x358] sm:$0xff] }
 0x4da   :  { %v2457_v32 = vld [vmem:[#allocation9 + $0x428] sm:$0xff] }
 0x4db   :  { %6490 = vmatpush1.bf16.msra.mxu1 %v6489_v58  ;;  %6554 = vmatpush1.bf16.msra.mxu0 %v6553_v59  ;;  %v2212_v58 = vld [vmem:[#allocation9 + $0x260] sm:$0xff]  ;;  %v6507_v59 = vpack.c.bf16 %v2213_v52, %v2209_v51  ;;  %v2247_v51 = vld [vmem:[#allocation9 + $0x378] sm:$0xff] }
 0x4dc   :  { %6492 = vmatprep.subr.bf16.mxu1 %v6491_v62  ;;  %6556 = vmatprep.subr.bf16.mxu0 %v6555_v63  ;;  %v2214_v62 = vld [vmem:[#allocation9 + $0x270] sm:$0xff]  ;;  %v2217_v63 = vld [vmem:[#allocation9 + $0x288] sm:$0xff]  ;;  %v6509_v3 = vpack.c.bf16 %v2212_v58, %v2208_v57  ;;  %v6587_v57 = vpack.c.bf16 %v2247_v51, %v2243_v50  ;;  %v2463_v50 = vld [vmem:[#allocation9 + $0x458] sm:$0xff] }
 0x4dd   :  { %v6573_v12 = vpack.c.bf16 %v2214_v62, %v2210_v61  ;;  %v2242_v58 = vld [vmem:[#allocation9 + $0x350] sm:$0xff]  ;;  %v2253_v61 = vld [vmem:[#allocation9 + $0x3a8] sm:$0xff]  ;;  %v2251_v62 = vld [vmem:[#allocation9 + $0x398] sm:$0xff] }
 0x4df   :  { %6494 = vmatpush1.bf16.msra.mxu1 %v6493_v7  ;;  %6558 = vmatpush1.bf16.msra.mxu0 %v6557_v9  ;;  %v2220_v7 = vld [vmem:[#allocation9 + $0x2a0] sm:$0xff]  ;;  %v6511_v9 = vpack.c.bf16 %v2221_v5, %v2217_v63  ;;  %v2255_v63 = vld [vmem:[#allocation9 + $0x3b8] sm:$0xff] }
 0x4e0   :  { %6496 = vmatprep.subr.bf16.mxu1 %v6495_v16  ;;  %6560 = vmatprep.subr.bf16.mxu0 %v6559_v17  ;;  %v2222_v16 = vld [vmem:[#allocation9 + $0x2b0] sm:$0xff]  ;;  %v2225_v17 = vld [vmem:[#allocation9 + $0x2c8] sm:$0xff]  ;;  %v6513_v21 = vpack.c.bf16 %v2220_v7, %v2216_v6  ;;  %v6591_v6 = vpack.c.bf16 %v2255_v63, %v2251_v62  ;;  %v2471_v62 = vld [vmem:[#allocation9 + $0x498] sm:$0xff] }
 0x4e1   :  { %v6577_v23 = vpack.c.bf16 %v2222_v16, %v2218_v14  ;;  %v2250_v7 = vld [vmem:[#allocation9 + $0x390] sm:$0xff]  ;;  %v2261_v14 = vld [vmem:[#allocation9 + $0x3e8] sm:$0xff]  ;;  %v2259_v16 = vld [vmem:[#allocation9 + $0x3d8] sm:$0xff] }
 0x4e2   :  { %v2475_v63 = vld [vmem:[#allocation9 + $0x4b8] sm:$0xff] }
 0x4e3   :  { %6498 = vmatpush1.bf16.msra.mxu1 %v6497_v39  ;;  %6562 = vmatpush1.bf16.msra.mxu0 %v6561_v25  ;;  %v2228_v39 = vld [vmem:[#allocation9 + $0x2e0] sm:$0xff]  ;;  %v6515_v25 = vpack.c.bf16 %v2229_v48, %v2225_v17  ;;  %v2263_v17 = vld [vmem:[#allocation9 + $0x3f8] sm:$0xff] }
 0x4e4   :  { %6500 = vmatprep.subr.bf16.mxu1 %v6499_v29  ;;  %6564 = vmatprep.subr.bf16.mxu0 %v6563_v30  ;;  %v2230_v29 = vld [vmem:[#allocation9 + $0x2f0] sm:$0xff]  ;;  %v2233_v30 = vld [vmem:[#allocation9 + $0x308] sm:$0xff]  ;;  %v6517_v34 = vpack.c.bf16 %v2228_v39, %v2224_v24  ;;  %v2260_v24 = vld [vmem:[#allocation9 + $0x3e0] sm:$0xff] }
 0x4e5   :  { %v6581_v36 = vpack.c.bf16 %v2230_v29, %v2226_v28  ;;  %v2258_v39 = vld [vmem:[#allocation9 + $0x3d0] sm:$0xff]  ;;  %v8051_v29 = vld [vmem:[%s8568_s2] ss:$0 sm:$0xff] }
 0x4e7   :  { %6502 = vmatpush1.bf16.msra.mxu1 %v6501_v41  ;;  %6566 = vmatpush1.bf16.msra.mxu0 %v6565_v42  ;;  %v2236_v41 = vld [vmem:[#allocation9 + $0x320] sm:$0xff]  ;;  %v6519_v42 = vpack.c.bf16 %v2237_v31, %v2233_v30  ;;  %v195_v30 = vadd.f32 %v8051_v29, %v8293_v8  ;;  %v2453_v31 = vld [vmem:[#allocation9 + $0x408] sm:$0xff] }
 0x4e8   :  { %6504 = vmatprep.subr.bf16.mxu1 %v6503_v45  ;;  %6568 = vmatprep.subr.bf16.mxu0 %v6567_v46  ;;  %v2238_v45 = vld [vmem:[#allocation9 + $0x330] sm:$0xff]  ;;  %v2241_v46 = vld [vmem:[#allocation9 + $0x348] sm:$0xff]  ;;  %v6521_v52 = vpack.c.bf16 %v2236_v41, %v2232_v40  ;;  %v2452_v40 = vld [vmem:[#allocation9 + $0x400] sm:$0xff] }
 0x4e9   :  { %v6585_v53 = vpack.c.bf16 %v2238_v45, %v2234_v44  ;;  %v2456_v41 = vld [vmem:[#allocation9 + $0x420] sm:$0xff]  ;;  %v2454_v44 = vld [vmem:[#allocation9 + $0x410] sm:$0xff]  ;;  %v2465_v8 = vld [vmem:[#allocation9 + $0x468] sm:$0xff] }
 0x4ea   :  { %v2458_v45 = vld [vmem:[#allocation9 + $0x430] sm:$0xff] }
 0x4eb   :  { %6506 = vmatpush1.bf16.msra.mxu1 %v6505_v55  ;;  %6570 = vmatpush1.bf16.msra.mxu0 %v6569_v56  ;;  %v2244_v55 = vld [vmem:[#allocation9 + $0x360] sm:$0xff]  ;;  %v6523_v56 = vpack.c.bf16 %v2245_v47, %v2241_v46  ;;  %v6665_v46 = vpack.c.bf16 %v2458_v45, %v2454_v44  ;;  %v2461_v47 = vld [vmem:[#allocation9 + $0x448] sm:$0xff]  ;;  %v2495_v45 = vld [vmem:[#allocation9 + $0x558] sm:$0xff] }
 0x4ec   :  { %6508 = vmatprep.subr.bf16.mxu1 %v6507_v59  ;;  %6572 = vmatprep.subr.bf16.mxu0 %v6571_v60  ;;  %v2246_v59 = vld [vmem:[#allocation9 + $0x370] sm:$0xff]  ;;  %v2249_v60 = vld [vmem:[#allocation9 + $0x388] sm:$0xff]  ;;  %v6525_v5 = vpack.c.bf16 %v2244_v55, %v2240_v54  ;;  %v6603_v51 = vpack.c.bf16 %v2465_v8, %v2461_v47  ;;  %v2464_v54 = vld [vmem:[#allocation9 + $0x460] sm:$0xff] }
 0x4ed   :  { %v6589_v0 = vpack.c.bf16 %v2246_v59, %v2242_v58  ;;  %v2466_v58 = vld [vmem:[#allocation9 + $0x470] sm:$0xff]  ;;  %v2469_v59 = vld [vmem:[#allocation9 + $0x488] sm:$0xff]  ;;  %v2499_v47 = vld [vmem:[#allocation9 + $0x578] sm:$0xff] }
 0x4ee   :  { %v2497_v44 = vld [vmem:[#allocation9 + $0x568] sm:$0xff]  ;;  %v2492_v8 = vld [vmem:[#allocation9 + $0x540] sm:$0xff] }
 0x4ef   :  { %6510 = vmatpush1.bf16.msra.mxu1 %v6509_v3  ;;  %6574 = vmatpush1.bf16.msra.mxu0 %v6573_v12  ;;  %v2252_v3 = vld [vmem:[#allocation9 + $0x3a0] sm:$0xff]  ;;  %v6527_v12 = vpack.c.bf16 %v2253_v61, %v2249_v60  ;;  %v2473_v61 = vld [vmem:[#allocation9 + $0x4a8] sm:$0xff] }
 0x4f0   :  { %6512 = vmatprep.subr.bf16.mxu1 %v6511_v9  ;;  %6576 = vmatprep.subr.bf16.mxu0 %v6575_v13  ;;  %v2254_v9 = vld [vmem:[#allocation9 + $0x3b0] sm:$0xff]  ;;  %v2257_v13 = vld [vmem:[#allocation9 + $0x3c8] sm:$0xff]  ;;  %v6529_v48 = vpack.c.bf16 %v2252_v3, %v2248_v1  ;;  %v2468_v1 = vld [vmem:[#allocation9 + $0x480] sm:$0xff] }
 0x4f1   :  { %v6593_v18 = vpack.c.bf16 %v2254_v9, %v2250_v7  ;;  %v2472_v3 = vld [vmem:[#allocation9 + $0x4a0] sm:$0xff]  ;;  %v2474_v7 = vld [vmem:[#allocation9 + $0x4b0] sm:$0xff]  ;;  %v2477_v9 = vld [vmem:[#allocation9 + $0x4c8] sm:$0xff] }
 0x4f3   :  { %6514 = vmatpush1.bf16.msra.mxu1 %v6513_v21  ;;  %6578 = vmatpush1.bf16.msra.mxu0 %v6577_v23  ;;  %v6531_v21 = vpack.c.bf16 %v2261_v14, %v2257_v13  ;;  %v6595_v23 = vpack.c.bf16 %v2263_v17, %v2259_v16  ;;  %v2481_v13 = vld [vmem:[#allocation9 + $0x4e8] sm:$0xff]  ;;  %v2479_v17 = vld [vmem:[#allocation9 + $0x4d8] sm:$0xff] }
 0x4f4   :  { %6516 = vmatprep.subr.bf16.mxu1 %v6515_v25  ;;  %6580 = vmatprep.subr.bf16.mxu0 %v6579_v27  ;;  %v2262_v25 = vld [vmem:[#allocation9 + $0x3f0] sm:$0xff]  ;;  %v6533_v27 = vpack.c.bf16 %v2260_v24, %v2256_v20  ;;  %v6611_v16 = vpack.c.bf16 %v2481_v13, %v2477_v9  ;;  %v2515_v13 = vld [vmem:[#allocation9 + $0x5f8] sm:$0xff] }
 0x4f5   :  { %v6597_v28 = vpack.c.bf16 %v2262_v25, %v2258_v39  ;;  %v2482_v24 = vld [vmem:[#allocation9 + $0x4f0] sm:$0xff]  ;;  %v2485_v25 = vld [vmem:[#allocation9 + $0x508] sm:$0xff] }
 0x4f7   :  { %6518 = vmatpush1.bf16.msra.mxu1 %v6517_v34  ;;  %6582 = vmatpush1.bf16.msra.mxu0 %v6581_v36  ;;  %v6599_v34 = vpack.c.bf16 %v2457_v32, %v2453_v31  ;;  %v2459_v36 = vld [vmem:[#allocation9 + $0x438] sm:$0xff]  ;;  %v2484_v32 = vld [vmem:[#allocation9 + $0x500] sm:$0xff] }
 0x4f8   :  { %6520 = vmatprep.subr.bf16.mxu1 %v6519_v42  ;;  %6584 = vmatprep.subr.bf16.mxu0 %v6583_v43  ;;  %v6663_v42 = vpack.c.bf16 %v2459_v36, %v2455_v33  ;;  %v6601_v43 = vpack.c.bf16 %v2456_v41, %v2452_v40  ;;  %v2491_v31 = vld [vmem:[#allocation9 + $0x538] sm:$0xff]  ;;  %v2488_v33 = vld [vmem:[#allocation9 + $0x520] sm:$0xff]  ;;  %v2486_v36 = vld [vmem:[#allocation9 + $0x510] sm:$0xff] }
 0x4f9   :  { %v2490_v40 = vld [vmem:[#allocation9 + $0x530] sm:$0xff]  ;;  %v6617_v41 = vpack.c.bf16 %v2488_v33, %v2484_v32 }
 0x4fa   :  { %v2518_v32 = vld [vmem:[#allocation9 + $0x610] sm:$0xff] }
 0x4fb   :  { %6522 = vmatpush1.bf16.msra.mxu1 %v6521_v52  ;;  %6586 = vmatpush1.bf16.msra.mxu0 %v6585_v53  ;;  %v2467_v52 = vld [vmem:[#allocation9 + $0x478] sm:$0xff]  ;;  %v2460_v53 = vld [vmem:[#allocation9 + $0x440] sm:$0xff]  ;;  %v2522_v33 = vld [vmem:[#allocation9 + $0x630] sm:$0xff] }
 0x4fc   :  { %6524 = vmatprep.subr.bf16.mxu1 %v6523_v56  ;;  %6588 = vmatprep.subr.bf16.mxu0 %v6587_v57  ;;  %v6667_v55 = vpack.c.bf16 %v2467_v52, %v2463_v50  ;;  %v6605_v56 = vpack.c.bf16 %v2464_v54, %v2460_v53  ;;  %v2462_v57 = vld [vmem:[#allocation9 + $0x450] sm:$0xff]  ;;  %v2496_v50 = vld [vmem:[#allocation9 + $0x560] sm:$0xff] }
 0x4fd   :  { %v6669_v60 = vpack.c.bf16 %v2466_v58, %v2462_v57  ;;  %v6621_v52 = vpack.c.bf16 %v2496_v50, %v2492_v8  ;;  %v2494_v53 = vld [vmem:[#allocation9 + $0x550] sm:$0xff]  ;;  %v2505_v57 = vld [vmem:[#allocation9 + $0x5a8] sm:$0xff]  ;;  %v2503_v58 = vld [vmem:[#allocation9 + $0x598] sm:$0xff] }
 0x4fe   :  { %v2498_v54 = vld [vmem:[#allocation9 + $0x570] sm:$0xff] }
 0x4ff   :  { %6526 = vmatpush1.bf16.msra.mxu1 %v6525_v5  ;;  %6590 = vmatpush1.bf16.msra.mxu0 %v6589_v0  ;;  %v6607_v5 = vpack.c.bf16 %v2473_v61, %v2469_v59  ;;  %v6671_v0 = vpack.c.bf16 %v2475_v63, %v2471_v62  ;;  %v2500_v61 = vld [vmem:[#allocation9 + $0x580] sm:$0xff]  ;;  %v2526_v8 = vld [vmem:[#allocation9 + $0x650] sm:$0xff] }
 0x500   :  { %6528 = vmatprep.subr.bf16.mxu1 %v6527_v12  ;;  %6592 = vmatprep.subr.bf16.mxu0 %v6591_v6  ;;  %v2470_v12 = vld [vmem:[#allocation9 + $0x490] sm:$0xff]  ;;  %v6609_v6 = vpack.c.bf16 %v2472_v3, %v2468_v1  ;;  %v2504_v62 = vld [vmem:[#allocation9 + $0x5a0] sm:$0xff] }
 0x501   :  { %v6673_v14 = vpack.c.bf16 %v2474_v7, %v2470_v12  ;;  %v2506_v1 = vld [vmem:[#allocation9 + $0x5b0] sm:$0xff]  ;;  %v2509_v12 = vld [vmem:[#allocation9 + $0x5c8] sm:$0xff]  ;;  %v2511_v7 = vld [vmem:[#allocation9 + $0x5d8] sm:$0xff] }
 0x502   :  { %v2530_v50 = vld [vmem:[#allocation9 + $0x670] sm:$0xff] }
 0x503   :  { %6530 = vmatpush1.bf16.msra.mxu1 %v6529_v48  ;;  %6594 = vmatpush1.bf16.msra.mxu0 %v6593_v18  ;;  %v2483_v48 = vld [vmem:[#allocation9 + $0x4f8] sm:$0xff]  ;;  %v2476_v18 = vld [vmem:[#allocation9 + $0x4c0] sm:$0xff] }
 0x504   :  { %6532 = vmatprep.subr.bf16.mxu1 %v6531_v21  ;;  %6596 = vmatprep.subr.bf16.mxu0 %v6595_v23  ;;  %v6675_v20 = vpack.c.bf16 %v2483_v48, %v2479_v17  ;;  %v2480_v21 = vld [vmem:[#allocation9 + $0x4e0] sm:$0xff]  ;;  %v2478_v23 = vld [vmem:[#allocation9 + $0x4d0] sm:$0xff]  ;;  %v6691_v17 = vpack.c.bf16 %v2515_v13, %v2511_v7 }
 0x505   :  { %v6613_v39 = vpack.c.bf16 %v2480_v21, %v2476_v18  ;;  %v6677_v29 = vpack.c.bf16 %v2482_v24, %v2478_v23  ;;  %v2510_v18 = vld [vmem:[#allocation9 + $0x5d0] sm:$0xff]  ;;  %v2517_v23 = vld [vmem:[#allocation9 + $0x608] sm:$0xff]  ;;  %v2544_v7 = vld [vmem:[#allocation9 + $0x6e0] sm:$0xff] }
 0x506   :  { %v2521_v24 = vld [vmem:[#allocation9 + $0x628] sm:$0xff] }
 0x507   :  { %6534 = vmatpush1.bf16.msra.mxu1 %v6533_v27  ;;  %6598 = vmatpush1.bf16.msra.mxu0 %v6597_v28  ;;  %v2489_v27 = vld [vmem:[#allocation9 + $0x528] sm:$0xff]  ;;  %v2487_v28 = vld [vmem:[#allocation9 + $0x518] sm:$0xff] }
 0x508   :  { %6600 = vmatprep.subr.bf16.mxu1 %v6599_v34  ;;  %6664 = vmatprep.subr.bf16.mxu0 %v6663_v42  ;;  %v6679_v34 = vpack.c.bf16 %v2491_v31, %v2487_v28  ;;  %v6681_v42 = vpack.c.bf16 %v2490_v40, %v2486_v36  ;;  %v2516_v28 = vld [vmem:[#allocation9 + $0x600] sm:$0xff]  ;;  %v2525_v36 = vld [vmem:[#allocation9 + $0x648] sm:$0xff] }
 0x509   :  { %v2529_v40 = vld [vmem:[#allocation9 + $0x668] sm:$0xff] }
 0x50a   :  { %2351 = vmatmul.mubr.f32.vlgmr.msra.gmra.mrb[12].mxu1 %v195_v30  ;;  %2422 = vmatmul.mubr.f32.vlgmr.msra.gmra.mrb[20].mxu0 %v195_v30  ;;  %v6615_v30 = vpack.c.bf16 %v2489_v27, %v2485_v25  ;;  %v6631_v25 = vpack.c.bf16 %v2521_v24, %v2517_v23  ;;  %v2523_v27 = vld [vmem:[#allocation9 + $0x638] sm:$0xff]  ;;  %v2548_v24 = vld [vmem:[#allocation9 + $0x700] sm:$0xff] }
 0x50b   :  { %6602 = vmatpush1.bf16.msra.mxu1 %v6601_v43  ;;  %6666 = vmatpush1.bf16.msra.mxu0 %v6665_v46  ;;  %v2493_v43 = vld [vmem:[#allocation9 + $0x548] sm:$0xff]  ;;  %v2555_v23 = vld [vmem:[#allocation9 + $0x738] sm:$0xff] }
 0x50c   :  { %6604 = vmatprep.subr.bf16.mxu1 %v6603_v51  ;;  %6668 = vmatprep.subr.bf16.mxu0 %v6667_v55  ;;  %v6619_v46 = vpack.c.bf16 %v2497_v44, %v2493_v43  ;;  %v6683_v51 = vpack.c.bf16 %v2499_v47, %v2495_v45  ;;  %v6685_v55 = vpack.c.bf16 %v2498_v54, %v2494_v53  ;;  %v2531_v43 = vld [vmem:[#allocation9 + $0x678] sm:$0xff]  ;;  %v2524_v44 = vld [vmem:[#allocation9 + $0x640] sm:$0xff]  ;;  %v2537_v53 = vld [vmem:[#allocation9 + $0x6a8] sm:$0xff] }
 0x50d   :  { %v2528_v45 = vld [vmem:[#allocation9 + $0x660] sm:$0xff]  ;;  %v2535_v54 = vld [vmem:[#allocation9 + $0x698] sm:$0xff] }
 0x50e   :  { %v6637_v47 = vpack.c.bf16 %v2528_v45, %v2524_v44  ;;  %v2558_v44 = vld [vmem:[#allocation9 + $0x750] sm:$0xff] }
 0x50f   :  { %6606 = vmatpush1.bf16.msra.mxu1 %v6605_v56  ;;  %6670 = vmatpush1.bf16.msra.mxu0 %v6669_v60  ;;  %v2501_v56 = vld [vmem:[#allocation9 + $0x588] sm:$0xff]  ;;  %v2507_v60 = vld [vmem:[#allocation9 + $0x5b8] sm:$0xff]  ;;  %v2562_v45 = vld [vmem:[#allocation9 + $0x770] sm:$0xff] }
 0x510   :  { %6608 = vmatprep.subr.bf16.mxu1 %v6607_v5  ;;  %6672 = vmatprep.subr.bf16.mxu0 %v6671_v0  ;;  %v6623_v59 = vpack.c.bf16 %v2505_v57, %v2501_v56  ;;  %v6687_v63 = vpack.c.bf16 %v2507_v60, %v2503_v58  ;;  %v6625_v5 = vpack.c.bf16 %v2504_v62, %v2500_v61  ;;  %v2502_v0 = vld [vmem:[#allocation9 + $0x590] sm:$0xff]  ;;  %v2539_v56 = vld [vmem:[#allocation9 + $0x6b8] sm:$0xff]  ;;  %v2532_v57 = vld [vmem:[#allocation9 + $0x680] sm:$0xff] }
 0x511   :  { %v6689_v3 = vpack.c.bf16 %v2506_v1, %v2502_v0  ;;  %v2536_v58 = vld [vmem:[#allocation9 + $0x6a0] sm:$0xff]  ;;  %v2534_v61 = vld [vmem:[#allocation9 + $0x690] sm:$0xff]  ;;  %v2545_v0 = vld [vmem:[#allocation9 + $0x6e8] sm:$0xff] }
 0x512   :  { %v6641_v60 = vpack.c.bf16 %v2536_v58, %v2532_v57  ;;  %v2538_v62 = vld [vmem:[#allocation9 + $0x6b0] sm:$0xff]  ;;  %v2543_v1 = vld [vmem:[#allocation9 + $0x6d8] sm:$0xff] }
 0x513   :  { %6610 = vmatpush1.bf16.msra.mxu1 %v6609_v6  ;;  %6674 = vmatpush1.bf16.msra.mxu0 %v6673_v14  ;;  %v2513_v6 = vld [vmem:[#allocation9 + $0x5e8] sm:$0xff]  ;;  %v2508_v14 = vld [vmem:[#allocation9 + $0x5c0] sm:$0xff]  ;;  %v2570_v58 = vld [vmem:[#allocation9 + $0x7b0] sm:$0xff] }
 0x514   :  { %6612 = vmatprep.subr.bf16.mxu1 %v6611_v16  ;;  %6676 = vmatprep.subr.bf16.mxu0 %v6675_v20  ;;  %v6627_v9 = vpack.c.bf16 %v2513_v6, %v2509_v12  ;;  %v2512_v16 = vld [vmem:[#allocation9 + $0x5e0] sm:$0xff]  ;;  %v2514_v20 = vld [vmem:[#allocation9 + $0x5f0] sm:$0xff]  ;;  %v2547_v12 = vld [vmem:[#allocation9 + $0x6f8] sm:$0xff] }
 0x515   :  { %v6629_v48 = vpack.c.bf16 %v2512_v16, %v2508_v14  ;;  %v6693_v21 = vpack.c.bf16 %v2514_v20, %v2510_v18  ;;  %v2540_v6 = vld [vmem:[#allocation9 + $0x6c0] sm:$0xff]  ;;  %v2542_v14 = vld [vmem:[#allocation9 + $0x6d0] sm:$0xff]  ;;  %v2553_v18 = vld [vmem:[#allocation9 + $0x728] sm:$0xff] }
 0x516   :  { %v6645_v13 = vpack.c.bf16 %v2544_v7, %v2540_v6  ;;  %v2546_v16 = vld [vmem:[#allocation9 + $0x6f0] sm:$0xff]  ;;  %v2551_v20 = vld [vmem:[#allocation9 + $0x718] sm:$0xff] }
 0x517   :  { %6614 = vmatpush1.bf16.msra.mxu1 %v6613_v39  ;;  %6678 = vmatpush1.bf16.msra.mxu0 %v6677_v29  ;;  %v2519_v39 = vld [vmem:[#allocation9 + $0x618] sm:$0xff]  ;;  %v2520_v29 = vld [vmem:[#allocation9 + $0x620] sm:$0xff]  ;;  %v2578_v6 = vld [vmem:[#allocation9 + $0x7f0] sm:$0xff] }
 0x518   :  { %6616 = vmatprep.subr.bf16.mxu1 %v6615_v30  ;;  %6680 = vmatprep.subr.bf16.mxu0 %v6679_v34  ;;  %v6695_v30 = vpack.c.bf16 %v2523_v27, %v2519_v39  ;;  %v6633_v31 = vpack.c.bf16 %v2520_v29, %v2516_v28  ;;  %v6697_v34 = vpack.c.bf16 %v2522_v33, %v2518_v32  ;;  %v2552_v39 = vld [vmem:[#allocation9 + $0x720] sm:$0xff]  ;;  %v2550_v28 = vld [vmem:[#allocation9 + $0x710] sm:$0xff]  ;;  %v2561_v32 = vld [vmem:[#allocation9 + $0x768] sm:$0xff] }
 0x519   :  { %v6649_v27 = vpack.c.bf16 %v2552_v39, %v2548_v24  ;;  %v2554_v29 = vld [vmem:[#allocation9 + $0x730] sm:$0xff]  ;;  %v2559_v33 = vld [vmem:[#allocation9 + $0x758] sm:$0xff] }
 0x51b   :  { %6618 = vmatpush1.bf16.msra.mxu1 %v6617_v41  ;;  %6682 = vmatpush1.bf16.msra.mxu0 %v6681_v42  ;;  %v2527_v41 = vld [vmem:[#allocation9 + $0x658] sm:$0xff]  ;;  %v6635_v42 = vpack.c.bf16 %v2529_v40, %v2525_v36  ;;  %v2556_v40 = vld [vmem:[#allocation9 + $0x740] sm:$0xff] }
 0x51c   :  { %6620 = vmatprep.subr.bf16.mxu1 %v6619_v46  ;;  %6684 = vmatprep.subr.bf16.mxu0 %v6683_v51  ;;  %v6699_v46 = vpack.c.bf16 %v2531_v43, %v2527_v41  ;;  %v6701_v51 = vpack.c.bf16 %v2530_v50, %v2526_v8  ;;  %v2563_v36 = vld [vmem:[#allocation9 + $0x778] sm:$0xff]  ;;  %v2560_v41 = vld [vmem:[#allocation9 + $0x760] sm:$0xff]  ;;  %v2569_v8 = vld [vmem:[#allocation9 + $0x7a8] sm:$0xff] }
 0x51d   :  { %v6653_v43 = vpack.c.bf16 %v2560_v41, %v2556_v40  ;;  %v2567_v50 = vld [vmem:[#allocation9 + $0x798] sm:$0xff] }
 0x51f   :  { %6622 = vmatpush1.bf16.msra.mxu1 %v6621_v52  ;;  %6686 = vmatpush1.bf16.msra.mxu0 %v6685_v55  ;;  %v2533_v52 = vld [vmem:[#allocation9 + $0x688] sm:$0xff] }
 0x520   :  { %6624 = vmatprep.subr.bf16.mxu1 %v6623_v59  ;;  %6688 = vmatprep.subr.bf16.mxu0 %v6687_v63  ;;  %v6639_v55 = vpack.c.bf16 %v2537_v53, %v2533_v52  ;;  %v6703_v59 = vpack.c.bf16 %v2539_v56, %v2535_v54  ;;  %v6705_v63 = vpack.c.bf16 %v2538_v62, %v2534_v61  ;;  %v2564_v54 = vld [vmem:[#allocation9 + $0x780] sm:$0xff]  ;;  %v2566_v56 = vld [vmem:[#allocation9 + $0x790] sm:$0xff] }
 0x521   :  { %v6721_v61 = vpack.c.bf16 %v2570_v58, %v2566_v56 }
 0x523   :  { %6626 = vmatpush1.bf16.msra.mxu1 %v6625_v5  ;;  %6690 = vmatpush1.bf16.msra.mxu0 %v6689_v3  ;;  %v2541_v5 = vld [vmem:[#allocation9 + $0x6c8] sm:$0xff] }
 0x524   :  { %6628 = vmatprep.subr.bf16.mxu1 %v6627_v9  ;;  %6692 = vmatprep.subr.bf16.mxu0 %v6691_v17  ;;  %v6643_v3 = vpack.c.bf16 %v2545_v0, %v2541_v5  ;;  %v6707_v9 = vpack.c.bf16 %v2547_v12, %v2543_v1  ;;  %v6709_v17 = vpack.c.bf16 %v2546_v16, %v2542_v14  ;;  %v2579_v5 = vld [vmem:[#allocation9 + $0x7f8] sm:$0xff]  ;;  %v2572_v0 = vld [vmem:[#allocation9 + $0x7c0] sm:$0xff]  ;;  %v2574_v12 = vld [vmem:[#allocation9 + $0x7d0] sm:$0xff] }
 0x525   :  { %v2775_v14 = vld [vmem:[#allocation9 + $0x18] sm:$0xff]  ;;  %v6725_v16 = vpack.c.bf16 %v2578_v6, %v2574_v12 }
 0x527   :  { %6630 = vmatpush1.bf16.msra.mxu1 %v6629_v48  ;;  %6694 = vmatpush1.bf16.msra.mxu0 %v6693_v21  ;;  %v2549_v48 = vld [vmem:[#allocation9 + $0x708] sm:$0xff] }
 0x528   :  { %6632 = vmatprep.subr.bf16.mxu1 %v6631_v25  ;;  %6696 = vmatprep.subr.bf16.mxu0 %v6695_v30  ;;  %v6647_v21 = vpack.c.bf16 %v2553_v18, %v2549_v48  ;;  %v6711_v25 = vpack.c.bf16 %v2555_v23, %v2551_v20  ;;  %v6713_v30 = vpack.c.bf16 %v2554_v29, %v2550_v28  ;;  %v2779_v48 = vld [vmem:[#allocation9 + $0x38] sm:$0xff]  ;;  %v5495_v20 = vld [vmem:[%s8570_s4 + $0x4] sm:$0xf] }
 0x529   :  { %v6791_v18 = vpack.c.bf16 %v2779_v48, %v2775_v14  ;;  %v1953_v23 = vrot.slane %v5495_v20, %v8310_v4 }
 0x52b   :  { %6634 = vmatpush1.bf16.msra.mxu1 %v6633_v31  ;;  %6698 = vmatpush1.bf16.msra.mxu0 %v6697_v34  ;;  %v2557_v31 = vld [vmem:[#allocation9 + $0x748] sm:$0xff] }
 0x52c   :  { %6636 = vmatprep.subr.bf16.mxu1 %v6635_v42  ;;  %6700 = vmatprep.subr.bf16.mxu0 %v6699_v46  ;;  %v6651_v34 = vpack.c.bf16 %v2561_v32, %v2557_v31  ;;  %v6715_v42 = vpack.c.bf16 %v2563_v36, %v2559_v33  ;;  %v2565_v46 = vld [vmem:[#allocation9 + $0x788] sm:$0xff]  ;;  %v1961_v32 = vrot.slane %v5495_v20, %v8314_v10 }
 0x52d   :  { %v6655_v52 = vpack.c.bf16 %v2569_v8, %v2565_v46 }
 0x52f   :  { %6638 = vmatpush1.bf16.msra.mxu1 %v6637_v47  ;;  %6702 = vmatpush1.bf16.msra.mxu0 %v6701_v51  ;;  %v6717_v47 = vpack.c.bf16 %v2562_v45, %v2558_v44  ;;  %v2571_v51 = vld [vmem:[#allocation9 + $0x7b8] sm:$0xff] }
 0x530   :  { %6640 = vmatprep.subr.bf16.mxu1 %v6639_v55  ;;  %6704 = vmatprep.subr.bf16.mxu0 %v6703_v59  ;;  %v6719_v53 = vpack.c.bf16 %v2571_v51, %v2567_v50  ;;  %v2568_v55 = vld [vmem:[#allocation9 + $0x7a0] sm:$0xff]  ;;  %v2573_v59 = vld [vmem:[#allocation9 + $0x7c8] sm:$0xff] }
 0x531   :  { %v6657_v57 = vpack.c.bf16 %v2568_v55, %v2564_v54 }
 0x533   :  { %6642 = vmatpush1.bf16.msra.mxu1 %v6641_v60  ;;  %6706 = vmatpush1.bf16.msra.mxu0 %v6705_v63  ;;  %v2577_v60 = vld [vmem:[#allocation9 + $0x7e8] sm:$0xff]  ;;  %v2575_v63 = vld [vmem:[#allocation9 + $0x7d8] sm:$0xff] }
 0x534   :  { %6644 = vmatprep.subr.bf16.mxu1 %v6643_v3  ;;  %6708 = vmatprep.subr.bf16.mxu0 %v6707_v9  ;;  %v6659_v62 = vpack.c.bf16 %v2577_v60, %v2573_v59  ;;  %v6723_v1 = vpack.c.bf16 %v2579_v5, %v2575_v63  ;;  %v2576_v3 = vld [vmem:[#allocation9 + $0x7e0] sm:$0xff]  ;;  %v2773_v9 = vld [vmem:[#allocation9 + $0x8] sm:$0xff] }
 0x535   :  { %v6661_v7 = vpack.c.bf16 %v2576_v3, %v2572_v0 }
 0x537   :  { %6646 = vmatpush1.bf16.msra.mxu1 %v6645_v13  ;;  %6710 = vmatpush1.bf16.msra.mxu0 %v6709_v17  ;;  %v2777_v13 = vld [vmem:[#allocation9 + $0x28] sm:$0xff] }
 0x538   :  { %6648 = vmatprep.subr.bf16.mxu1 %v6647_v21  ;;  %6712 = vmatprep.subr.bf16.mxu0 %v6711_v25  ;;  %v6727_v17 = vpack.c.bf16 %v2777_v13, %v2773_v9  ;;  %v1949_v21 = vrot.slane %v5495_v20, %v8305_v2 }
 0x53b   :  { %6650 = vmatpush1.bf16.msra.mxu1 %v6649_v27  ;;  %6714 = vmatpush1.bf16.msra.mxu0 %v6713_v30 }
 0x53c   :  { %6652 = vmatprep.subr.bf16.mxu1 %v6651_v34  ;;  %6716 = vmatprep.subr.bf16.mxu0 %v6715_v42  ;;  %v1957_v34 = vrot.slane %v5495_v20, %v8317_v19 }
 0x53f   :  { %6654 = vmatpush1.bf16.msra.mxu1 %v6653_v43  ;;  %6718 = vmatpush1.bf16.msra.mxu0 %v6717_v47 }
 0x540   :  { %6656 = vmatprep.subr.bf16.mxu1 %v6655_v52  ;;  %6720 = vmatprep.subr.bf16.mxu0 %v6719_v53 }
 0x543   :  { %6658 = vmatpush1.bf16.msra.mxu1 %v6657_v57  ;;  %6722 = vmatpush1.bf16.msra.mxu0 %v6721_v61  ;;  %v2264_v57 = vld [vmem:[%s8570_s4] sm:$0xf] }
 0x544   :  { %6660 = vmatprep.subr.bf16.mxu1 %v6659_v62  ;;  %6724 = vmatprep.subr.bf16.mxu0 %v6723_v1  ;;  %v2269_v58 = vrot.slane %v2264_v57, %v8305_v2  ;;  %v2281_v3 = vrot.slane %v2264_v57, %v8314_v10  ;;  %v2277_v6 = vrot.slane %v2264_v57, %v8317_v19 }
 0x547   :  { %6662 = vmatpush1.bf16.msra.mxu1 %v6661_v7  ;;  %6726 = vmatpush1.bf16.msra.mxu0 %v6725_v16 }
 0x548   :  { %6728 = vmatprep.subr.bf16.mxu1 %v6727_v17  ;;  %6792 = vmatprep.subr.bf16.mxu0 %v6791_v18 }
 0x59d   :  { %v2032_v24 = vpop.f32.mrb[10].mxu1  ;;  %v2103_v39 = vpop.f32.mrb[18].mxu0 }
 0x59e   :  { %v2033_v25 = vadd.f32 %v2032_v24, %v1949_v21  ;;  %v2034_v27 = vpop.f32.mrb[11].mxu1  ;;  %v2105_v28 = vpop.f32.mrb[19].mxu0  ;;  %v2104_v40 = vadd.f32 %v2103_v39, %v1957_v34  ;;  %v2783_v34 = vld [vmem:[#allocation9 + $0x58] sm:$0xff] }
 0x59f   :  { %v2035_v29 = vadd.f32 %v2034_v27, %v1953_v23  ;;  %v2106_v33 = vadd.f32 %v2105_v28, %v1961_v32  ;;  %v2772_v27 = vld [vmem:[#allocation9] sm:$0xff] }
 0x5a0   :  { %v5496_v30 = vmul.f32 -1.442695, %v2033_v25  ;;  %v2776_v28 = vld [vmem:[#allocation9 + $0x20] sm:$0xff] }
 0x5a1   :  { %v5497_v31 = vmul.f32 -1.442695, %v2035_v29  ;;  %v5498_v36 = vmul.f32 -1.442695, %v2106_v33  ;;  %v2774_v29 = vld [vmem:[#allocation9 + $0x10] sm:$0xff]  ;;  %v2785_v33 = vld [vmem:[#allocation9 + $0x68] sm:$0xff] }
 0x5a2   :  { %7873 = vpow2.f32 %v5496_v30  ;;  %v2778_v30 = vld [vmem:[#allocation9 + $0x30] sm:$0xff] }
 0x5a3   :  { %7875 = vpow2.f32 %v5497_v31  ;;  %v2781_v31 = vld [vmem:[#allocation9 + $0x48] sm:$0xff] }
 0x5a4   :  { %7877 = vpow2.f32 %v5498_v36  ;;  %v2787_v36 = vld [vmem:[#allocation9 + $0x78] sm:$0xff] }
 0x5a5   :  { %7879 = vtanh.f32 %v2104_v40 }
 0x5ac   :  { %v7874_v41 = vpop.eup %7873 }
 0x5ad   :  { %v7876_v42 = vpop.eup %7875  ;;  %v2111_v43 = vadd.f32 1.0, %v7874_v41  ;;  %v6729_v41 = vpack.c.bf16 %v2776_v28, %v2772_v27 }
 0x5ae   :  { %v2117_v44 = vadd.f32 1.0, %v7876_v42  ;;  %v7878_v45 = vpop.eup %7877  ;;  %v6793_v42 = vpack.c.bf16 %v2778_v30, %v2774_v29  ;;  %v2806_v29 = vld [vmem:[#allocation9 + $0x110] sm:$0xff] }
 0x5af   :  { %7881 = vrcp.f32 %v2111_v43  ;;  %v7880_v46 = vpop.eup %7879  ;;  %v2124_v51 = vadd.f32 1.0, %v7878_v45  ;;  %v2780_v43 = vld [vmem:[#allocation9 + $0x40] sm:$0xff]  ;;  %v2782_v45 = vld [vmem:[#allocation9 + $0x50] sm:$0xff] }
 0x5b0   :  { %7883 = vrcp.f32 %v2117_v44  ;;  %v2784_v44 = vld [vmem:[#allocation9 + $0x60] sm:$0xff]  ;;  %v2810_v30 = vld [vmem:[#allocation9 + $0x130] sm:$0xff] }
 0x5b1   :  { %7885 = vrcp.f32 %v2124_v51  ;;  %v2793_v51 = vld [vmem:[#allocation9 + $0xa8] sm:$0xff] }
 0x5b9   :  { %v7882_v47 = vpop.eup %7881 }
 0x5ba   :  { %v7884_v8 = vpop.eup %7883  ;;  %v2128_v50 = vmul.f32 %v7882_v47, %v7880_v46  ;;  %v2786_v46 = vld [vmem:[#allocation9 + $0x70] sm:$0xff]  ;;  %v2789_v47 = vld [vmem:[#allocation9 + $0x88] sm:$0xff] }
 0x5bb   :  { %v2127_v52 = vmul.f32 %v7884_v8, %v8364_v11  ;;  %v7886_v54 = vpop.eup %7885  ;;  %v2273_v11 = vrot.slane %v2264_v57, %v8310_v4  ;;  %v6731_v8 = vpack.c.bf16 %v2785_v33, %v2781_v31  ;;  %v6797_v57 = vpack.c.bf16 %v2786_v46, %v2782_v45  ;;  %v2813_v31 = vld [vmem:[#allocation9 + $0x148] sm:$0xff]  ;;  %v2815_v33 = vld [vmem:[#allocation9 + $0x158] sm:$0xff]  ;;  %v2818_v45 = vld [vmem:[#allocation9 + $0x170] sm:$0xff] }
 0x5bc   :  { %v2821_v46 = vld [vmem:[#allocation9 + $0x188] sm:$0xff] }
 0x5bd   :  { %v8394_v53 = vadd.f32 %v2128_v50, %v2127_v52  ;;  %v6795_v50 = vpack.c.bf16 %v2787_v36, %v2783_v34  ;;  %v2791_v52 = vld [vmem:[#allocation9 + $0x98] sm:$0xff] }
 0x5be   :  { %v2819_v34 = vld [vmem:[#allocation9 + $0x178] sm:$0xff] }
 0x5bf   :  { %7887 = vtanh.f32 %v8394_v53 }
 0x5c9   :  { %v7888_v55 = vpop.eup %7887 }
 0x5ca   :  { %v8397_v56 = vmul.f32 %v7888_v55, %v7886_v54  ;;  %v2795_v54 = vld [vmem:[#allocation9 + $0xb8] sm:$0xff]  ;;  %v6733_v55 = vpack.c.bf16 %v2784_v44, %v2780_v43  ;;  %v6811_v44 = vpack.c.bf16 %v2819_v34, %v2815_v33  ;;  %v2844_v34 = vld [vmem:[#allocation9 + $0x240] sm:$0xff] }
 0x5cc   :  { %2666 = vmatprep.mubr.f32.mxu1 %v8397_v56  ;;  %2737 = vmatprep.mubr.f32.mxu0 %v8397_v56 }
 0x5dd   :  { %v2352_v59 = vpop.f32.mrb[12].mxu1  ;;  %v2423_v60 = vpop.f32.mrb[20].mxu0 }
 0x5de   :  { %v2353_v61 = vadd.f32 %v2352_v59, %v2269_v58  ;;  %v2354_v62 = vpop.f32.mrb[13].mxu1  ;;  %v2425_v63 = vpop.f32.mrb[21].mxu0  ;;  %v2424_v9 = vadd.f32 %v2423_v60, %v2277_v6  ;;  %v2788_v58 = vld [vmem:[#allocation9 + $0x80] sm:$0xff]  ;;  %v6735_v59 = vpack.c.bf16 %v2793_v51, %v2789_v47  ;;  %v6799_v60 = vpack.c.bf16 %v2795_v54, %v2791_v52  ;;  %v2825_v47 = vld [vmem:[#allocation9 + $0x1a8] sm:$0xff] }
 0x5df   :  { %v2355_v5 = vadd.f32 %v2354_v62, %v2273_v11  ;;  %v2426_v12 = vadd.f32 %v2425_v63, %v2281_v3  ;;  %v2792_v11 = vld [vmem:[#allocation9 + $0xa0] sm:$0xff]  ;;  %v2794_v62 = vld [vmem:[#allocation9 + $0xb0] sm:$0xff]  ;;  %v2797_v63 = vld [vmem:[#allocation9 + $0xc8] sm:$0xff] }
 0x5e0   :  { %v5499_v0 = vmul.f32 -1.442695, %v2353_v61  ;;  %v2790_v61 = vld [vmem:[#allocation9 + $0x90] sm:$0xff]  ;;  %v6737_v3 = vpack.c.bf16 %v2792_v11, %v2788_v58  ;;  %v2796_v6 = vld [vmem:[#allocation9 + $0xc0] sm:$0xff] }
 0x5e1   :  { %v5500_v1 = vmul.f32 -1.442695, %v2355_v5  ;;  %v5501_v7 = vmul.f32 -1.442695, %v2426_v12  ;;  %v2801_v5 = vld [vmem:[#allocation9 + $0xe8] sm:$0xff]  ;;  %v6801_v12 = vpack.c.bf16 %v2794_v62, %v2790_v61  ;;  %v2820_v54 = vld [vmem:[#allocation9 + $0x180] sm:$0xff] }
 0x5e2   :  { %7889 = vpow2.f32 %v5499_v0  ;;  %v2799_v0 = vld [vmem:[#allocation9 + $0xd8] sm:$0xff]  ;;  %v2822_v11 = vld [vmem:[#allocation9 + $0x190] sm:$0xff]  ;;  %v2833_v61 = vld [vmem:[#allocation9 + $0x1e8] sm:$0xff] }
 0x5e3   :  { %7891 = vpow2.f32 %v5500_v1  ;;  %v2803_v1 = vld [vmem:[#allocation9 + $0xf8] sm:$0xff] }
 0x5e4   :  { %7893 = vpow2.f32 %v5501_v7  ;;  %v2800_v7 = vld [vmem:[#allocation9 + $0xe0] sm:$0xff]  ;;  %v2831_v62 = vld [vmem:[#allocation9 + $0x1d8] sm:$0xff] }
 0x5e5   :  { %7895 = vtanh.f32 %v2424_v9  ;;  %v6739_v9 = vpack.c.bf16 %v2801_v5, %v2797_v63  ;;  %v2835_v63 = vld [vmem:[#allocation9 + $0x1f8] sm:$0xff] }
 0x5ec   :  { %v7890_v13 = vpop.eup %7889 }
 0x5ed   :  { %v7892_v14 = vpop.eup %7891  ;;  %v2431_v16 = vadd.f32 1.0, %v7890_v13  ;;  %v6803_v13 = vpack.c.bf16 %v2803_v1, %v2799_v0  ;;  %v2828_v1 = vld [vmem:[#allocation9 + $0x1c0] sm:$0xff] }
 0x5ee   :  { %v2437_v17 = vadd.f32 1.0, %v7892_v14  ;;  %v7894_v48 = vpop.eup %7893  ;;  %v2798_v14 = vld [vmem:[#allocation9 + $0xd0] sm:$0xff] }
 0x5ef   :  { %7897 = vrcp.f32 %v2431_v16  ;;  %v7896_v18 = vpop.eup %7895  ;;  %v2444_v24 = vadd.f32 1.0, %v7894_v48  ;;  %v2802_v16 = vld [vmem:[#allocation9 + $0xf0] sm:$0xff]  ;;  %v2809_v48 = vld [vmem:[#allocation9 + $0x128] sm:$0xff] }
 0x5f0   :  { %7899 = vrcp.f32 %v2437_v17  ;;  %v2805_v17 = vld [vmem:[#allocation9 + $0x108] sm:$0xff] }
 0x5f1   :  { %7901 = vrcp.f32 %v2444_v24  ;;  %v2804_v24 = vld [vmem:[#allocation9 + $0x100] sm:$0xff]  ;;  %v6743_v27 = vpack.c.bf16 %v2809_v48, %v2805_v17  ;;  %v2843_v17 = vld [vmem:[#allocation9 + $0x238] sm:$0xff] }
 0x5f9   :  { %v7898_v20 = vpop.eup %7897 }
 0x5fa   :  { %v7900_v21 = vpop.eup %7899  ;;  %v2448_v23 = vmul.f32 %v7898_v20, %v7896_v18  ;;  %v2807_v18 = vld [vmem:[#allocation9 + $0x118] sm:$0xff] }
 0x5fb   :  { %v2447_v39 = vmul.f32 %v7900_v21, %v8379_v49  ;;  %v7902_v32 = vpop.eup %7901  ;;  %v2811_v20 = vld [vmem:[#allocation9 + $0x138] sm:$0xff]  ;;  %v6741_v21 = vpack.c.bf16 %v2800_v7, %v2796_v6  ;;  %v6819_v6 = vpack.c.bf16 %v2835_v63, %v2831_v62  ;;  %v2830_v7 = vld [vmem:[#allocation9 + $0x1d0] sm:$0xff]  ;;  %v2860_v63 = vld [vmem:[#allocation9 + $0x2c0] sm:$0xff] }
 0x5fc   :  { %v6807_v28 = vpack.c.bf16 %v2811_v20, %v2807_v18  ;;  %v2836_v20 = vld [vmem:[#allocation9 + $0x200] sm:$0xff] }
 0x5fd   :  { %v8409_v25 = vadd.f32 %v2448_v23, %v2447_v39  ;;  %v6805_v23 = vpack.c.bf16 %v2802_v16, %v2798_v14  ;;  %v2808_v39 = vld [vmem:[#allocation9 + $0x120] sm:$0xff]  ;;  %v2841_v14 = vld [vmem:[#allocation9 + $0x228] sm:$0xff]  ;;  %v2839_v16 = vld [vmem:[#allocation9 + $0x218] sm:$0xff] }
 0x5fe   :  { %v6745_v36 = vpack.c.bf16 %v2808_v39, %v2804_v24  ;;  %v6823_v24 = vpack.c.bf16 %v2843_v17, %v2839_v16  ;;  %v2838_v39 = vld [vmem:[#allocation9 + $0x210] sm:$0xff]  ;;  %v2868_v17 = vld [vmem:[#allocation9 + $0x300] sm:$0xff] }
 0x5ff   :  { %7903 = vtanh.f32 %v8409_v25 }
 0x609   :  { %v7904_v40 = vpop.eup %7903 }
 0x60a   :  { %v2451_v49 = vmul.f32 %v7904_v40, %v7902_v32  ;;  %v2817_v32 = vld [vmem:[#allocation9 + $0x168] sm:$0xff]  ;;  %v6809_v40 = vpack.c.bf16 %v2810_v30, %v2806_v29  ;;  %v2847_v30 = vld [vmem:[#allocation9 + $0x258] sm:$0xff] }
 0x60b   :  { %v6747_v43 = vpack.c.bf16 %v2817_v32, %v2813_v31  ;;  %v2849_v29 = vld [vmem:[#allocation9 + $0x268] sm:$0xff]  ;;  %v2851_v31 = vld [vmem:[#allocation9 + $0x278] sm:$0xff] }
 0x60c   :  { %2667 = vmatmul.mubr.f32.vlgmr.msra.gmra.mrb[14].mxu1 %v2451_v49  ;;  %2738 = vmatmul.mubr.f32.vlgmr.msra.gmra.mrb[22].mxu0 %v2451_v49 }
 0x60d   :  { %6730 = vmatpush1.bf16.msra.mxu1 %v6729_v41  ;;  %6794 = vmatpush1.bf16.msra.mxu0 %v6793_v42  ;;  %v2812_v41 = vld [vmem:[#allocation9 + $0x140] sm:$0xff] }
 0x60e   :  { %2986 = vmatprep.mubr.f32.mxu1 %v2451_v49  ;;  %3057 = vmatprep.mubr.f32.mxu0 %v2451_v49  ;;  %v2816_v42 = vld [vmem:[#allocation9 + $0x160] sm:$0xff]  ;;  %v2814_v49 = vld [vmem:[#allocation9 + $0x150] sm:$0xff] }
 0x60f   :  { %6732 = vmatprep.subr.bf16.mxu1 %v6731_v8  ;;  %6796 = vmatprep.subr.bf16.mxu0 %v6795_v50  ;;  %v2823_v8 = vld [vmem:[#allocation9 + $0x198] sm:$0xff]  ;;  %v6749_v51 = vpack.c.bf16 %v2816_v42, %v2812_v41  ;;  %v6813_v52 = vpack.c.bf16 %v2818_v45, %v2814_v49  ;;  %v6827_v41 = vpack.c.bf16 %v2851_v31, %v2847_v30  ;;  %v2846_v42 = vld [vmem:[#allocation9 + $0x250] sm:$0xff]  ;;  %v2857_v49 = vld [vmem:[#allocation9 + $0x2a8] sm:$0xff] }
 0x610   :  { %v2827_v50 = vld [vmem:[#allocation9 + $0x1b8] sm:$0xff]  ;;  %v2876_v31 = vld [vmem:[#allocation9 + $0x340] sm:$0xff] }
 0x611   :  { %6734 = vmatpush1.bf16.msra.mxu1 %v6733_v55  ;;  %6798 = vmatpush1.bf16.msra.mxu0 %v6797_v57  ;;  %v2824_v55 = vld [vmem:[#allocation9 + $0x1a0] sm:$0xff]  ;;  %v6751_v57 = vpack.c.bf16 %v2825_v47, %v2821_v46  ;;  %v6815_v58 = vpack.c.bf16 %v2827_v50, %v2823_v8  ;;  %v2855_v45 = vld [vmem:[#allocation9 + $0x298] sm:$0xff] }
 0x612   :  { %6736 = vmatprep.subr.bf16.mxu1 %v6735_v59  ;;  %6800 = vmatprep.subr.bf16.mxu0 %v6799_v60  ;;  %v2826_v59 = vld [vmem:[#allocation9 + $0x1b0] sm:$0xff]  ;;  %v2829_v60 = vld [vmem:[#allocation9 + $0x1c8] sm:$0xff]  ;;  %v6753_v5 = vpack.c.bf16 %v2824_v55, %v2820_v54  ;;  %v2859_v46 = vld [vmem:[#allocation9 + $0x2b8] sm:$0xff] }
 0x613   :  { %v6817_v0 = vpack.c.bf16 %v2826_v59, %v2822_v11  ;;  %v2852_v50 = vld [vmem:[#allocation9 + $0x280] sm:$0xff]  ;;  %v6831_v54 = vpack.c.bf16 %v2859_v46, %v2855_v45  ;;  %v2854_v55 = vld [vmem:[#allocation9 + $0x290] sm:$0xff]  ;;  %v2865_v11 = vld [vmem:[#allocation9 + $0x2e8] sm:$0xff] }
 0x614   :  { %v2863_v59 = vld [vmem:[#allocation9 + $0x2d8] sm:$0xff]  ;;  %v2884_v46 = vld [vmem:[#allocation9 + $0x380] sm:$0xff] }
 0x615   :  { %6738 = vmatpush1.bf16.msra.mxu1 %v6737_v3  ;;  %6802 = vmatpush1.bf16.msra.mxu0 %v6801_v12  ;;  %v2832_v3 = vld [vmem:[#allocation9 + $0x1e0] sm:$0xff]  ;;  %v6755_v12 = vpack.c.bf16 %v2833_v61, %v2829_v60  ;;  %v2867_v60 = vld [vmem:[#allocation9 + $0x2f8] sm:$0xff] }
 0x616   :  { %6740 = vmatprep.subr.bf16.mxu1 %v6739_v9  ;;  %6804 = vmatprep.subr.bf16.mxu0 %v6803_v13  ;;  %v2834_v9 = vld [vmem:[#allocation9 + $0x1f0] sm:$0xff]  ;;  %v2837_v13 = vld [vmem:[#allocation9 + $0x208] sm:$0xff]  ;;  %v6757_v48 = vpack.c.bf16 %v2832_v3, %v2828_v1  ;;  %v6835_v1 = vpack.c.bf16 %v2867_v60, %v2863_v59  ;;  %v2892_v60 = vld [vmem:[#allocation9 + $0x3c0] sm:$0xff] }
 0x617   :  { %v6821_v18 = vpack.c.bf16 %v2834_v9, %v2830_v7  ;;  %v2862_v3 = vld [vmem:[#allocation9 + $0x2d0] sm:$0xff]  ;;  %v2873_v7 = vld [vmem:[#allocation9 + $0x328] sm:$0xff]  ;;  %v2871_v9 = vld [vmem:[#allocation9 + $0x318] sm:$0xff] }
 0x619   :  { %6742 = vmatpush1.bf16.msra.mxu1 %v6741_v21  ;;  %6806 = vmatpush1.bf16.msra.mxu0 %v6805_v23  ;;  %v2840_v21 = vld [vmem:[#allocation9 + $0x220] sm:$0xff]  ;;  %v6759_v23 = vpack.c.bf16 %v2841_v14, %v2837_v13  ;;  %v2875_v13 = vld [vmem:[#allocation9 + $0x338] sm:$0xff] }
 0x61a   :  { %6744 = vmatprep.subr.bf16.mxu1 %v6743_v27  ;;  %6808 = vmatprep.subr.bf16.mxu0 %v6807_v28  ;;  %v2842_v27 = vld [vmem:[#allocation9 + $0x230] sm:$0xff]  ;;  %v2845_v28 = vld [vmem:[#allocation9 + $0x248] sm:$0xff]  ;;  %v6761_v32 = vpack.c.bf16 %v2840_v21, %v2836_v20  ;;  %v6839_v20 = vpack.c.bf16 %v2875_v13, %v2871_v9  ;;  %v3091_v13 = vld [vmem:[#allocation9 + $0x418] sm:$0xff] }
 0x61b   :  { %v6825_v33 = vpack.c.bf16 %v2842_v27, %v2838_v39  ;;  %v2870_v21 = vld [vmem:[#allocation9 + $0x310] sm:$0xff]  ;;  %v2881_v39 = vld [vmem:[#allocation9 + $0x368] sm:$0xff]  ;;  %v2879_v27 = vld [vmem:[#allocation9 + $0x358] sm:$0xff] }
 0x61c   :  { %v3093_v9 = vld [vmem:[#allocation9 + $0x428] sm:$0xff] }
 0x61d   :  { %6746 = vmatpush1.bf16.msra.mxu1 %v6745_v36  ;;  %6810 = vmatpush1.bf16.msra.mxu0 %v6809_v40  ;;  %v2848_v36 = vld [vmem:[#allocation9 + $0x260] sm:$0xff]  ;;  %v6763_v40 = vpack.c.bf16 %v2849_v29, %v2845_v28  ;;  %v2883_v28 = vld [vmem:[#allocation9 + $0x378] sm:$0xff] }
 0x61e   :  { %6748 = vmatprep.subr.bf16.mxu1 %v6747_v43  ;;  %6812 = vmatprep.subr.bf16.mxu0 %v6811_v44  ;;  %v2850_v43 = vld [vmem:[#allocation9 + $0x270] sm:$0xff]  ;;  %v2853_v44 = vld [vmem:[#allocation9 + $0x288] sm:$0xff]  ;;  %v6765_v47 = vpack.c.bf16 %v2848_v36, %v2844_v34  ;;  %v6843_v34 = vpack.c.bf16 %v2883_v28, %v2879_v27  ;;  %v3099_v27 = vld [vmem:[#allocation9 + $0x458] sm:$0xff] }
 0x61f   :  { %v6829_v8 = vpack.c.bf16 %v2850_v43, %v2846_v42  ;;  %v2878_v36 = vld [vmem:[#allocation9 + $0x350] sm:$0xff]  ;;  %v2889_v42 = vld [vmem:[#allocation9 + $0x3a8] sm:$0xff]  ;;  %v2887_v43 = vld [vmem:[#allocation9 + $0x398] sm:$0xff] }
 0x621   :  { %6750 = vmatpush1.bf16.msra.mxu1 %v6749_v51  ;;  %6814 = vmatpush1.bf16.msra.mxu0 %v6813_v52  ;;  %v2856_v51 = vld [vmem:[#allocation9 + $0x2a0] sm:$0xff]  ;;  %v6767_v52 = vpack.c.bf16 %v2857_v49, %v2853_v44  ;;  %v2891_v44 = vld [vmem:[#allocation9 + $0x3b8] sm:$0xff] }
 0x622   :  { %6752 = vmatprep.subr.bf16.mxu1 %v6751_v57  ;;  %6816 = vmatprep.subr.bf16.mxu0 %v6815_v58  ;;  %v2858_v57 = vld [vmem:[#allocation9 + $0x2b0] sm:$0xff]  ;;  %v2861_v58 = vld [vmem:[#allocation9 + $0x2c8] sm:$0xff]  ;;  %v6769_v61 = vpack.c.bf16 %v2856_v51, %v2852_v50  ;;  %v6847_v50 = vpack.c.bf16 %v2891_v44, %v2887_v43  ;;  %v3107_v43 = vld [vmem:[#allocation9 + $0x498] sm:$0xff] }
 0x623   :  { %v6833_v62 = vpack.c.bf16 %v2858_v57, %v2854_v55  ;;  %v2886_v51 = vld [vmem:[#allocation9 + $0x390] sm:$0xff]  ;;  %v2897_v55 = vld [vmem:[#allocation9 + $0x3e8] sm:$0xff]  ;;  %v2895_v57 = vld [vmem:[#allocation9 + $0x3d8] sm:$0xff] }
 0x624   :  { %v3111_v44 = vld [vmem:[#allocation9 + $0x4b8] sm:$0xff] }
 0x625   :  { %6754 = vmatpush1.bf16.msra.mxu1 %v6753_v5  ;;  %6818 = vmatpush1.bf16.msra.mxu0 %v6817_v0  ;;  %v2864_v5 = vld [vmem:[#allocation9 + $0x2e0] sm:$0xff]  ;;  %v6771_v0 = vpack.c.bf16 %v2865_v11, %v2861_v58  ;;  %v2899_v58 = vld [vmem:[#allocation9 + $0x3f8] sm:$0xff] }
 0x626   :  { %6756 = vmatprep.subr.bf16.mxu1 %v6755_v12  ;;  %6820 = vmatprep.subr.bf16.mxu0 %v6819_v6  ;;  %v2866_v12 = vld [vmem:[#allocation9 + $0x2f0] sm:$0xff]  ;;  %v2869_v6 = vld [vmem:[#allocation9 + $0x308] sm:$0xff]  ;;  %v6773_v14 = vpack.c.bf16 %v2864_v5, %v2860_v63  ;;  %v2896_v63 = vld [vmem:[#allocation9 + $0x3e0] sm:$0xff] }
 0x627   :  { %v6837_v16 = vpack.c.bf16 %v2866_v12, %v2862_v3  ;;  %v2894_v5 = vld [vmem:[#allocation9 + $0x3d0] sm:$0xff]  ;;  %v8052_v12 = vld [vmem:[%s8568_s2] ss:$0 sm:$0xff] }
 0x629   :  { %6758 = vmatpush1.bf16.msra.mxu1 %v6757_v48  ;;  %6822 = vmatpush1.bf16.msra.mxu0 %v6821_v18  ;;  %v2872_v48 = vld [vmem:[#allocation9 + $0x320] sm:$0xff]  ;;  %v6775_v18 = vpack.c.bf16 %v2873_v7, %v2869_v6  ;;  %v200_v6 = vadd.f32 %v8052_v12, %v8299_v26  ;;  %v3089_v7 = vld [vmem:[#allocation9 + $0x408] sm:$0xff] }
 0x62a   :  { %6760 = vmatprep.subr.bf16.mxu1 %v6759_v23  ;;  %6824 = vmatprep.subr.bf16.mxu0 %v6823_v24  ;;  %v2874_v23 = vld [vmem:[#allocation9 + $0x330] sm:$0xff]  ;;  %v2877_v24 = vld [vmem:[#allocation9 + $0x348] sm:$0xff]  ;;  %v6777_v29 = vpack.c.bf16 %v2872_v48, %v2868_v17  ;;  %v3088_v17 = vld [vmem:[#allocation9 + $0x400] sm:$0xff] }
 0x62b   :  { %v6841_v30 = vpack.c.bf16 %v2874_v23, %v2870_v21  ;;  %v3092_v48 = vld [vmem:[#allocation9 + $0x420] sm:$0xff]  ;;  %v3090_v21 = vld [vmem:[#allocation9 + $0x410] sm:$0xff]  ;;  %v3101_v26 = vld [vmem:[#allocation9 + $0x468] sm:$0xff] }
 0x62c   :  { %v3094_v23 = vld [vmem:[#allocation9 + $0x430] sm:$0xff] }
 0x62d   :  { %6762 = vmatpush1.bf16.msra.mxu1 %v6761_v32  ;;  %6826 = vmatpush1.bf16.msra.mxu0 %v6825_v33  ;;  %v2880_v32 = vld [vmem:[#allocation9 + $0x360] sm:$0xff]  ;;  %v6779_v33 = vpack.c.bf16 %v2881_v39, %v2877_v24  ;;  %v6921_v24 = vpack.c.bf16 %v3094_v23, %v3090_v21  ;;  %v3097_v39 = vld [vmem:[#allocation9 + $0x448] sm:$0xff]  ;;  %v3131_v23 = vld [vmem:[#allocation9 + $0x558] sm:$0xff] }
 0x62e   :  { %6764 = vmatprep.subr.bf16.mxu1 %v6763_v40  ;;  %6828 = vmatprep.subr.bf16.mxu0 %v6827_v41  ;;  %v2882_v40 = vld [vmem:[#allocation9 + $0x370] sm:$0xff]  ;;  %v2885_v41 = vld [vmem:[#allocation9 + $0x388] sm:$0xff]  ;;  %v6781_v49 = vpack.c.bf16 %v2880_v32, %v2876_v31  ;;  %v6859_v28 = vpack.c.bf16 %v3101_v26, %v3097_v39  ;;  %v3100_v31 = vld [vmem:[#allocation9 + $0x460] sm:$0xff] }
 0x62f   :  { %v6845_v45 = vpack.c.bf16 %v2882_v40, %v2878_v36  ;;  %v3102_v36 = vld [vmem:[#allocation9 + $0x470] sm:$0xff]  ;;  %v3105_v40 = vld [vmem:[#allocation9 + $0x488] sm:$0xff]  ;;  %v3135_v39 = vld [vmem:[#allocation9 + $0x578] sm:$0xff] }
 0x630   :  { %v3133_v21 = vld [vmem:[#allocation9 + $0x568] sm:$0xff]  ;;  %v3128_v26 = vld [vmem:[#allocation9 + $0x540] sm:$0xff] }
 0x631   :  { %6766 = vmatpush1.bf16.msra.mxu1 %v6765_v47  ;;  %6830 = vmatpush1.bf16.msra.mxu0 %v6829_v8  ;;  %v2888_v47 = vld [vmem:[#allocation9 + $0x3a0] sm:$0xff]  ;;  %v6783_v8 = vpack.c.bf16 %v2889_v42, %v2885_v41  ;;  %v3109_v42 = vld [vmem:[#allocation9 + $0x4a8] sm:$0xff] }
 0x632   :  { %6768 = vmatprep.subr.bf16.mxu1 %v6767_v52  ;;  %6832 = vmatprep.subr.bf16.mxu0 %v6831_v54  ;;  %v2890_v52 = vld [vmem:[#allocation9 + $0x3b0] sm:$0xff]  ;;  %v2893_v54 = vld [vmem:[#allocation9 + $0x3c8] sm:$0xff]  ;;  %v6785_v11 = vpack.c.bf16 %v2888_v47, %v2884_v46  ;;  %v3104_v46 = vld [vmem:[#allocation9 + $0x480] sm:$0xff] }
 0x633   :  { %v6849_v59 = vpack.c.bf16 %v2890_v52, %v2886_v51  ;;  %v3108_v47 = vld [vmem:[#allocation9 + $0x4a0] sm:$0xff]  ;;  %v3110_v51 = vld [vmem:[#allocation9 + $0x4b0] sm:$0xff]  ;;  %v3113_v52 = vld [vmem:[#allocation9 + $0x4c8] sm:$0xff] }
 0x635   :  { %6770 = vmatpush1.bf16.msra.mxu1 %v6769_v61  ;;  %6834 = vmatpush1.bf16.msra.mxu0 %v6833_v62  ;;  %v6787_v61 = vpack.c.bf16 %v2897_v55, %v2893_v54  ;;  %v6851_v62 = vpack.c.bf16 %v2899_v58, %v2895_v57  ;;  %v3117_v54 = vld [vmem:[#allocation9 + $0x4e8] sm:$0xff]  ;;  %v3115_v58 = vld [vmem:[#allocation9 + $0x4d8] sm:$0xff] }
 0x636   :  { %6772 = vmatprep.subr.bf16.mxu1 %v6771_v0  ;;  %6836 = vmatprep.subr.bf16.mxu0 %v6835_v1  ;;  %v2898_v0 = vld [vmem:[#allocation9 + $0x3f0] sm:$0xff]  ;;  %v6789_v1 = vpack.c.bf16 %v2896_v63, %v2892_v60  ;;  %v6867_v57 = vpack.c.bf16 %v3117_v54, %v3113_v52  ;;  %v3151_v54 = vld [vmem:[#allocation9 + $0x5f8] sm:$0xff] }
 0x637   :  { %v6853_v3 = vpack.c.bf16 %v2898_v0, %v2894_v5  ;;  %v3118_v63 = vld [vmem:[#allocation9 + $0x4f0] sm:$0xff]  ;;  %v3121_v0 = vld [vmem:[#allocation9 + $0x508] sm:$0xff] }
 0x639   :  { %6774 = vmatpush1.bf16.msra.mxu1 %v6773_v14  ;;  %6838 = vmatpush1.bf16.msra.mxu0 %v6837_v16  ;;  %v6855_v14 = vpack.c.bf16 %v3093_v9, %v3089_v7  ;;  %v3095_v16 = vld [vmem:[#allocation9 + $0x438] sm:$0xff]  ;;  %v3120_v9 = vld [vmem:[#allocation9 + $0x500] sm:$0xff] }
 0x63a   :  { %6776 = vmatprep.subr.bf16.mxu1 %v6775_v18  ;;  %6840 = vmatprep.subr.bf16.mxu0 %v6839_v20  ;;  %v6919_v18 = vpack.c.bf16 %v3095_v16, %v3091_v13  ;;  %v6857_v20 = vpack.c.bf16 %v3092_v48, %v3088_v17  ;;  %v3127_v7 = vld [vmem:[#allocation9 + $0x538] sm:$0xff]  ;;  %v3124_v13 = vld [vmem:[#allocation9 + $0x520] sm:$0xff]  ;;  %v3122_v16 = vld [vmem:[#allocation9 + $0x510] sm:$0xff] }
 0x63b   :  { %v3126_v17 = vld [vmem:[#allocation9 + $0x530] sm:$0xff]  ;;  %v6873_v48 = vpack.c.bf16 %v3124_v13, %v3120_v9 }
 0x63c   :  { %v3154_v9 = vld [vmem:[#allocation9 + $0x610] sm:$0xff] }
 0x63d   :  { %6778 = vmatpush1.bf16.msra.mxu1 %v6777_v29  ;;  %6842 = vmatpush1.bf16.msra.mxu0 %v6841_v30  ;;  %v3103_v29 = vld [vmem:[#allocation9 + $0x478] sm:$0xff]  ;;  %v3096_v30 = vld [vmem:[#allocation9 + $0x440] sm:$0xff]  ;;  %v3158_v13 = vld [vmem:[#allocation9 + $0x630] sm:$0xff] }
 0x63e   :  { %6780 = vmatprep.subr.bf16.mxu1 %v6779_v33  ;;  %6844 = vmatprep.subr.bf16.mxu0 %v6843_v34  ;;  %v6923_v32 = vpack.c.bf16 %v3103_v29, %v3099_v27  ;;  %v6861_v33 = vpack.c.bf16 %v3100_v31, %v3096_v30  ;;  %v3098_v34 = vld [vmem:[#allocation9 + $0x450] sm:$0xff]  ;;  %v3132_v27 = vld [vmem:[#allocation9 + $0x560] sm:$0xff] }
 0x63f   :  { %v6925_v41 = vpack.c.bf16 %v3102_v36, %v3098_v34  ;;  %v6877_v29 = vpack.c.bf16 %v3132_v27, %v3128_v26  ;;  %v3130_v30 = vld [vmem:[#allocation9 + $0x550] sm:$0xff]  ;;  %v3141_v34 = vld [vmem:[#allocation9 + $0x5a8] sm:$0xff]  ;;  %v3139_v36 = vld [vmem:[#allocation9 + $0x598] sm:$0xff] }
 0x640   :  { %v3134_v31 = vld [vmem:[#allocation9 + $0x570] sm:$0xff] }
 0x641   :  { %6782 = vmatpush1.bf16.msra.mxu1 %v6781_v49  ;;  %6846 = vmatpush1.bf16.msra.mxu0 %v6845_v45  ;;  %v6863_v49 = vpack.c.bf16 %v3109_v42, %v3105_v40  ;;  %v6927_v45 = vpack.c.bf16 %v3111_v44, %v3107_v43  ;;  %v3136_v42 = vld [vmem:[#allocation9 + $0x580] sm:$0xff]  ;;  %v3162_v26 = vld [vmem:[#allocation9 + $0x650] sm:$0xff] }
 0x642   :  { %6784 = vmatprep.subr.bf16.mxu1 %v6783_v8  ;;  %6848 = vmatprep.subr.bf16.mxu0 %v6847_v50  ;;  %v3106_v8 = vld [vmem:[#allocation9 + $0x490] sm:$0xff]  ;;  %v6865_v50 = vpack.c.bf16 %v3108_v47, %v3104_v46  ;;  %v3140_v43 = vld [vmem:[#allocation9 + $0x5a0] sm:$0xff] }
 0x643   :  { %v6929_v55 = vpack.c.bf16 %v3110_v51, %v3106_v8  ;;  %v3142_v46 = vld [vmem:[#allocation9 + $0x5b0] sm:$0xff]  ;;  %v3145_v8 = vld [vmem:[#allocation9 + $0x5c8] sm:$0xff]  ;;  %v3147_v51 = vld [vmem:[#allocation9 + $0x5d8] sm:$0xff] }
 0x644   :  { %v3166_v27 = vld [vmem:[#allocation9 + $0x670] sm:$0xff] }
 0x645   :  { %6786 = vmatpush1.bf16.msra.mxu1 %v6785_v11  ;;  %6850 = vmatpush1.bf16.msra.mxu0 %v6849_v59  ;;  %v3119_v11 = vld [vmem:[#allocation9 + $0x4f8] sm:$0xff]  ;;  %v3112_v59 = vld [vmem:[#allocation9 + $0x4c0] sm:$0xff] }
 0x646   :  { %6788 = vmatprep.subr.bf16.mxu1 %v6787_v61  ;;  %6852 = vmatprep.subr.bf16.mxu0 %v6851_v62  ;;  %v6931_v60 = vpack.c.bf16 %v3119_v11, %v3115_v58  ;;  %v3116_v61 = vld [vmem:[#allocation9 + $0x4e0] sm:$0xff]  ;;  %v3114_v62 = vld [vmem:[#allocation9 + $0x4d0] sm:$0xff]  ;;  %v6947_v58 = vpack.c.bf16 %v3151_v54, %v3147_v51 }
 0x647   :  { %v6869_v5 = vpack.c.bf16 %v3116_v61, %v3112_v59  ;;  %v6933_v12 = vpack.c.bf16 %v3118_v63, %v3114_v62  ;;  %v3146_v59 = vld [vmem:[#allocation9 + $0x5d0] sm:$0xff]  ;;  %v3153_v62 = vld [vmem:[#allocation9 + $0x608] sm:$0xff]  ;;  %v3180_v51 = vld [vmem:[#allocation9 + $0x6e0] sm:$0xff] }
 0x648   :  { %v3157_v63 = vld [vmem:[#allocation9 + $0x628] sm:$0xff] }
 0x649   :  { %6790 = vmatpush1.bf16.msra.mxu1 %v6789_v1  ;;  %6854 = vmatpush1.bf16.msra.mxu0 %v6853_v3  ;;  %v3125_v1 = vld [vmem:[#allocation9 + $0x528] sm:$0xff]  ;;  %v3123_v3 = vld [vmem:[#allocation9 + $0x518] sm:$0xff] }
 0x64a   :  { %6856 = vmatprep.subr.bf16.mxu1 %v6855_v14  ;;  %6920 = vmatprep.subr.bf16.mxu0 %v6919_v18  ;;  %v6935_v14 = vpack.c.bf16 %v3127_v7, %v3123_v3  ;;  %v6937_v18 = vpack.c.bf16 %v3126_v17, %v3122_v16  ;;  %v3152_v3 = vld [vmem:[#allocation9 + $0x600] sm:$0xff]  ;;  %v3161_v16 = vld [vmem:[#allocation9 + $0x648] sm:$0xff] }
 0x64b   :  { %v3165_v17 = vld [vmem:[#allocation9 + $0x668] sm:$0xff] }
 0x64c   :  { %2987 = vmatmul.mubr.f32.vlgmr.msra.gmra.mrb[16].mxu1 %v200_v6  ;;  %3058 = vmatmul.mubr.f32.vlgmr.msra.gmra.mrb[24].mxu0 %v200_v6  ;;  %v6871_v6 = vpack.c.bf16 %v3125_v1, %v3121_v0  ;;  %v6887_v0 = vpack.c.bf16 %v3157_v63, %v3153_v62  ;;  %v3159_v1 = vld [vmem:[#allocation9 + $0x638] sm:$0xff]  ;;  %v3184_v63 = vld [vmem:[#allocation9 + $0x700] sm:$0xff] }
 0x64d   :  { %6858 = vmatpush1.bf16.msra.mxu1 %v6857_v20  ;;  %6922 = vmatpush1.bf16.msra.mxu0 %v6921_v24  ;;  %v3129_v20 = vld [vmem:[#allocation9 + $0x548] sm:$0xff]  ;;  %v3191_v62 = vld [vmem:[#allocation9 + $0x738] sm:$0xff] }
 0x64e   :  { %6860 = vmatprep.subr.bf16.mxu1 %v6859_v28  ;;  %6924 = vmatprep.subr.bf16.mxu0 %v6923_v32  ;;  %v6875_v24 = vpack.c.bf16 %v3133_v21, %v3129_v20  ;;  %v6939_v28 = vpack.c.bf16 %v3135_v39, %v3131_v23  ;;  %v6941_v32 = vpack.c.bf16 %v3134_v31, %v3130_v30  ;;  %v3167_v20 = vld [vmem:[#allocation9 + $0x678] sm:$0xff]  ;;  %v3160_v21 = vld [vmem:[#allocation9 + $0x640] sm:$0xff]  ;;  %v3173_v30 = vld [vmem:[#allocation9 + $0x6a8] sm:$0xff] }
 0x64f   :  { %v3164_v23 = vld [vmem:[#allocation9 + $0x660] sm:$0xff]  ;;  %v3171_v31 = vld [vmem:[#allocation9 + $0x698] sm:$0xff] }
 0x650   :  { %v6893_v39 = vpack.c.bf16 %v3164_v23, %v3160_v21  ;;  %v3194_v21 = vld [vmem:[#allocation9 + $0x750] sm:$0xff] }
 0x651   :  { %6862 = vmatpush1.bf16.msra.mxu1 %v6861_v33  ;;  %6926 = vmatpush1.bf16.msra.mxu0 %v6925_v41  ;;  %v3137_v33 = vld [vmem:[#allocation9 + $0x588] sm:$0xff]  ;;  %v3143_v41 = vld [vmem:[#allocation9 + $0x5b8] sm:$0xff]  ;;  %v3198_v23 = vld [vmem:[#allocation9 + $0x770] sm:$0xff] }
 0x652   :  { %6864 = vmatprep.subr.bf16.mxu1 %v6863_v49  ;;  %6928 = vmatprep.subr.bf16.mxu0 %v6927_v45  ;;  %v6879_v40 = vpack.c.bf16 %v3141_v34, %v3137_v33  ;;  %v6943_v44 = vpack.c.bf16 %v3143_v41, %v3139_v36  ;;  %v6881_v49 = vpack.c.bf16 %v3140_v43, %v3136_v42  ;;  %v3138_v45 = vld [vmem:[#allocation9 + $0x590] sm:$0xff]  ;;  %v3175_v33 = vld [vmem:[#allocation9 + $0x6b8] sm:$0xff]  ;;  %v3168_v34 = vld [vmem:[#allocation9 + $0x680] sm:$0xff] }
 0x653   :  { %v6945_v47 = vpack.c.bf16 %v3142_v46, %v3138_v45  ;;  %v3172_v36 = vld [vmem:[#allocation9 + $0x6a0] sm:$0xff]  ;;  %v3170_v42 = vld [vmem:[#allocation9 + $0x690] sm:$0xff]  ;;  %v3181_v45 = vld [vmem:[#allocation9 + $0x6e8] sm:$0xff] }
 0x654   :  { %v6897_v41 = vpack.c.bf16 %v3172_v36, %v3168_v34  ;;  %v3174_v43 = vld [vmem:[#allocation9 + $0x6b0] sm:$0xff]  ;;  %v3179_v46 = vld [vmem:[#allocation9 + $0x6d8] sm:$0xff] }
 0x655   :  { %6866 = vmatpush1.bf16.msra.mxu1 %v6865_v50  ;;  %6930 = vmatpush1.bf16.msra.mxu0 %v6929_v55  ;;  %v3149_v50 = vld [vmem:[#allocation9 + $0x5e8] sm:$0xff]  ;;  %v3144_v55 = vld [vmem:[#allocation9 + $0x5c0] sm:$0xff]  ;;  %v3206_v36 = vld [vmem:[#allocation9 + $0x7b0] sm:$0xff] }
 0x656   :  { %6868 = vmatprep.subr.bf16.mxu1 %v6867_v57  ;;  %6932 = vmatprep.subr.bf16.mxu0 %v6931_v60  ;;  %v6883_v52 = vpack.c.bf16 %v3149_v50, %v3145_v8  ;;  %v3148_v57 = vld [vmem:[#allocation9 + $0x5e0] sm:$0xff]  ;;  %v3150_v60 = vld [vmem:[#allocation9 + $0x5f0] sm:$0xff]  ;;  %v3183_v8 = vld [vmem:[#allocation9 + $0x6f8] sm:$0xff] }
 0x657   :  { %v6885_v11 = vpack.c.bf16 %v3148_v57, %v3144_v55  ;;  %v6949_v61 = vpack.c.bf16 %v3150_v60, %v3146_v59  ;;  %v3176_v50 = vld [vmem:[#allocation9 + $0x6c0] sm:$0xff]  ;;  %v3178_v55 = vld [vmem:[#allocation9 + $0x6d0] sm:$0xff]  ;;  %v3189_v59 = vld [vmem:[#allocation9 + $0x728] sm:$0xff] }
 0x658   :  { %v6901_v54 = vpack.c.bf16 %v3180_v51, %v3176_v50  ;;  %v3182_v57 = vld [vmem:[#allocation9 + $0x6f0] sm:$0xff]  ;;  %v3187_v60 = vld [vmem:[#allocation9 + $0x718] sm:$0xff] }
 0x659   :  { %6870 = vmatpush1.bf16.msra.mxu1 %v6869_v5  ;;  %6934 = vmatpush1.bf16.msra.mxu0 %v6933_v12  ;;  %v3155_v5 = vld [vmem:[#allocation9 + $0x618] sm:$0xff]  ;;  %v3156_v12 = vld [vmem:[#allocation9 + $0x620] sm:$0xff]  ;;  %v3214_v50 = vld [vmem:[#allocation9 + $0x7f0] sm:$0xff] }
 0x65a   :  { %6872 = vmatprep.subr.bf16.mxu1 %v6871_v6  ;;  %6936 = vmatprep.subr.bf16.mxu0 %v6935_v14  ;;  %v6951_v6 = vpack.c.bf16 %v3159_v1, %v3155_v5  ;;  %v6889_v7 = vpack.c.bf16 %v3156_v12, %v3152_v3  ;;  %v6953_v14 = vpack.c.bf16 %v3158_v13, %v3154_v9  ;;  %v3188_v5 = vld [vmem:[#allocation9 + $0x720] sm:$0xff]  ;;  %v3186_v3 = vld [vmem:[#allocation9 + $0x710] sm:$0xff]  ;;  %v3197_v9 = vld [vmem:[#allocation9 + $0x768] sm:$0xff] }
 0x65b   :  { %v6905_v1 = vpack.c.bf16 %v3188_v5, %v3184_v63  ;;  %v3190_v12 = vld [vmem:[#allocation9 + $0x730] sm:$0xff]  ;;  %v3195_v13 = vld [vmem:[#allocation9 + $0x758] sm:$0xff] }
 0x65d   :  { %6874 = vmatpush1.bf16.msra.mxu1 %v6873_v48  ;;  %6938 = vmatpush1.bf16.msra.mxu0 %v6937_v18  ;;  %v3163_v48 = vld [vmem:[#allocation9 + $0x658] sm:$0xff]  ;;  %v6891_v18 = vpack.c.bf16 %v3165_v17, %v3161_v16  ;;  %v3192_v17 = vld [vmem:[#allocation9 + $0x740] sm:$0xff] }
 0x65e   :  { %6876 = vmatprep.subr.bf16.mxu1 %v6875_v24  ;;  %6940 = vmatprep.subr.bf16.mxu0 %v6939_v28  ;;  %v6955_v24 = vpack.c.bf16 %v3167_v20, %v3163_v48  ;;  %v6957_v28 = vpack.c.bf16 %v3166_v27, %v3162_v26  ;;  %v3199_v16 = vld [vmem:[#allocation9 + $0x778] sm:$0xff]  ;;  %v3196_v48 = vld [vmem:[#allocation9 + $0x760] sm:$0xff]  ;;  %v3205_v26 = vld [vmem:[#allocation9 + $0x7a8] sm:$0xff] }
 0x65f   :  { %v6909_v20 = vpack.c.bf16 %v3196_v48, %v3192_v17  ;;  %v3203_v27 = vld [vmem:[#allocation9 + $0x798] sm:$0xff] }
 0x661   :  { %6878 = vmatpush1.bf16.msra.mxu1 %v6877_v29  ;;  %6942 = vmatpush1.bf16.msra.mxu0 %v6941_v32  ;;  %v3169_v29 = vld [vmem:[#allocation9 + $0x688] sm:$0xff] }
 0x662   :  { %6880 = vmatprep.subr.bf16.mxu1 %v6879_v40  ;;  %6944 = vmatprep.subr.bf16.mxu0 %v6943_v44  ;;  %v6895_v32 = vpack.c.bf16 %v3173_v30, %v3169_v29  ;;  %v6959_v40 = vpack.c.bf16 %v3175_v33, %v3171_v31  ;;  %v6961_v44 = vpack.c.bf16 %v3174_v43, %v3170_v42  ;;  %v3200_v31 = vld [vmem:[#allocation9 + $0x780] sm:$0xff]  ;;  %v3202_v33 = vld [vmem:[#allocation9 + $0x790] sm:$0xff] }
 0x663   :  { %v6977_v42 = vpack.c.bf16 %v3206_v36, %v3202_v33 }
 0x665   :  { %6882 = vmatpush1.bf16.msra.mxu1 %v6881_v49  ;;  %6946 = vmatpush1.bf16.msra.mxu0 %v6945_v47  ;;  %v3177_v49 = vld [vmem:[#allocation9 + $0x6c8] sm:$0xff] }
 0x666   :  { %6884 = vmatprep.subr.bf16.mxu1 %v6883_v52  ;;  %6948 = vmatprep.subr.bf16.mxu0 %v6947_v58  ;;  %v6899_v47 = vpack.c.bf16 %v3181_v45, %v3177_v49  ;;  %v6963_v52 = vpack.c.bf16 %v3183_v8, %v3179_v46  ;;  %v6965_v58 = vpack.c.bf16 %v3182_v57, %v3178_v55  ;;  %v3215_v49 = vld [vmem:[#allocation9 + $0x7f8] sm:$0xff]  ;;  %v3208_v45 = vld [vmem:[#allocation9 + $0x7c0] sm:$0xff]  ;;  %v3210_v8 = vld [vmem:[#allocation9 + $0x7d0] sm:$0xff] }
 0x667   :  { %v3411_v55 = vld [vmem:[#allocation9 + $0x18] sm:$0xff]  ;;  %v6981_v57 = vpack.c.bf16 %v3214_v50, %v3210_v8 }
 0x669   :  { %6886 = vmatpush1.bf16.msra.mxu1 %v6885_v11  ;;  %6950 = vmatpush1.bf16.msra.mxu0 %v6949_v61  ;;  %v3185_v11 = vld [vmem:[#allocation9 + $0x708] sm:$0xff] }
 0x66a   :  { %6888 = vmatprep.subr.bf16.mxu1 %v6887_v0  ;;  %6952 = vmatprep.subr.bf16.mxu0 %v6951_v6  ;;  %v6903_v61 = vpack.c.bf16 %v3189_v59, %v3185_v11  ;;  %v6967_v0 = vpack.c.bf16 %v3191_v62, %v3187_v60  ;;  %v6969_v6 = vpack.c.bf16 %v3190_v12, %v3186_v3  ;;  %v3415_v11 = vld [vmem:[#allocation9 + $0x38] sm:$0xff]  ;;  %v5502_v60 = vld [vmem:[%s8570_s4 + $0x4] sm:$0xf] }
 0x66b   :  { %v7047_v59 = vpack.c.bf16 %v3415_v11, %v3411_v55  ;;  %v2589_v62 = vrot.slane %v5502_v60, %v8310_v4 }
 0x66d   :  { %6890 = vmatpush1.bf16.msra.mxu1 %v6889_v7  ;;  %6954 = vmatpush1.bf16.msra.mxu0 %v6953_v14  ;;  %v3193_v7 = vld [vmem:[#allocation9 + $0x748] sm:$0xff] }
 0x66e   :  { %6892 = vmatprep.subr.bf16.mxu1 %v6891_v18  ;;  %6956 = vmatprep.subr.bf16.mxu0 %v6955_v24  ;;  %v6907_v14 = vpack.c.bf16 %v3197_v9, %v3193_v7  ;;  %v6971_v18 = vpack.c.bf16 %v3199_v16, %v3195_v13  ;;  %v3201_v24 = vld [vmem:[#allocation9 + $0x788] sm:$0xff]  ;;  %v2597_v9 = vrot.slane %v5502_v60, %v8314_v10 }
 0x66f   :  { %v6911_v29 = vpack.c.bf16 %v3205_v26, %v3201_v24 }
 0x671   :  { %6894 = vmatpush1.bf16.msra.mxu1 %v6893_v39  ;;  %6958 = vmatpush1.bf16.msra.mxu0 %v6957_v28  ;;  %v6973_v39 = vpack.c.bf16 %v3198_v23, %v3194_v21  ;;  %v3207_v28 = vld [vmem:[#allocation9 + $0x7b8] sm:$0xff] }
 0x672   :  { %6896 = vmatprep.subr.bf16.mxu1 %v6895_v32  ;;  %6960 = vmatprep.subr.bf16.mxu0 %v6959_v40  ;;  %v6975_v30 = vpack.c.bf16 %v3207_v28, %v3203_v27  ;;  %v3204_v32 = vld [vmem:[#allocation9 + $0x7a0] sm:$0xff]  ;;  %v3209_v40 = vld [vmem:[#allocation9 + $0x7c8] sm:$0xff] }
 0x673   :  { %v6913_v34 = vpack.c.bf16 %v3204_v32, %v3200_v31 }
 0x675   :  { %6898 = vmatpush1.bf16.msra.mxu1 %v6897_v41  ;;  %6962 = vmatpush1.bf16.msra.mxu0 %v6961_v44  ;;  %v3213_v41 = vld [vmem:[#allocation9 + $0x7e8] sm:$0xff]  ;;  %v3211_v44 = vld [vmem:[#allocation9 + $0x7d8] sm:$0xff] }
 0x676   :  { %6900 = vmatprep.subr.bf16.mxu1 %v6899_v47  ;;  %6964 = vmatprep.subr.bf16.mxu0 %v6963_v52  ;;  %v6915_v43 = vpack.c.bf16 %v3213_v41, %v3209_v40  ;;  %v6979_v46 = vpack.c.bf16 %v3215_v49, %v3211_v44  ;;  %v3212_v47 = vld [vmem:[#allocation9 + $0x7e0] sm:$0xff]  ;;  %v3409_v52 = vld [vmem:[#allocation9 + $0x8] sm:$0xff] }
 0x677   :  { %v6917_v51 = vpack.c.bf16 %v3212_v47, %v3208_v45 }
 0x679   :  { %6902 = vmatpush1.bf16.msra.mxu1 %v6901_v54  ;;  %6966 = vmatpush1.bf16.msra.mxu0 %v6965_v58  ;;  %v3413_v54 = vld [vmem:[#allocation9 + $0x28] sm:$0xff] }
 0x67a   :  { %6904 = vmatprep.subr.bf16.mxu1 %v6903_v61  ;;  %6968 = vmatprep.subr.bf16.mxu0 %v6967_v0  ;;  %v6983_v58 = vpack.c.bf16 %v3413_v54, %v3409_v52  ;;  %v2585_v61 = vrot.slane %v5502_v60, %v8305_v2 }
 0x67d   :  { %6906 = vmatpush1.bf16.msra.mxu1 %v6905_v1  ;;  %6970 = vmatpush1.bf16.msra.mxu0 %v6969_v6 }
 0x67e   :  { %6908 = vmatprep.subr.bf16.mxu1 %v6907_v14  ;;  %6972 = vmatprep.subr.bf16.mxu0 %v6971_v18  ;;  %v2593_v14 = vrot.slane %v5502_v60, %v8317_v19 }
 0x681   :  { %6910 = vmatpush1.bf16.msra.mxu1 %v6909_v20  ;;  %6974 = vmatpush1.bf16.msra.mxu0 %v6973_v39 }
 0x682   :  { %6912 = vmatprep.subr.bf16.mxu1 %v6911_v29  ;;  %6976 = vmatprep.subr.bf16.mxu0 %v6975_v30 }
 0x685   :  { %6914 = vmatpush1.bf16.msra.mxu1 %v6913_v34  ;;  %6978 = vmatpush1.bf16.msra.mxu0 %v6977_v42  ;;  %v2900_v34 = vld [vmem:[%s8570_s4] sm:$0xf] }
 0x686   :  { %6916 = vmatprep.subr.bf16.mxu1 %v6915_v43  ;;  %6980 = vmatprep.subr.bf16.mxu0 %v6979_v46  ;;  %v2905_v36 = vrot.slane %v2900_v34, %v8305_v2  ;;  %v2917_v47 = vrot.slane %v2900_v34, %v8314_v10  ;;  %v2913_v50 = vrot.slane %v2900_v34, %v8317_v19 }
 0x689   :  { %6918 = vmatpush1.bf16.msra.mxu1 %v6917_v51  ;;  %6982 = vmatpush1.bf16.msra.mxu0 %v6981_v57 }
 0x68a   :  { %6984 = vmatprep.subr.bf16.mxu1 %v6983_v58  ;;  %7048 = vmatprep.subr.bf16.mxu0 %v7047_v59 }
 0x6df   :  { %v2668_v63 = vpop.f32.mrb[14].mxu1  ;;  %v2739_v5 = vpop.f32.mrb[22].mxu0 }
 0x6e0   :  { %v2669_v0 = vadd.f32 %v2668_v63, %v2585_v61  ;;  %v2670_v1 = vpop.f32.mrb[15].mxu1  ;;  %v2741_v3 = vpop.f32.mrb[23].mxu0  ;;  %v2740_v17 = vadd.f32 %v2739_v5, %v2593_v14  ;;  %v3419_v14 = vld [vmem:[#allocation9 + $0x58] sm:$0xff] }
 0x6e1   :  { %v2671_v12 = vadd.f32 %v2670_v1, %v2589_v62  ;;  %v2742_v13 = vadd.f32 %v2741_v3, %v2597_v9  ;;  %v3408_v1 = vld [vmem:[#allocation9] sm:$0xff] }
 0x6e2   :  { %v5503_v6 = vmul.f32 -1.442695, %v2669_v0  ;;  %v3412_v3 = vld [vmem:[#allocation9 + $0x20] sm:$0xff] }
 0x6e3   :  { %v5504_v7 = vmul.f32 -1.442695, %v2671_v12  ;;  %v5505_v16 = vmul.f32 -1.442695, %v2742_v13  ;;  %v3410_v12 = vld [vmem:[#allocation9 + $0x10] sm:$0xff]  ;;  %v3421_v13 = vld [vmem:[#allocation9 + $0x68] sm:$0xff] }
 0x6e4   :  { %7905 = vpow2.f32 %v5503_v6  ;;  %v3414_v6 = vld [vmem:[#allocation9 + $0x30] sm:$0xff] }
 0x6e5   :  { %7907 = vpow2.f32 %v5504_v7  ;;  %v3417_v7 = vld [vmem:[#allocation9 + $0x48] sm:$0xff] }
 0x6e6   :  { %7909 = vpow2.f32 %v5505_v16  ;;  %v3423_v16 = vld [vmem:[#allocation9 + $0x78] sm:$0xff] }
 0x6e7   :  { %7911 = vtanh.f32 %v2740_v17 }
 0x6ee   :  { %v7906_v48 = vpop.eup %7905 }
 0x6ef   :  { %v7908_v18 = vpop.eup %7907  ;;  %v2747_v20 = vadd.f32 1.0, %v7906_v48  ;;  %v6985_v48 = vpack.c.bf16 %v3412_v3, %v3408_v1 }
 0x6f0   :  { %v2753_v21 = vadd.f32 1.0, %v7908_v18  ;;  %v7910_v23 = vpop.eup %7909  ;;  %v7049_v18 = vpack.c.bf16 %v3414_v6, %v3410_v12  ;;  %v3442_v12 = vld [vmem:[#allocation9 + $0x110] sm:$0xff] }
 0x6f1   :  { %7913 = vrcp.f32 %v2747_v20  ;;  %v7912_v24 = vpop.eup %7911  ;;  %v2760_v28 = vadd.f32 1.0, %v7910_v23  ;;  %v3416_v20 = vld [vmem:[#allocation9 + $0x40] sm:$0xff]  ;;  %v3418_v23 = vld [vmem:[#allocation9 + $0x50] sm:$0xff] }
 0x6f2   :  { %7915 = vrcp.f32 %v2753_v21  ;;  %v3420_v21 = vld [vmem:[#allocation9 + $0x60] sm:$0xff]  ;;  %v3446_v6 = vld [vmem:[#allocation9 + $0x130] sm:$0xff] }
 0x6f3   :  { %7917 = vrcp.f32 %v2760_v28  ;;  %v3429_v28 = vld [vmem:[#allocation9 + $0xa8] sm:$0xff] }
 0x6fb   :  { %v7914_v39 = vpop.eup %7913 }
 0x6fc   :  { %v7916_v26 = vpop.eup %7915  ;;  %v2764_v27 = vmul.f32 %v7914_v39, %v7912_v24  ;;  %v3422_v24 = vld [vmem:[#allocation9 + $0x70] sm:$0xff]  ;;  %v3425_v39 = vld [vmem:[#allocation9 + $0x88] sm:$0xff] }
 0x6fd   :  { %v2763_v29 = vmul.f32 %v7916_v26, %v8394_v53  ;;  %v7918_v31 = vpop.eup %7917  ;;  %v2909_v53 = vrot.slane %v2900_v34, %v8310_v4  ;;  %v6987_v26 = vpack.c.bf16 %v3421_v13, %v3417_v7  ;;  %v7053_v34 = vpack.c.bf16 %v3422_v24, %v3418_v23  ;;  %v3449_v7 = vld [vmem:[#allocation9 + $0x148] sm:$0xff]  ;;  %v3451_v13 = vld [vmem:[#allocation9 + $0x158] sm:$0xff]  ;;  %v3454_v23 = vld [vmem:[#allocation9 + $0x170] sm:$0xff] }
 0x6fe   :  { %v3457_v24 = vld [vmem:[#allocation9 + $0x188] sm:$0xff] }
 0x6ff   :  { %v8424_v30 = vadd.f32 %v2764_v27, %v2763_v29  ;;  %v7051_v27 = vpack.c.bf16 %v3423_v16, %v3419_v14  ;;  %v3427_v29 = vld [vmem:[#allocation9 + $0x98] sm:$0xff] }
 0x700   :  { %v3455_v14 = vld [vmem:[#allocation9 + $0x178] sm:$0xff] }
 0x701   :  { %7919 = vtanh.f32 %v8424_v30 }
 0x70b   :  { %v7920_v32 = vpop.eup %7919 }
 0x70c   :  { %v8427_v33 = vmul.f32 %v7920_v32, %v7918_v31  ;;  %v3431_v31 = vld [vmem:[#allocation9 + $0xb8] sm:$0xff]  ;;  %v6989_v32 = vpack.c.bf16 %v3420_v21, %v3416_v20  ;;  %v7067_v21 = vpack.c.bf16 %v3455_v14, %v3451_v13  ;;  %v3480_v14 = vld [vmem:[#allocation9 + $0x240] sm:$0xff] }
 0x70e   :  { %3302 = vmatprep.mubr.f32.mxu1 %v8427_v33  ;;  %3373 = vmatprep.mubr.f32.mxu0 %v8427_v33 }
 0x71f   :  { %v2988_v40 = vpop.f32.mrb[16].mxu1  ;;  %v3059_v41 = vpop.f32.mrb[24].mxu0 }
 0x720   :  { %v2989_v42 = vadd.f32 %v2988_v40, %v2905_v36  ;;  %v2990_v43 = vpop.f32.mrb[17].mxu1  ;;  %v3061_v44 = vpop.f32.mrb[25].mxu0  ;;  %v3060_v52 = vadd.f32 %v3059_v41, %v2913_v50  ;;  %v3424_v36 = vld [vmem:[#allocation9 + $0x80] sm:$0xff]  ;;  %v6991_v40 = vpack.c.bf16 %v3429_v28, %v3425_v39  ;;  %v7055_v41 = vpack.c.bf16 %v3431_v31, %v3427_v29  ;;  %v3461_v39 = vld [vmem:[#allocation9 + $0x1a8] sm:$0xff] }
 0x721   :  { %v2991_v49 = vadd.f32 %v2990_v43, %v2909_v53  ;;  %v3062_v8 = vadd.f32 %v3061_v44, %v2917_v47  ;;  %v3428_v53 = vld [vmem:[#allocation9 + $0xa0] sm:$0xff]  ;;  %v3430_v43 = vld [vmem:[#allocation9 + $0xb0] sm:$0xff]  ;;  %v3433_v44 = vld [vmem:[#allocation9 + $0xc8] sm:$0xff] }
 0x722   :  { %v5506_v45 = vmul.f32 -1.442695, %v2989_v42  ;;  %v3426_v42 = vld [vmem:[#allocation9 + $0x90] sm:$0xff]  ;;  %v6993_v47 = vpack.c.bf16 %v3428_v53, %v3424_v36  ;;  %v3432_v50 = vld [vmem:[#allocation9 + $0xc0] sm:$0xff] }
 0x723   :  { %v5507_v46 = vmul.f32 -1.442695, %v2991_v49  ;;  %v5508_v51 = vmul.f32 -1.442695, %v3062_v8  ;;  %v3437_v49 = vld [vmem:[#allocation9 + $0xe8] sm:$0xff]  ;;  %v7057_v8 = vpack.c.bf16 %v3430_v43, %v3426_v42  ;;  %v3456_v31 = vld [vmem:[#allocation9 + $0x180] sm:$0xff] }
 0x724   :  { %7921 = vpow2.f32 %v5506_v45  ;;  %v3435_v45 = vld [vmem:[#allocation9 + $0xd8] sm:$0xff]  ;;  %v3458_v53 = vld [vmem:[#allocation9 + $0x190] sm:$0xff]  ;;  %v3469_v42 = vld [vmem:[#allocation9 + $0x1e8] sm:$0xff] }
 0x725   :  { %7923 = vpow2.f32 %v5507_v46  ;;  %v3439_v46 = vld [vmem:[#allocation9 + $0xf8] sm:$0xff] }
 0x726   :  { %7925 = vpow2.f32 %v5508_v51  ;;  %v3436_v51 = vld [vmem:[#allocation9 + $0xe0] sm:$0xff]  ;;  %v3467_v43 = vld [vmem:[#allocation9 + $0x1d8] sm:$0xff] }
 0x727   :  { %7927 = vtanh.f32 %v3060_v52  ;;  %v6995_v52 = vpack.c.bf16 %v3437_v49, %v3433_v44  ;;  %v3471_v44 = vld [vmem:[#allocation9 + $0x1f8] sm:$0xff] }
 0x72e   :  { %v7922_v54 = vpop.eup %7921 }
 0x72f   :  { %v7924_v55 = vpop.eup %7923  ;;  %v3067_v57 = vadd.f32 1.0, %v7922_v54  ;;  %v7059_v54 = vpack.c.bf16 %v3439_v46, %v3435_v45  ;;  %v3464_v46 = vld [vmem:[#allocation9 + $0x1c0] sm:$0xff] }
 0x730   :  { %v3073_v58 = vadd.f32 1.0, %v7924_v55  ;;  %v7926_v11 = vpop.eup %7925  ;;  %v3434_v55 = vld [vmem:[#allocation9 + $0xd0] sm:$0xff] }
 0x731   :  { %7929 = vrcp.f32 %v3067_v57  ;;  %v7928_v59 = vpop.eup %7927  ;;  %v3080_v63 = vadd.f32 1.0, %v7926_v11  ;;  %v3438_v57 = vld [vmem:[#allocation9 + $0xf0] sm:$0xff]  ;;  %v3445_v11 = vld [vmem:[#allocation9 + $0x128] sm:$0xff] }
 0x732   :  { %7931 = vrcp.f32 %v3073_v58  ;;  %v3441_v58 = vld [vmem:[#allocation9 + $0x108] sm:$0xff] }
 0x733   :  { %7933 = vrcp.f32 %v3080_v63  ;;  %v3440_v63 = vld [vmem:[#allocation9 + $0x100] sm:$0xff]  ;;  %v6999_v1 = vpack.c.bf16 %v3445_v11, %v3441_v58  ;;  %v3479_v58 = vld [vmem:[#allocation9 + $0x238] sm:$0xff] }
 0x73b   :  { %v7930_v60 = vpop.eup %7929 }
 0x73c   :  { %v7932_v61 = vpop.eup %7931  ;;  %v3084_v62 = vmul.f32 %v7930_v60, %v7928_v59  ;;  %v3443_v59 = vld [vmem:[#allocation9 + $0x118] sm:$0xff] }
 0x73d   :  { %v3083_v5 = vmul.f32 %v7932_v61, %v8409_v25  ;;  %v7934_v9 = vpop.eup %7933  ;;  %v3447_v60 = vld [vmem:[#allocation9 + $0x138] sm:$0xff]  ;;  %v6997_v61 = vpack.c.bf16 %v3436_v51, %v3432_v50  ;;  %v7075_v50 = vpack.c.bf16 %v3471_v44, %v3467_v43  ;;  %v3466_v51 = vld [vmem:[#allocation9 + $0x1d0] sm:$0xff]  ;;  %v3496_v44 = vld [vmem:[#allocation9 + $0x2c0] sm:$0xff] }
 0x73e   :  { %v7063_v3 = vpack.c.bf16 %v3447_v60, %v3443_v59  ;;  %v3472_v60 = vld [vmem:[#allocation9 + $0x200] sm:$0xff] }
 0x73f   :  { %v8439_v0 = vadd.f32 %v3084_v62, %v3083_v5  ;;  %v7061_v62 = vpack.c.bf16 %v3438_v57, %v3434_v55  ;;  %v3444_v5 = vld [vmem:[#allocation9 + $0x120] sm:$0xff]  ;;  %v3477_v55 = vld [vmem:[#allocation9 + $0x228] sm:$0xff]  ;;  %v3475_v57 = vld [vmem:[#allocation9 + $0x218] sm:$0xff] }
 0x740   :  { %v7001_v16 = vpack.c.bf16 %v3444_v5, %v3440_v63  ;;  %v7079_v63 = vpack.c.bf16 %v3479_v58, %v3475_v57  ;;  %v3474_v5 = vld [vmem:[#allocation9 + $0x210] sm:$0xff]  ;;  %v3504_v58 = vld [vmem:[#allocation9 + $0x300] sm:$0xff] }
 0x741   :  { %7935 = vtanh.f32 %v8439_v0 }
 0x74b   :  { %v7936_v17 = vpop.eup %7935 }
 0x74c   :  { %v3087_v25 = vmul.f32 %v7936_v17, %v7934_v9  ;;  %v3453_v9 = vld [vmem:[#allocation9 + $0x168] sm:$0xff]  ;;  %v7065_v17 = vpack.c.bf16 %v3446_v6, %v3442_v12  ;;  %v3483_v6 = vld [vmem:[#allocation9 + $0x258] sm:$0xff] }
 0x74d   :  { %v7003_v20 = vpack.c.bf16 %v3453_v9, %v3449_v7  ;;  %v3485_v12 = vld [vmem:[#allocation9 + $0x268] sm:$0xff]  ;;  %v3487_v7 = vld [vmem:[#allocation9 + $0x278] sm:$0xff] }
 0x74e   :  { %3303 = vmatmul.mubr.f32.vlgmr.msra.gmra.mrb[18].mxu1 %v3087_v25  ;;  %3374 = vmatmul.mubr.f32.vlgmr.msra.gmra.mrb[26].mxu0 %v3087_v25 }
 0x74f   :  { %6986 = vmatpush1.bf16.msra.mxu1 %v6985_v48  ;;  %7050 = vmatpush1.bf16.msra.mxu0 %v7049_v18  ;;  %v3448_v48 = vld [vmem:[#allocation9 + $0x140] sm:$0xff] }
 0x750   :  { %3622 = vmatprep.mubr.f32.mxu1 %v3087_v25  ;;  %3693 = vmatprep.mubr.f32.mxu0 %v3087_v25  ;;  %v3452_v18 = vld [vmem:[#allocation9 + $0x160] sm:$0xff]  ;;  %v3450_v25 = vld [vmem:[#allocation9 + $0x150] sm:$0xff] }
 0x751   :  { %6988 = vmatprep.subr.bf16.mxu1 %v6987_v26  ;;  %7052 = vmatprep.subr.bf16.mxu0 %v7051_v27  ;;  %v3459_v26 = vld [vmem:[#allocation9 + $0x198] sm:$0xff]  ;;  %v7005_v28 = vpack.c.bf16 %v3452_v18, %v3448_v48  ;;  %v7069_v29 = vpack.c.bf16 %v3454_v23, %v3450_v25  ;;  %v7083_v48 = vpack.c.bf16 %v3487_v7, %v3483_v6  ;;  %v3482_v18 = vld [vmem:[#allocation9 + $0x250] sm:$0xff]  ;;  %v3493_v25 = vld [vmem:[#allocation9 + $0x2a8] sm:$0xff] }
 0x752   :  { %v3463_v27 = vld [vmem:[#allocation9 + $0x1b8] sm:$0xff]  ;;  %v3512_v7 = vld [vmem:[#allocation9 + $0x340] sm:$0xff] }
 0x753   :  { %6990 = vmatpush1.bf16.msra.mxu1 %v6989_v32  ;;  %7054 = vmatpush1.bf16.msra.mxu0 %v7053_v34  ;;  %v3460_v32 = vld [vmem:[#allocation9 + $0x1a0] sm:$0xff]  ;;  %v7007_v34 = vpack.c.bf16 %v3461_v39, %v3457_v24  ;;  %v7071_v36 = vpack.c.bf16 %v3463_v27, %v3459_v26  ;;  %v3491_v23 = vld [vmem:[#allocation9 + $0x298] sm:$0xff] }
 0x754   :  { %6992 = vmatprep.subr.bf16.mxu1 %v6991_v40  ;;  %7056 = vmatprep.subr.bf16.mxu0 %v7055_v41  ;;  %v3462_v40 = vld [vmem:[#allocation9 + $0x1b0] sm:$0xff]  ;;  %v3465_v41 = vld [vmem:[#allocation9 + $0x1c8] sm:$0xff]  ;;  %v7009_v49 = vpack.c.bf16 %v3460_v32, %v3456_v31  ;;  %v3495_v24 = vld [vmem:[#allocation9 + $0x2b8] sm:$0xff] }
 0x755   :  { %v7073_v45 = vpack.c.bf16 %v3462_v40, %v3458_v53  ;;  %v3488_v27 = vld [vmem:[#allocation9 + $0x280] sm:$0xff]  ;;  %v7087_v31 = vpack.c.bf16 %v3495_v24, %v3491_v23  ;;  %v3490_v32 = vld [vmem:[#allocation9 + $0x290] sm:$0xff]  ;;  %v3501_v53 = vld [vmem:[#allocation9 + $0x2e8] sm:$0xff] }
 0x756   :  { %v3499_v40 = vld [vmem:[#allocation9 + $0x2d8] sm:$0xff]  ;;  %v3520_v24 = vld [vmem:[#allocation9 + $0x380] sm:$0xff] }
 0x757   :  { %6994 = vmatpush1.bf16.msra.mxu1 %v6993_v47  ;;  %7058 = vmatpush1.bf16.msra.mxu0 %v7057_v8  ;;  %v3468_v47 = vld [vmem:[#allocation9 + $0x1e0] sm:$0xff]  ;;  %v7011_v8 = vpack.c.bf16 %v3469_v42, %v3465_v41  ;;  %v3503_v41 = vld [vmem:[#allocation9 + $0x2f8] sm:$0xff] }
 0x758   :  { %6996 = vmatprep.subr.bf16.mxu1 %v6995_v52  ;;  %7060 = vmatprep.subr.bf16.mxu0 %v7059_v54  ;;  %v3470_v52 = vld [vmem:[#allocation9 + $0x1f0] sm:$0xff]  ;;  %v3473_v54 = vld [vmem:[#allocation9 + $0x208] sm:$0xff]  ;;  %v7013_v11 = vpack.c.bf16 %v3468_v47, %v3464_v46  ;;  %v7091_v46 = vpack.c.bf16 %v3503_v41, %v3499_v40  ;;  %v3528_v41 = vld [vmem:[#allocation9 + $0x3c0] sm:$0xff] }
 0x759   :  { %v7077_v59 = vpack.c.bf16 %v3470_v52, %v3466_v51  ;;  %v3498_v47 = vld [vmem:[#allocation9 + $0x2d0] sm:$0xff]  ;;  %v3509_v51 = vld [vmem:[#allocation9 + $0x328] sm:$0xff]  ;;  %v3507_v52 = vld [vmem:[#allocation9 + $0x318] sm:$0xff] }
 0x75b   :  { %6998 = vmatpush1.bf16.msra.mxu1 %v6997_v61  ;;  %7062 = vmatpush1.bf16.msra.mxu0 %v7061_v62  ;;  %v3476_v61 = vld [vmem:[#allocation9 + $0x220] sm:$0xff]  ;;  %v7015_v62 = vpack.c.bf16 %v3477_v55, %v3473_v54  ;;  %v3511_v54 = vld [vmem:[#allocation9 + $0x338] sm:$0xff] }
 0x75c   :  { %7000 = vmatprep.subr.bf16.mxu1 %v6999_v1  ;;  %7064 = vmatprep.subr.bf16.mxu0 %v7063_v3  ;;  %v3478_v1 = vld [vmem:[#allocation9 + $0x230] sm:$0xff]  ;;  %v3481_v3 = vld [vmem:[#allocation9 + $0x248] sm:$0xff]  ;;  %v7017_v9 = vpack.c.bf16 %v3476_v61, %v3472_v60  ;;  %v7095_v60 = vpack.c.bf16 %v3511_v54, %v3507_v52  ;;  %v3727_v54 = vld [vmem:[#allocation9 + $0x418] sm:$0xff] }
 0x75d   :  { %v7081_v13 = vpack.c.bf16 %v3478_v1, %v3474_v5  ;;  %v3506_v61 = vld [vmem:[#allocation9 + $0x310] sm:$0xff]  ;;  %v3517_v5 = vld [vmem:[#allocation9 + $0x368] sm:$0xff]  ;;  %v3515_v1 = vld [vmem:[#allocation9 + $0x358] sm:$0xff] }
 0x75e   :  { %v3729_v52 = vld [vmem:[#allocation9 + $0x428] sm:$0xff] }
 0x75f   :  { %7002 = vmatpush1.bf16.msra.mxu1 %v7001_v16  ;;  %7066 = vmatpush1.bf16.msra.mxu0 %v7065_v17  ;;  %v3484_v16 = vld [vmem:[#allocation9 + $0x260] sm:$0xff]  ;;  %v7019_v17 = vpack.c.bf16 %v3485_v12, %v3481_v3  ;;  %v3519_v3 = vld [vmem:[#allocation9 + $0x378] sm:$0xff] }
 0x760   :  { %7004 = vmatprep.subr.bf16.mxu1 %v7003_v20  ;;  %7068 = vmatprep.subr.bf16.mxu0 %v7067_v21  ;;  %v3486_v20 = vld [vmem:[#allocation9 + $0x270] sm:$0xff]  ;;  %v3489_v21 = vld [vmem:[#allocation9 + $0x288] sm:$0xff]  ;;  %v7021_v39 = vpack.c.bf16 %v3484_v16, %v3480_v14  ;;  %v7099_v14 = vpack.c.bf16 %v3519_v3, %v3515_v1  ;;  %v3735_v1 = vld [vmem:[#allocation9 + $0x458] sm:$0xff] }
 0x761   :  { %v7085_v26 = vpack.c.bf16 %v3486_v20, %v3482_v18  ;;  %v3514_v16 = vld [vmem:[#allocation9 + $0x350] sm:$0xff]  ;;  %v3525_v18 = vld [vmem:[#allocation9 + $0x3a8] sm:$0xff]  ;;  %v3523_v20 = vld [vmem:[#allocation9 + $0x398] sm:$0xff] }
 0x763   :  { %7006 = vmatpush1.bf16.msra.mxu1 %v7005_v28  ;;  %7070 = vmatpush1.bf16.msra.mxu0 %v7069_v29  ;;  %v3492_v28 = vld [vmem:[#allocation9 + $0x2a0] sm:$0xff]  ;;  %v7023_v29 = vpack.c.bf16 %v3493_v25, %v3489_v21  ;;  %v3527_v21 = vld [vmem:[#allocation9 + $0x3b8] sm:$0xff] }
 0x764   :  { %7008 = vmatprep.subr.bf16.mxu1 %v7007_v34  ;;  %7072 = vmatprep.subr.bf16.mxu0 %v7071_v36  ;;  %v3494_v34 = vld [vmem:[#allocation9 + $0x2b0] sm:$0xff]  ;;  %v3497_v36 = vld [vmem:[#allocation9 + $0x2c8] sm:$0xff]  ;;  %v7025_v42 = vpack.c.bf16 %v3492_v28, %v3488_v27  ;;  %v7103_v27 = vpack.c.bf16 %v3527_v21, %v3523_v20  ;;  %v3743_v20 = vld [vmem:[#allocation9 + $0x498] sm:$0xff] }
 0x765   :  { %v7089_v43 = vpack.c.bf16 %v3494_v34, %v3490_v32  ;;  %v3522_v28 = vld [vmem:[#allocation9 + $0x390] sm:$0xff]  ;;  %v3533_v32 = vld [vmem:[#allocation9 + $0x3e8] sm:$0xff]  ;;  %v3531_v34 = vld [vmem:[#allocation9 + $0x3d8] sm:$0xff] }
 0x766   :  { %v3747_v21 = vld [vmem:[#allocation9 + $0x4b8] sm:$0xff] }
 0x767   :  { %7010 = vmatpush1.bf16.msra.mxu1 %v7009_v49  ;;  %7074 = vmatpush1.bf16.msra.mxu0 %v7073_v45  ;;  %v3500_v49 = vld [vmem:[#allocation9 + $0x2e0] sm:$0xff]  ;;  %v7027_v45 = vpack.c.bf16 %v3501_v53, %v3497_v36  ;;  %v3535_v36 = vld [vmem:[#allocation9 + $0x3f8] sm:$0xff] }
 0x768   :  { %7012 = vmatprep.subr.bf16.mxu1 %v7011_v8  ;;  %7076 = vmatprep.subr.bf16.mxu0 %v7075_v50  ;;  %v3502_v8 = vld [vmem:[#allocation9 + $0x2f0] sm:$0xff]  ;;  %v3505_v50 = vld [vmem:[#allocation9 + $0x308] sm:$0xff]  ;;  %v7029_v55 = vpack.c.bf16 %v3500_v49, %v3496_v44  ;;  %v3532_v44 = vld [vmem:[#allocation9 + $0x3e0] sm:$0xff] }
 0x769   :  { %v7093_v57 = vpack.c.bf16 %v3502_v8, %v3498_v47  ;;  %v3530_v49 = vld [vmem:[#allocation9 + $0x3d0] sm:$0xff]  ;;  %v8053_v8 = vld [vmem:[%s8568_s2] ss:$0 sm:$0xff] }
 0x76b   :  { %7014 = vmatpush1.bf16.msra.mxu1 %v7013_v11  ;;  %7078 = vmatpush1.bf16.msra.mxu0 %v7077_v59  ;;  %v3508_v11 = vld [vmem:[#allocation9 + $0x320] sm:$0xff]  ;;  %v7031_v59 = vpack.c.bf16 %v3509_v51, %v3505_v50  ;;  %v205_v50 = vadd.f32 %v8053_v8, %v8297_v22  ;;  %v3725_v51 = vld [vmem:[#allocation9 + $0x408] sm:$0xff] }
 0x76c   :  { %7016 = vmatprep.subr.bf16.mxu1 %v7015_v62  ;;  %7080 = vmatprep.subr.bf16.mxu0 %v7079_v63  ;;  %v3510_v62 = vld [vmem:[#allocation9 + $0x330] sm:$0xff]  ;;  %v3513_v63 = vld [vmem:[#allocation9 + $0x348] sm:$0xff]  ;;  %v7033_v12 = vpack.c.bf16 %v3508_v11, %v3504_v58  ;;  %v3724_v58 = vld [vmem:[#allocation9 + $0x400] sm:$0xff] }
 0x76d   :  { %v7097_v6 = vpack.c.bf16 %v3510_v62, %v3506_v61  ;;  %v3728_v11 = vld [vmem:[#allocation9 + $0x420] sm:$0xff]  ;;  %v3726_v61 = vld [vmem:[#allocation9 + $0x410] sm:$0xff]  ;;  %v3737_v22 = vld [vmem:[#allocation9 + $0x468] sm:$0xff] }
 0x76e   :  { %v3730_v62 = vld [vmem:[#allocation9 + $0x430] sm:$0xff] }
 0x76f   :  { %7018 = vmatpush1.bf16.msra.mxu1 %v7017_v9  ;;  %7082 = vmatpush1.bf16.msra.mxu0 %v7081_v13  ;;  %v3516_v9 = vld [vmem:[#allocation9 + $0x360] sm:$0xff]  ;;  %v7035_v13 = vpack.c.bf16 %v3517_v5, %v3513_v63  ;;  %v7177_v63 = vpack.c.bf16 %v3730_v62, %v3726_v61  ;;  %v3733_v5 = vld [vmem:[#allocation9 + $0x448] sm:$0xff]  ;;  %v3767_v62 = vld [vmem:[#allocation9 + $0x558] sm:$0xff] }
 0x770   :  { %7020 = vmatprep.subr.bf16.mxu1 %v7019_v17  ;;  %7084 = vmatprep.subr.bf16.mxu0 %v7083_v48  ;;  %v3518_v17 = vld [vmem:[#allocation9 + $0x370] sm:$0xff]  ;;  %v3521_v48 = vld [vmem:[#allocation9 + $0x388] sm:$0xff]  ;;  %v7037_v25 = vpack.c.bf16 %v3516_v9, %v3512_v7  ;;  %v7115_v3 = vpack.c.bf16 %v3737_v22, %v3733_v5  ;;  %v3736_v7 = vld [vmem:[#allocation9 + $0x460] sm:$0xff] }
 0x771   :  { %v7101_v23 = vpack.c.bf16 %v3518_v17, %v3514_v16  ;;  %v3738_v16 = vld [vmem:[#allocation9 + $0x470] sm:$0xff]  ;;  %v3741_v17 = vld [vmem:[#allocation9 + $0x488] sm:$0xff]  ;;  %v3771_v5 = vld [vmem:[#allocation9 + $0x578] sm:$0xff] }
 0x772   :  { %v3769_v61 = vld [vmem:[#allocation9 + $0x568] sm:$0xff]  ;;  %v3764_v22 = vld [vmem:[#allocation9 + $0x540] sm:$0xff] }
 0x773   :  { %7022 = vmatpush1.bf16.msra.mxu1 %v7021_v39  ;;  %7086 = vmatpush1.bf16.msra.mxu0 %v7085_v26  ;;  %v3524_v39 = vld [vmem:[#allocation9 + $0x3a0] sm:$0xff]  ;;  %v7039_v26 = vpack.c.bf16 %v3525_v18, %v3521_v48  ;;  %v3745_v18 = vld [vmem:[#allocation9 + $0x4a8] sm:$0xff] }
 0x774   :  { %7024 = vmatprep.subr.bf16.mxu1 %v7023_v29  ;;  %7088 = vmatprep.subr.bf16.mxu0 %v7087_v31  ;;  %v3526_v29 = vld [vmem:[#allocation9 + $0x3b0] sm:$0xff]  ;;  %v3529_v31 = vld [vmem:[#allocation9 + $0x3c8] sm:$0xff]  ;;  %v7041_v53 = vpack.c.bf16 %v3524_v39, %v3520_v24  ;;  %v3740_v24 = vld [vmem:[#allocation9 + $0x480] sm:$0xff] }
 0x775   :  { %v7105_v40 = vpack.c.bf16 %v3526_v29, %v3522_v28  ;;  %v3744_v39 = vld [vmem:[#allocation9 + $0x4a0] sm:$0xff]  ;;  %v3746_v28 = vld [vmem:[#allocation9 + $0x4b0] sm:$0xff]  ;;  %v3749_v29 = vld [vmem:[#allocation9 + $0x4c8] sm:$0xff] }
 0x777   :  { %7026 = vmatpush1.bf16.msra.mxu1 %v7025_v42  ;;  %7090 = vmatpush1.bf16.msra.mxu0 %v7089_v43  ;;  %v7043_v42 = vpack.c.bf16 %v3533_v32, %v3529_v31  ;;  %v7107_v43 = vpack.c.bf16 %v3535_v36, %v3531_v34  ;;  %v3753_v31 = vld [vmem:[#allocation9 + $0x4e8] sm:$0xff]  ;;  %v3751_v36 = vld [vmem:[#allocation9 + $0x4d8] sm:$0xff] }
 0x778   :  { %7028 = vmatprep.subr.bf16.mxu1 %v7027_v45  ;;  %7092 = vmatprep.subr.bf16.mxu0 %v7091_v46  ;;  %v3534_v45 = vld [vmem:[#allocation9 + $0x3f0] sm:$0xff]  ;;  %v7045_v46 = vpack.c.bf16 %v3532_v44, %v3528_v41  ;;  %v7123_v34 = vpack.c.bf16 %v3753_v31, %v3749_v29  ;;  %v3787_v31 = vld [vmem:[#allocation9 + $0x5f8] sm:$0xff] }
 0x779   :  { %v7109_v47 = vpack.c.bf16 %v3534_v45, %v3530_v49  ;;  %v3754_v44 = vld [vmem:[#allocation9 + $0x4f0] sm:$0xff]  ;;  %v3757_v45 = vld [vmem:[#allocation9 + $0x508] sm:$0xff] }
 0x77b   :  { %7030 = vmatpush1.bf16.msra.mxu1 %v7029_v55  ;;  %7094 = vmatpush1.bf16.msra.mxu0 %v7093_v57  ;;  %v7111_v55 = vpack.c.bf16 %v3729_v52, %v3725_v51  ;;  %v3731_v57 = vld [vmem:[#allocation9 + $0x438] sm:$0xff]  ;;  %v3756_v52 = vld [vmem:[#allocation9 + $0x500] sm:$0xff] }
 0x77c   :  { %7032 = vmatprep.subr.bf16.mxu1 %v7031_v59  ;;  %7096 = vmatprep.subr.bf16.mxu0 %v7095_v60  ;;  %v7175_v59 = vpack.c.bf16 %v3731_v57, %v3727_v54  ;;  %v7113_v60 = vpack.c.bf16 %v3728_v11, %v3724_v58  ;;  %v3763_v51 = vld [vmem:[#allocation9 + $0x538] sm:$0xff]  ;;  %v3760_v54 = vld [vmem:[#allocation9 + $0x520] sm:$0xff]  ;;  %v3758_v57 = vld [vmem:[#allocation9 + $0x510] sm:$0xff] }
 0x77d   :  { %v3762_v58 = vld [vmem:[#allocation9 + $0x530] sm:$0xff]  ;;  %v7129_v11 = vpack.c.bf16 %v3760_v54, %v3756_v52 }
 0x77e   :  { %v3790_v52 = vld [vmem:[#allocation9 + $0x610] sm:$0xff] }
 0x77f   :  { %7034 = vmatpush1.bf16.msra.mxu1 %v7033_v12  ;;  %7098 = vmatpush1.bf16.msra.mxu0 %v7097_v6  ;;  %v3739_v12 = vld [vmem:[#allocation9 + $0x478] sm:$0xff]  ;;  %v3732_v6 = vld [vmem:[#allocation9 + $0x440] sm:$0xff]  ;;  %v3794_v54 = vld [vmem:[#allocation9 + $0x630] sm:$0xff] }
 0x780   :  { %7036 = vmatprep.subr.bf16.mxu1 %v7035_v13  ;;  %7100 = vmatprep.subr.bf16.mxu0 %v7099_v14  ;;  %v7179_v9 = vpack.c.bf16 %v3739_v12, %v3735_v1  ;;  %v7117_v13 = vpack.c.bf16 %v3736_v7, %v3732_v6  ;;  %v3734_v14 = vld [vmem:[#allocation9 + $0x450] sm:$0xff]  ;;  %v3768_v1 = vld [vmem:[#allocation9 + $0x560] sm:$0xff] }
 0x781   :  { %v7181_v48 = vpack.c.bf16 %v3738_v16, %v3734_v14  ;;  %v7133_v12 = vpack.c.bf16 %v3768_v1, %v3764_v22  ;;  %v3766_v6 = vld [vmem:[#allocation9 + $0x550] sm:$0xff]  ;;  %v3777_v14 = vld [vmem:[#allocation9 + $0x5a8] sm:$0xff]  ;;  %v3775_v16 = vld [vmem:[#allocation9 + $0x598] sm:$0xff] }
 0x782   :  { %v3770_v7 = vld [vmem:[#allocation9 + $0x570] sm:$0xff] }
 0x783   :  { %7038 = vmatpush1.bf16.msra.mxu1 %v7037_v25  ;;  %7102 = vmatpush1.bf16.msra.mxu0 %v7101_v23  ;;  %v7119_v25 = vpack.c.bf16 %v3745_v18, %v3741_v17  ;;  %v7183_v23 = vpack.c.bf16 %v3747_v21, %v3743_v20  ;;  %v3772_v18 = vld [vmem:[#allocation9 + $0x580] sm:$0xff]  ;;  %v3798_v22 = vld [vmem:[#allocation9 + $0x650] sm:$0xff] }
 0x784   :  { %7040 = vmatprep.subr.bf16.mxu1 %v7039_v26  ;;  %7104 = vmatprep.subr.bf16.mxu0 %v7103_v27  ;;  %v3742_v26 = vld [vmem:[#allocation9 + $0x490] sm:$0xff]  ;;  %v7121_v27 = vpack.c.bf16 %v3744_v39, %v3740_v24  ;;  %v3776_v20 = vld [vmem:[#allocation9 + $0x5a0] sm:$0xff] }
 0x785   :  { %v7185_v32 = vpack.c.bf16 %v3746_v28, %v3742_v26  ;;  %v3778_v24 = vld [vmem:[#allocation9 + $0x5b0] sm:$0xff]  ;;  %v3781_v26 = vld [vmem:[#allocation9 + $0x5c8] sm:$0xff]  ;;  %v3783_v28 = vld [vmem:[#allocation9 + $0x5d8] sm:$0xff] }
 0x786   :  { %v3802_v1 = vld [vmem:[#allocation9 + $0x670] sm:$0xff] }
 0x787   :  { %7042 = vmatpush1.bf16.msra.mxu1 %v7041_v53  ;;  %7106 = vmatpush1.bf16.msra.mxu0 %v7105_v40  ;;  %v3755_v53 = vld [vmem:[#allocation9 + $0x4f8] sm:$0xff]  ;;  %v3748_v40 = vld [vmem:[#allocation9 + $0x4c0] sm:$0xff] }
 0x788   :  { %7044 = vmatprep.subr.bf16.mxu1 %v7043_v42  ;;  %7108 = vmatprep.subr.bf16.mxu0 %v7107_v43  ;;  %v7187_v41 = vpack.c.bf16 %v3755_v53, %v3751_v36  ;;  %v3752_v42 = vld [vmem:[#allocation9 + $0x4e0] sm:$0xff]  ;;  %v3750_v43 = vld [vmem:[#allocation9 + $0x4d0] sm:$0xff]  ;;  %v7203_v36 = vpack.c.bf16 %v3787_v31, %v3783_v28 }
 0x789   :  { %v7125_v49 = vpack.c.bf16 %v3752_v42, %v3748_v40  ;;  %v7189_v8 = vpack.c.bf16 %v3754_v44, %v3750_v43  ;;  %v3782_v40 = vld [vmem:[#allocation9 + $0x5d0] sm:$0xff]  ;;  %v3789_v43 = vld [vmem:[#allocation9 + $0x608] sm:$0xff]  ;;  %v3816_v28 = vld [vmem:[#allocation9 + $0x6e0] sm:$0xff] }
 0x78a   :  { %v3793_v44 = vld [vmem:[#allocation9 + $0x628] sm:$0xff] }
 0x78b   :  { %7046 = vmatpush1.bf16.msra.mxu1 %v7045_v46  ;;  %7110 = vmatpush1.bf16.msra.mxu0 %v7109_v47  ;;  %v3761_v46 = vld [vmem:[#allocation9 + $0x528] sm:$0xff]  ;;  %v3759_v47 = vld [vmem:[#allocation9 + $0x518] sm:$0xff] }
 0x78c   :  { %7112 = vmatprep.subr.bf16.mxu1 %v7111_v55  ;;  %7176 = vmatprep.subr.bf16.mxu0 %v7175_v59  ;;  %v7191_v55 = vpack.c.bf16 %v3763_v51, %v3759_v47  ;;  %v7193_v59 = vpack.c.bf16 %v3762_v58, %v3758_v57  ;;  %v3788_v47 = vld [vmem:[#allocation9 + $0x600] sm:$0xff]  ;;  %v3797_v57 = vld [vmem:[#allocation9 + $0x648] sm:$0xff] }
 0x78d   :  { %v3801_v58 = vld [vmem:[#allocation9 + $0x668] sm:$0xff] }
 0x78e   :  { %3623 = vmatmul.mubr.f32.vlgmr.msra.gmra.mrb[20].mxu1 %v205_v50  ;;  %3694 = vmatmul.mubr.f32.vlgmr.msra.gmra.mrb[28].mxu0 %v205_v50  ;;  %v7127_v50 = vpack.c.bf16 %v3761_v46, %v3757_v45  ;;  %v7143_v45 = vpack.c.bf16 %v3793_v44, %v3789_v43  ;;  %v3795_v46 = vld [vmem:[#allocation9 + $0x638] sm:$0xff]  ;;  %v3820_v44 = vld [vmem:[#allocation9 + $0x700] sm:$0xff] }
 0x78f   :  { %7114 = vmatpush1.bf16.msra.mxu1 %v7113_v60  ;;  %7178 = vmatpush1.bf16.msra.mxu0 %v7177_v63  ;;  %v3765_v60 = vld [vmem:[#allocation9 + $0x548] sm:$0xff]  ;;  %v3827_v43 = vld [vmem:[#allocation9 + $0x738] sm:$0xff] }
 0x790   :  { %7116 = vmatprep.subr.bf16.mxu1 %v7115_v3  ;;  %7180 = vmatprep.subr.bf16.mxu0 %v7179_v9  ;;  %v7131_v63 = vpack.c.bf16 %v3769_v61, %v3765_v60  ;;  %v7195_v3 = vpack.c.bf16 %v3771_v5, %v3767_v62  ;;  %v7197_v9 = vpack.c.bf16 %v3770_v7, %v3766_v6  ;;  %v3803_v60 = vld [vmem:[#allocation9 + $0x678] sm:$0xff]  ;;  %v3796_v61 = vld [vmem:[#allocation9 + $0x640] sm:$0xff]  ;;  %v3809_v6 = vld [vmem:[#allocation9 + $0x6a8] sm:$0xff] }
 0x791   :  { %v3800_v62 = vld [vmem:[#allocation9 + $0x660] sm:$0xff]  ;;  %v3807_v7 = vld [vmem:[#allocation9 + $0x698] sm:$0xff] }
 0x792   :  { %v7149_v5 = vpack.c.bf16 %v3800_v62, %v3796_v61  ;;  %v3830_v61 = vld [vmem:[#allocation9 + $0x750] sm:$0xff] }
 0x793   :  { %7118 = vmatpush1.bf16.msra.mxu1 %v7117_v13  ;;  %7182 = vmatpush1.bf16.msra.mxu0 %v7181_v48  ;;  %v3773_v13 = vld [vmem:[#allocation9 + $0x588] sm:$0xff]  ;;  %v3779_v48 = vld [vmem:[#allocation9 + $0x5b8] sm:$0xff]  ;;  %v3834_v62 = vld [vmem:[#allocation9 + $0x770] sm:$0xff] }
 0x794   :  { %7120 = vmatprep.subr.bf16.mxu1 %v7119_v25  ;;  %7184 = vmatprep.subr.bf16.mxu0 %v7183_v23  ;;  %v7135_v17 = vpack.c.bf16 %v3777_v14, %v3773_v13  ;;  %v7199_v21 = vpack.c.bf16 %v3779_v48, %v3775_v16  ;;  %v7137_v25 = vpack.c.bf16 %v3776_v20, %v3772_v18  ;;  %v3774_v23 = vld [vmem:[#allocation9 + $0x590] sm:$0xff]  ;;  %v3811_v13 = vld [vmem:[#allocation9 + $0x6b8] sm:$0xff]  ;;  %v3804_v14 = vld [vmem:[#allocation9 + $0x680] sm:$0xff] }
 0x795   :  { %v7201_v39 = vpack.c.bf16 %v3778_v24, %v3774_v23  ;;  %v3808_v16 = vld [vmem:[#allocation9 + $0x6a0] sm:$0xff]  ;;  %v3806_v18 = vld [vmem:[#allocation9 + $0x690] sm:$0xff]  ;;  %v3817_v23 = vld [vmem:[#allocation9 + $0x6e8] sm:$0xff] }
 0x796   :  { %v7153_v48 = vpack.c.bf16 %v3808_v16, %v3804_v14  ;;  %v3810_v20 = vld [vmem:[#allocation9 + $0x6b0] sm:$0xff]  ;;  %v3815_v24 = vld [vmem:[#allocation9 + $0x6d8] sm:$0xff] }
 0x797   :  { %7122 = vmatpush1.bf16.msra.mxu1 %v7121_v27  ;;  %7186 = vmatpush1.bf16.msra.mxu0 %v7185_v32  ;;  %v3785_v27 = vld [vmem:[#allocation9 + $0x5e8] sm:$0xff]  ;;  %v3780_v32 = vld [vmem:[#allocation9 + $0x5c0] sm:$0xff]  ;;  %v3842_v16 = vld [vmem:[#allocation9 + $0x7b0] sm:$0xff] }
 0x798   :  { %7124 = vmatprep.subr.bf16.mxu1 %v7123_v34  ;;  %7188 = vmatprep.subr.bf16.mxu0 %v7187_v41  ;;  %v7139_v29 = vpack.c.bf16 %v3785_v27, %v3781_v26  ;;  %v3784_v34 = vld [vmem:[#allocation9 + $0x5e0] sm:$0xff]  ;;  %v3786_v41 = vld [vmem:[#allocation9 + $0x5f0] sm:$0xff]  ;;  %v3819_v26 = vld [vmem:[#allocation9 + $0x6f8] sm:$0xff] }
 0x799   :  { %v7141_v53 = vpack.c.bf16 %v3784_v34, %v3780_v32  ;;  %v7205_v42 = vpack.c.bf16 %v3786_v41, %v3782_v40  ;;  %v3812_v27 = vld [vmem:[#allocation9 + $0x6c0] sm:$0xff]  ;;  %v3814_v32 = vld [vmem:[#allocation9 + $0x6d0] sm:$0xff]  ;;  %v3825_v40 = vld [vmem:[#allocation9 + $0x728] sm:$0xff] }
 0x79a   :  { %v7157_v31 = vpack.c.bf16 %v3816_v28, %v3812_v27  ;;  %v3818_v34 = vld [vmem:[#allocation9 + $0x6f0] sm:$0xff]  ;;  %v3823_v41 = vld [vmem:[#allocation9 + $0x718] sm:$0xff] }
 0x79b   :  { %7126 = vmatpush1.bf16.msra.mxu1 %v7125_v49  ;;  %7190 = vmatpush1.bf16.msra.mxu0 %v7189_v8  ;;  %v3791_v49 = vld [vmem:[#allocation9 + $0x618] sm:$0xff]  ;;  %v3792_v8 = vld [vmem:[#allocation9 + $0x620] sm:$0xff]  ;;  %v3850_v27 = vld [vmem:[#allocation9 + $0x7f0] sm:$0xff] }
 0x79c   :  { %7128 = vmatprep.subr.bf16.mxu1 %v7127_v50  ;;  %7192 = vmatprep.subr.bf16.mxu0 %v7191_v55  ;;  %v7207_v50 = vpack.c.bf16 %v3795_v46, %v3791_v49  ;;  %v7145_v51 = vpack.c.bf16 %v3792_v8, %v3788_v47  ;;  %v7209_v55 = vpack.c.bf16 %v3794_v54, %v3790_v52  ;;  %v3824_v49 = vld [vmem:[#allocation9 + $0x720] sm:$0xff]  ;;  %v3822_v47 = vld [vmem:[#allocation9 + $0x710] sm:$0xff]  ;;  %v3833_v52 = vld [vmem:[#allocation9 + $0x768] sm:$0xff] }
 0x79d   :  { %v7161_v46 = vpack.c.bf16 %v3824_v49, %v3820_v44  ;;  %v3826_v8 = vld [vmem:[#allocation9 + $0x730] sm:$0xff]  ;;  %v3831_v54 = vld [vmem:[#allocation9 + $0x758] sm:$0xff] }
 0x79f   :  { %7130 = vmatpush1.bf16.msra.mxu1 %v7129_v11  ;;  %7194 = vmatpush1.bf16.msra.mxu0 %v7193_v59  ;;  %v3799_v11 = vld [vmem:[#allocation9 + $0x658] sm:$0xff]  ;;  %v7147_v59 = vpack.c.bf16 %v3801_v58, %v3797_v57  ;;  %v3828_v58 = vld [vmem:[#allocation9 + $0x740] sm:$0xff] }
 0x7a0   :  { %7132 = vmatprep.subr.bf16.mxu1 %v7131_v63  ;;  %7196 = vmatprep.subr.bf16.mxu0 %v7195_v3  ;;  %v7211_v63 = vpack.c.bf16 %v3803_v60, %v3799_v11  ;;  %v7213_v3 = vpack.c.bf16 %v3802_v1, %v3798_v22  ;;  %v3835_v57 = vld [vmem:[#allocation9 + $0x778] sm:$0xff]  ;;  %v3832_v11 = vld [vmem:[#allocation9 + $0x760] sm:$0xff]  ;;  %v3841_v22 = vld [vmem:[#allocation9 + $0x7a8] sm:$0xff] }
 0x7a1   :  { %v7165_v60 = vpack.c.bf16 %v3832_v11, %v3828_v58  ;;  %v3839_v1 = vld [vmem:[#allocation9 + $0x798] sm:$0xff] }
 0x7a3   :  { %7134 = vmatpush1.bf16.msra.mxu1 %v7133_v12  ;;  %7198 = vmatpush1.bf16.msra.mxu0 %v7197_v9  ;;  %v3805_v12 = vld [vmem:[#allocation9 + $0x688] sm:$0xff] }
 0x7a4   :  { %7136 = vmatprep.subr.bf16.mxu1 %v7135_v17  ;;  %7200 = vmatprep.subr.bf16.mxu0 %v7199_v21  ;;  %v7151_v9 = vpack.c.bf16 %v3809_v6, %v3805_v12  ;;  %v7215_v17 = vpack.c.bf16 %v3811_v13, %v3807_v7  ;;  %v7217_v21 = vpack.c.bf16 %v3810_v20, %v3806_v18  ;;  %v3836_v7 = vld [vmem:[#allocation9 + $0x780] sm:$0xff]  ;;  %v3838_v13 = vld [vmem:[#allocation9 + $0x790] sm:$0xff] }
 0x7a5   :  { %v7233_v18 = vpack.c.bf16 %v3842_v16, %v3838_v13 }
 0x7a7   :  { %7138 = vmatpush1.bf16.msra.mxu1 %v7137_v25  ;;  %7202 = vmatpush1.bf16.msra.mxu0 %v7201_v39  ;;  %v3813_v25 = vld [vmem:[#allocation9 + $0x6c8] sm:$0xff] }
 0x7a8   :  { %7140 = vmatprep.subr.bf16.mxu1 %v7139_v29  ;;  %7204 = vmatprep.subr.bf16.mxu0 %v7203_v36  ;;  %v7155_v39 = vpack.c.bf16 %v3817_v23, %v3813_v25  ;;  %v7219_v29 = vpack.c.bf16 %v3819_v26, %v3815_v24  ;;  %v7221_v36 = vpack.c.bf16 %v3818_v34, %v3814_v32  ;;  %v3851_v25 = vld [vmem:[#allocation9 + $0x7f8] sm:$0xff]  ;;  %v3844_v23 = vld [vmem:[#allocation9 + $0x7c0] sm:$0xff]  ;;  %v3846_v26 = vld [vmem:[#allocation9 + $0x7d0] sm:$0xff] }
 0x7a9   :  { %v4047_v32 = vld [vmem:[#allocation9 + $0x18] sm:$0xff]  ;;  %v7237_v34 = vpack.c.bf16 %v3850_v27, %v3846_v26 }
 0x7ab   :  { %7142 = vmatpush1.bf16.msra.mxu1 %v7141_v53  ;;  %7206 = vmatpush1.bf16.msra.mxu0 %v7205_v42  ;;  %v3821_v53 = vld [vmem:[#allocation9 + $0x708] sm:$0xff] }
 0x7ac   :  { %7144 = vmatprep.subr.bf16.mxu1 %v7143_v45  ;;  %7208 = vmatprep.subr.bf16.mxu0 %v7207_v50  ;;  %v7159_v42 = vpack.c.bf16 %v3825_v40, %v3821_v53  ;;  %v7223_v45 = vpack.c.bf16 %v3827_v43, %v3823_v41  ;;  %v7225_v50 = vpack.c.bf16 %v3826_v8, %v3822_v47  ;;  %v4051_v53 = vld [vmem:[#allocation9 + $0x38] sm:$0xff]  ;;  %v5509_v41 = vld [vmem:[%s8570_s4 + $0x4] sm:$0xf] }
 0x7ad   :  { %v7303_v40 = vpack.c.bf16 %v4051_v53, %v4047_v32  ;;  %v3225_v43 = vrot.slane %v5509_v41, %v8310_v4 }
 0x7af   :  { %7146 = vmatpush1.bf16.msra.mxu1 %v7145_v51  ;;  %7210 = vmatpush1.bf16.msra.mxu0 %v7209_v55  ;;  %v3829_v51 = vld [vmem:[#allocation9 + $0x748] sm:$0xff] }
 0x7b0   :  { %7148 = vmatprep.subr.bf16.mxu1 %v7147_v59  ;;  %7212 = vmatprep.subr.bf16.mxu0 %v7211_v63  ;;  %v7163_v55 = vpack.c.bf16 %v3833_v52, %v3829_v51  ;;  %v7227_v59 = vpack.c.bf16 %v3835_v57, %v3831_v54  ;;  %v3837_v63 = vld [vmem:[#allocation9 + $0x788] sm:$0xff]  ;;  %v3233_v52 = vrot.slane %v5509_v41, %v8314_v10 }
 0x7b1   :  { %v7167_v12 = vpack.c.bf16 %v3841_v22, %v3837_v63 }
 0x7b3   :  { %7150 = vmatpush1.bf16.msra.mxu1 %v7149_v5  ;;  %7214 = vmatpush1.bf16.msra.mxu0 %v7213_v3  ;;  %v7229_v5 = vpack.c.bf16 %v3834_v62, %v3830_v61  ;;  %v3843_v3 = vld [vmem:[#allocation9 + $0x7b8] sm:$0xff] }
 0x7b4   :  { %7152 = vmatprep.subr.bf16.mxu1 %v7151_v9  ;;  %7216 = vmatprep.subr.bf16.mxu0 %v7215_v17  ;;  %v7231_v6 = vpack.c.bf16 %v3843_v3, %v3839_v1  ;;  %v3840_v9 = vld [vmem:[#allocation9 + $0x7a0] sm:$0xff]  ;;  %v3845_v17 = vld [vmem:[#allocation9 + $0x7c8] sm:$0xff] }
 0x7b5   :  { %v7169_v14 = vpack.c.bf16 %v3840_v9, %v3836_v7 }
 0x7b7   :  { %7154 = vmatpush1.bf16.msra.mxu1 %v7153_v48  ;;  %7218 = vmatpush1.bf16.msra.mxu0 %v7217_v21  ;;  %v3849_v48 = vld [vmem:[#allocation9 + $0x7e8] sm:$0xff]  ;;  %v3847_v21 = vld [vmem:[#allocation9 + $0x7d8] sm:$0xff] }
 0x7b8   :  { %7156 = vmatprep.subr.bf16.mxu1 %v7155_v39  ;;  %7220 = vmatprep.subr.bf16.mxu0 %v7219_v29  ;;  %v7171_v20 = vpack.c.bf16 %v3849_v48, %v3845_v17  ;;  %v7235_v24 = vpack.c.bf16 %v3851_v25, %v3847_v21  ;;  %v3848_v39 = vld [vmem:[#allocation9 + $0x7e0] sm:$0xff]  ;;  %v4045_v29 = vld [vmem:[#allocation9 + $0x8] sm:$0xff] }
 0x7b9   :  { %v7173_v28 = vpack.c.bf16 %v3848_v39, %v3844_v23 }
 0x7bb   :  { %7158 = vmatpush1.bf16.msra.mxu1 %v7157_v31  ;;  %7222 = vmatpush1.bf16.msra.mxu0 %v7221_v36  ;;  %v4049_v31 = vld [vmem:[#allocation9 + $0x28] sm:$0xff] }
 0x7bc   :  { %7160 = vmatprep.subr.bf16.mxu1 %v7159_v42  ;;  %7224 = vmatprep.subr.bf16.mxu0 %v7223_v45  ;;  %v7239_v36 = vpack.c.bf16 %v4049_v31, %v4045_v29  ;;  %v3221_v42 = vrot.slane %v5509_v41, %v8305_v2 }
 0x7bf   :  { %7162 = vmatpush1.bf16.msra.mxu1 %v7161_v46  ;;  %7226 = vmatpush1.bf16.msra.mxu0 %v7225_v50 }
 0x7c0   :  { %7164 = vmatprep.subr.bf16.mxu1 %v7163_v55  ;;  %7228 = vmatprep.subr.bf16.mxu0 %v7227_v59  ;;  %v3229_v55 = vrot.slane %v5509_v41, %v8317_v19 }
 0x7c3   :  { %7166 = vmatpush1.bf16.msra.mxu1 %v7165_v60  ;;  %7230 = vmatpush1.bf16.msra.mxu0 %v7229_v5 }
 0x7c4   :  { %7168 = vmatprep.subr.bf16.mxu1 %v7167_v12  ;;  %7232 = vmatprep.subr.bf16.mxu0 %v7231_v6 }
 0x7c7   :  { %7170 = vmatpush1.bf16.msra.mxu1 %v7169_v14  ;;  %7234 = vmatpush1.bf16.msra.mxu0 %v7233_v18  ;;  %v3536_v14 = vld [vmem:[%s8570_s4] sm:$0xf] }
 0x7c8   :  { %7172 = vmatprep.subr.bf16.mxu1 %v7171_v20  ;;  %7236 = vmatprep.subr.bf16.mxu0 %v7235_v24  ;;  %v3541_v16 = vrot.slane %v3536_v14, %v8305_v2  ;;  %v3553_v39 = vrot.slane %v3536_v14, %v8314_v10  ;;  %v3549_v27 = vrot.slane %v3536_v14, %v8317_v19 }
 0x7cb   :  { %7174 = vmatpush1.bf16.msra.mxu1 %v7173_v28  ;;  %7238 = vmatpush1.bf16.msra.mxu0 %v7237_v34 }
 0x7cc   :  { %7240 = vmatprep.subr.bf16.mxu1 %v7239_v36  ;;  %7304 = vmatprep.subr.bf16.mxu0 %v7303_v40 }
 0x821   :  { %v3304_v44 = vpop.f32.mrb[18].mxu1  ;;  %v3375_v49 = vpop.f32.mrb[26].mxu0 }
 0x822   :  { %v3305_v45 = vadd.f32 %v3304_v44, %v3221_v42  ;;  %v3306_v46 = vpop.f32.mrb[19].mxu1  ;;  %v3377_v47 = vpop.f32.mrb[27].mxu0  ;;  %v3376_v58 = vadd.f32 %v3375_v49, %v3229_v55  ;;  %v4055_v55 = vld [vmem:[#allocation9 + $0x58] sm:$0xff] }
 0x823   :  { %v3307_v8 = vadd.f32 %v3306_v46, %v3225_v43  ;;  %v3378_v54 = vadd.f32 %v3377_v47, %v3233_v52  ;;  %v4044_v46 = vld [vmem:[#allocation9] sm:$0xff] }
 0x824   :  { %v5510_v50 = vmul.f32 -1.442695, %v3305_v45  ;;  %v4048_v47 = vld [vmem:[#allocation9 + $0x20] sm:$0xff] }
 0x825   :  { %v5511_v51 = vmul.f32 -1.442695, %v3307_v8  ;;  %v5512_v57 = vmul.f32 -1.442695, %v3378_v54  ;;  %v4046_v8 = vld [vmem:[#allocation9 + $0x10] sm:$0xff]  ;;  %v4057_v54 = vld [vmem:[#allocation9 + $0x68] sm:$0xff] }
 0x826   :  { %7937 = vpow2.f32 %v5510_v50  ;;  %v4050_v50 = vld [vmem:[#allocation9 + $0x30] sm:$0xff] }
 0x827   :  { %7939 = vpow2.f32 %v5511_v51  ;;  %v4053_v51 = vld [vmem:[#allocation9 + $0x48] sm:$0xff] }
 0x828   :  { %7941 = vpow2.f32 %v5512_v57  ;;  %v4059_v57 = vld [vmem:[#allocation9 + $0x78] sm:$0xff] }
 0x829   :  { %7943 = vtanh.f32 %v3376_v58 }
 0x830   :  { %v7938_v11 = vpop.eup %7937 }
 0x831   :  { %v7940_v59 = vpop.eup %7939  ;;  %v3383_v60 = vadd.f32 1.0, %v7938_v11  ;;  %v7241_v11 = vpack.c.bf16 %v4048_v47, %v4044_v46 }
 0x832   :  { %v3389_v61 = vadd.f32 1.0, %v7940_v59  ;;  %v7942_v62 = vpop.eup %7941  ;;  %v7305_v59 = vpack.c.bf16 %v4050_v50, %v4046_v8  ;;  %v4078_v8 = vld [vmem:[#allocation9 + $0x110] sm:$0xff] }
 0x833   :  { %7945 = vrcp.f32 %v3383_v60  ;;  %v7944_v63 = vpop.eup %7943  ;;  %v3396_v3 = vadd.f32 1.0, %v7942_v62  ;;  %v4052_v60 = vld [vmem:[#allocation9 + $0x40] sm:$0xff]  ;;  %v4054_v62 = vld [vmem:[#allocation9 + $0x50] sm:$0xff] }
 0x834   :  { %7947 = vrcp.f32 %v3389_v61  ;;  %v4056_v61 = vld [vmem:[#allocation9 + $0x60] sm:$0xff]  ;;  %v4082_v50 = vld [vmem:[#allocation9 + $0x130] sm:$0xff] }
 0x835   :  { %7949 = vrcp.f32 %v3396_v3  ;;  %v4065_v3 = vld [vmem:[#allocation9 + $0xa8] sm:$0xff] }
 0x83d   :  { %v7946_v5 = vpop.eup %7945 }
 0x83e   :  { %v7948_v22 = vpop.eup %7947  ;;  %v3400_v1 = vmul.f32 %v7946_v5, %v7944_v63  ;;  %v4058_v63 = vld [vmem:[#allocation9 + $0x70] sm:$0xff]  ;;  %v4061_v5 = vld [vmem:[#allocation9 + $0x88] sm:$0xff] }
 0x83f   :  { %v3399_v12 = vmul.f32 %v7948_v22, %v8424_v30  ;;  %v7950_v7 = vpop.eup %7949  ;;  %v3545_v30 = vrot.slane %v3536_v14, %v8310_v4  ;;  %v7243_v22 = vpack.c.bf16 %v4057_v54, %v4053_v51  ;;  %v7309_v14 = vpack.c.bf16 %v4058_v63, %v4054_v62  ;;  %v4085_v51 = vld [vmem:[#allocation9 + $0x148] sm:$0xff]  ;;  %v4087_v54 = vld [vmem:[#allocation9 + $0x158] sm:$0xff]  ;;  %v4090_v62 = vld [vmem:[#allocation9 + $0x170] sm:$0xff] }
 0x840   :  { %v4093_v63 = vld [vmem:[#allocation9 + $0x188] sm:$0xff] }
 0x841   :  { %v8454_v6 = vadd.f32 %v3400_v1, %v3399_v12  ;;  %v7307_v1 = vpack.c.bf16 %v4059_v57, %v4055_v55  ;;  %v4063_v12 = vld [vmem:[#allocation9 + $0x98] sm:$0xff] }
 0x842   :  { %v4091_v55 = vld [vmem:[#allocation9 + $0x178] sm:$0xff] }
 0x843   :  { %7951 = vtanh.f32 %v8454_v6 }
 0x84d   :  { %v7952_v9 = vpop.eup %7951 }
 0x84e   :  { %v8457_v13 = vmul.f32 %v7952_v9, %v7950_v7  ;;  %v4067_v7 = vld [vmem:[#allocation9 + $0xb8] sm:$0xff]  ;;  %v7245_v9 = vpack.c.bf16 %v4056_v61, %v4052_v60  ;;  %v7323_v61 = vpack.c.bf16 %v4091_v55, %v4087_v54  ;;  %v4116_v55 = vld [vmem:[#allocation9 + $0x240] sm:$0xff] }
 0x850   :  { %3938 = vmatprep.mubr.f32.mxu1 %v8457_v13  ;;  %4009 = vmatprep.mubr.f32.mxu0 %v8457_v13 }
 0x861   :  { %v3624_v17 = vpop.f32.mrb[20].mxu1  ;;  %v3695_v48 = vpop.f32.mrb[28].mxu0 }
 0x862   :  { %v3625_v18 = vadd.f32 %v3624_v17, %v3541_v16  ;;  %v3626_v20 = vpop.f32.mrb[21].mxu1  ;;  %v3697_v21 = vpop.f32.mrb[29].mxu0  ;;  %v3696_v29 = vadd.f32 %v3695_v48, %v3549_v27  ;;  %v4060_v16 = vld [vmem:[#allocation9 + $0x80] sm:$0xff]  ;;  %v7247_v17 = vpack.c.bf16 %v4065_v3, %v4061_v5  ;;  %v7311_v48 = vpack.c.bf16 %v4067_v7, %v4063_v12  ;;  %v4097_v5 = vld [vmem:[#allocation9 + $0x1a8] sm:$0xff] }
 0x863   :  { %v3627_v25 = vadd.f32 %v3626_v20, %v3545_v30  ;;  %v3698_v26 = vadd.f32 %v3697_v21, %v3553_v39  ;;  %v4064_v30 = vld [vmem:[#allocation9 + $0xa0] sm:$0xff]  ;;  %v4066_v20 = vld [vmem:[#allocation9 + $0xb0] sm:$0xff]  ;;  %v4069_v21 = vld [vmem:[#allocation9 + $0xc8] sm:$0xff] }
 0x864   :  { %v5513_v23 = vmul.f32 -1.442695, %v3625_v18  ;;  %v4062_v18 = vld [vmem:[#allocation9 + $0x90] sm:$0xff]  ;;  %v7249_v39 = vpack.c.bf16 %v4064_v30, %v4060_v16  ;;  %v4068_v27 = vld [vmem:[#allocation9 + $0xc0] sm:$0xff] }
 0x865   :  { %v5514_v24 = vmul.f32 -1.442695, %v3627_v25  ;;  %v5515_v28 = vmul.f32 -1.442695, %v3698_v26  ;;  %v4073_v25 = vld [vmem:[#allocation9 + $0xe8] sm:$0xff]  ;;  %v7313_v26 = vpack.c.bf16 %v4066_v20, %v4062_v18  ;;  %v4092_v7 = vld [vmem:[#allocation9 + $0x180] sm:$0xff] }
 0x866   :  { %7953 = vpow2.f32 %v5513_v23  ;;  %v4071_v23 = vld [vmem:[#allocation9 + $0xd8] sm:$0xff]  ;;  %v4094_v30 = vld [vmem:[#allocation9 + $0x190] sm:$0xff]  ;;  %v4105_v18 = vld [vmem:[#allocation9 + $0x1e8] sm:$0xff] }
 0x867   :  { %7955 = vpow2.f32 %v5514_v24  ;;  %v4075_v24 = vld [vmem:[#allocation9 + $0xf8] sm:$0xff] }
 0x868   :  { %7957 = vpow2.f32 %v5515_v28  ;;  %v4072_v28 = vld [vmem:[#allocation9 + $0xe0] sm:$0xff]  ;;  %v4103_v20 = vld [vmem:[#allocation9 + $0x1d8] sm:$0xff] }
 0x869   :  { %7959 = vtanh.f32 %v3696_v29  ;;  %v7251_v29 = vpack.c.bf16 %v4073_v25, %v4069_v21  ;;  %v4107_v21 = vld [vmem:[#allocation9 + $0x1f8] sm:$0xff] }
 0x870   :  { %v7954_v31 = vpop.eup %7953 }
 0x871   :  { %v7956_v32 = vpop.eup %7955  ;;  %v3703_v34 = vadd.f32 1.0, %v7954_v31  ;;  %v7315_v31 = vpack.c.bf16 %v4075_v24, %v4071_v23  ;;  %v4100_v24 = vld [vmem:[#allocation9 + $0x1c0] sm:$0xff] }
 0x872   :  { %v3709_v36 = vadd.f32 1.0, %v7956_v32  ;;  %v7958_v53 = vpop.eup %7957  ;;  %v4070_v32 = vld [vmem:[#allocation9 + $0xd0] sm:$0xff] }
 0x873   :  { %7961 = vrcp.f32 %v3703_v34  ;;  %v7960_v40 = vpop.eup %7959  ;;  %v3716_v44 = vadd.f32 1.0, %v7958_v53  ;;  %v4074_v34 = vld [vmem:[#allocation9 + $0xf0] sm:$0xff]  ;;  %v4081_v53 = vld [vmem:[#allocation9 + $0x128] sm:$0xff] }
 0x874   :  { %7963 = vrcp.f32 %v3709_v36  ;;  %v4077_v36 = vld [vmem:[#allocation9 + $0x108] sm:$0xff] }
 0x875   :  { %7965 = vrcp.f32 %v3716_v44  ;;  %v4076_v44 = vld [vmem:[#allocation9 + $0x100] sm:$0xff]  ;;  %v7255_v46 = vpack.c.bf16 %v4081_v53, %v4077_v36  ;;  %v4115_v36 = vld [vmem:[#allocation9 + $0x238] sm:$0xff] }
 0x87d   :  { %v7962_v41 = vpop.eup %7961 }
 0x87e   :  { %v7964_v42 = vpop.eup %7963  ;;  %v3720_v43 = vmul.f32 %v7962_v41, %v7960_v40  ;;  %v4079_v40 = vld [vmem:[#allocation9 + $0x118] sm:$0xff] }
 0x87f   :  { %v3719_v49 = vmul.f32 %v7964_v42, %v8439_v0  ;;  %v7966_v52 = vpop.eup %7965  ;;  %v4083_v41 = vld [vmem:[#allocation9 + $0x138] sm:$0xff]  ;;  %v7253_v42 = vpack.c.bf16 %v4072_v28, %v4068_v27  ;;  %v7331_v27 = vpack.c.bf16 %v4107_v21, %v4103_v20  ;;  %v4102_v28 = vld [vmem:[#allocation9 + $0x1d0] sm:$0xff]  ;;  %v4132_v21 = vld [vmem:[#allocation9 + $0x2c0] sm:$0xff] }
 0x880   :  { %v7319_v47 = vpack.c.bf16 %v4083_v41, %v4079_v40  ;;  %v4108_v41 = vld [vmem:[#allocation9 + $0x200] sm:$0xff] }
 0x881   :  { %v8469_v45 = vadd.f32 %v3720_v43, %v3719_v49  ;;  %v7317_v43 = vpack.c.bf16 %v4074_v34, %v4070_v32  ;;  %v4080_v49 = vld [vmem:[#allocation9 + $0x120] sm:$0xff]  ;;  %v4113_v32 = vld [vmem:[#allocation9 + $0x228] sm:$0xff]  ;;  %v4111_v34 = vld [vmem:[#allocation9 + $0x218] sm:$0xff] }
 0x882   :  { %v7257_v57 = vpack.c.bf16 %v4080_v49, %v4076_v44  ;;  %v7335_v44 = vpack.c.bf16 %v4115_v36, %v4111_v34  ;;  %v4110_v49 = vld [vmem:[#allocation9 + $0x210] sm:$0xff]  ;;  %v4140_v36 = vld [vmem:[#allocation9 + $0x300] sm:$0xff] }
 0x883   :  { %7967 = vtanh.f32 %v8469_v45 }
 0x88d   :  { %v7968_v58 = vpop.eup %7967 }
 0x88e   :  { %v3723_v0 = vmul.f32 %v7968_v58, %v7966_v52  ;;  %v4089_v52 = vld [vmem:[#allocation9 + $0x168] sm:$0xff]  ;;  %v7321_v58 = vpack.c.bf16 %v4082_v50, %v4078_v8  ;;  %v4119_v50 = vld [vmem:[#allocation9 + $0x258] sm:$0xff] }
 0x88f   :  { %v7259_v60 = vpack.c.bf16 %v4089_v52, %v4085_v51  ;;  %v4121_v8 = vld [vmem:[#allocation9 + $0x268] sm:$0xff]  ;;  %v4123_v51 = vld [vmem:[#allocation9 + $0x278] sm:$0xff] }
 0x890   :  { %3939 = vmatmul.mubr.f32.vlgmr.msra.gmra.mrb[22].mxu1 %v3723_v0  ;;  %4010 = vmatmul.mubr.f32.vlgmr.msra.gmra.mrb[30].mxu0 %v3723_v0 }
 0x891   :  { %7242 = vmatpush1.bf16.msra.mxu1 %v7241_v11  ;;  %7306 = vmatpush1.bf16.msra.mxu0 %v7305_v59  ;;  %v4084_v11 = vld [vmem:[#allocation9 + $0x140] sm:$0xff] }
 0x892   :  { %4258 = vmatprep.mubr.f32.mxu1 %v3723_v0  ;;  %4329 = vmatprep.mubr.f32.mxu0 %v3723_v0  ;;  %v4088_v59 = vld [vmem:[#allocation9 + $0x160] sm:$0xff]  ;;  %v4086_v0 = vld [vmem:[#allocation9 + $0x150] sm:$0xff] }
 0x893   :  { %7244 = vmatprep.subr.bf16.mxu1 %v7243_v22  ;;  %7308 = vmatprep.subr.bf16.mxu0 %v7307_v1  ;;  %v4095_v22 = vld [vmem:[#allocation9 + $0x198] sm:$0xff]  ;;  %v7261_v3 = vpack.c.bf16 %v4088_v59, %v4084_v11  ;;  %v7325_v12 = vpack.c.bf16 %v4090_v62, %v4086_v0  ;;  %v7339_v11 = vpack.c.bf16 %v4123_v51, %v4119_v50  ;;  %v4118_v59 = vld [vmem:[#allocation9 + $0x250] sm:$0xff]  ;;  %v4129_v0 = vld [vmem:[#allocation9 + $0x2a8] sm:$0xff] }
 0x894   :  { %v4099_v1 = vld [vmem:[#allocation9 + $0x1b8] sm:$0xff]  ;;  %v4148_v51 = vld [vmem:[#allocation9 + $0x340] sm:$0xff] }
 0x895   :  { %7246 = vmatpush1.bf16.msra.mxu1 %v7245_v9  ;;  %7310 = vmatpush1.bf16.msra.mxu0 %v7309_v14  ;;  %v4096_v9 = vld [vmem:[#allocation9 + $0x1a0] sm:$0xff]  ;;  %v7263_v14 = vpack.c.bf16 %v4097_v5, %v4093_v63  ;;  %v7327_v16 = vpack.c.bf16 %v4099_v1, %v4095_v22  ;;  %v4127_v62 = vld [vmem:[#allocation9 + $0x298] sm:$0xff] }
 0x896   :  { %7248 = vmatprep.subr.bf16.mxu1 %v7247_v17  ;;  %7312 = vmatprep.subr.bf16.mxu0 %v7311_v48  ;;  %v4098_v17 = vld [vmem:[#allocation9 + $0x1b0] sm:$0xff]  ;;  %v4101_v48 = vld [vmem:[#allocation9 + $0x1c8] sm:$0xff]  ;;  %v7265_v25 = vpack.c.bf16 %v4096_v9, %v4092_v7  ;;  %v4131_v63 = vld [vmem:[#allocation9 + $0x2b8] sm:$0xff] }
 0x897   :  { %v7329_v23 = vpack.c.bf16 %v4098_v17, %v4094_v30  ;;  %v4124_v1 = vld [vmem:[#allocation9 + $0x280] sm:$0xff]  ;;  %v7343_v7 = vpack.c.bf16 %v4131_v63, %v4127_v62  ;;  %v4126_v9 = vld [vmem:[#allocation9 + $0x290] sm:$0xff]  ;;  %v4137_v30 = vld [vmem:[#allocation9 + $0x2e8] sm:$0xff] }
 0x898   :  { %v4135_v17 = vld [vmem:[#allocation9 + $0x2d8] sm:$0xff]  ;;  %v4156_v63 = vld [vmem:[#allocation9 + $0x380] sm:$0xff] }
 0x899   :  { %7250 = vmatpush1.bf16.msra.mxu1 %v7249_v39  ;;  %7314 = vmatpush1.bf16.msra.mxu0 %v7313_v26  ;;  %v4104_v39 = vld [vmem:[#allocation9 + $0x1e0] sm:$0xff]  ;;  %v7267_v26 = vpack.c.bf16 %v4105_v18, %v4101_v48  ;;  %v4139_v48 = vld [vmem:[#allocation9 + $0x2f8] sm:$0xff] }
 0x89a   :  { %7252 = vmatprep.subr.bf16.mxu1 %v7251_v29  ;;  %7316 = vmatprep.subr.bf16.mxu0 %v7315_v31  ;;  %v4106_v29 = vld [vmem:[#allocation9 + $0x1f0] sm:$0xff]  ;;  %v4109_v31 = vld [vmem:[#allocation9 + $0x208] sm:$0xff]  ;;  %v7269_v53 = vpack.c.bf16 %v4104_v39, %v4100_v24  ;;  %v7347_v24 = vpack.c.bf16 %v4139_v48, %v4135_v17  ;;  %v4164_v48 = vld [vmem:[#allocation9 + $0x3c0] sm:$0xff] }
 0x89b   :  { %v7333_v40 = vpack.c.bf16 %v4106_v29, %v4102_v28  ;;  %v4134_v39 = vld [vmem:[#allocation9 + $0x2d0] sm:$0xff]  ;;  %v4145_v28 = vld [vmem:[#allocation9 + $0x328] sm:$0xff]  ;;  %v4143_v29 = vld [vmem:[#allocation9 + $0x318] sm:$0xff] }
 0x89d   :  { %7254 = vmatpush1.bf16.msra.mxu1 %v7253_v42  ;;  %7318 = vmatpush1.bf16.msra.mxu0 %v7317_v43  ;;  %v4112_v42 = vld [vmem:[#allocation9 + $0x220] sm:$0xff]  ;;  %v7271_v43 = vpack.c.bf16 %v4113_v32, %v4109_v31  ;;  %v4147_v31 = vld [vmem:[#allocation9 + $0x338] sm:$0xff] }
 0x89e   :  { %7256 = vmatprep.subr.bf16.mxu1 %v7255_v46  ;;  %7320 = vmatprep.subr.bf16.mxu0 %v7319_v47  ;;  %v4114_v46 = vld [vmem:[#allocation9 + $0x230] sm:$0xff]  ;;  %v4117_v47 = vld [vmem:[#allocation9 + $0x248] sm:$0xff]  ;;  %v7273_v52 = vpack.c.bf16 %v4112_v42, %v4108_v41  ;;  %v7351_v41 = vpack.c.bf16 %v4147_v31, %v4143_v29  ;;  %v4363_v31 = vld [vmem:[#allocation9 + $0x418] sm:$0xff] }
 0x89f   :  { %v7337_v54 = vpack.c.bf16 %v4114_v46, %v4110_v49  ;;  %v4142_v42 = vld [vmem:[#allocation9 + $0x310] sm:$0xff]  ;;  %v4153_v49 = vld [vmem:[#allocation9 + $0x368] sm:$0xff]  ;;  %v4151_v46 = vld [vmem:[#allocation9 + $0x358] sm:$0xff] }
 0x8a0   :  { %v4365_v29 = vld [vmem:[#allocation9 + $0x428] sm:$0xff] }
 0x8a1   :  { %7258 = vmatpush1.bf16.msra.mxu1 %v7257_v57  ;;  %7322 = vmatpush1.bf16.msra.mxu0 %v7321_v58  ;;  %v4120_v57 = vld [vmem:[#allocation9 + $0x260] sm:$0xff]  ;;  %v7275_v58 = vpack.c.bf16 %v4121_v8, %v4117_v47  ;;  %v4155_v47 = vld [vmem:[#allocation9 + $0x378] sm:$0xff] }
 0x8a2   :  { %7260 = vmatprep.subr.bf16.mxu1 %v7259_v60  ;;  %7324 = vmatprep.subr.bf16.mxu0 %v7323_v61  ;;  %v4122_v60 = vld [vmem:[#allocation9 + $0x270] sm:$0xff]  ;;  %v4125_v61 = vld [vmem:[#allocation9 + $0x288] sm:$0xff]  ;;  %v7277_v5 = vpack.c.bf16 %v4120_v57, %v4116_v55  ;;  %v7355_v55 = vpack.c.bf16 %v4155_v47, %v4151_v46  ;;  %v4371_v46 = vld [vmem:[#allocation9 + $0x458] sm:$0xff] }
 0x8a3   :  { %v7341_v22 = vpack.c.bf16 %v4122_v60, %v4118_v59  ;;  %v4150_v57 = vld [vmem:[#allocation9 + $0x350] sm:$0xff]  ;;  %v4161_v59 = vld [vmem:[#allocation9 + $0x3a8] sm:$0xff]  ;;  %v4159_v60 = vld [vmem:[#allocation9 + $0x398] sm:$0xff] }
 0x8a5   :  { %7262 = vmatpush1.bf16.msra.mxu1 %v7261_v3  ;;  %7326 = vmatpush1.bf16.msra.mxu0 %v7325_v12  ;;  %v4128_v3 = vld [vmem:[#allocation9 + $0x2a0] sm:$0xff]  ;;  %v7279_v12 = vpack.c.bf16 %v4129_v0, %v4125_v61  ;;  %v4163_v61 = vld [vmem:[#allocation9 + $0x3b8] sm:$0xff] }
 0x8a6   :  { %7264 = vmatprep.subr.bf16.mxu1 %v7263_v14  ;;  %7328 = vmatprep.subr.bf16.mxu0 %v7327_v16  ;;  %v4130_v14 = vld [vmem:[#allocation9 + $0x2b0] sm:$0xff]  ;;  %v4133_v16 = vld [vmem:[#allocation9 + $0x2c8] sm:$0xff]  ;;  %v7281_v18 = vpack.c.bf16 %v4128_v3, %v4124_v1  ;;  %v7359_v1 = vpack.c.bf16 %v4163_v61, %v4159_v60  ;;  %v4379_v60 = vld [vmem:[#allocation9 + $0x498] sm:$0xff] }
 0x8a7   :  { %v7345_v20 = vpack.c.bf16 %v4130_v14, %v4126_v9  ;;  %v4158_v3 = vld [vmem:[#allocation9 + $0x390] sm:$0xff]  ;;  %v4169_v9 = vld [vmem:[#allocation9 + $0x3e8] sm:$0xff]  ;;  %v4167_v14 = vld [vmem:[#allocation9 + $0x3d8] sm:$0xff] }
 0x8a8   :  { %v4383_v61 = vld [vmem:[#allocation9 + $0x4b8] sm:$0xff] }
 0x8a9   :  { %7266 = vmatpush1.bf16.msra.mxu1 %v7265_v25  ;;  %7330 = vmatpush1.bf16.msra.mxu0 %v7329_v23  ;;  %v4136_v25 = vld [vmem:[#allocation9 + $0x2e0] sm:$0xff]  ;;  %v7283_v23 = vpack.c.bf16 %v4137_v30, %v4133_v16  ;;  %v4171_v16 = vld [vmem:[#allocation9 + $0x3f8] sm:$0xff] }
 0x8aa   :  { %7268 = vmatprep.subr.bf16.mxu1 %v7267_v26  ;;  %7332 = vmatprep.subr.bf16.mxu0 %v7331_v27  ;;  %v4138_v26 = vld [vmem:[#allocation9 + $0x2f0] sm:$0xff]  ;;  %v4141_v27 = vld [vmem:[#allocation9 + $0x308] sm:$0xff]  ;;  %v7285_v32 = vpack.c.bf16 %v4136_v25, %v4132_v21  ;;  %v4168_v21 = vld [vmem:[#allocation9 + $0x3e0] sm:$0xff] }
 0x8ab   :  { %v7349_v34 = vpack.c.bf16 %v4138_v26, %v4134_v39  ;;  %v4166_v25 = vld [vmem:[#allocation9 + $0x3d0] sm:$0xff]  ;;  %v8054_v26 = vld [vmem:[%s8568_s2] ss:$0 sm:$0xff] }
 0x8ad   :  { %7270 = vmatpush1.bf16.msra.mxu1 %v7269_v53  ;;  %7334 = vmatpush1.bf16.msra.mxu0 %v7333_v40  ;;  %v4144_v53 = vld [vmem:[#allocation9 + $0x320] sm:$0xff]  ;;  %v7287_v40 = vpack.c.bf16 %v4145_v28, %v4141_v27  ;;  %v210_v27 = vadd.f32 %v8054_v26, %v8303_v38  ;;  %v4361_v28 = vld [vmem:[#allocation9 + $0x408] sm:$0xff] }
 0x8ae   :  { %7272 = vmatprep.subr.bf16.mxu1 %v7271_v43  ;;  %7336 = vmatprep.subr.bf16.mxu0 %v7335_v44  ;;  %v4146_v43 = vld [vmem:[#allocation9 + $0x330] sm:$0xff]  ;;  %v4149_v44 = vld [vmem:[#allocation9 + $0x348] sm:$0xff]  ;;  %v7289_v8 = vpack.c.bf16 %v4144_v53, %v4140_v36  ;;  %v4360_v36 = vld [vmem:[#allocation9 + $0x400] sm:$0xff] }
 0x8af   :  { %v7353_v50 = vpack.c.bf16 %v4146_v43, %v4142_v42  ;;  %v4364_v53 = vld [vmem:[#allocation9 + $0x420] sm:$0xff]  ;;  %v4362_v42 = vld [vmem:[#allocation9 + $0x410] sm:$0xff]  ;;  %v4373_v38 = vld [vmem:[#allocation9 + $0x468] sm:$0xff] }
 0x8b0   :  { %v4366_v43 = vld [vmem:[#allocation9 + $0x430] sm:$0xff] }
 0x8b1   :  { %7274 = vmatpush1.bf16.msra.mxu1 %v7273_v52  ;;  %7338 = vmatpush1.bf16.msra.mxu0 %v7337_v54  ;;  %v4152_v52 = vld [vmem:[#allocation9 + $0x360] sm:$0xff]  ;;  %v7291_v54 = vpack.c.bf16 %v4153_v49, %v4149_v44  ;;  %v7433_v44 = vpack.c.bf16 %v4366_v43, %v4362_v42  ;;  %v4369_v49 = vld [vmem:[#allocation9 + $0x448] sm:$0xff]  ;;  %v4403_v43 = vld [vmem:[#allocation9 + $0x558] sm:$0xff] }
 0x8b2   :  { %7276 = vmatprep.subr.bf16.mxu1 %v7275_v58  ;;  %7340 = vmatprep.subr.bf16.mxu0 %v7339_v11  ;;  %v4154_v58 = vld [vmem:[#allocation9 + $0x370] sm:$0xff]  ;;  %v4157_v11 = vld [vmem:[#allocation9 + $0x388] sm:$0xff]  ;;  %v7293_v0 = vpack.c.bf16 %v4152_v52, %v4148_v51  ;;  %v7371_v47 = vpack.c.bf16 %v4373_v38, %v4369_v49  ;;  %v4372_v51 = vld [vmem:[#allocation9 + $0x460] sm:$0xff] }
 0x8b3   :  { %v7357_v62 = vpack.c.bf16 %v4154_v58, %v4150_v57  ;;  %v4374_v57 = vld [vmem:[#allocation9 + $0x470] sm:$0xff]  ;;  %v4377_v58 = vld [vmem:[#allocation9 + $0x488] sm:$0xff]  ;;  %v4407_v49 = vld [vmem:[#allocation9 + $0x578] sm:$0xff] }
 0x8b4   :  { %v4405_v42 = vld [vmem:[#allocation9 + $0x568] sm:$0xff]  ;;  %v4400_v38 = vld [vmem:[#allocation9 + $0x540] sm:$0xff] }
 0x8b5   :  { %7278 = vmatpush1.bf16.msra.mxu1 %v7277_v5  ;;  %7342 = vmatpush1.bf16.msra.mxu0 %v7341_v22  ;;  %v4160_v5 = vld [vmem:[#allocation9 + $0x3a0] sm:$0xff]  ;;  %v7295_v22 = vpack.c.bf16 %v4161_v59, %v4157_v11  ;;  %v4381_v59 = vld [vmem:[#allocation9 + $0x4a8] sm:$0xff] }
 0x8b6   :  { %7280 = vmatprep.subr.bf16.mxu1 %v7279_v12  ;;  %7344 = vmatprep.subr.bf16.mxu0 %v7343_v7  ;;  %v4162_v12 = vld [vmem:[#allocation9 + $0x3b0] sm:$0xff]  ;;  %v4165_v7 = vld [vmem:[#allocation9 + $0x3c8] sm:$0xff]  ;;  %v7297_v30 = vpack.c.bf16 %v4160_v5, %v4156_v63  ;;  %v4376_v63 = vld [vmem:[#allocation9 + $0x480] sm:$0xff] }
 0x8b7   :  { %v7361_v17 = vpack.c.bf16 %v4162_v12, %v4158_v3  ;;  %v4380_v5 = vld [vmem:[#allocation9 + $0x4a0] sm:$0xff]  ;;  %v4382_v3 = vld [vmem:[#allocation9 + $0x4b0] sm:$0xff]  ;;  %v4385_v12 = vld [vmem:[#allocation9 + $0x4c8] sm:$0xff] }
 0x8b9   :  { %7282 = vmatpush1.bf16.msra.mxu1 %v7281_v18  ;;  %7346 = vmatpush1.bf16.msra.mxu0 %v7345_v20  ;;  %v7299_v18 = vpack.c.bf16 %v4169_v9, %v4165_v7  ;;  %v7363_v20 = vpack.c.bf16 %v4171_v16, %v4167_v14  ;;  %v4389_v7 = vld [vmem:[#allocation9 + $0x4e8] sm:$0xff]  ;;  %v4387_v16 = vld [vmem:[#allocation9 + $0x4d8] sm:$0xff] }
 0x8ba   :  { %7284 = vmatprep.subr.bf16.mxu1 %v7283_v23  ;;  %7348 = vmatprep.subr.bf16.mxu0 %v7347_v24  ;;  %v4170_v23 = vld [vmem:[#allocation9 + $0x3f0] sm:$0xff]  ;;  %v7301_v24 = vpack.c.bf16 %v4168_v21, %v4164_v48  ;;  %v7379_v14 = vpack.c.bf16 %v4389_v7, %v4385_v12  ;;  %v4423_v7 = vld [vmem:[#allocation9 + $0x5f8] sm:$0xff] }
 0x8bb   :  { %v7365_v39 = vpack.c.bf16 %v4170_v23, %v4166_v25  ;;  %v4390_v21 = vld [vmem:[#allocation9 + $0x4f0] sm:$0xff]  ;;  %v4393_v23 = vld [vmem:[#allocation9 + $0x508] sm:$0xff] }
 0x8bd   :  { %7286 = vmatpush1.bf16.msra.mxu1 %v7285_v32  ;;  %7350 = vmatpush1.bf16.msra.mxu0 %v7349_v34  ;;  %v7367_v32 = vpack.c.bf16 %v4365_v29, %v4361_v28  ;;  %v4367_v34 = vld [vmem:[#allocation9 + $0x438] sm:$0xff]  ;;  %v4392_v29 = vld [vmem:[#allocation9 + $0x500] sm:$0xff] }
 0x8be   :  { %7288 = vmatprep.subr.bf16.mxu1 %v7287_v40  ;;  %7352 = vmatprep.subr.bf16.mxu0 %v7351_v41  ;;  %v7431_v40 = vpack.c.bf16 %v4367_v34, %v4363_v31  ;;  %v7369_v41 = vpack.c.bf16 %v4364_v53, %v4360_v36  ;;  %v4399_v28 = vld [vmem:[#allocation9 + $0x538] sm:$0xff]  ;;  %v4396_v31 = vld [vmem:[#allocation9 + $0x520] sm:$0xff]  ;;  %v4394_v34 = vld [vmem:[#allocation9 + $0x510] sm:$0xff] }
 0x8bf   :  { %v4398_v36 = vld [vmem:[#allocation9 + $0x530] sm:$0xff]  ;;  %v7385_v53 = vpack.c.bf16 %v4396_v31, %v4392_v29 }
 0x8c0   :  { %v4426_v29 = vld [vmem:[#allocation9 + $0x610] sm:$0xff] }
 0x8c1   :  { %7290 = vmatpush1.bf16.msra.mxu1 %v7289_v8  ;;  %7354 = vmatpush1.bf16.msra.mxu0 %v7353_v50  ;;  %v4375_v8 = vld [vmem:[#allocation9 + $0x478] sm:$0xff]  ;;  %v4368_v50 = vld [vmem:[#allocation9 + $0x440] sm:$0xff]  ;;  %v4430_v31 = vld [vmem:[#allocation9 + $0x630] sm:$0xff] }
 0x8c2   :  { %7292 = vmatprep.subr.bf16.mxu1 %v7291_v54  ;;  %7356 = vmatprep.subr.bf16.mxu0 %v7355_v55  ;;  %v7435_v52 = vpack.c.bf16 %v4375_v8, %v4371_v46  ;;  %v7373_v54 = vpack.c.bf16 %v4372_v51, %v4368_v50  ;;  %v4370_v55 = vld [vmem:[#allocation9 + $0x450] sm:$0xff]  ;;  %v4404_v46 = vld [vmem:[#allocation9 + $0x560] sm:$0xff] }
 0x8c3   :  { %v7437_v11 = vpack.c.bf16 %v4374_v57, %v4370_v55  ;;  %v7389_v8 = vpack.c.bf16 %v4404_v46, %v4400_v38  ;;  %v4402_v50 = vld [vmem:[#allocation9 + $0x550] sm:$0xff]  ;;  %v4413_v55 = vld [vmem:[#allocation9 + $0x5a8] sm:$0xff]  ;;  %v4411_v57 = vld [vmem:[#allocation9 + $0x598] sm:$0xff] }
 0x8c4   :  { %v4406_v51 = vld [vmem:[#allocation9 + $0x570] sm:$0xff] }
 0x8c5   :  { %7294 = vmatpush1.bf16.msra.mxu1 %v7293_v0  ;;  %7358 = vmatpush1.bf16.msra.mxu0 %v7357_v62  ;;  %v7375_v0 = vpack.c.bf16 %v4381_v59, %v4377_v58  ;;  %v7439_v62 = vpack.c.bf16 %v4383_v61, %v4379_v60  ;;  %v4408_v59 = vld [vmem:[#allocation9 + $0x580] sm:$0xff]  ;;  %v4434_v38 = vld [vmem:[#allocation9 + $0x650] sm:$0xff] }
 0x8c6   :  { %7296 = vmatprep.subr.bf16.mxu1 %v7295_v22  ;;  %7360 = vmatprep.subr.bf16.mxu0 %v7359_v1  ;;  %v4378_v22 = vld [vmem:[#allocation9 + $0x490] sm:$0xff]  ;;  %v7377_v1 = vpack.c.bf16 %v4380_v5, %v4376_v63  ;;  %v4412_v60 = vld [vmem:[#allocation9 + $0x5a0] sm:$0xff] }
 0x8c7   :  { %v7441_v9 = vpack.c.bf16 %v4382_v3, %v4378_v22  ;;  %v4414_v63 = vld [vmem:[#allocation9 + $0x5b0] sm:$0xff]  ;;  %v4417_v22 = vld [vmem:[#allocation9 + $0x5c8] sm:$0xff]  ;;  %v4419_v3 = vld [vmem:[#allocation9 + $0x5d8] sm:$0xff] }
 0x8c8   :  { %v4438_v46 = vld [vmem:[#allocation9 + $0x670] sm:$0xff] }
 0x8c9   :  { %7298 = vmatpush1.bf16.msra.mxu1 %v7297_v30  ;;  %7362 = vmatpush1.bf16.msra.mxu0 %v7361_v17  ;;  %v4391_v30 = vld [vmem:[#allocation9 + $0x4f8] sm:$0xff]  ;;  %v4384_v17 = vld [vmem:[#allocation9 + $0x4c0] sm:$0xff] }
 0x8ca   :  { %7300 = vmatprep.subr.bf16.mxu1 %v7299_v18  ;;  %7364 = vmatprep.subr.bf16.mxu0 %v7363_v20  ;;  %v7443_v48 = vpack.c.bf16 %v4391_v30, %v4387_v16  ;;  %v4388_v18 = vld [vmem:[#allocation9 + $0x4e0] sm:$0xff]  ;;  %v4386_v20 = vld [vmem:[#allocation9 + $0x4d0] sm:$0xff]  ;;  %v7459_v16 = vpack.c.bf16 %v4423_v7, %v4419_v3 }
 0x8cb   :  { %v7381_v25 = vpack.c.bf16 %v4388_v18, %v4384_v17  ;;  %v7445_v26 = vpack.c.bf16 %v4390_v21, %v4386_v20  ;;  %v4418_v17 = vld [vmem:[#allocation9 + $0x5d0] sm:$0xff]  ;;  %v4425_v20 = vld [vmem:[#allocation9 + $0x608] sm:$0xff]  ;;  %v4452_v3 = vld [vmem:[#allocation9 + $0x6e0] sm:$0xff] }
 0x8cc   :  { %v4429_v21 = vld [vmem:[#allocation9 + $0x628] sm:$0xff] }
 0x8cd   :  { %7302 = vmatpush1.bf16.msra.mxu1 %v7301_v24  ;;  %7366 = vmatpush1.bf16.msra.mxu0 %v7365_v39  ;;  %v4397_v24 = vld [vmem:[#allocation9 + $0x528] sm:$0xff]  ;;  %v4395_v39 = vld [vmem:[#allocation9 + $0x518] sm:$0xff] }
 0x8ce   :  { %7368 = vmatprep.subr.bf16.mxu1 %v7367_v32  ;;  %7432 = vmatprep.subr.bf16.mxu0 %v7431_v40  ;;  %v7447_v32 = vpack.c.bf16 %v4399_v28, %v4395_v39  ;;  %v7449_v40 = vpack.c.bf16 %v4398_v36, %v4394_v34  ;;  %v4424_v39 = vld [vmem:[#allocation9 + $0x600] sm:$0xff]  ;;  %v4433_v34 = vld [vmem:[#allocation9 + $0x648] sm:$0xff] }
 0x8cf   :  { %v4437_v36 = vld [vmem:[#allocation9 + $0x668] sm:$0xff] }
 0x8d0   :  { %4259 = vmatmul.mubr.f32.vlgmr.msra.gmra.mrb[24].mxu1 %v210_v27  ;;  %4330 = vmatmul.mubr.f32.vlgmr.msra.gmra.mrb[32].mxu0 %v210_v27  ;;  %v7383_v27 = vpack.c.bf16 %v4397_v24, %v4393_v23  ;;  %v7399_v23 = vpack.c.bf16 %v4429_v21, %v4425_v20  ;;  %v4431_v24 = vld [vmem:[#allocation9 + $0x638] sm:$0xff]  ;;  %v4456_v21 = vld [vmem:[#allocation9 + $0x700] sm:$0xff] }
 0x8d1   :  { %7370 = vmatpush1.bf16.msra.mxu1 %v7369_v41  ;;  %7434 = vmatpush1.bf16.msra.mxu0 %v7433_v44  ;;  %v4401_v41 = vld [vmem:[#allocation9 + $0x548] sm:$0xff]  ;;  %v4463_v20 = vld [vmem:[#allocation9 + $0x738] sm:$0xff] }
 0x8d2   :  { %7372 = vmatprep.subr.bf16.mxu1 %v7371_v47  ;;  %7436 = vmatprep.subr.bf16.mxu0 %v7435_v52  ;;  %v7387_v44 = vpack.c.bf16 %v4405_v42, %v4401_v41  ;;  %v7451_v47 = vpack.c.bf16 %v4407_v49, %v4403_v43  ;;  %v7453_v52 = vpack.c.bf16 %v4406_v51, %v4402_v50  ;;  %v4439_v41 = vld [vmem:[#allocation9 + $0x678] sm:$0xff]  ;;  %v4432_v42 = vld [vmem:[#allocation9 + $0x640] sm:$0xff]  ;;  %v4445_v50 = vld [vmem:[#allocation9 + $0x6a8] sm:$0xff] }
 0x8d3   :  { %v4436_v43 = vld [vmem:[#allocation9 + $0x660] sm:$0xff]  ;;  %v4443_v51 = vld [vmem:[#allocation9 + $0x698] sm:$0xff] }
 0x8d4   :  { %v7405_v49 = vpack.c.bf16 %v4436_v43, %v4432_v42  ;;  %v4466_v42 = vld [vmem:[#allocation9 + $0x750] sm:$0xff] }
 0x8d5   :  { %7374 = vmatpush1.bf16.msra.mxu1 %v7373_v54  ;;  %7438 = vmatpush1.bf16.msra.mxu0 %v7437_v11  ;;  %v4409_v54 = vld [vmem:[#allocation9 + $0x588] sm:$0xff]  ;;  %v4415_v11 = vld [vmem:[#allocation9 + $0x5b8] sm:$0xff]  ;;  %v4470_v43 = vld [vmem:[#allocation9 + $0x770] sm:$0xff] }
 0x8d6   :  { %7376 = vmatprep.subr.bf16.mxu1 %v7375_v0  ;;  %7440 = vmatprep.subr.bf16.mxu0 %v7439_v62  ;;  %v7391_v58 = vpack.c.bf16 %v4413_v55, %v4409_v54  ;;  %v7455_v61 = vpack.c.bf16 %v4415_v11, %v4411_v57  ;;  %v7393_v0 = vpack.c.bf16 %v4412_v60, %v4408_v59  ;;  %v4410_v62 = vld [vmem:[#allocation9 + $0x590] sm:$0xff]  ;;  %v4447_v54 = vld [vmem:[#allocation9 + $0x6b8] sm:$0xff]  ;;  %v4440_v55 = vld [vmem:[#allocation9 + $0x680] sm:$0xff] }
 0x8d7   :  { %v7457_v5 = vpack.c.bf16 %v4414_v63, %v4410_v62  ;;  %v4444_v57 = vld [vmem:[#allocation9 + $0x6a0] sm:$0xff]  ;;  %v4442_v59 = vld [vmem:[#allocation9 + $0x690] sm:$0xff]  ;;  %v4453_v62 = vld [vmem:[#allocation9 + $0x6e8] sm:$0xff] }
 0x8d8   :  { %v7409_v11 = vpack.c.bf16 %v4444_v57, %v4440_v55  ;;  %v4446_v60 = vld [vmem:[#allocation9 + $0x6b0] sm:$0xff]  ;;  %v4451_v63 = vld [vmem:[#allocation9 + $0x6d8] sm:$0xff] }
 0x8d9   :  { %7378 = vmatpush1.bf16.msra.mxu1 %v7377_v1  ;;  %7442 = vmatpush1.bf16.msra.mxu0 %v7441_v9  ;;  %v4421_v1 = vld [vmem:[#allocation9 + $0x5e8] sm:$0xff]  ;;  %v4416_v9 = vld [vmem:[#allocation9 + $0x5c0] sm:$0xff]  ;;  %v4478_v57 = vld [vmem:[#allocation9 + $0x7b0] sm:$0xff] }
 0x8da   :  { %7380 = vmatprep.subr.bf16.mxu1 %v7379_v14  ;;  %7444 = vmatprep.subr.bf16.mxu0 %v7443_v48  ;;  %v7395_v12 = vpack.c.bf16 %v4421_v1, %v4417_v22  ;;  %v4420_v14 = vld [vmem:[#allocation9 + $0x5e0] sm:$0xff]  ;;  %v4422_v48 = vld [vmem:[#allocation9 + $0x5f0] sm:$0xff]  ;;  %v4455_v22 = vld [vmem:[#allocation9 + $0x6f8] sm:$0xff] }
 0x8db   :  { %v7397_v30 = vpack.c.bf16 %v4420_v14, %v4416_v9  ;;  %v7461_v18 = vpack.c.bf16 %v4422_v48, %v4418_v17  ;;  %v4448_v1 = vld [vmem:[#allocation9 + $0x6c0] sm:$0xff]  ;;  %v4450_v9 = vld [vmem:[#allocation9 + $0x6d0] sm:$0xff]  ;;  %v4461_v17 = vld [vmem:[#allocation9 + $0x728] sm:$0xff] }
 0x8dc   :  { %v7413_v7 = vpack.c.bf16 %v4452_v3, %v4448_v1  ;;  %v4454_v14 = vld [vmem:[#allocation9 + $0x6f0] sm:$0xff]  ;;  %v4459_v48 = vld [vmem:[#allocation9 + $0x718] sm:$0xff] }
 0x8dd   :  { %7382 = vmatpush1.bf16.msra.mxu1 %v7381_v25  ;;  %7446 = vmatpush1.bf16.msra.mxu0 %v7445_v26  ;;  %v4427_v25 = vld [vmem:[#allocation9 + $0x618] sm:$0xff]  ;;  %v4428_v26 = vld [vmem:[#allocation9 + $0x620] sm:$0xff]  ;;  %v4486_v1 = vld [vmem:[#allocation9 + $0x7f0] sm:$0xff] }
 0x8de   :  { %7384 = vmatprep.subr.bf16.mxu1 %v7383_v27  ;;  %7448 = vmatprep.subr.bf16.mxu0 %v7447_v32  ;;  %v7463_v27 = vpack.c.bf16 %v4431_v24, %v4427_v25  ;;  %v7401_v28 = vpack.c.bf16 %v4428_v26, %v4424_v39  ;;  %v7465_v32 = vpack.c.bf16 %v4430_v31, %v4426_v29  ;;  %v4460_v25 = vld [vmem:[#allocation9 + $0x720] sm:$0xff]  ;;  %v4458_v39 = vld [vmem:[#allocation9 + $0x710] sm:$0xff]  ;;  %v4469_v29 = vld [vmem:[#allocation9 + $0x768] sm:$0xff] }
 0x8df   :  { %v7417_v24 = vpack.c.bf16 %v4460_v25, %v4456_v21  ;;  %v4462_v26 = vld [vmem:[#allocation9 + $0x730] sm:$0xff]  ;;  %v4467_v31 = vld [vmem:[#allocation9 + $0x758] sm:$0xff] }
 0x8e1   :  { %7386 = vmatpush1.bf16.msra.mxu1 %v7385_v53  ;;  %7450 = vmatpush1.bf16.msra.mxu0 %v7449_v40  ;;  %v4435_v53 = vld [vmem:[#allocation9 + $0x658] sm:$0xff]  ;;  %v7403_v40 = vpack.c.bf16 %v4437_v36, %v4433_v34  ;;  %v4464_v36 = vld [vmem:[#allocation9 + $0x740] sm:$0xff] }
 0x8e2   :  { %7388 = vmatprep.subr.bf16.mxu1 %v7387_v44  ;;  %7452 = vmatprep.subr.bf16.mxu0 %v7451_v47  ;;  %v7467_v44 = vpack.c.bf16 %v4439_v41, %v4435_v53  ;;  %v7469_v47 = vpack.c.bf16 %v4438_v46, %v4434_v38  ;;  %v4471_v34 = vld [vmem:[#allocation9 + $0x778] sm:$0xff]  ;;  %v4468_v53 = vld [vmem:[#allocation9 + $0x760] sm:$0xff]  ;;  %v4477_v38 = vld [vmem:[#allocation9 + $0x7a8] sm:$0xff] }
 0x8e3   :  { %v7421_v41 = vpack.c.bf16 %v4468_v53, %v4464_v36  ;;  %v4475_v46 = vld [vmem:[#allocation9 + $0x798] sm:$0xff] }
 0x8e5   :  { %7390 = vmatpush1.bf16.msra.mxu1 %v7389_v8  ;;  %7454 = vmatpush1.bf16.msra.mxu0 %v7453_v52  ;;  %v4441_v8 = vld [vmem:[#allocation9 + $0x688] sm:$0xff] }
 0x8e6   :  { %7392 = vmatprep.subr.bf16.mxu1 %v7391_v58  ;;  %7456 = vmatprep.subr.bf16.mxu0 %v7455_v61  ;;  %v7407_v52 = vpack.c.bf16 %v4445_v50, %v4441_v8  ;;  %v7471_v58 = vpack.c.bf16 %v4447_v54, %v4443_v51  ;;  %v7473_v61 = vpack.c.bf16 %v4446_v60, %v4442_v59  ;;  %v4472_v51 = vld [vmem:[#allocation9 + $0x780] sm:$0xff]  ;;  %v4474_v54 = vld [vmem:[#allocation9 + $0x790] sm:$0xff] }
 0x8e7   :  { %v7489_v59 = vpack.c.bf16 %v4478_v57, %v4474_v54 }
 0x8e9   :  { %7394 = vmatpush1.bf16.msra.mxu1 %v7393_v0  ;;  %7458 = vmatpush1.bf16.msra.mxu0 %v7457_v5  ;;  %v4449_v0 = vld [vmem:[#allocation9 + $0x6c8] sm:$0xff] }
 0x8ea   :  { %7396 = vmatprep.subr.bf16.mxu1 %v7395_v12  ;;  %7460 = vmatprep.subr.bf16.mxu0 %v7459_v16  ;;  %v7411_v5 = vpack.c.bf16 %v4453_v62, %v4449_v0  ;;  %v7475_v12 = vpack.c.bf16 %v4455_v22, %v4451_v63  ;;  %v7477_v16 = vpack.c.bf16 %v4454_v14, %v4450_v9  ;;  %v4487_v0 = vld [vmem:[#allocation9 + $0x7f8] sm:$0xff]  ;;  %v4480_v62 = vld [vmem:[#allocation9 + $0x7c0] sm:$0xff]  ;;  %v4482_v22 = vld [vmem:[#allocation9 + $0x7d0] sm:$0xff] }
 0x8eb   :  { %v4683_v9 = vld [vmem:[#allocation9 + $0x18] sm:$0xff]  ;;  %v7493_v14 = vpack.c.bf16 %v4486_v1, %v4482_v22 }
 0x8ed   :  { %7398 = vmatpush1.bf16.msra.mxu1 %v7397_v30  ;;  %7462 = vmatpush1.bf16.msra.mxu0 %v7461_v18  ;;  %v4457_v30 = vld [vmem:[#allocation9 + $0x708] sm:$0xff] }
 0x8ee   :  { %7400 = vmatprep.subr.bf16.mxu1 %v7399_v23  ;;  %7464 = vmatprep.subr.bf16.mxu0 %v7463_v27  ;;  %v7415_v18 = vpack.c.bf16 %v4461_v17, %v4457_v30  ;;  %v7479_v23 = vpack.c.bf16 %v4463_v20, %v4459_v48  ;;  %v7481_v27 = vpack.c.bf16 %v4462_v26, %v4458_v39  ;;  %v4687_v30 = vld [vmem:[#allocation9 + $0x38] sm:$0xff]  ;;  %v5516_v48 = vld [vmem:[%s8570_s4 + $0x4] sm:$0xf] }
 0x8ef   :  { %v7559_v17 = vpack.c.bf16 %v4687_v30, %v4683_v9  ;;  %v3861_v20 = vrot.slane %v5516_v48, %v8310_v4 }
 0x8f1   :  { %7402 = vmatpush1.bf16.msra.mxu1 %v7401_v28  ;;  %7466 = vmatpush1.bf16.msra.mxu0 %v7465_v32  ;;  %v4465_v28 = vld [vmem:[#allocation9 + $0x748] sm:$0xff] }
 0x8f2   :  { %7404 = vmatprep.subr.bf16.mxu1 %v7403_v40  ;;  %7468 = vmatprep.subr.bf16.mxu0 %v7467_v44  ;;  %v7419_v32 = vpack.c.bf16 %v4469_v29, %v4465_v28  ;;  %v7483_v40 = vpack.c.bf16 %v4471_v34, %v4467_v31  ;;  %v4473_v44 = vld [vmem:[#allocation9 + $0x788] sm:$0xff]  ;;  %v3869_v29 = vrot.slane %v5516_v48, %v8314_v10 }
 0x8f3   :  { %v7423_v8 = vpack.c.bf16 %v4477_v38, %v4473_v44 }
 0x8f5   :  { %7406 = vmatpush1.bf16.msra.mxu1 %v7405_v49  ;;  %7470 = vmatpush1.bf16.msra.mxu0 %v7469_v47  ;;  %v7485_v49 = vpack.c.bf16 %v4470_v43, %v4466_v42  ;;  %v4479_v47 = vld [vmem:[#allocation9 + $0x7b8] sm:$0xff] }
 0x8f6   :  { %7408 = vmatprep.subr.bf16.mxu1 %v7407_v52  ;;  %7472 = vmatprep.subr.bf16.mxu0 %v7471_v58  ;;  %v7487_v50 = vpack.c.bf16 %v4479_v47, %v4475_v46  ;;  %v4476_v52 = vld [vmem:[#allocation9 + $0x7a0] sm:$0xff]  ;;  %v4481_v58 = vld [vmem:[#allocation9 + $0x7c8] sm:$0xff] }
 0x8f7   :  { %v7425_v55 = vpack.c.bf16 %v4476_v52, %v4472_v51 }
 0x8f9   :  { %7410 = vmatpush1.bf16.msra.mxu1 %v7409_v11  ;;  %7474 = vmatpush1.bf16.msra.mxu0 %v7473_v61  ;;  %v4485_v11 = vld [vmem:[#allocation9 + $0x7e8] sm:$0xff]  ;;  %v4483_v61 = vld [vmem:[#allocation9 + $0x7d8] sm:$0xff] }
 0x8fa   :  { %7412 = vmatprep.subr.bf16.mxu1 %v7411_v5  ;;  %7476 = vmatprep.subr.bf16.mxu0 %v7475_v12  ;;  %v7427_v60 = vpack.c.bf16 %v4485_v11, %v4481_v58  ;;  %v7491_v63 = vpack.c.bf16 %v4487_v0, %v4483_v61  ;;  %v4484_v5 = vld [vmem:[#allocation9 + $0x7e0] sm:$0xff]  ;;  %v4681_v12 = vld [vmem:[#allocation9 + $0x8] sm:$0xff] }
 0x8fb   :  { %v7429_v3 = vpack.c.bf16 %v4484_v5, %v4480_v62 }
 0x8fd   :  { %7414 = vmatpush1.bf16.msra.mxu1 %v7413_v7  ;;  %7478 = vmatpush1.bf16.msra.mxu0 %v7477_v16  ;;  %v4685_v7 = vld [vmem:[#allocation9 + $0x28] sm:$0xff] }
 0x8fe   :  { %7416 = vmatprep.subr.bf16.mxu1 %v7415_v18  ;;  %7480 = vmatprep.subr.bf16.mxu0 %v7479_v23  ;;  %v7495_v16 = vpack.c.bf16 %v4685_v7, %v4681_v12  ;;  %v3857_v18 = vrot.slane %v5516_v48, %v8305_v2 }
 0x901   :  { %7418 = vmatpush1.bf16.msra.mxu1 %v7417_v24  ;;  %7482 = vmatpush1.bf16.msra.mxu0 %v7481_v27 }
 0x902   :  { %7420 = vmatprep.subr.bf16.mxu1 %v7419_v32  ;;  %7484 = vmatprep.subr.bf16.mxu0 %v7483_v40  ;;  %v3865_v32 = vrot.slane %v5516_v48, %v8317_v19 }
 0x905   :  { %7422 = vmatpush1.bf16.msra.mxu1 %v7421_v41  ;;  %7486 = vmatpush1.bf16.msra.mxu0 %v7485_v49 }
 0x906   :  { %7424 = vmatprep.subr.bf16.mxu1 %v7423_v8  ;;  %7488 = vmatprep.subr.bf16.mxu0 %v7487_v50 }
 0x909   :  { %7426 = vmatpush1.bf16.msra.mxu1 %v7425_v55  ;;  %7490 = vmatpush1.bf16.msra.mxu0 %v7489_v59  ;;  %v4172_v55 = vld [vmem:[%s8570_s4] sm:$0xf] }
 0x90a   :  { %7428 = vmatprep.subr.bf16.mxu1 %v7427_v60  ;;  %7492 = vmatprep.subr.bf16.mxu0 %v7491_v63  ;;  %v4177_v57 = vrot.slane %v4172_v55, %v8305_v2  ;;  %v4189_v5 = vrot.slane %v4172_v55, %v8314_v10  ;;  %v4185_v1 = vrot.slane %v4172_v55, %v8317_v19 }
 0x90d   :  { %7430 = vmatpush1.bf16.msra.mxu1 %v7429_v3  ;;  %7494 = vmatpush1.bf16.msra.mxu0 %v7493_v14 }
 0x90e   :  { %7496 = vmatprep.subr.bf16.mxu1 %v7495_v16  ;;  %7560 = vmatprep.subr.bf16.mxu0 %v7559_v17 }
 0x963   :  { %v3940_v21 = vpop.f32.mrb[22].mxu1  ;;  %v4011_v25 = vpop.f32.mrb[30].mxu0 }
 0x964   :  { %v3941_v23 = vadd.f32 %v3940_v21, %v3857_v18  ;;  %v3942_v24 = vpop.f32.mrb[23].mxu1  ;;  %v4013_v39 = vpop.f32.mrb[31].mxu0  ;;  %v4012_v36 = vadd.f32 %v4011_v25, %v3865_v32  ;;  %v4691_v32 = vld [vmem:[#allocation9 + $0x58] sm:$0xff] }
 0x965   :  { %v3943_v26 = vadd.f32 %v3942_v24, %v3861_v20  ;;  %v4014_v31 = vadd.f32 %v4013_v39, %v3869_v29  ;;  %v4680_v24 = vld [vmem:[#allocation9] sm:$0xff] }
 0x966   :  { %v5517_v27 = vmul.f32 -1.442695, %v3941_v23  ;;  %v4684_v39 = vld [vmem:[#allocation9 + $0x20] sm:$0xff] }
 0x967   :  { %v5518_v28 = vmul.f32 -1.442695, %v3943_v26  ;;  %v5519_v34 = vmul.f32 -1.442695, %v4014_v31  ;;  %v4682_v26 = vld [vmem:[#allocation9 + $0x10] sm:$0xff]  ;;  %v4693_v31 = vld [vmem:[#allocation9 + $0x68] sm:$0xff] }
 0x968   :  { %7969 = vpow2.f32 %v5517_v27  ;;  %v4686_v27 = vld [vmem:[#allocation9 + $0x30] sm:$0xff] }
 0x969   :  { %7971 = vpow2.f32 %v5518_v28  ;;  %v4689_v28 = vld [vmem:[#allocation9 + $0x48] sm:$0xff] }
 0x96a   :  { %7973 = vpow2.f32 %v5519_v34  ;;  %v4695_v34 = vld [vmem:[#allocation9 + $0x78] sm:$0xff] }
 0x96b   :  { %7975 = vtanh.f32 %v4012_v36 }
 0x972   :  { %v7970_v53 = vpop.eup %7969 }
 0x973   :  { %v7972_v40 = vpop.eup %7971  ;;  %v4019_v41 = vadd.f32 1.0, %v7970_v53  ;;  %v7497_v53 = vpack.c.bf16 %v4684_v39, %v4680_v24 }
 0x974   :  { %v4025_v42 = vadd.f32 1.0, %v7972_v40  ;;  %v7974_v43 = vpop.eup %7973  ;;  %v7561_v40 = vpack.c.bf16 %v4686_v27, %v4682_v26  ;;  %v4714_v26 = vld [vmem:[#allocation9 + $0x110] sm:$0xff] }
 0x975   :  { %7977 = vrcp.f32 %v4019_v41  ;;  %v7976_v44 = vpop.eup %7975  ;;  %v4032_v47 = vadd.f32 1.0, %v7974_v43  ;;  %v4688_v41 = vld [vmem:[#allocation9 + $0x40] sm:$0xff]  ;;  %v4690_v43 = vld [vmem:[#allocation9 + $0x50] sm:$0xff] }
 0x976   :  { %7979 = vrcp.f32 %v4025_v42  ;;  %v4692_v42 = vld [vmem:[#allocation9 + $0x60] sm:$0xff]  ;;  %v4718_v27 = vld [vmem:[#allocation9 + $0x130] sm:$0xff] }
 0x977   :  { %7981 = vrcp.f32 %v4032_v47  ;;  %v4701_v47 = vld [vmem:[#allocation9 + $0xa8] sm:$0xff] }
 0x97f   :  { %v7978_v49 = vpop.eup %7977 }
 0x980   :  { %v7980_v38 = vpop.eup %7979  ;;  %v4036_v46 = vmul.f32 %v7978_v49, %v7976_v44  ;;  %v4694_v44 = vld [vmem:[#allocation9 + $0x70] sm:$0xff]  ;;  %v4697_v49 = vld [vmem:[#allocation9 + $0x88] sm:$0xff] }
 0x981   :  { %v4035_v8 = vmul.f32 %v7980_v38, %v8454_v6  ;;  %v7982_v51 = vpop.eup %7981  ;;  %v4181_v6 = vrot.slane %v4172_v55, %v8310_v4  ;;  %v7499_v38 = vpack.c.bf16 %v4693_v31, %v4689_v28  ;;  %v7565_v55 = vpack.c.bf16 %v4694_v44, %v4690_v43  ;;  %v4721_v28 = vld [vmem:[#allocation9 + $0x148] sm:$0xff]  ;;  %v4723_v31 = vld [vmem:[#allocation9 + $0x158] sm:$0xff]  ;;  %v4726_v43 = vld [vmem:[#allocation9 + $0x170] sm:$0xff] }
 0x982   :  { %v4729_v44 = vld [vmem:[#allocation9 + $0x188] sm:$0xff] }
 0x983   :  { %v8484_v50 = vadd.f32 %v4036_v46, %v4035_v8  ;;  %v7563_v46 = vpack.c.bf16 %v4695_v34, %v4691_v32  ;;  %v4699_v8 = vld [vmem:[#allocation9 + $0x98] sm:$0xff] }
 0x984   :  { %v4727_v32 = vld [vmem:[#allocation9 + $0x178] sm:$0xff] }
 0x985   :  { %7983 = vtanh.f32 %v8484_v50 }
 0x98f   :  { %v7984_v52 = vpop.eup %7983 }
 0x990   :  { %v8487_v54 = vmul.f32 %v7984_v52, %v7982_v51  ;;  %v4703_v51 = vld [vmem:[#allocation9 + $0xb8] sm:$0xff]  ;;  %v7501_v52 = vpack.c.bf16 %v4692_v42, %v4688_v41  ;;  %v7579_v42 = vpack.c.bf16 %v4727_v32, %v4723_v31  ;;  %v4752_v32 = vld [vmem:[#allocation9 + $0x240] sm:$0xff] }
 0x992   :  { %4574 = vmatprep.mubr.f32.mxu1 %v8487_v54  ;;  %4645 = vmatprep.mubr.f32.mxu0 %v8487_v54 }
 0x9a3   :  { %v4260_v58 = vpop.f32.mrb[24].mxu1  ;;  %v4331_v11 = vpop.f32.mrb[32].mxu0 }
 0x9a4   :  { %v4261_v59 = vadd.f32 %v4260_v58, %v4177_v57  ;;  %v4262_v60 = vpop.f32.mrb[25].mxu1  ;;  %v4333_v61 = vpop.f32.mrb[33].mxu0  ;;  %v4332_v12 = vadd.f32 %v4331_v11, %v4185_v1  ;;  %v4696_v57 = vld [vmem:[#allocation9 + $0x80] sm:$0xff]  ;;  %v7503_v58 = vpack.c.bf16 %v4701_v47, %v4697_v49  ;;  %v7567_v11 = vpack.c.bf16 %v4703_v51, %v4699_v8  ;;  %v4733_v49 = vld [vmem:[#allocation9 + $0x1a8] sm:$0xff] }
 0x9a5   :  { %v4263_v0 = vadd.f32 %v4262_v60, %v4181_v6  ;;  %v4334_v22 = vadd.f32 %v4333_v61, %v4189_v5  ;;  %v4700_v6 = vld [vmem:[#allocation9 + $0xa0] sm:$0xff]  ;;  %v4702_v60 = vld [vmem:[#allocation9 + $0xb0] sm:$0xff]  ;;  %v4705_v61 = vld [vmem:[#allocation9 + $0xc8] sm:$0xff] }
 0x9a6   :  { %v5520_v62 = vmul.f32 -1.442695, %v4261_v59  ;;  %v4698_v59 = vld [vmem:[#allocation9 + $0x90] sm:$0xff]  ;;  %v7505_v5 = vpack.c.bf16 %v4700_v6, %v4696_v57  ;;  %v4704_v1 = vld [vmem:[#allocation9 + $0xc0] sm:$0xff] }
 0x9a7   :  { %v5521_v63 = vmul.f32 -1.442695, %v4263_v0  ;;  %v5522_v3 = vmul.f32 -1.442695, %v4334_v22  ;;  %v4709_v0 = vld [vmem:[#allocation9 + $0xe8] sm:$0xff]  ;;  %v7569_v22 = vpack.c.bf16 %v4702_v60, %v4698_v59  ;;  %v4728_v51 = vld [vmem:[#allocation9 + $0x180] sm:$0xff] }
 0x9a8   :  { %7985 = vpow2.f32 %v5520_v62  ;;  %v4707_v62 = vld [vmem:[#allocation9 + $0xd8] sm:$0xff]  ;;  %v4730_v6 = vld [vmem:[#allocation9 + $0x190] sm:$0xff]  ;;  %v4741_v59 = vld [vmem:[#allocation9 + $0x1e8] sm:$0xff] }
 0x9a9   :  { %7987 = vpow2.f32 %v5521_v63  ;;  %v4711_v63 = vld [vmem:[#allocation9 + $0xf8] sm:$0xff] }
 0x9aa   :  { %7989 = vpow2.f32 %v5522_v3  ;;  %v4708_v3 = vld [vmem:[#allocation9 + $0xe0] sm:$0xff]  ;;  %v4739_v60 = vld [vmem:[#allocation9 + $0x1d8] sm:$0xff] }
 0x9ab   :  { %7991 = vtanh.f32 %v4332_v12  ;;  %v7507_v12 = vpack.c.bf16 %v4709_v0, %v4705_v61  ;;  %v4743_v61 = vld [vmem:[#allocation9 + $0x1f8] sm:$0xff] }
 0x9b2   :  { %v7986_v7 = vpop.eup %7985 }
 0x9b3   :  { %v7988_v9 = vpop.eup %7987  ;;  %v4339_v14 = vadd.f32 1.0, %v7986_v7  ;;  %v7571_v7 = vpack.c.bf16 %v4711_v63, %v4707_v62  ;;  %v4736_v63 = vld [vmem:[#allocation9 + $0x1c0] sm:$0xff] }
 0x9b4   :  { %v4345_v16 = vadd.f32 1.0, %v7988_v9  ;;  %v7990_v30 = vpop.eup %7989  ;;  %v4706_v9 = vld [vmem:[#allocation9 + $0xd0] sm:$0xff] }
 0x9b5   :  { %7993 = vrcp.f32 %v4339_v14  ;;  %v7992_v17 = vpop.eup %7991  ;;  %v4352_v21 = vadd.f32 1.0, %v7990_v30  ;;  %v4710_v14 = vld [vmem:[#allocation9 + $0xf0] sm:$0xff]  ;;  %v4717_v30 = vld [vmem:[#allocation9 + $0x128] sm:$0xff] }
 0x9b6   :  { %7995 = vrcp.f32 %v4345_v16  ;;  %v4713_v16 = vld [vmem:[#allocation9 + $0x108] sm:$0xff] }
 0x9b7   :  { %7997 = vrcp.f32 %v4352_v21  ;;  %v4712_v21 = vld [vmem:[#allocation9 + $0x100] sm:$0xff]  ;;  %v7511_v24 = vpack.c.bf16 %v4717_v30, %v4713_v16  ;;  %v4751_v16 = vld [vmem:[#allocation9 + $0x238] sm:$0xff] }
 0x9bf   :  { %v7994_v48 = vpop.eup %7993 }
 0x9c0   :  { %v7996_v18 = vpop.eup %7995  ;;  %v4356_v20 = vmul.f32 %v7994_v48, %v7992_v17  ;;  %v4715_v17 = vld [vmem:[#allocation9 + $0x118] sm:$0xff] }
 0x9c1   :  { %v4355_v25 = vmul.f32 %v7996_v18, %v8469_v45  ;;  %v7998_v29 = vpop.eup %7997  ;;  %v4719_v48 = vld [vmem:[#allocation9 + $0x138] sm:$0xff]  ;;  %v7509_v18 = vpack.c.bf16 %v4708_v3, %v4704_v1  ;;  %v7587_v1 = vpack.c.bf16 %v4743_v61, %v4739_v60  ;;  %v4738_v3 = vld [vmem:[#allocation9 + $0x1d0] sm:$0xff]  ;;  %v4768_v61 = vld [vmem:[#allocation9 + $0x2c0] sm:$0xff] }
 0x9c2   :  { %v7575_v39 = vpack.c.bf16 %v4719_v48, %v4715_v17  ;;  %v4744_v48 = vld [vmem:[#allocation9 + $0x200] sm:$0xff] }
 0x9c3   :  { %v8499_v23 = vadd.f32 %v4356_v20, %v4355_v25  ;;  %v7573_v20 = vpack.c.bf16 %v4710_v14, %v4706_v9  ;;  %v4716_v25 = vld [vmem:[#allocation9 + $0x120] sm:$0xff]  ;;  %v4749_v9 = vld [vmem:[#allocation9 + $0x228] sm:$0xff]  ;;  %v4747_v14 = vld [vmem:[#allocation9 + $0x218] sm:$0xff] }
 0x9c4   :  { %v7513_v34 = vpack.c.bf16 %v4716_v25, %v4712_v21  ;;  %v7591_v21 = vpack.c.bf16 %v4751_v16, %v4747_v14  ;;  %v4746_v25 = vld [vmem:[#allocation9 + $0x210] sm:$0xff]  ;;  %v4776_v16 = vld [vmem:[#allocation9 + $0x300] sm:$0xff] }
 0x9c5   :  { %7999 = vtanh.f32 %v8499_v23 }
 0x9cf   :  { %v8000_v36 = vpop.eup %7999 }
 0x9d0   :  { %v4359_v45 = vmul.f32 %v8000_v36, %v7998_v29  ;;  %v4725_v29 = vld [vmem:[#allocation9 + $0x168] sm:$0xff]  ;;  %v7577_v36 = vpack.c.bf16 %v4718_v27, %v4714_v26  ;;  %v4755_v27 = vld [vmem:[#allocation9 + $0x258] sm:$0xff] }
 0x9d1   :  { %v7515_v41 = vpack.c.bf16 %v4725_v29, %v4721_v28  ;;  %v4757_v26 = vld [vmem:[#allocation9 + $0x268] sm:$0xff]  ;;  %v4759_v28 = vld [vmem:[#allocation9 + $0x278] sm:$0xff] }
 0x9d2   :  { %4575 = vmatmul.mubr.f32.vlgmr.msra.gmra.mrb[26].mxu1 %v4359_v45  ;;  %4646 = vmatmul.mubr.f32.vlgmr.msra.gmra.mrb[34].mxu0 %v4359_v45 }
 0x9d3   :  { %7498 = vmatpush1.bf16.msra.mxu1 %v7497_v53  ;;  %7562 = vmatpush1.bf16.msra.mxu0 %v7561_v40  ;;  %v4720_v53 = vld [vmem:[#allocation9 + $0x140] sm:$0xff] }
 0x9d4   :  { %4894 = vmatprep.mubr.f32.mxu1 %v4359_v45  ;;  %4965 = vmatprep.mubr.f32.mxu0 %v4359_v45  ;;  %v4724_v40 = vld [vmem:[#allocation9 + $0x160] sm:$0xff]  ;;  %v4722_v45 = vld [vmem:[#allocation9 + $0x150] sm:$0xff] }
 0x9d5   :  { %7500 = vmatprep.subr.bf16.mxu1 %v7499_v38  ;;  %7564 = vmatprep.subr.bf16.mxu0 %v7563_v46  ;;  %v4731_v38 = vld [vmem:[#allocation9 + $0x198] sm:$0xff]  ;;  %v7517_v47 = vpack.c.bf16 %v4724_v40, %v4720_v53  ;;  %v7581_v8 = vpack.c.bf16 %v4726_v43, %v4722_v45  ;;  %v7595_v53 = vpack.c.bf16 %v4759_v28, %v4755_v27  ;;  %v4754_v40 = vld [vmem:[#allocation9 + $0x250] sm:$0xff]  ;;  %v4765_v45 = vld [vmem:[#allocation9 + $0x2a8] sm:$0xff] }
 0x9d6   :  { %v4735_v46 = vld [vmem:[#allocation9 + $0x1b8] sm:$0xff]  ;;  %v4784_v28 = vld [vmem:[#allocation9 + $0x340] sm:$0xff] }
 0x9d7   :  { %7502 = vmatpush1.bf16.msra.mxu1 %v7501_v52  ;;  %7566 = vmatpush1.bf16.msra.mxu0 %v7565_v55  ;;  %v4732_v52 = vld [vmem:[#allocation9 + $0x1a0] sm:$0xff]  ;;  %v7519_v55 = vpack.c.bf16 %v4733_v49, %v4729_v44  ;;  %v7583_v57 = vpack.c.bf16 %v4735_v46, %v4731_v38  ;;  %v4763_v43 = vld [vmem:[#allocation9 + $0x298] sm:$0xff] }
 0x9d8   :  { %7504 = vmatprep.subr.bf16.mxu1 %v7503_v58  ;;  %7568 = vmatprep.subr.bf16.mxu0 %v7567_v11  ;;  %v4734_v58 = vld [vmem:[#allocation9 + $0x1b0] sm:$0xff]  ;;  %v4737_v11 = vld [vmem:[#allocation9 + $0x1c8] sm:$0xff]  ;;  %v7521_v0 = vpack.c.bf16 %v4732_v52, %v4728_v51  ;;  %v4767_v44 = vld [vmem:[#allocation9 + $0x2b8] sm:$0xff] }
 0x9d9   :  { %v7585_v62 = vpack.c.bf16 %v4734_v58, %v4730_v6  ;;  %v4760_v46 = vld [vmem:[#allocation9 + $0x280] sm:$0xff]  ;;  %v7599_v51 = vpack.c.bf16 %v4767_v44, %v4763_v43  ;;  %v4762_v52 = vld [vmem:[#allocation9 + $0x290] sm:$0xff]  ;;  %v4773_v6 = vld [vmem:[#allocation9 + $0x2e8] sm:$0xff] }
 0x9da   :  { %v4771_v58 = vld [vmem:[#allocation9 + $0x2d8] sm:$0xff]  ;;  %v4792_v44 = vld [vmem:[#allocation9 + $0x380] sm:$0xff] }
 0x9db   :  { %7506 = vmatpush1.bf16.msra.mxu1 %v7505_v5  ;;  %7570 = vmatpush1.bf16.msra.mxu0 %v7569_v22  ;;  %v4740_v5 = vld [vmem:[#allocation9 + $0x1e0] sm:$0xff]  ;;  %v7523_v22 = vpack.c.bf16 %v4741_v59, %v4737_v11  ;;  %v4775_v11 = vld [vmem:[#allocation9 + $0x2f8] sm:$0xff] }
 0x9dc   :  { %7508 = vmatprep.subr.bf16.mxu1 %v7507_v12  ;;  %7572 = vmatprep.subr.bf16.mxu0 %v7571_v7  ;;  %v4742_v12 = vld [vmem:[#allocation9 + $0x1f0] sm:$0xff]  ;;  %v4745_v7 = vld [vmem:[#allocation9 + $0x208] sm:$0xff]  ;;  %v7525_v30 = vpack.c.bf16 %v4740_v5, %v4736_v63  ;;  %v7603_v63 = vpack.c.bf16 %v4775_v11, %v4771_v58  ;;  %v4800_v11 = vld [vmem:[#allocation9 + $0x3c0] sm:$0xff] }
 0x9dd   :  { %v7589_v17 = vpack.c.bf16 %v4742_v12, %v4738_v3  ;;  %v4770_v5 = vld [vmem:[#allocation9 + $0x2d0] sm:$0xff]  ;;  %v4781_v3 = vld [vmem:[#allocation9 + $0x328] sm:$0xff]  ;;  %v4779_v12 = vld [vmem:[#allocation9 + $0x318] sm:$0xff] }
 0x9df   :  { %7510 = vmatpush1.bf16.msra.mxu1 %v7509_v18  ;;  %7574 = vmatpush1.bf16.msra.mxu0 %v7573_v20  ;;  %v4748_v18 = vld [vmem:[#allocation9 + $0x220] sm:$0xff]  ;;  %v7527_v20 = vpack.c.bf16 %v4749_v9, %v4745_v7  ;;  %v4783_v7 = vld [vmem:[#allocation9 + $0x338] sm:$0xff] }
 0x9e0   :  { %7512 = vmatprep.subr.bf16.mxu1 %v7511_v24  ;;  %7576 = vmatprep.subr.bf16.mxu0 %v7575_v39  ;;  %v4750_v24 = vld [vmem:[#allocation9 + $0x230] sm:$0xff]  ;;  %v4753_v39 = vld [vmem:[#allocation9 + $0x248] sm:$0xff]  ;;  %v7529_v29 = vpack.c.bf16 %v4748_v18, %v4744_v48  ;;  %v7607_v48 = vpack.c.bf16 %v4783_v7, %v4779_v12  ;;  %v4996_v7 = vld [vmem:[#allocation9 + $0x400] sm:$0xff] }
 0x9e1   :  { %v7593_v31 = vpack.c.bf16 %v4750_v24, %v4746_v25  ;;  %v4778_v18 = vld [vmem:[#allocation9 + $0x310] sm:$0xff]  ;;  %v4789_v25 = vld [vmem:[#allocation9 + $0x368] sm:$0xff]  ;;  %v4787_v24 = vld [vmem:[#allocation9 + $0x358] sm:$0xff] }
 0x9e2   :  { %v5001_v12 = vld [vmem:[#allocation9 + $0x428] sm:$0xff] }
 0x9e3   :  { %7514 = vmatpush1.bf16.msra.mxu1 %v7513_v34  ;;  %7578 = vmatpush1.bf16.msra.mxu0 %v7577_v36  ;;  %v4756_v34 = vld [vmem:[#allocation9 + $0x260] sm:$0xff]  ;;  %v7531_v36 = vpack.c.bf16 %v4757_v26, %v4753_v39  ;;  %v4791_v39 = vld [vmem:[#allocation9 + $0x378] sm:$0xff] }
 0x9e4   :  { %7516 = vmatprep.subr.bf16.mxu1 %v7515_v41  ;;  %7580 = vmatprep.subr.bf16.mxu0 %v7579_v42  ;;  %v4758_v41 = vld [vmem:[#allocation9 + $0x270] sm:$0xff]  ;;  %v4761_v42 = vld [vmem:[#allocation9 + $0x288] sm:$0xff]  ;;  %v7533_v49 = vpack.c.bf16 %v4756_v34, %v4752_v32  ;;  %v7611_v32 = vpack.c.bf16 %v4791_v39, %v4787_v24 }
 0x9e5   :  { %v7597_v38 = vpack.c.bf16 %v4758_v41, %v4754_v40  ;;  %v4786_v34 = vld [vmem:[#allocation9 + $0x350] sm:$0xff]  ;;  %v4797_v40 = vld [vmem:[#allocation9 + $0x3a8] sm:$0xff]  ;;  %v4795_v41 = vld [vmem:[#allocation9 + $0x398] sm:$0xff] }
 0x9e6   :  { %v5009_v24 = vld [vmem:[#allocation9 + $0x468] sm:$0xff] }
 0x9e7   :  { %7518 = vmatpush1.bf16.msra.mxu1 %v7517_v47  ;;  %7582 = vmatpush1.bf16.msra.mxu0 %v7581_v8  ;;  %v4764_v47 = vld [vmem:[#allocation9 + $0x2a0] sm:$0xff]  ;;  %v7535_v8 = vpack.c.bf16 %v4765_v45, %v4761_v42  ;;  %v4799_v42 = vld [vmem:[#allocation9 + $0x3b8] sm:$0xff] }
 0x9e8   :  { %7520 = vmatprep.subr.bf16.mxu1 %v7519_v55  ;;  %7584 = vmatprep.subr.bf16.mxu0 %v7583_v57  ;;  %v4766_v55 = vld [vmem:[#allocation9 + $0x2b0] sm:$0xff]  ;;  %v4769_v57 = vld [vmem:[#allocation9 + $0x2c8] sm:$0xff]  ;;  %v7537_v59 = vpack.c.bf16 %v4764_v47, %v4760_v46  ;;  %v7615_v46 = vpack.c.bf16 %v4799_v42, %v4795_v41  ;;  %v5012_v41 = vld [vmem:[#allocation9 + $0x480] sm:$0xff] }
 0x9e9   :  { %v7601_v60 = vpack.c.bf16 %v4766_v55, %v4762_v52  ;;  %v4794_v47 = vld [vmem:[#allocation9 + $0x390] sm:$0xff]  ;;  %v4805_v52 = vld [vmem:[#allocation9 + $0x3e8] sm:$0xff]  ;;  %v4803_v55 = vld [vmem:[#allocation9 + $0x3d8] sm:$0xff] }
 0x9ea   :  { %v5016_v42 = vld [vmem:[#allocation9 + $0x4a0] sm:$0xff] }
 0x9eb   :  { %7522 = vmatpush1.bf16.msra.mxu1 %v7521_v0  ;;  %7586 = vmatpush1.bf16.msra.mxu0 %v7585_v62  ;;  %v4772_v0 = vld [vmem:[#allocation9 + $0x2e0] sm:$0xff]  ;;  %v7539_v62 = vpack.c.bf16 %v4773_v6, %v4769_v57  ;;  %v4807_v57 = vld [vmem:[#allocation9 + $0x3f8] sm:$0xff] }
 0x9ec   :  { %7524 = vmatprep.subr.bf16.mxu1 %v7523_v22  ;;  %7588 = vmatprep.subr.bf16.mxu0 %v7587_v1  ;;  %v4774_v22 = vld [vmem:[#allocation9 + $0x2f0] sm:$0xff]  ;;  %v4777_v1 = vld [vmem:[#allocation9 + $0x308] sm:$0xff]  ;;  %v7541_v9 = vpack.c.bf16 %v4772_v0, %v4768_v61  ;;  %v4804_v61 = vld [vmem:[#allocation9 + $0x3e0] sm:$0xff] }
 0x9ed   :  { %v7605_v14 = vpack.c.bf16 %v4774_v22, %v4770_v5  ;;  %v4802_v0 = vld [vmem:[#allocation9 + $0x3d0] sm:$0xff]  ;;  %v8055_v22 = vld [vmem:[%s8568_s2] ss:$0 sm:$0xff] }
 0x9ef   :  { %7526 = vmatpush1.bf16.msra.mxu1 %v7525_v30  ;;  %7590 = vmatpush1.bf16.msra.mxu0 %v7589_v17  ;;  %v4780_v30 = vld [vmem:[#allocation9 + $0x320] sm:$0xff]  ;;  %v7543_v17 = vpack.c.bf16 %v4781_v3, %v4777_v1  ;;  %v215_v1 = vadd.f32 %v8055_v22, %v8301_v37  ;;  %v4997_v3 = vld [vmem:[#allocation9 + $0x408] sm:$0xff] }
 0x9f0   :  { %7528 = vmatprep.subr.bf16.mxu1 %v7527_v20  ;;  %7592 = vmatprep.subr.bf16.mxu0 %v7591_v21  ;;  %v4782_v20 = vld [vmem:[#allocation9 + $0x330] sm:$0xff]  ;;  %v4785_v21 = vld [vmem:[#allocation9 + $0x348] sm:$0xff]  ;;  %v7545_v26 = vpack.c.bf16 %v4780_v30, %v4776_v16  ;;  %v4999_v16 = vld [vmem:[#allocation9 + $0x418] sm:$0xff] }
 0x9f1   :  { %v7609_v27 = vpack.c.bf16 %v4782_v20, %v4778_v18  ;;  %v5003_v30 = vld [vmem:[#allocation9 + $0x438] sm:$0xff]  ;;  %v4998_v18 = vld [vmem:[#allocation9 + $0x410] sm:$0xff]  ;;  %v5004_v37 = vld [vmem:[#allocation9 + $0x440] sm:$0xff] }
 0x9f2   :  { %v5002_v20 = vld [vmem:[#allocation9 + $0x430] sm:$0xff] }
 0x9f3   :  { %7530 = vmatpush1.bf16.msra.mxu1 %v7529_v29  ;;  %7594 = vmatpush1.bf16.msra.mxu0 %v7593_v31  ;;  %v4788_v29 = vld [vmem:[#allocation9 + $0x360] sm:$0xff]  ;;  %v7547_v31 = vpack.c.bf16 %v4789_v25, %v4785_v21  ;;  %v7689_v21 = vpack.c.bf16 %v5002_v20, %v4998_v18  ;;  %v5005_v25 = vld [vmem:[#allocation9 + $0x448] sm:$0xff] }
 0x9f4   :  { %7532 = vmatprep.subr.bf16.mxu1 %v7531_v36  ;;  %7596 = vmatprep.subr.bf16.mxu0 %v7595_v53  ;;  %v4790_v36 = vld [vmem:[#allocation9 + $0x370] sm:$0xff]  ;;  %v4793_v53 = vld [vmem:[#allocation9 + $0x388] sm:$0xff]  ;;  %v7549_v45 = vpack.c.bf16 %v4788_v29, %v4784_v28  ;;  %v7627_v39 = vpack.c.bf16 %v5009_v24, %v5005_v25  ;;  %v5011_v28 = vld [vmem:[#allocation9 + $0x478] sm:$0xff] }
 0x9f5   :  { %v7613_v43 = vpack.c.bf16 %v4790_v36, %v4786_v34  ;;  %v5010_v34 = vld [vmem:[#allocation9 + $0x470] sm:$0xff]  ;;  %v5013_v36 = vld [vmem:[#allocation9 + $0x488] sm:$0xff]  ;;  %v5040_v25 = vld [vmem:[#allocation9 + $0x560] sm:$0xff] }
 0x9f6   :  { %v5041_v18 = vld [vmem:[#allocation9 + $0x568] sm:$0xff]  ;;  %v5039_v24 = vld [vmem:[#allocation9 + $0x558] sm:$0xff] }
 0x9f7   :  { %7534 = vmatpush1.bf16.msra.mxu1 %v7533_v49  ;;  %7598 = vmatpush1.bf16.msra.mxu0 %v7597_v38  ;;  %v4796_v49 = vld [vmem:[#allocation9 + $0x3a0] sm:$0xff]  ;;  %v7551_v38 = vpack.c.bf16 %v4797_v40, %v4793_v53  ;;  %v5017_v40 = vld [vmem:[#allocation9 + $0x4a8] sm:$0xff] }
 0x9f8   :  { %7536 = vmatprep.subr.bf16.mxu1 %v7535_v8  ;;  %7600 = vmatprep.subr.bf16.mxu0 %v7599_v51  ;;  %v4798_v8 = vld [vmem:[#allocation9 + $0x3b0] sm:$0xff]  ;;  %v4801_v51 = vld [vmem:[#allocation9 + $0x3c8] sm:$0xff]  ;;  %v7553_v6 = vpack.c.bf16 %v4796_v49, %v4792_v44  ;;  %v5015_v44 = vld [vmem:[#allocation9 + $0x498] sm:$0xff] }
 0x9f9   :  { %v7617_v58 = vpack.c.bf16 %v4798_v8, %v4794_v47  ;;  %v5019_v49 = vld [vmem:[#allocation9 + $0x4b8] sm:$0xff]  ;;  %v5018_v47 = vld [vmem:[#allocation9 + $0x4b0] sm:$0xff]  ;;  %v5021_v8 = vld [vmem:[#allocation9 + $0x4c8] sm:$0xff] }
 0x9fb   :  { %7538 = vmatpush1.bf16.msra.mxu1 %v7537_v59  ;;  %7602 = vmatpush1.bf16.msra.mxu0 %v7601_v60  ;;  %v7555_v59 = vpack.c.bf16 %v4805_v52, %v4801_v51  ;;  %v7619_v60 = vpack.c.bf16 %v4807_v57, %v4803_v55  ;;  %v5025_v51 = vld [vmem:[#allocation9 + $0x4e8] sm:$0xff]  ;;  %v5020_v57 = vld [vmem:[#allocation9 + $0x4c0] sm:$0xff] }
 0x9fc   :  { %7540 = vmatprep.subr.bf16.mxu1 %v7539_v62  ;;  %7604 = vmatprep.subr.bf16.mxu0 %v7603_v63  ;;  %v4806_v62 = vld [vmem:[#allocation9 + $0x3f0] sm:$0xff]  ;;  %v7557_v63 = vpack.c.bf16 %v4804_v61, %v4800_v11  ;;  %v7635_v55 = vpack.c.bf16 %v5025_v51, %v5021_v8  ;;  %v5027_v11 = vld [vmem:[#allocation9 + $0x4f8] sm:$0xff]  ;;  %v5052_v8 = vld [vmem:[#allocation9 + $0x5c0] sm:$0xff] }
 0x9fd   :  { %v7621_v5 = vpack.c.bf16 %v4806_v62, %v4802_v0  ;;  %v5029_v62 = vld [vmem:[#allocation9 + $0x508] sm:$0xff]  ;;  %v5056_v51 = vld [vmem:[#allocation9 + $0x5e0] sm:$0xff] }
 0x9ff   :  { %7542 = vmatpush1.bf16.msra.mxu1 %v7541_v9  ;;  %7606 = vmatpush1.bf16.msra.mxu0 %v7605_v14  ;;  %v7623_v9 = vpack.c.bf16 %v5001_v12, %v4997_v3  ;;  %v5000_v14 = vld [vmem:[#allocation9 + $0x420] sm:$0xff]  ;;  %v5031_v12 = vld [vmem:[#allocation9 + $0x518] sm:$0xff] }
 0xa00   :  { %7544 = vmatprep.subr.bf16.mxu1 %v7543_v17  ;;  %7608 = vmatprep.subr.bf16.mxu0 %v7607_v48  ;;  %v7625_v17 = vpack.c.bf16 %v5000_v14, %v4996_v7  ;;  %v7687_v48 = vpack.c.bf16 %v5003_v30, %v4999_v16  ;;  %v5032_v3 = vld [vmem:[#allocation9 + $0x520] sm:$0xff]  ;;  %v5035_v7 = vld [vmem:[#allocation9 + $0x538] sm:$0xff]  ;;  %v5030_v16 = vld [vmem:[#allocation9 + $0x510] sm:$0xff] }
 0xa01   :  { %v5034_v30 = vld [vmem:[#allocation9 + $0x530] sm:$0xff] }
 0xa03   :  { %7546 = vmatpush1.bf16.msra.mxu1 %v7545_v26  ;;  %7610 = vmatpush1.bf16.msra.mxu0 %v7609_v27  ;;  %v5008_v26 = vld [vmem:[#allocation9 + $0x460] sm:$0xff]  ;;  %v5007_v27 = vld [vmem:[#allocation9 + $0x458] sm:$0xff] }
 0xa04   :  { %7548 = vmatprep.subr.bf16.mxu1 %v7547_v31  ;;  %7612 = vmatprep.subr.bf16.mxu0 %v7611_v32  ;;  %v7629_v29 = vpack.c.bf16 %v5008_v26, %v5004_v37  ;;  %v7691_v31 = vpack.c.bf16 %v5011_v28, %v5007_v27  ;;  %v5006_v32 = vld [vmem:[#allocation9 + $0x450] sm:$0xff] }
 0xa05   :  { %v7693_v53 = vpack.c.bf16 %v5010_v34, %v5006_v32  ;;  %v5038_v26 = vld [vmem:[#allocation9 + $0x550] sm:$0xff]  ;;  %v5049_v32 = vld [vmem:[#allocation9 + $0x5a8] sm:$0xff] }
 0xa06   :  { %v5042_v27 = vld [vmem:[#allocation9 + $0x570] sm:$0xff] }
 0xa07   :  { %7550 = vmatpush1.bf16.msra.mxu1 %v7549_v45  ;;  %7614 = vmatpush1.bf16.msra.mxu0 %v7613_v43  ;;  %v7631_v45 = vpack.c.bf16 %v5017_v40, %v5013_v36  ;;  %v7633_v43 = vpack.c.bf16 %v5016_v42, %v5012_v41  ;;  %v5044_v36 = vld [vmem:[#allocation9 + $0x580] sm:$0xff]  ;;  %v5047_v40 = vld [vmem:[#allocation9 + $0x598] sm:$0xff] }
 0xa08   :  { %7552 = vmatprep.subr.bf16.mxu1 %v7551_v38  ;;  %7616 = vmatprep.subr.bf16.mxu0 %v7615_v46  ;;  %v5014_v38 = vld [vmem:[#allocation9 + $0x490] sm:$0xff]  ;;  %v7695_v46 = vpack.c.bf16 %v5019_v49, %v5015_v44  ;;  %v5051_v42 = vld [vmem:[#allocation9 + $0x5b8] sm:$0xff] }
 0xa09   :  { %v7697_v52 = vpack.c.bf16 %v5018_v47, %v5014_v38  ;;  %v7711_v44 = vpack.c.bf16 %v5051_v42, %v5047_v40  ;;  %v5053_v38 = vld [vmem:[#allocation9 + $0x5c8] sm:$0xff]  ;;  %v5082_v40 = vld [vmem:[#allocation9 + $0x6b0] sm:$0xff] }
 0xa0b   :  { %7554 = vmatpush1.bf16.msra.mxu1 %v7553_v6  ;;  %7618 = vmatpush1.bf16.msra.mxu0 %v7617_v58  ;;  %v5024_v6 = vld [vmem:[#allocation9 + $0x4e0] sm:$0xff]  ;;  %v5023_v58 = vld [vmem:[#allocation9 + $0x4d8] sm:$0xff] }
 0xa0c   :  { %7556 = vmatprep.subr.bf16.mxu1 %v7555_v59  ;;  %7620 = vmatprep.subr.bf16.mxu0 %v7619_v60  ;;  %v5022_v59 = vld [vmem:[#allocation9 + $0x4d0] sm:$0xff]  ;;  %v7637_v61 = vpack.c.bf16 %v5024_v6, %v5020_v57  ;;  %v7699_v0 = vpack.c.bf16 %v5027_v11, %v5023_v58  ;;  %v5059_v57 = vld [vmem:[#allocation9 + $0x5f8] sm:$0xff] }
 0xa0d   :  { %v5026_v60 = vld [vmem:[#allocation9 + $0x4f0] sm:$0xff] }
 0xa0e   :  { %v7701_v22 = vpack.c.bf16 %v5026_v60, %v5022_v59  ;;  %v5054_v6 = vld [vmem:[#allocation9 + $0x5d0] sm:$0xff]  ;;  %v5061_v60 = vld [vmem:[#allocation9 + $0x608] sm:$0xff] }
 0xa0f   :  { %7558 = vmatpush1.bf16.msra.mxu1 %v7557_v63  ;;  %7622 = vmatpush1.bf16.msra.mxu0 %v7621_v5  ;;  %v5033_v63 = vld [vmem:[#allocation9 + $0x528] sm:$0xff]  ;;  %v5028_v5 = vld [vmem:[#allocation9 + $0x500] sm:$0xff]  ;;  %v5058_v58 = vld [vmem:[#allocation9 + $0x5f0] sm:$0xff] }
 0xa10   :  { %7624 = vmatprep.subr.bf16.mxu1 %v7623_v9  ;;  %7688 = vmatprep.subr.bf16.mxu0 %v7687_v48  ;;  %v7703_v9 = vpack.c.bf16 %v5035_v7, %v5031_v12  ;;  %v7641_v14 = vpack.c.bf16 %v5032_v3, %v5028_v5  ;;  %v5037_v48 = vld [vmem:[#allocation9 + $0x548] sm:$0xff]  ;;  %v7717_v59 = vpack.c.bf16 %v5058_v58, %v5054_v6  ;;  %v5063_v5 = vld [vmem:[#allocation9 + $0x618] sm:$0xff]  ;;  %v5062_v3 = vld [vmem:[#allocation9 + $0x610] sm:$0xff] }
 0xa11   :  { %v7643_v20 = vpack.c.bf16 %v5041_v18, %v5037_v48  ;;  %v5066_v12 = vld [vmem:[#allocation9 + $0x630] sm:$0xff]  ;;  %v5072_v48 = vld [vmem:[#allocation9 + $0x660] sm:$0xff]  ;;  %v5071_v18 = vld [vmem:[#allocation9 + $0x658] sm:$0xff] }
 0xa12   :  { %4895 = vmatmul.mubr.f32.vlgmr.msra.gmra.mrb[28].mxu1 %v215_v1  ;;  %4966 = vmatmul.mubr.f32.vlgmr.msra.gmra.mrb[36].mxu0 %v215_v1  ;;  %v7639_v1 = vpack.c.bf16 %v5033_v63, %v5029_v62  ;;  %v5060_v62 = vld [vmem:[#allocation9 + $0x600] sm:$0xff]  ;;  %v5093_v6 = vld [vmem:[#allocation9 + $0x708] sm:$0xff] }
 0xa13   :  { %7626 = vmatpush1.bf16.msra.mxu1 %v7625_v17  ;;  %7690 = vmatpush1.bf16.msra.mxu0 %v7689_v21  ;;  %v7705_v17 = vpack.c.bf16 %v5034_v30, %v5030_v16  ;;  %v5036_v21 = vld [vmem:[#allocation9 + $0x540] sm:$0xff]  ;;  %v5073_v16 = vld [vmem:[#allocation9 + $0x668] sm:$0xff] }
 0xa14   :  { %7628 = vmatprep.subr.bf16.mxu1 %v7627_v39  ;;  %7692 = vmatprep.subr.bf16.mxu0 %v7691_v31  ;;  %v7645_v37 = vpack.c.bf16 %v5040_v25, %v5036_v21  ;;  %v5043_v39 = vld [vmem:[#allocation9 + $0x578] sm:$0xff]  ;;  %v5045_v31 = vld [vmem:[#allocation9 + $0x588] sm:$0xff]  ;;  %v5064_v63 = vld [vmem:[#allocation9 + $0x620] sm:$0xff] }
 0xa15   :  { %v7707_v28 = vpack.c.bf16 %v5043_v39, %v5039_v24  ;;  %v7647_v34 = vpack.c.bf16 %v5049_v32, %v5045_v31  ;;  %v5075_v21 = vld [vmem:[#allocation9 + $0x678] sm:$0xff]  ;;  %v5070_v25 = vld [vmem:[#allocation9 + $0x650] sm:$0xff]  ;;  %v5080_v31 = vld [vmem:[#allocation9 + $0x6a0] sm:$0xff] }
 0xa16   :  { %v5074_v24 = vld [vmem:[#allocation9 + $0x670] sm:$0xff]  ;;  %v5079_v32 = vld [vmem:[#allocation9 + $0x698] sm:$0xff]  ;;  %v5097_v58 = vld [vmem:[#allocation9 + $0x728] sm:$0xff] }
 0xa17   :  { %7630 = vmatpush1.bf16.msra.mxu1 %v7629_v29  ;;  %7694 = vmatpush1.bf16.msra.mxu0 %v7693_v53  ;;  %v7709_v29 = vpack.c.bf16 %v5042_v27, %v5038_v26  ;;  %v5048_v53 = vld [vmem:[#allocation9 + $0x5a0] sm:$0xff]  ;;  %v7725_v39 = vpack.c.bf16 %v5074_v24, %v5070_v25  ;;  %v5077_v26 = vld [vmem:[#allocation9 + $0x688] sm:$0xff] }
 0xa18   :  { %7632 = vmatprep.subr.bf16.mxu1 %v7631_v45  ;;  %7696 = vmatprep.subr.bf16.mxu0 %v7695_v46  ;;  %v7649_v41 = vpack.c.bf16 %v5048_v53, %v5044_v36  ;;  %v5046_v45 = vld [vmem:[#allocation9 + $0x590] sm:$0xff]  ;;  %v5057_v46 = vld [vmem:[#allocation9 + $0x5e8] sm:$0xff]  ;;  %v5083_v36 = vld [vmem:[#allocation9 + $0x6b8] sm:$0xff] }
 0xa19   :  { %v7651_v47 = vpack.c.bf16 %v5057_v46, %v5053_v38  ;;  %v5081_v27 = vld [vmem:[#allocation9 + $0x6a8] sm:$0xff]  ;;  %v5078_v53 = vld [vmem:[#allocation9 + $0x690] sm:$0xff]  ;;  %v5088_v38 = vld [vmem:[#allocation9 + $0x6e0] sm:$0xff] }
 0xa1a   :  { %v7729_v42 = vpack.c.bf16 %v5082_v40, %v5078_v53  ;;  %v5087_v46 = vld [vmem:[#allocation9 + $0x6d8] sm:$0xff]  ;;  %v5109_v25 = vld [vmem:[#allocation9 + $0x788] sm:$0xff] }
 0xa1b   :  { %7634 = vmatpush1.bf16.msra.mxu1 %v7633_v43  ;;  %7698 = vmatpush1.bf16.msra.mxu0 %v7697_v52  ;;  %v5050_v43 = vld [vmem:[#allocation9 + $0x5b0] sm:$0xff]  ;;  %v5055_v52 = vld [vmem:[#allocation9 + $0x5d8] sm:$0xff]  ;;  %v5113_v24 = vld [vmem:[#allocation9 + $0x7a8] sm:$0xff] }
 0xa1c   :  { %7636 = vmatprep.subr.bf16.mxu1 %v7635_v55  ;;  %7700 = vmatprep.subr.bf16.mxu0 %v7699_v0  ;;  %v7713_v49 = vpack.c.bf16 %v5050_v43, %v5046_v45  ;;  %v7653_v55 = vpack.c.bf16 %v5056_v51, %v5052_v8  ;;  %v7715_v11 = vpack.c.bf16 %v5059_v57, %v5055_v52  ;;  %v5085_v45 = vld [vmem:[#allocation9 + $0x6c8] sm:$0xff]  ;;  %v5091_v8 = vld [vmem:[#allocation9 + $0x6f8] sm:$0xff]  ;;  %v5086_v51 = vld [vmem:[#allocation9 + $0x6d0] sm:$0xff] }
 0xa1d   :  { %v5089_v43 = vld [vmem:[#allocation9 + $0x6e8] sm:$0xff]  ;;  %v5090_v52 = vld [vmem:[#allocation9 + $0x6f0] sm:$0xff] }
 0xa1e   :  { %v7733_v57 = vpack.c.bf16 %v5090_v52, %v5086_v51  ;;  %v5121_v40 = vld [vmem:[#allocation9 + $0x7e8] sm:$0xff] }
 0xa1f   :  { %7638 = vmatpush1.bf16.msra.mxu1 %v7637_v61  ;;  %7702 = vmatpush1.bf16.msra.mxu0 %v7701_v22  ;;  %v5065_v61 = vld [vmem:[#allocation9 + $0x628] sm:$0xff]  ;;  %v7657_v22 = vpack.c.bf16 %v5064_v63, %v5060_v62  ;;  %v5099_v62 = vld [vmem:[#allocation9 + $0x738] sm:$0xff]  ;;  %v5094_v63 = vld [vmem:[#allocation9 + $0x710] sm:$0xff] }
 0xa20   :  { %7640 = vmatprep.subr.bf16.mxu1 %v7639_v1  ;;  %7704 = vmatprep.subr.bf16.mxu0 %v7703_v9  ;;  %v7655_v0 = vpack.c.bf16 %v5065_v61, %v5061_v60  ;;  %v5067_v1 = vld [vmem:[#allocation9 + $0x638] sm:$0xff]  ;;  %v7721_v9 = vpack.c.bf16 %v5066_v12, %v5062_v3  ;;  %v5096_v60 = vld [vmem:[#allocation9 + $0x720] sm:$0xff]  ;;  %v5101_v3 = vld [vmem:[#allocation9 + $0x748] sm:$0xff] }
 0xa21   :  { %v7719_v7 = vpack.c.bf16 %v5067_v1, %v5063_v5  ;;  %v5095_v61 = vld [vmem:[#allocation9 + $0x718] sm:$0xff]  ;;  %v5098_v5 = vld [vmem:[#allocation9 + $0x730] sm:$0xff]  ;;  %v5105_v12 = vld [vmem:[#allocation9 + $0x768] sm:$0xff] }
 0xa22   :  { %v7737_v1 = vpack.c.bf16 %v5098_v5, %v5094_v63  ;;  %v5323_v51 = vld [vmem:[#allocation10 + $0x8] sm:$0xff] }
 0xa23   :  { %7642 = vmatpush1.bf16.msra.mxu1 %v7641_v14  ;;  %7706 = vmatpush1.bf16.msra.mxu0 %v7705_v17  ;;  %v5069_v14 = vld [vmem:[#allocation9 + $0x648] sm:$0xff]  ;;  %v5068_v17 = vld [vmem:[#allocation9 + $0x640] sm:$0xff] }
 0xa24   :  { %7644 = vmatprep.subr.bf16.mxu1 %v7643_v20  ;;  %7708 = vmatprep.subr.bf16.mxu0 %v7707_v28  ;;  %v7659_v30 = vpack.c.bf16 %v5073_v16, %v5069_v14  ;;  %v7661_v20 = vpack.c.bf16 %v5072_v48, %v5068_v17  ;;  %v7663_v28 = vpack.c.bf16 %v5081_v27, %v5077_v26  ;;  %v5104_v14 = vld [vmem:[#allocation9 + $0x760] sm:$0xff]  ;;  %v5103_v16 = vld [vmem:[#allocation9 + $0x758] sm:$0xff]  ;;  %v5102_v48 = vld [vmem:[#allocation9 + $0x750] sm:$0xff] }
 0xa25   :  { %v5107_v17 = vld [vmem:[#allocation9 + $0x778] sm:$0xff]  ;;  %v5112_v26 = vld [vmem:[#allocation9 + $0x7a0] sm:$0xff] }
 0xa26   :  { %v5111_v27 = vld [vmem:[#allocation9 + $0x798] sm:$0xff] }
 0xa27   :  { %7646 = vmatpush1.bf16.msra.mxu1 %v7645_v37  ;;  %7710 = vmatpush1.bf16.msra.mxu0 %v7709_v29  ;;  %v7723_v37 = vpack.c.bf16 %v5075_v21, %v5071_v18  ;;  %v5076_v29 = vld [vmem:[#allocation9 + $0x680] sm:$0xff]  ;;  %v5106_v18 = vld [vmem:[#allocation9 + $0x770] sm:$0xff] }
 0xa28   :  { %7648 = vmatprep.subr.bf16.mxu1 %v7647_v34  ;;  %7712 = vmatprep.subr.bf16.mxu0 %v7711_v44  ;;  %v7665_v34 = vpack.c.bf16 %v5080_v31, %v5076_v29  ;;  %v7667_v44 = vpack.c.bf16 %v5089_v43, %v5085_v45  ;;  %v7741_v21 = vpack.c.bf16 %v5106_v18, %v5102_v48  ;;  %v5119_v43 = vld [vmem:[#allocation9 + $0x7d8] sm:$0xff] }
 0xa2b   :  { %7650 = vmatpush1.bf16.msra.mxu1 %v7649_v41  ;;  %7714 = vmatpush1.bf16.msra.mxu0 %v7713_v49  ;;  %v7727_v41 = vpack.c.bf16 %v5083_v36, %v5079_v32  ;;  %v5084_v49 = vld [vmem:[#allocation9 + $0x6c0] sm:$0xff]  ;;  %v5110_v32 = vld [vmem:[#allocation9 + $0x790] sm:$0xff]  ;;  %v5117_v36 = vld [vmem:[#allocation9 + $0x7c8] sm:$0xff] }
 0xa2c   :  { %7652 = vmatprep.subr.bf16.mxu1 %v7651_v47  ;;  %7716 = vmatprep.subr.bf16.mxu0 %v7715_v11  ;;  %v7669_v47 = vpack.c.bf16 %v5088_v38, %v5084_v49  ;;  %v7671_v11 = vpack.c.bf16 %v5097_v58, %v5093_v6  ;;  %v7683_v45 = vpack.c.bf16 %v5121_v40, %v5117_v36  ;;  %v5118_v49 = vld [vmem:[#allocation9 + $0x7d0] sm:$0xff] }
 0xa2f   :  { %7654 = vmatpush1.bf16.msra.mxu1 %v7653_v55  ;;  %7718 = vmatpush1.bf16.msra.mxu0 %v7717_v59  ;;  %v7731_v55 = vpack.c.bf16 %v5091_v8, %v5087_v46  ;;  %v5092_v59 = vld [vmem:[#allocation9 + $0x700] sm:$0xff] }
 0xa30   :  { %7656 = vmatprep.subr.bf16.mxu1 %v7655_v0  ;;  %7720 = vmatprep.subr.bf16.mxu0 %v7719_v7  ;;  %v7673_v0 = vpack.c.bf16 %v5096_v60, %v5092_v59  ;;  %v7675_v7 = vpack.c.bf16 %v5105_v12, %v5101_v3  ;;  %v5322_v8 = vld [vmem:[#allocation10] sm:$0xff] }
 0xa31   :  { %v8506_v52 = vpack.c.bf16 %v5323_v51, %v5322_v8 }
 0xa33   :  { %7658 = vmatpush1.bf16.msra.mxu1 %v7657_v22  ;;  %7722 = vmatpush1.bf16.msra.mxu0 %v7721_v9  ;;  %v7735_v22 = vpack.c.bf16 %v5099_v62, %v5095_v61  ;;  %v5100_v9 = vld [vmem:[#allocation9 + $0x740] sm:$0xff] }
 0xa34   :  { %7660 = vmatprep.subr.bf16.mxu1 %v7659_v30  ;;  %7724 = vmatprep.subr.bf16.mxu0 %v7723_v37  ;;  %v7677_v30 = vpack.c.bf16 %v5104_v14, %v5100_v9  ;;  %v5108_v37 = vld [vmem:[#allocation9 + $0x780] sm:$0xff] }
 0xa35   :  { %v7681_v29 = vpack.c.bf16 %v5112_v26, %v5108_v37 }
 0xa37   :  { %7662 = vmatpush1.bf16.msra.mxu1 %v7661_v20  ;;  %7726 = vmatpush1.bf16.msra.mxu0 %v7725_v39  ;;  %v7739_v20 = vpack.c.bf16 %v5107_v17, %v5103_v16  ;;  %v7679_v39 = vpack.c.bf16 %v5113_v24, %v5109_v25 }
 0xa38   :  { %7664 = vmatprep.subr.bf16.mxu1 %v7663_v28  ;;  %7728 = vmatprep.subr.bf16.mxu0 %v7727_v41  ;;  %v5115_v28 = vld [vmem:[#allocation9 + $0x7b8] sm:$0xff]  ;;  %v5116_v41 = vld [vmem:[#allocation9 + $0x7c0] sm:$0xff] }
 0xa39   :  { %v7743_v31 = vpack.c.bf16 %v5115_v28, %v5111_v27  ;;  %v4808_v28 = vld [vmem:[%s8570_s4] sm:$0xf] }
 0xa3b   :  { %7666 = vmatpush1.bf16.msra.mxu1 %v7665_v34  ;;  %7730 = vmatpush1.bf16.msra.mxu0 %v7729_v42  ;;  %v5114_v34 = vld [vmem:[#allocation9 + $0x7b0] sm:$0xff]  ;;  %v5120_v42 = vld [vmem:[#allocation9 + $0x7e0] sm:$0xff] }
 0xa3c   :  { %7668 = vmatprep.subr.bf16.mxu1 %v7667_v44  ;;  %7732 = vmatprep.subr.bf16.mxu0 %v7731_v55  ;;  %v7745_v53 = vpack.c.bf16 %v5114_v34, %v5110_v32  ;;  %v5123_v44 = vld [vmem:[#allocation9 + $0x7f8] sm:$0xff]  ;;  %v7685_v38 = vpack.c.bf16 %v5120_v42, %v5116_v41 }
 0xa3d   :  { %v7747_v46 = vpack.c.bf16 %v5123_v44, %v5119_v43  ;;  %v4821_v44 = vrot.slane %v4808_v28, %v8317_v19 }
 0xa3f   :  { %7670 = vmatpush1.bf16.msra.mxu1 %v7669_v47  ;;  %7734 = vmatpush1.bf16.msra.mxu0 %v7733_v57  ;;  %v5122_v47 = vld [vmem:[#allocation9 + $0x7f0] sm:$0xff]  ;;  %v5523_v57 = vld [vmem:[%s8570_s4 + $0x4] sm:$0xf] }
 0xa40   :  { %7672 = vmatprep.subr.bf16.mxu1 %v7671_v11  ;;  %7736 = vmatprep.subr.bf16.mxu0 %v7735_v22  ;;  %v7749_v55 = vpack.c.bf16 %v5122_v47, %v5118_v49  ;;  %v4493_v6 = vrot.slane %v5523_v57, %v8305_v2  ;;  %v4497_v58 = vrot.slane %v5523_v57, %v8310_v4 }
 0xa41   :  { %v4505_v22 = vrot.slane %v5523_v57, %v8314_v10  ;;  %v4501_v3 = vrot.slane %v5523_v57, %v8317_v19 }
 0xa43   :  { %7674 = vmatpush1.bf16.msra.mxu1 %v7673_v0  ;;  %7738 = vmatpush1.bf16.msra.mxu0 %v7737_v1 }
 0xa44   :  { %7676 = vmatprep.subr.bf16.mxu1 %v7675_v7  ;;  %7740 = vmatprep.subr.bf16.mxu0 %v7739_v20 }
 0xa47   :  { %7678 = vmatpush1.bf16.msra.mxu1 %v7677_v30  ;;  %7742 = vmatpush1.bf16.msra.mxu0 %v7741_v21 }
 0xa48   :  { %7680 = vmatprep.subr.bf16.mxu1 %v7679_v39  ;;  %7744 = vmatprep.subr.bf16.mxu0 %v7743_v31 }
 0xa4b   :  { %7682 = vmatpush1.bf16.msra.mxu1 %v7681_v29  ;;  %7746 = vmatpush1.bf16.msra.mxu0 %v7745_v53  ;;  %v4813_v29 = vrot.slane %v4808_v28, %v8305_v2 }
 0xa4c   :  { %7684 = vmatprep.subr.bf16.mxu1 %v7683_v45  ;;  %7748 = vmatprep.subr.bf16.mxu0 %v7747_v46  ;;  %v4825_v45 = vrot.slane %v4808_v28, %v8314_v10 }
 0xa4f   :  { %7686 = vmatpush1.bf16.msra.mxu1 %v7685_v38  ;;  %7750 = vmatpush1.bf16.msra.mxu0 %v7749_v55 }
 0xa50   :  { %7752 = vmatprep.subr.bf16.mxu1 %v8506_v52 }
 0xaa5   :  { %v4576_v11 = vpop.f32.mrb[26].mxu1  ;;  %v4647_v59 = vpop.f32.mrb[34].mxu0 }
 0xaa6   :  { %v4577_v60 = vadd.f32 %v4576_v11, %v4493_v6  ;;  %v4578_v61 = vpop.f32.mrb[27].mxu1  ;;  %v4649_v0 = vpop.f32.mrb[35].mxu0  ;;  %v4648_v7 = vadd.f32 %v4647_v59, %v4501_v3  ;;  %v5326_v3 = vld [vmem:[#allocation10 + $0x20] sm:$0xff] }
 0xaa7   :  { %v4579_v62 = vadd.f32 %v4578_v61, %v4497_v58  ;;  %v4650_v1 = vadd.f32 %v4649_v0, %v4505_v22  ;;  %v5324_v0 = vld [vmem:[#allocation10 + $0x10] sm:$0xff] }
 0xaa8   :  { %v5524_v63 = vmul.f32 -1.442695, %v4577_v60 }
 0xaa9   :  { %v5525_v5 = vmul.f32 -1.442695, %v4579_v62  ;;  %v5526_v12 = vmul.f32 -1.442695, %v4650_v1  ;;  %v5325_v62 = vld [vmem:[#allocation10 + $0x18] sm:$0xff] }
 0xaaa   :  { %8001 = vpow2.f32 %v5524_v63  ;;  %v7755_v1 = vpack.c.bf16 %v5325_v62, %v5324_v0 }
 0xaab   :  { %8003 = vpow2.f32 %v5525_v5 }
 0xaac   :  { %8005 = vpow2.f32 %v5526_v12  ;;  %v5327_v12 = vld [vmem:[#allocation10 + $0x28] sm:$0xff] }
 0xaad   :  { %8007 = vtanh.f32 %v4648_v7  ;;  %v7759_v7 = vpack.c.bf16 %v5327_v12, %v5326_v3 }
 0xab4   :  { %v8002_v9 = vpop.eup %8001 }
 0xab5   :  { %v8004_v14 = vpop.eup %8003  ;;  %v4655_v16 = vadd.f32 1.0, %v8002_v9  ;;  %v5329_v9 = vld [vmem:[#allocation10 + $0x38] sm:$0xff] }
 0xab6   :  { %v4661_v30 = vadd.f32 1.0, %v8004_v14  ;;  %v8006_v17 = vpop.eup %8005 }
 0xab7   :  { %8009 = vrcp.f32 %v4655_v16  ;;  %v8008_v48 = vpop.eup %8007  ;;  %v4668_v25 = vadd.f32 1.0, %v8006_v17  ;;  %v5330_v16 = vld [vmem:[#allocation10 + $0x40] sm:$0xff] }
 0xab8   :  { %8011 = vrcp.f32 %v4661_v30  ;;  %v5331_v30 = vld [vmem:[#allocation10 + $0x48] sm:$0xff] }
 0xab9   :  { %8013 = vrcp.f32 %v4668_v25  ;;  %v7767_v17 = vpack.c.bf16 %v5331_v30, %v5330_v16  ;;  %v5336_v25 = vld [vmem:[#allocation10 + $0x70] sm:$0xff] }
 0xac1   :  { %v8010_v18 = vpop.eup %8009 }
 0xac2   :  { %v8012_v20 = vpop.eup %8011  ;;  %v4672_v21 = vmul.f32 %v8010_v18, %v8008_v48  ;;  %v5332_v48 = vld [vmem:[#allocation10 + $0x50] sm:$0xff]  ;;  %v5333_v18 = vld [vmem:[#allocation10 + $0x58] sm:$0xff] }
 0xac3   :  { %v4671_v24 = vmul.f32 %v8012_v20, %v8484_v50  ;;  %v8014_v39 = vpop.eup %8013  ;;  %v4817_v50 = vrot.slane %v4808_v28, %v8310_v4  ;;  %v7771_v20 = vpack.c.bf16 %v5333_v18, %v5332_v48 }
 0xac5   :  { %v8517_v37 = vadd.f32 %v4672_v21, %v4671_v24  ;;  %v5335_v21 = vld [vmem:[#allocation10 + $0x68] sm:$0xff]  ;;  %v5337_v24 = vld [vmem:[#allocation10 + $0x78] sm:$0xff] }
 0xac7   :  { %8015 = vtanh.f32 %v8517_v37 }
 0xad1   :  { %v8016_v26 = vpop.eup %8015 }
 0xad2   :  { %v8520_v27 = vmul.f32 %v8016_v26, %v8014_v39  ;;  %v7779_v39 = vpack.c.bf16 %v5337_v24, %v5336_v25  ;;  %v5530_v26 = vld [vmem:[%s8570_s4 + $0x4] sm:$0xf] }
 0xad3   :  { %v5129_v28 = vrot.slane %v5530_v26, %v8305_v2 }
 0xad4   :  { %5210 = vmatprep.mubr.f32.mxu1 %v8520_v27  ;;  %5281 = vmatprep.mubr.f32.mxu0 %v8520_v27 }
 0xae5   :  { %v4896_v31 = vpop.f32.mrb[28].mxu1  ;;  %v4967_v32 = vpop.f32.mrb[36].mxu0 }
 0xae6   :  { %v4897_v34 = vadd.f32 %v4896_v31, %v4813_v29  ;;  %v4898_v36 = vpop.f32.mrb[29].mxu1  ;;  %v4969_v53 = vpop.f32.mrb[37].mxu0  ;;  %v4968_v38 = vadd.f32 %v4967_v32, %v4821_v44  ;;  %v5133_v29 = vrot.slane %v5530_v26, %v8310_v4 }
 0xae7   :  { %v4899_v40 = vadd.f32 %v4898_v36, %v4817_v50  ;;  %v4970_v43 = vadd.f32 %v4969_v53, %v4825_v45  ;;  %v5137_v36 = vrot.slane %v5530_v26, %v8317_v19  ;;  %v5534_v19 = vld [vmem:[%s8572_s6] ss:$0 sm:$0xff]  ;;  %s8183_s6 = smov [#allocation12]  }
 0xae8   :  { %v5527_v41 = vmul.f32 -1.442695, %v4897_v34  ;;  %s5463_s3 = sshll.u32 %s8183_s6, 4  ;;  %s5464_s3 = int_to_ptr.vmem [resolvable:$true] %s5463_s3 }
 0xae9   :  { %v5528_v42 = vmul.f32 -1.442695, %v4899_v40  ;;  %v5529_v49 = vmul.f32 -1.442695, %v4970_v43  ;;  %s8144_s28 = scalar_lea.vmem %s5464_s3, 1024  ;;  %p8149_p5 = scmp.lt.s32.totalorder %s5464_s3, %s5464_s3 }
 0xaea   :  { %8017 = vpow2.f32 %v5527_v41  ;;  %p8145_p4 = scmp.ne.s32.totalorder %s5464_s3, %s8144_s28  ;;  %p8150_p6 = scmp.lt.s32.totalorder %s8144_s28, %s8144_s28 }
 0xaeb   :  { %8019 = vpow2.f32 %v5528_v42 }
 0xaec   :  { %8021 = vpow2.f32 %v5529_v49  ;;  %p8151_p7 = por %p8150_p6, %p8149_p5 }
 0xaed   :  { %8023 = vtanh.f32 %v4968_v38 }
 0xaee   :  { %p8152_p8 = pnand %p8151_p7, %p8145_p4 }
 0xaf4   :  { %v8018_v46 = vpop.eup %8017 }
 0xaf5   :  { %v8020_v47 = vpop.eup %8019  ;;  %v4975_v8 = vadd.f32 1.0, %v8018_v46 }
 0xaf6   :  { %v4981_v51 = vadd.f32 1.0, %v8020_v47  ;;  %v8022_v55 = vpop.eup %8021 }
 0xaf7   :  { %8025 = vrcp.f32 %v4975_v8  ;;  %v8024_v57 = vpop.eup %8023  ;;  %v4988_v59 = vadd.f32 1.0, %v8022_v55 }
 0xaf8   :  { %8027 = vrcp.f32 %v4981_v51 }
 0xaf9   :  { %8029 = vrcp.f32 %v4988_v59 }
 0xb01   :  { %v8026_v6 = vpop.eup %8025 }
 0xb02   :  { %v8028_v58 = vpop.eup %8027  ;;  %v4992_v11 = vmul.f32 %v8026_v6, %v8024_v57 }
 0xb03   :  { %v4991_v60 = vmul.f32 %v8028_v58, %v8499_v23  ;;  %v8030_v63 = vpop.eup %8029  ;;  %v5328_v23 = vld [vmem:[#allocation10 + $0x30] sm:$0xff] }
 0xb04   :  { %v7763_v14 = vpack.c.bf16 %v5329_v9, %v5328_v23 }
 0xb05   :  { %v4993_v61 = vadd.f32 %v4992_v11, %v4991_v60 }
 0xb07   :  { %8031 = vtanh.f32 %v4993_v61 }
 0xb11   :  { %v8032_v5 = vpop.eup %8031 }
 0xb12   :  { %v4995_v22 = vmul.f32 %v8032_v5, %v8030_v63 }
 0xb14   :  { %5211 = vmatmul.mubr.f32.vlgmr.msra.gmra.mrb[30].mxu1 %v4995_v22  ;;  %5282 = vmatmul.mubr.f32.vlgmr.msra.gmra.mrb[38].mxu0 %v4995_v22 }
 0xb15   :  { %7754 = vmatpush3.bf16.msra.mxu1 %v8506_v52  ;;  %5659 = vmatprep.mubr.f32.mxu1 %v8337_v35  ;;  %v5334_v52 = vld [vmem:[#allocation10 + $0x60] sm:$0xff] }
 0xb16   :  { %7756 = vmatprep.subr.bf16.mxu1 %v7755_v1  ;;  %v7775_v35 = vpack.c.bf16 %v5335_v21, %v5334_v52 }
 0xb19   :  { %7758 = vmatpush3.bf16.msra.mxu1 %v7755_v1 }
 0xb1a   :  { %7760 = vmatprep.subr.bf16.mxu1 %v7759_v7 }
 0xb1d   :  { %7762 = vmatpush3.bf16.msra.mxu1 %v7759_v7 }
 0xb1e   :  { %7764 = vmatprep.subr.bf16.mxu1 %v7763_v14 }
 0xb21   :  { %7766 = vmatpush3.bf16.msra.mxu1 %v7763_v14 }
 0xb22   :  { %7768 = vmatprep.subr.bf16.mxu1 %v7767_v17 }
 0xb25   :  { %7770 = vmatpush3.bf16.msra.mxu1 %v7767_v17 }
 0xb26   :  { %7772 = vmatprep.subr.bf16.mxu1 %v7771_v20 }
 0xb29   :  { %7774 = vmatpush3.bf16.msra.mxu1 %v7771_v20 }
 0xb2a   :  { %7776 = vmatprep.subr.bf16.mxu1 %v7775_v35 }
 0xb2d   :  { %7778 = vmatpush3.bf16.msra.mxu1 %v7775_v35 }
 0xb2e   :  { %7780 = vmatprep.subr.bf16.mxu1 %v7779_v39 }
 0xb31   :  { %7782 = vmatpush3.bf16.msra.mxu1 %v7779_v39 }
 0xb34   :  { %5660 = vmatmul.mubr.f32.vlgmr.msra.gmra.mrb[32].mxu1 %v8367_v15 }
 0xb35   :  { %5662 = vmatprep.mubr.f32.mxu1 %v8397_v56 }
 0xb38   :  { %5663 = vmatmul.mubr.f32.gmra.mrb[34].mxu1 %v8427_v33 }
 0xb39   :  { %5665 = vmatprep.mubr.f32.mxu1 %v8457_v13 }
 0xb3c   :  { %5666 = vmatmul.mubr.f32.gmra.mrb[36].mxu1 %v8487_v54  ;;  %v5141_v54 = vrot.slane %v5530_v26, %v8314_v10 }
 0xb3d   :  { %5668 = vmatprep.mubr.f32.mxu1 %v8520_v27 }
 0xbe7   :  { %v5212_v50 = vpop.f32.mrb[30].mxu1  ;;  %v5283_v15 = vpop.f32.mrb[38].mxu0 }
 0xbe8   :  { %v5213_v31 = vadd.f32 %v5212_v50, %v5129_v28  ;;  %v5214_v56 = vpop.f32.mrb[31].mxu1  ;;  %v5285_v32 = vpop.f32.mrb[39].mxu0  ;;  %v5284_v40 = vadd.f32 %v5283_v15, %v5137_v36 }
 0xbe9   :  { %v5215_v33 = vadd.f32 %v5214_v56, %v5133_v29  ;;  %v5286_v27 = vadd.f32 %v5285_v32, %v5141_v54 }
 0xbea   :  { %v5531_v34 = vmul.f32 -1.442695, %v5213_v31 }
 0xbeb   :  { %v5532_v13 = vmul.f32 -1.442695, %v5215_v33  ;;  %v5533_v53 = vmul.f32 -1.442695, %v5286_v27 }
 0xbec   :  { %8033 = vpow2.f32 %v5531_v34 }
 0xbed   :  { %8035 = vpow2.f32 %v5532_v13 }
 0xbee   :  { %8037 = vpow2.f32 %v5533_v53 }
 0xbef   :  { %8039 = vtanh.f32 %v5284_v40 }
 0xbf6   :  { %v8034_v2 = vpop.eup %8033 }
 0xbf7   :  { %v8036_v41 = vpop.eup %8035  ;;  %v5291_v4 = vadd.f32 1.0, %v8034_v2 }
 0xbf8   :  { %v5297_v42 = vadd.f32 1.0, %v8036_v41  ;;  %v8038_v45 = vpop.eup %8037 }
 0xbf9   :  { %8041 = vrcp.f32 %v5291_v4  ;;  %v8040_v43 = vpop.eup %8039  ;;  %v5304_v38 = vadd.f32 1.0, %v8038_v45 }
 0xbfa   :  { %8043 = vrcp.f32 %v5297_v42 }
 0xbfb   :  { %8045 = vrcp.f32 %v5304_v38 }
 0xc03   :  { %v8042_v44 = vpop.eup %8041 }
 0xc04   :  { %v8044_v49 = vpop.eup %8043  ;;  %v5308_v10 = vmul.f32 %v8042_v44, %v8040_v43 }
 0xc05   :  { %v5307_v46 = vmul.f32 %v8044_v49, %v8517_v37  ;;  %v8046_v62 = vpop.eup %8045 }
 0xc07   :  { %v5661_v47 = vpop.f32.mrb[32].mxu1  ;;  %v5309_v8 = vadd.f32 %v5308_v10, %v5307_v46 }
 0xc08   :  { %v5417_v51 = vadd.f32 %v5661_v47, %v5534_v19  ;;  %v5411_v55 = vpop.f32.mrb[33].mxu1 }
 0xc09   :  { %v5412_v57 = vadd.f32 %v5534_v19, %v5411_v55  ;;  %8047 = vtanh.f32 %v5309_v8 }
 0xc0a   :  { %5451 = vst [vmem:[#allocation12 + $0x8] sm:$0xff] %v5417_v51 }
 0xc0b   :  { %5450 = vst [vmem:[#allocation12] sm:$0xff] %v5412_v57  ;;  %v5664_v6 = vpop.f32.mrb[34].mxu1 }
 0xc0c   :  { %v5427_v58 = vadd.f32 %v5664_v6, %v5534_v19  ;;  %v5421_v11 = vpop.f32.mrb[35].mxu1 }
 0xc0d   :  { %v5422_v59 = vadd.f32 %v5534_v19, %v5421_v11 }
 0xc0e   :  { %5453 = vst [vmem:[#allocation12 + $0x18] sm:$0xff] %v5427_v58 }
 0xc0f   :  { %5452 = vst [vmem:[#allocation12 + $0x10] sm:$0xff] %v5422_v59  ;;  %v5667_v37 = vpop.f32.mrb[36].mxu1 }
 0xc10   :  { %v5437_v60 = vadd.f32 %v5667_v37, %v5534_v19  ;;  %v5431_v61 = vpop.f32.mrb[37].mxu1 }
 0xc11   :  { %v5432_v0 = vadd.f32 %v5534_v19, %v5431_v61 }
 0xc12   :  { %5455 = vst [vmem:[#allocation12 + $0x28] sm:$0xff] %v5437_v60 }
 0xc13   :  { %v8048_v63 = vpop.eup %8047  ;;  %5454 = vst [vmem:[#allocation12 + $0x20] sm:$0xff] %v5432_v0 }
 0xc14   :  { %v5311_v5 = vmul.f32 %v8048_v63, %v8046_v62 }
 0xc16   :  { %5669 = vmatmul.mubr.f32.gmra.mrb[38].mxu1 %v5311_v5 }
 0xce9   :  { %v5670_v22 = vpop.f32.mrb[38].mxu1 }
 0xcea   :  { %v5447_v1 = vadd.f32 %v5670_v22, %v5534_v19  ;;  %v5441_v3 = vpop.f32.mrb[39].mxu1 }
 0xceb   :  { %v5442_v12 = vadd.f32 %v5534_v19, %v5441_v3 }
 0xcec   :  { %5457 = vst [vmem:[#allocation12 + $0x38] sm:$0xff] %v5447_v1 }
 0xced   :  { %5456 = vst [vmem:[#allocation12 + $0x30] sm:$0xff] %v5442_v12 }
 0xcee   :  { %8155 = shalt.err (!%p8152_p8)
}
 0xcef   :  { %s8156_s30 = scalar_lea.hbm %s8573_s7, 1024 }
 0xcf0   :  { %p8157_p9 = scmp.ne.s32.totalorder %s8573_s7, %s8156_s30  ;;  %p8160_p10 = scmp.lt.u32.totalorder %s8156_s30, %s8573_s7 }
 0xcf2   :  { %p8162_p11 = pnand %p8160_p10, %p8157_p9 }
 0xcf4   :  { %8165 = shalt.err (!%p8162_p11)
}
 0xcf5   :  { %5469 = dma.vmem_to_hbm [thread:$0]  %s5464_s3, 1024, %s8573_s7, [#allocation6], %s8176_s13, %s8176_s13, %s8177_s14  }
 0xcf6   :  { %8172 = dma.done.wait [#allocation6], 1024  }
 0xcf7   :  { %8173 = vsyncadd [#allocation6], 4294966272 }
 0xcf8   :  { %5473 = vsyncpa [#allocation5], 1 }
 0xcf9   :  { %5474 = vsyncpa [#allocation8], 1 }
 0xcfa   :  { %5475 = vsyncpa [#allocation11], 1 }
 0xcfb   :  { %5476 = vsyncpa [#allocation6], 1 }

</bundles_post_ra>
